<compile_context>
chip_gen: v7x
topology: tpu7x:2x2x1
jax: 0.10.0
libtpu: 0.0.40
codegen_flags: <defaults>
</compile_context>

<pallas_src>
import math
import functools

import jax
import jax.numpy as jnp
from jax.experimental import pallas as pl
from jax.experimental.pallas import tpu as pltpu


def _swap_halves(t):
    """rotate_half's data movement only: [x1, x2] -> [x2, x1] along the last axis.

    The sign of rotate_half is folded into the sin table by the wrapper.
    NOTE: pltpu.roll(t, hd//2, axis=-1) would keep this on the XLU slot; the concat
    form is kept because it is guaranteed to lower for sub-128-lane head dims.
    """
    h = t.shape[-1] // 2
    return jnp.concatenate([t[..., h:], t[..., :h]], axis=-1)


# --------------- Kernel 1: fused QKV projection + RoPE (tiled over batch, rows) ---------------
def qkv_rope_kernel(x_ref, wq_ref, wk_ref, wv_ref, cos_ref, sin_ref,
                    q2_ref, k_ref, v_ref):
    # x: (TS, H) bf16; weights bf16 MXU operands; accumulation f32.
    x = x_ref[0]
    cdims = (((1,), (1,)), ((), ()))  # contract in-features directly (== x @ W.T, no transpose)

    q = jax.lax.dot_general(x, wq_ref[...], cdims, preferred_element_type=jnp.float32)  # (TS, H)
    k = jax.lax.dot_general(x, wk_ref[...], cdims, preferred_element_type=jnp.float32)  # (TS, hd)
    v = jax.lax.dot_general(x, wv_ref[...], cdims, preferred_element_type=jnp.float32)  # (TS, hd)

    cos = cos_ref[...]            # (TS, hd) f32
    sin = sin_ref[...]            # (TS, hd) f32, rotate_half's sign folded in
    hd = k.shape[-1]
    nh = q.shape[-1] // hd

    # Shared multi-query K/V, bf16 writeback (kernel 2 consumes bf16).
    k_ref[0] = (k * cos + _swap_halves(k) * sin).astype(jnp.bfloat16)
    v_ref[0] = v.astype(jnp.bfloat16)

    # Q RoPE per head, stored heads-major: q2[b, h, s, :].
    # (1/sqrt(hd) is already folded into wq, so no extra scaling here.)
    # TODO(synk): at production nh (71) replace this unrolled loop with a single
    # pltpu.einshape / reshape+transpose; at demo nh=4 it is negligible.
    for h in range(nh):
        qh = q[:, h * hd:(h + 1) * hd]
        q2_ref[0, h] = (qh * cos + _swap_halves(qh) * sin).astype(jnp.bfloat16)


# --------- Kernel 2: flash MQA attention (Q and KV tiled) fused with the dense projection ---------
def mqa_flash_dense_kernel(q2_ref, k_ref, v_ref, wd_ref, o_ref,
                           m_sc, l_sc, acc_sc):
    qi = pl.program_id(1)
    kj = pl.program_id(2)
    nh, tq, hd = q2_ref.shape[1], q2_ref.shape[2], q2_ref.shape[3]
    tkv = k_ref.shape[1]
    m_rows = nh * tq

    @pl.when(kj == 0)
    def _init():
        m_sc[...] = jnp.full_like(m_sc, -jnp.inf)
        l_sc[...] = jnp.zeros_like(l_sc)
        acc_sc[...] = jnp.zeros_like(acc_sc)

    q_start = qi * tq
    k_start = kj * tkv

    # Causal block skipping: a KV tile whose first key position is beyond the last
    # query position of this query tile is fully masked -> skip all compute.
    @pl.when(k_start <= q_start + (tq - 1))
    def _compute():
        # (nh, tq, hd) -> (nh*tq, hd): pure leading-dim merge, rows ordered (head, q).
        q2 = q2_ref[0].reshape(m_rows, hd)          # bf16, RoPE + 1/sqrt(hd) already applied
        k = k_ref[0]                                # (tkv, hd) bf16
        v = v_ref[0]                                # (tkv, hd) bf16

        # Scores for ALL heads at once against the shared multi-query K.
        s = jax.lax.dot_general(q2, k, (((1,), (1,)), ((), ())),
                                preferred_element_type=jnp.float32)   # (m_rows, tkv)

        # Causal mask with narrow index math: (m_rows,1) query pos vs (1,tkv) key pos.
        qpos = q_start + (jax.lax.broadcasted_iota(jnp.int32, (m_rows, 1), 0) % tq)
        kpos = k_start + jax.lax.broadcasted_iota(jnp.int32, (1, tkv), 1)
        s = jnp.where(kpos <= qpos, s, jnp.finfo(jnp.float32).min)

        # Online softmax (stats in f32).
        m_prev = m_sc[...]
        m_new = jnp.maximum(m_prev, jnp.max(s, axis=-1, keepdims=True))
        alpha = jnp.exp(m_prev - m_new)
        p = jnp.exp(s - m_new)
        l_sc[...] = alpha * l_sc[...] + jnp.sum(p, axis=-1, keepdims=True)
        acc_sc[...] = alpha * acc_sc[...] + jax.lax.dot_general(
            p.astype(jnp.bfloat16), v, (((1,), (0,)), ((), ())),
            preferred_element_type=jnp.float32)
        m_sc[...] = m_new

    @pl.when(kj == pl.num_programs(2) - 1)
    def _finalize():
        ctx = acc_sc[...] * pl.reciprocal(l_sc[...], approx=True)     # (nh*tq, hd)
        # Heads -> lanes: (nh*tq, hd) -> (tq, H).  This IS the module's
        # permute(0,2,1,3).reshape, done in VMEM (no HBM transpose).
        # TODO(synk): at production nh use pltpu.einshape instead of the unrolled concat.
        ctx_flat = jnp.concatenate(
            [ctx[h * tq:(h + 1) * tq, :] for h in range(nh)], axis=1)
        # Fused dense projection; lane-dense (tq, H) store.
        o_ref[0] = jax.lax.dot_general(ctx_flat.astype(jnp.bfloat16), wd_ref[...],
                                       (((1,), (1,)), ((), ())),
                                       preferred_element_type=jnp.float32)


# ---------------------------------------------- Wrapper ----------------------------------------------
@functools.partial(jax.jit, static_argnames=("q_block", "kv_block"))
def attention_forward(x, wq, wk, wv, wd, cos, sin, *, q_block=256, kv_block=256):
    B, S, H = x.shape
    hd = wk.shape[0]
    nh = H // hd
    assert nh * hd == H
    q_block = min(q_block, S)
    kv_block = min(kv_block, S)
    assert S % q_block == 0 and S % kv_block == 0
    assert q_block % 8 == 0 and kv_block % 8 == 0

    # Fold rotate_half's sign into the sin table; fold 1/sqrt(hd) into wq.
    sign = jnp.concatenate([jnp.full((hd // 2,), -1.0, jnp.float32),
                            jnp.ones((hd // 2,), jnp.float32)])
    sin_signed = sin * sign
    scale = 1.0 / math.sqrt(hd)

    x_b = x.astype(jnp.bfloat16)                 # halve activation DMA, drop in-kernel cast
    wq_b = (wq * scale).astype(jnp.bfloat16)     # attention scale folded into Q projection
    wk_b = wk.astype(jnp.bfloat16)
    wv_b = wv.astype(jnp.bfloat16)
    wd_b = wd.astype(jnp.bfloat16)

    # 56 MiB keeps us inside v7x's 64 MiB physical VMEM; ample for v5e/v6e too
    # (raise towards ~96 MiB there when sweeping larger KV tiles / Buffered(3)).
    cparams1 = pltpu.CompilerParams(dimension_semantics=("parallel", "parallel"),
                                    vmem_limit_bytes=56 * 1024 * 1024)
    cparams2 = pltpu.CompilerParams(dimension_semantics=("parallel", "parallel", "arbitrary"),
                                    vmem_limit_bytes=56 * 1024 * 1024)

    # ---- Kernel 1: fused QKV projection + RoPE, tiled over (batch, rows) ----
    # TODO(synk): at real Falcon sizes (H=4544) the (H,H) wq/wd additionally need
    # K/N tiling of the projection matmuls (extra grid axis over out-features).
    q2, k_rot, v = pl.pallas_call(
        qkv_rope_kernel,
        out_shape=(jax.ShapeDtypeStruct((B, nh, S, hd), jnp.bfloat16),
                   jax.ShapeDtypeStruct((B, S, hd), jnp.bfloat16),
                   jax.ShapeDtypeStruct((B, S, hd), jnp.bfloat16)),
        grid=(B, S // q_block),
        in_specs=[pl.BlockSpec((1, q_block, H), lambda b, si: (b, si, 0)),
                  pl.BlockSpec((H, H), lambda b, si: (0, 0)),
                  pl.BlockSpec((hd, H), lambda b, si: (0, 0)),
                  pl.BlockSpec((hd, H), lambda b, si: (0, 0)),
                  pl.BlockSpec((q_block, hd), lambda b, si: (si, 0)),
                  pl.BlockSpec((q_block, hd), lambda b, si: (si, 0))],
        out_specs=(pl.BlockSpec((1, nh, q_block, hd), lambda b, si: (b, 0, si, 0)),
                   pl.BlockSpec((1, q_block, hd), lambda b, si: (b, si, 0)),
                   pl.BlockSpec((1, q_block, hd), lambda b, si: (b, si, 0))),
        compiler_params=cparams1,
    )(x_b, wq_b, wk_b, wv_b, cos, sin_signed)

    # ---- Kernel 2: flash MQA attention (Q and KV tiled) fused with the dense projection ----
    out = pl.pallas_call(
        mqa_flash_dense_kernel,
        out_shape=jax.ShapeDtypeStruct((B, S, H), jnp.float32),
        grid=(B, S // q_block, S // kv_block),
        in_specs=[pl.BlockSpec((1, nh, q_block, hd), lambda b, qi, kj: (b, 0, qi, 0)),
                  pl.BlockSpec((1, kv_block, hd), lambda b, qi, kj: (b, kj, 0)),
                  pl.BlockSpec((1, kv_block, hd), lambda b, qi, kj: (b, kj, 0)),
                  pl.BlockSpec((H, H), lambda b, qi, kj: (0, 0))],
        out_specs=pl.BlockSpec((1, q_block, H), lambda b, qi, kj: (b, qi, 0)),
        scratch_shapes=[pltpu.VMEM((nh * q_block, 1), jnp.float32),
                        pltpu.VMEM((nh * q_block, 1), jnp.float32),
                        pltpu.VMEM((nh * q_block, hd), jnp.float32)],
        compiler_params=cparams2,
    )(q2, k_rot, v, wd_b)

    # Module contract: (dense output, rotated shared K, shared V).
    return out, k_rot, v


# -------------------------- pure-JAX (f32) reference for verification --------------------------
def reference(x, wq, wk, wv, wd, cos, sin):
    B, S, H = x.shape
    hd = wk.shape[0]
    nh = H // hd
    q = (x @ wq.T).reshape(B, S, nh, hd).transpose(0, 2, 1, 3)   # (B,nh,S,hd)
    k = (x @ wk.T)[:, None]                                      # (B,1,S,hd)
    v = (x @ wv.T)[:, None]

    def rot_half(t):
        return jnp.concatenate([-t[..., hd // 2:], t[..., :hd // 2]], axis=-1)

    q = q * cos + rot_half(q) * sin
    k = k * cos + rot_half(k) * sin
    kb = jnp.broadcast_to(k, (B, nh, S, hd))
    vb = jnp.broadcast_to(v, (B, nh, S, hd))
    scores = jnp.einsum('bhqd,bhkd->bhqk', q, kb) / math.sqrt(hd)
    mask = jnp.where(jnp.triu(jnp.ones((S, S)), 1) > 0,
                     jnp.finfo(jnp.float32).min, 0.0)
    p = jax.nn.softmax(scores + mask, axis=-1)
    ctx = jnp.einsum('bhqk,bhkd->bhqd', p, vb)
    out = ctx.transpose(0, 2, 1, 3).reshape(B, S, H) @ wd.T
    return out, k[:, 0], v[:, 0]


if __name__ == "__main__":
    # Small Falcon-like config (multi_query=True, bias=False). S=256 with
    # q_block=kv_block=128 gives 2 query tiles x 2 KV tiles, exercising the
    # multi-step online softmax AND the causal block skipping (tile (qi=0,kj=1)
    # is fully skipped).
    B, S, H, nh = 2, 256, 128, 4
    hd = H // nh

    key = jax.random.PRNGKey(0)
    k1, k2, k3, k4, k5 = jax.random.split(key, 5)
    w_std = 1.0 / math.sqrt(H)
    x  = jax.random.normal(k1, (B, S, H), dtype=jnp.float32)
    wq = jax.random.normal(k2, (H, H), dtype=jnp.float32) * w_std    # Linear weight (out, in)
    wk = jax.random.normal(k3, (hd, H), dtype=jnp.float32) * w_std
    wv = jax.random.normal(k4, (hd, H), dtype=jnp.float32) * w_std
    wd = jax.random.normal(k5, (H, H), dtype=jnp.float32) * w_std

    # rotary embedding tables (standard Falcon RotaryEmbedding), shape (S, hd)
    inv_freq = 1.0 / (10000.0 ** (jnp.arange(0, hd, 2, dtype=jnp.float32) / hd))
    t = jnp.arange(S, dtype=jnp.float32)
    freqs = jnp.einsum('i,j->ij', t, inv_freq)
    emb = jnp.concatenate([freqs, freqs], axis=-1)
    cos, sin = jnp.cos(emb), jnp.sin(emb)

    out, k_ret, v_ret = attention_forward(x, wq, wk, wv, wd, cos, sin,
                                          q_block=128, kv_block=128)
    jax.block_until_ready((out, k_ret, v_ret))

    out_r, k_r, v_r = reference(x, wq, wk, wv, wd, cos, sin)
    # Tolerances account for bf16 MXU operands, bf16 Q/K/V intermediates and the
    # approximate reciprocal in the softmax normalization vs the f32 reference.
    assert jnp.max(jnp.abs(out - out_r)) < 2e-1, "output mismatch"
    assert jnp.max(jnp.abs(k_ret.astype(jnp.float32) - k_r)) < 1e-1, "key mismatch"
    assert jnp.max(jnp.abs(v_ret.astype(jnp.float32) - v_r)) < 1e-1, "value mismatch"

    print("KERNEL_OK")
</pallas_src>

<mosaic_0001>
module attributes {stable_mosaic.version = 11 : i64} {
  func.func @qkv_rope_kernel(%arg0: i32, %arg1: i32, %arg2: memref<1x128x128xbf16, #tpu.memory_space<vmem>>, %arg3: memref<128x128xbf16, #tpu.memory_space<vmem>>, %arg4: memref<32x128xbf16, #tpu.memory_space<vmem>>, %arg5: memref<32x128xbf16, #tpu.memory_space<vmem>>, %arg6: memref<128x32xf32, #tpu.memory_space<vmem>>, %arg7: memref<128x32xf32, #tpu.memory_space<vmem>>, %arg8: memref<1x4x128x32xbf16, #tpu.memory_space<vmem>>, %arg9: memref<1x128x32xbf16, #tpu.memory_space<vmem>>, %arg10: memref<1x128x32xbf16, #tpu.memory_space<vmem>>) attributes {dimension_semantics = [#tpu.dimension_semantics<parallel>, #tpu.dimension_semantics<parallel>], iteration_bounds = array<i64: 2, 2>, scalar_prefetch = 0 : i64, scratch_operands = 0 : i64, tpu.core_type = #tpu.core_type<tc>, window_params = [{transform_indices = @transform_0, window_bounds = array<i64: 1, 128, 128>}, {pipeline_mode = #tpu.pipeline_mode<synchronous>, transform_indices = @transform_1, window_bounds = array<i64: 128, 128>}, {pipeline_mode = #tpu.pipeline_mode<synchronous>, transform_indices = @transform_2, window_bounds = array<i64: 32, 128>}, {pipeline_mode = #tpu.pipeline_mode<synchronous>, transform_indices = @transform_3, window_bounds = array<i64: 32, 128>}, {transform_indices = @transform_4, window_bounds = array<i64: 128, 32>}, {transform_indices = @transform_5, window_bounds = array<i64: 128, 32>}, {transform_indices = @transform_6, window_bounds = array<i64: 1, 4, 128, 32>}, {transform_indices = @transform_7, window_bounds = array<i64: 1, 128, 32>}, {transform_indices = @transform_8, window_bounds = array<i64: 1, 128, 32>}]} {
    %c0 = arith.constant 0 : index
    %c0_0 = arith.constant 0 : index
    %c0_1 = arith.constant 0 : index
    %0 = vector.load %arg2[%c0, %c0_0, %c0_1] : memref<1x128x128xbf16, #tpu.memory_space<vmem>>, vector<1x128x128xbf16>
    %1 = vector.shape_cast %0 : vector<1x128x128xbf16> to vector<128x128xbf16>
    %c0_2 = arith.constant 0 : index
    %c0_3 = arith.constant 0 : index
    %2 = vector.load %arg3[%c0_2, %c0_3] : memref<128x128xbf16, #tpu.memory_space<vmem>>, vector<128x128xbf16>
    %cst = arith.constant dense<0.000000e+00> : vector<128x128xf32>
    %3 = tpu.matmul %1, %2, %cst {dimension_numbers = #tpu.dot_dimension_numbers<[1], [1], [0], [0], [0, 0, 1, 0], [], []>} : vector<128x128xbf16>, vector<128x128xbf16>, vector<128x128xf32> -> vector<128x128xf32>
    %c0_4 = arith.constant 0 : index
    %c0_5 = arith.constant 0 : index
    %4 = vector.load %arg4[%c0_4, %c0_5] : memref<32x128xbf16, #tpu.memory_space<vmem>>, vector<32x128xbf16>
    %cst_6 = arith.constant dense<0.000000e+00> : vector<128x32xf32>
    %5 = tpu.matmul %1, %4, %cst_6 {dimension_numbers = #tpu.dot_dimension_numbers<[1], [1], [0], [0], [0, 0, 1, 0], [], []>} : vector<128x128xbf16>, vector<32x128xbf16>, vector<128x32xf32> -> vector<128x32xf32>
    %c0_7 = arith.constant 0 : index
    %c0_8 = arith.constant 0 : index
    %6 = vector.load %arg5[%c0_7, %c0_8] : memref<32x128xbf16, #tpu.memory_space<vmem>>, vector<32x128xbf16>
    %cst_9 = arith.constant dense<0.000000e+00> : vector<128x32xf32>
    %7 = tpu.matmul %1, %6, %cst_9 {dimension_numbers = #tpu.dot_dimension_numbers<[1], [1], [0], [0], [0, 0, 1, 0], [], []>} : vector<128x128xbf16>, vector<32x128xbf16>, vector<128x32xf32> -> vector<128x32xf32>
    %c0_10 = arith.constant 0 : index
    %c0_11 = arith.constant 0 : index
    %8 = vector.load %arg6[%c0_10, %c0_11] : memref<128x32xf32, #tpu.memory_space<vmem>>, vector<128x32xf32>
    %c0_12 = arith.constant 0 : index
    %c0_13 = arith.constant 0 : index
    %9 = vector.load %arg7[%c0_12, %c0_13] : memref<128x32xf32, #tpu.memory_space<vmem>>, vector<128x32xf32>
    %10 = arith.mulf %5, %8 : vector<128x32xf32>
    %11 = vector.extract_strided_slice %5 {offsets = [0, 16], sizes = [128, 16], strides = [1, 1]} : vector<128x32xf32> to vector<128x16xf32>
    %12 = vector.extract_strided_slice %5 {offsets = [0, 0], sizes = [128, 16], strides = [1, 1]} : vector<128x32xf32> to vector<128x16xf32>
    %13 = tpu.concatenate %11, %12 in 1 : vector<128x16xf32>, vector<128x16xf32> -> vector<128x32xf32>
    %14 = arith.mulf %13, %9 : vector<128x32xf32>
    %15 = arith.addf %10, %14 : vector<128x32xf32>
    %16 = arith.truncf %15 : vector<128x32xf32> to vector<128x32xbf16>
    %c0_14 = arith.constant 0 : index
    %c0_15 = arith.constant 0 : index
    %c0_16 = arith.constant 0 : index
    %17 = vector.load %arg9[%c0_14, %c0_15, %c0_16] : memref<1x128x32xbf16, #tpu.memory_space<vmem>>, vector<1x128x32xbf16>
    %18 = vector.shape_cast %17 : vector<1x128x32xbf16> to vector<128x32xbf16>
    %19 = vector.shape_cast %16 : vector<128x32xbf16> to vector<1x128x32xbf16>
    tpu.vector_store %arg9[%c0_14, %c0_15, %c0_16], %19 {strides = array<i32>} : memref<1x128x32xbf16, #tpu.memory_space<vmem>>, vector<1x128x32xbf16>,
    %20 = arith.truncf %7 : vector<128x32xf32> to vector<128x32xbf16>
    %c0_17 = arith.constant 0 : index
    %c0_18 = arith.constant 0 : index
    %c0_19 = arith.constant 0 : index
    %21 = vector.load %arg10[%c0_17, %c0_18, %c0_19] : memref<1x128x32xbf16, #tpu.memory_space<vmem>>, vector<1x128x32xbf16>
    %22 = vector.shape_cast %21 : vector<1x128x32xbf16> to vector<128x32xbf16>
    %23 = vector.shape_cast %20 : vector<128x32xbf16> to vector<1x128x32xbf16>
    tpu.vector_store %arg10[%c0_17, %c0_18, %c0_19], %23 {strides = array<i32>} : memref<1x128x32xbf16, #tpu.memory_space<vmem>>, vector<1x128x32xbf16>,
    %24 = vector.extract_strided_slice %3 {offsets = [0, 0], sizes = [128, 32], strides = [1, 1]} : vector<128x128xf32> to vector<128x32xf32>
    %25 = arith.mulf %24, %8 : vector<128x32xf32>
    %26 = vector.extract_strided_slice %24 {offsets = [0, 16], sizes = [128, 16], strides = [1, 1]} : vector<128x32xf32> to vector<128x16xf32>
    %27 = vector.extract_strided_slice %24 {offsets = [0, 0], sizes = [128, 16], strides = [1, 1]} : vector<128x32xf32> to vector<128x16xf32>
    %28 = tpu.concatenate %26, %27 in 1 : vector<128x16xf32>, vector<128x16xf32> -> vector<128x32xf32>
    %29 = arith.mulf %28, %9 : vector<128x32xf32>
    %30 = arith.addf %25, %29 : vector<128x32xf32>
    %31 = arith.truncf %30 : vector<128x32xf32> to vector<128x32xbf16>
    %c0_20 = arith.constant 0 : index
    %c0_21 = arith.constant 0 : index
    %c0_22 = arith.constant 0 : index
    %c0_23 = arith.constant 0 : index
    %32 = vector.load %arg8[%c0_20, %c0_21, %c0_22, %c0_23] : memref<1x4x128x32xbf16, #tpu.memory_space<vmem>>, vector<1x1x128x32xbf16>
    %33 = vector.shape_cast %32 : vector<1x1x128x32xbf16> to vector<128x32xbf16>
    %34 = vector.shape_cast %31 : vector<128x32xbf16> to vector<1x1x128x32xbf16>
    tpu.vector_store %arg8[%c0_20, %c0_21, %c0_22, %c0_23], %34 {strides = array<i32>} : memref<1x4x128x32xbf16, #tpu.memory_space<vmem>>, vector<1x1x128x32xbf16>,
    %35 = vector.extract_strided_slice %3 {offsets = [0, 32], sizes = [128, 32], strides = [1, 1]} : vector<128x128xf32> to vector<128x32xf32>
    %36 = arith.mulf %35, %8 : vector<128x32xf32>
    %37 = vector.extract_strided_slice %35 {offsets = [0, 16], sizes = [128, 16], strides = [1, 1]} : vector<128x32xf32> to vector<128x16xf32>
    %38 = vector.extract_strided_slice %35 {offsets = [0, 0], sizes = [128, 16], strides = [1, 1]} : vector<128x32xf32> to vector<128x16xf32>
    %39 = tpu.concatenate %37, %38 in 1 : vector<128x16xf32>, vector<128x16xf32> -> vector<128x32xf32>
    %40 = arith.mulf %39, %9 : vector<128x32xf32>
    %41 = arith.addf %36, %40 : vector<128x32xf32>
    %42 = arith.truncf %41 : vector<128x32xf32> to vector<128x32xbf16>
    %c0_24 = arith.constant 0 : index
    %c1 = arith.constant 1 : index
    %c0_25 = arith.constant 0 : index
    %c0_26 = arith.constant 0 : index
    %43 = vector.load %arg8[%c0_24, %c1, %c0_25, %c0_26] : memref<1x4x128x32xbf16, #tpu.memory_space<vmem>>, vector<1x1x128x32xbf16>
    %44 = vector.shape_cast %43 : vector<1x1x128x32xbf16> to vector<128x32xbf16>
    %45 = vector.shape_cast %42 : vector<128x32xbf16> to vector<1x1x128x32xbf16>
    tpu.vector_store %arg8[%c0_24, %c1, %c0_25, %c0_26], %45 {strides = array<i32>} : memref<1x4x128x32xbf16, #tpu.memory_space<vmem>>, vector<1x1x128x32xbf16>,
    %46 = vector.extract_strided_slice %3 {offsets = [0, 64], sizes = [128, 32], strides = [1, 1]} : vector<128x128xf32> to vector<128x32xf32>
    %47 = arith.mulf %46, %8 : vector<128x32xf32>
    %48 = vector.extract_strided_slice %46 {offsets = [0, 16], sizes = [128, 16], strides = [1, 1]} : vector<128x32xf32> to vector<128x16xf32>
    %49 = vector.extract_strided_slice %46 {offsets = [0, 0], sizes = [128, 16], strides = [1, 1]} : vector<128x32xf32> to vector<128x16xf32>
    %50 = tpu.concatenate %48, %49 in 1 : vector<128x16xf32>, vector<128x16xf32> -> vector<128x32xf32>
    %51 = arith.mulf %50, %9 : vector<128x32xf32>
    %52 = arith.addf %47, %51 : vector<128x32xf32>
    %53 = arith.truncf %52 : vector<128x32xf32> to vector<128x32xbf16>
    %c0_27 = arith.constant 0 : index
    %c2 = arith.constant 2 : index
    %c0_28 = arith.constant 0 : index
    %c0_29 = arith.constant 0 : index
    %54 = vector.load %arg8[%c0_27, %c2, %c0_28, %c0_29] : memref<1x4x128x32xbf16, #tpu.memory_space<vmem>>, vector<1x1x128x32xbf16>
    %55 = vector.shape_cast %54 : vector<1x1x128x32xbf16> to vector<128x32xbf16>
    %56 = vector.shape_cast %53 : vector<128x32xbf16> to vector<1x1x128x32xbf16>
    tpu.vector_store %arg8[%c0_27, %c2, %c0_28, %c0_29], %56 {strides = array<i32>} : memref<1x4x128x32xbf16, #tpu.memory_space<vmem>>, vector<1x1x128x32xbf16>,
    %57 = vector.extract_strided_slice %3 {offsets = [0, 96], sizes = [128, 32], strides = [1, 1]} : vector<128x128xf32> to vector<128x32xf32>
    %58 = arith.mulf %57, %8 : vector<128x32xf32>
    %59 = vector.extract_strided_slice %57 {offsets = [0, 16], sizes = [128, 16], strides = [1, 1]} : vector<128x32xf32> to vector<128x16xf32>
    %60 = vector.extract_strided_slice %57 {offsets = [0, 0], sizes = [128, 16], strides = [1, 1]} : vector<128x32xf32> to vector<128x16xf32>
    %61 = tpu.concatenate %59, %60 in 1 : vector<128x16xf32>, vector<128x16xf32> -> vector<128x32xf32>
    %62 = arith.mulf %61, %9 : vector<128x32xf32>
    %63 = arith.addf %58, %62 : vector<128x32xf32>
    %64 = arith.truncf %63 : vector<128x32xf32> to vector<128x32xbf16>
    %c0_30 = arith.constant 0 : index
    %c3 = arith.constant 3 : index
    %c0_31 = arith.constant 0 : index
    %c0_32 = arith.constant 0 : index
    %65 = vector.load %arg8[%c0_30, %c3, %c0_31, %c0_32] : memref<1x4x128x32xbf16, #tpu.memory_space<vmem>>, vector<1x1x128x32xbf16>
    %66 = vector.shape_cast %65 : vector<1x1x128x32xbf16> to vector<128x32xbf16>
    %67 = vector.shape_cast %64 : vector<128x32xbf16> to vector<1x1x128x32xbf16>
    tpu.vector_store %arg8[%c0_30, %c3, %c0_31, %c0_32], %67 {strides = array<i32>} : memref<1x4x128x32xbf16, #tpu.memory_space<vmem>>, vector<1x1x128x32xbf16>,
    return
  }
  func.func @transform_0(%arg0: i32, %arg1: i32) -> (i32, i32, i32) {
    %c0_i32 = arith.constant 0 : i32
    %c0_i32_0 = arith.constant 0 : i32
    return %arg0, %arg1, %c0_i32 : i32, i32, i32
  }
  func.func @transform_1(%arg0: i32, %arg1: i32) -> (i32, i32) {
    %c0_i32 = arith.constant 0 : i32
    %c0_i32_0 = arith.constant 0 : i32
    %c0_i32_1 = arith.constant 0 : i32
    return %c0_i32, %c0_i32_0 : i32, i32
  }
  func.func @transform_2(%arg0: i32, %arg1: i32) -> (i32, i32) {
    %c0_i32 = arith.constant 0 : i32
    %c0_i32_0 = arith.constant 0 : i32
    %c0_i32_1 = arith.constant 0 : i32
    return %c0_i32, %c0_i32_0 : i32, i32
  }
  func.func @transform_3(%arg0: i32, %arg1: i32) -> (i32, i32) {
    %c0_i32 = arith.constant 0 : i32
    %c0_i32_0 = arith.constant 0 : i32
    %c0_i32_1 = arith.constant 0 : i32
    return %c0_i32, %c0_i32_0 : i32, i32
  }
  func.func @transform_4(%arg0: i32, %arg1: i32) -> (i32, i32) {
    %c0_i32 = arith.constant 0 : i32
    %c0_i32_0 = arith.constant 0 : i32
    return %arg1, %c0_i32 : i32, i32
  }
  func.func @transform_5(%arg0: i32, %arg1: i32) -> (i32, i32) {
    %c0_i32 = arith.constant 0 : i32
    %c0_i32_0 = arith.constant 0 : i32
    return %arg1, %c0_i32 : i32, i32
  }
  func.func @transform_6(%arg0: i32, %arg1: i32) -> (i32, i32, i32, i32) {
    %c0_i32 = arith.constant 0 : i32
    %c0_i32_0 = arith.constant 0 : i32
    %c0_i32_1 = arith.constant 0 : i32
    return %arg0, %c0_i32, %arg1, %c0_i32_0 : i32, i32, i32, i32
  }
  func.func @transform_7(%arg0: i32, %arg1: i32) -> (i32, i32, i32) {
    %c0_i32 = arith.constant 0 : i32
    %c0_i32_0 = arith.constant 0 : i32
    return %arg0, %arg1, %c0_i32 : i32, i32, i32
  }
  func.func @transform_8(%arg0: i32, %arg1: i32) -> (i32, i32, i32) {
    %c0_i32 = arith.constant 0 : i32
    %c0_i32_0 = arith.constant 0 : i32
    return %arg0, %arg1, %c0_i32 : i32, i32, i32
  }
}

module attributes {stable_mosaic.version = 11 : i64} {
  func.func @mqa_flash_dense_kernel(%arg0: i32, %arg1: i32, %arg2: i32, %arg3: memref<1x4x128x32xbf16, #tpu.memory_space<vmem>>, %arg4: memref<1x128x32xbf16, #tpu.memory_space<vmem>>, %arg5: memref<1x128x32xbf16, #tpu.memory_space<vmem>>, %arg6: memref<128x128xbf16, #tpu.memory_space<vmem>>, %arg7: memref<1x128x128xf32, #tpu.memory_space<vmem>>, %arg8: memref<512x1xf32, #tpu.memory_space<vmem>>, %arg9: memref<512x1xf32, #tpu.memory_space<vmem>>, %arg10: memref<512x32xf32, #tpu.memory_space<vmem>>) attributes {dimension_semantics = [#tpu.dimension_semantics<parallel>, #tpu.dimension_semantics<parallel>, #tpu.dimension_semantics<arbitrary>], iteration_bounds = array<i64: 2, 2, 2>, scalar_prefetch = 0 : i64, scratch_operands = 3 : i64, tpu.core_type = #tpu.core_type<tc>, window_params = [{transform_indices = @transform_0, window_bounds = array<i64: 1, 4, 128, 32>}, {transform_indices = @transform_1, window_bounds = array<i64: 1, 128, 32>}, {transform_indices = @transform_2, window_bounds = array<i64: 1, 128, 32>}, {pipeline_mode = #tpu.pipeline_mode<synchronous>, transform_indices = @transform_3, window_bounds = array<i64: 128, 128>}, {transform_indices = @transform_4, window_bounds = array<i64: 1, 128, 128>}]} {
    %c0_i32 = arith.constant 0 : i32
    %0 = arith.cmpi eq, %arg2, %c0_i32 : i32
    %1 = arith.extui %0 : i1 to i32
    %c0_i32_0 = arith.constant 0 : i32
    %2 = arith.cmpi ne, %1, %c0_i32_0 : i32
    scf.if %2 {
      %cst = arith.constant 0xFF800000 : f32
      %12 = vector.broadcast %cst : f32 to vector<512x1xf32>
      %c0 = arith.constant 0 : index
      %c0_4 = arith.constant 0 : index
      %13 = vector.load %arg8[%c0, %c0_4] : memref<512x1xf32, #tpu.memory_space<vmem>>, vector<512x1xf32>
      tpu.vector_store %arg8[%c0, %c0_4], %12 {strides = array<i32>} : memref<512x1xf32, #tpu.memory_space<vmem>>, vector<512x1xf32>,
      %cst_5 = arith.constant 0.000000e+00 : f32
      %14 = vector.broadcast %cst_5 : f32 to vector<512x1xf32>
      %c0_6 = arith.constant 0 : index
      %c0_7 = arith.constant 0 : index
      %15 = vector.load %arg9[%c0_6, %c0_7] : memref<512x1xf32, #tpu.memory_space<vmem>>, vector<512x1xf32>
      tpu.vector_store %arg9[%c0_6, %c0_7], %14 {strides = array<i32>} : memref<512x1xf32, #tpu.memory_space<vmem>>, vector<512x1xf32>,
      %cst_8 = arith.constant 0.000000e+00 : f32
      %16 = vector.broadcast %cst_8 : f32 to vector<512x32xf32>
      %c0_9 = arith.constant 0 : index
      %c0_10 = arith.constant 0 : index
      %17 = vector.load %arg10[%c0_9, %c0_10] : memref<512x32xf32, #tpu.memory_space<vmem>>, vector<512x32xf32>
      tpu.vector_store %arg10[%c0_9, %c0_10], %16 {strides = array<i32>} : memref<512x32xf32, #tpu.memory_space<vmem>>, vector<512x32xf32>,
    } else {
    }
    %c128_i32 = arith.constant 128 : i32
    %3 = arith.muli %arg1, %c128_i32 : i32
    %c128_i32_1 = arith.constant 128 : i32
    %4 = arith.muli %arg2, %c128_i32_1 : i32
    %c127_i32 = arith.constant 127 : i32
    %5 = arith.addi %3, %c127_i32 : i32
    %6 = arith.cmpi sle, %4, %5 : i32
    %7 = arith.extui %6 : i1 to i32
    %c0_i32_2 = arith.constant 0 : i32
    %8 = arith.cmpi ne, %7, %c0_i32_2 : i32
    scf.if %8 {
      %c0 = arith.constant 0 : index
      %c0_4 = arith.constant 0 : index
      %c0_5 = arith.constant 0 : index
      %c0_6 = arith.constant 0 : index
      %12 = vector.load %arg3[%c0, %c0_4, %c0_5, %c0_6] : memref<1x4x128x32xbf16, #tpu.memory_space<vmem>>, vector<1x4x128x32xbf16>
      %13 = vector.shape_cast %12 : vector<1x4x128x32xbf16> to vector<4x128x32xbf16>
      %14 = vector.shape_cast %13 : vector<4x128x32xbf16> to vector<512x32xbf16>
      %c0_7 = arith.constant 0 : index
      %c0_8 = arith.constant 0 : index
      %c0_9 = arith.constant 0 : index
      %15 = vector.load %arg4[%c0_7, %c0_8, %c0_9] : memref<1x128x32xbf16, #tpu.memory_space<vmem>>, vector<1x128x32xbf16>
      %16 = vector.shape_cast %15 : vector<1x128x32xbf16> to vector<128x32xbf16>
      %c0_10 = arith.constant 0 : index
      %c0_11 = arith.constant 0 : index
      %c0_12 = arith.constant 0 : index
      %17 = vector.load %arg5[%c0_10, %c0_11, %c0_12] : memref<1x128x32xbf16, #tpu.memory_space<vmem>>, vector<1x128x32xbf16>
      %18 = vector.shape_cast %17 : vector<1x128x32xbf16> to vector<128x32xbf16>
      %cst = arith.constant dense<0.000000e+00> : vector<512x128xf32>
      %19 = tpu.matmul %14, %16, %cst {dimension_numbers = #tpu.dot_dimension_numbers<[1], [1], [0], [0], [0, 0, 1, 0], [], []>} : vector<512x32xbf16>, vector<128x32xbf16>, vector<512x128xf32> -> vector<512x128xf32>
      %20 = tpu.iota {dimensions = array<i32: 0>} : vector<512x1xi32>
      %c128_i32_13 = arith.constant 128 : i32
      %c0_i32_14 = arith.constant 0 : i32
      %21 = arith.cmpi eq, %c128_i32_13, %c0_i32_14 : i32
      %c1_i32_15 = arith.constant 1 : i32
      %22 = arith.select %21, %c1_i32_15, %c128_i32_13 : i32
      %23 = vector.broadcast %22 : i32 to vector<512x1xi32>
      %24 = arith.remsi %20, %23 : vector<512x1xi32>
      %c0_i32_16 = arith.constant 0 : i32
      %25 = vector.broadcast %c0_i32_16 : i32 to vector<512x1xi32>
      %26 = arith.cmpi ne, %24, %25 : vector<512x1xi32>
      %c0_i32_17 = arith.constant 0 : i32
      %27 = vector.broadcast %c0_i32_17 : i32 to vector<512x1xi32>
      %28 = arith.cmpi slt, %24, %27 : vector<512x1xi32>
      %c0_i32_18 = arith.constant 0 : i32
      %29 = arith.cmpi slt, %22, %c0_i32_18 : i32
      %30 = vector.broadcast %29 : i1 to vector<512x1xi1>
      %31 = vector.broadcast %30 : vector<512x1xi1> to vector<512x1xi1>
      %32 = arith.xori %28, %31 : vector<512x1xi1>
      %33 = arith.andi %32, %26 : vector<512x1xi1>
      %34 = vector.broadcast %22 : i32 to vector<512x1xi32>
      %35 = arith.addi %24, %34 : vector<512x1xi32>
      %36 = arith.select %33, %35, %24 : vector<512x1xi1>, vector<512x1xi32>
      %37 = vector.broadcast %3 : i32 to vector<512x1xi32>
      %38 = arith.addi %37, %36 : vector<512x1xi32>
      %39 = tpu.iota {dimensions = array<i32: 1>} : vector<1x128xi32>
      %40 = vector.broadcast %4 : i32 to vector<1x128xi32>
      %41 = arith.addi %40, %39 : vector<1x128xi32>
      %42 = vector.broadcast %41 : vector<1x128xi32> to vector<512x128xi32>
      %43 = vector.broadcast %38 : vector<512x1xi32> to vector<512x128xi32>
      %44 = arith.cmpi sle, %42, %43 : vector<512x128xi32>
      %cst_19 = arith.constant -3.40282347E+38 : f32
      %45 = vector.broadcast %cst_19 : f32 to vector<512x128xf32>
      %46 = arith.select %44, %19, %45 : vector<512x128xi1>, vector<512x128xf32>
      %c0_20 = arith.constant 0 : index
      %c0_21 = arith.constant 0 : index
      %47 = vector.load %arg8[%c0_20, %c0_21] : memref<512x1xf32, #tpu.memory_space<vmem>>, vector<512x1xf32>
      %cst_22 = arith.constant dense<0xFF800000> : vector<512xf32>
      %48 = vector.multi_reduction <maximumf>, %46, %cst_22 [1] : vector<512x128xf32> to vector<512xf32>
      %49 = vector.shape_cast %48 : vector<512xf32> to vector<512x1xf32>
      %50 = arith.maximumf %47, %49 : vector<512x1xf32>
      %51 = arith.subf %47, %50 : vector<512x1xf32>
      %52 = math.exp %51 : vector<512x1xf32>
      %53 = vector.broadcast %50 : vector<512x1xf32> to vector<512x128xf32>
      %54 = arith.subf %46, %53 : vector<512x128xf32>
      %55 = math.exp %54 : vector<512x128xf32>
      %c0_23 = arith.constant 0 : index
      %c0_24 = arith.constant 0 : index
      %56 = vector.load %arg9[%c0_23, %c0_24] : memref<512x1xf32, #tpu.memory_space<vmem>>, vector<512x1xf32>
      %57 = arith.mulf %52, %56 : vector<512x1xf32>
      %cst_25 = arith.constant dense<0.000000e+00> : vector<512xf32>
      %58 = vector.multi_reduction <add>, %55, %cst_25 [1] : vector<512x128xf32> to vector<512xf32>
      %59 = vector.shape_cast %58 : vector<512xf32> to vector<512x1xf32>
      %60 = arith.addf %57, %59 : vector<512x1xf32>
      %c0_26 = arith.constant 0 : index
      %c0_27 = arith.constant 0 : index
      %61 = vector.load %arg9[%c0_26, %c0_27] : memref<512x1xf32, #tpu.memory_space<vmem>>, vector<512x1xf32>
      tpu.vector_store %arg9[%c0_26, %c0_27], %60 {strides = array<i32>} : memref<512x1xf32, #tpu.memory_space<vmem>>, vector<512x1xf32>,
      %c0_28 = arith.constant 0 : index
      %c0_29 = arith.constant 0 : index
      %62 = vector.load %arg10[%c0_28, %c0_29] : memref<512x32xf32, #tpu.memory_space<vmem>>, vector<512x32xf32>
      %63 = vector.broadcast %52 : vector<512x1xf32> to vector<512x32xf32>
      %64 = arith.mulf %63, %62 : vector<512x32xf32>
      %65 = arith.truncf %55 : vector<512x128xf32> to vector<512x128xbf16>
      %cst_30 = arith.constant dense<0.000000e+00> : vector<512x32xf32>
      %66 = tpu.matmul %65, %18, %cst_30 {dimension_numbers = #tpu.dot_dimension_numbers<[1], [0], [0], [1], [0, 0, 1, 1], [], []>} : vector<512x128xbf16>, vector<128x32xbf16>, vector<512x32xf32> -> vector<512x32xf32>
      %67 = arith.addf %64, %66 : vector<512x32xf32>
      %c0_31 = arith.constant 0 : index
      %c0_32 = arith.constant 0 : index
      %68 = vector.load %arg10[%c0_31, %c0_32] : memref<512x32xf32, #tpu.memory_space<vmem>>, vector<512x32xf32>
      tpu.vector_store %arg10[%c0_31, %c0_32], %67 {strides = array<i32>} : memref<512x32xf32, #tpu.memory_space<vmem>>, vector<512x32xf32>,
      %c0_33 = arith.constant 0 : index
      %c0_34 = arith.constant 0 : index
      %69 = vector.load %arg8[%c0_33, %c0_34] : memref<512x1xf32, #tpu.memory_space<vmem>>, vector<512x1xf32>
      tpu.vector_store %arg8[%c0_33, %c0_34], %50 {strides = array<i32>} : memref<512x1xf32, #tpu.memory_space<vmem>>, vector<512x1xf32>,
    } else {
    }
    %c1_i32 = arith.constant 1 : i32
    %9 = arith.cmpi eq, %arg2, %c1_i32 : i32
    %10 = arith.extui %9 : i1 to i32
    %c0_i32_3 = arith.constant 0 : i32
    %11 = arith.cmpi ne, %10, %c0_i32_3 : i32
    scf.if %11 {
      %c0 = arith.constant 0 : index
      %c0_4 = arith.constant 0 : index
      %12 = vector.load %arg10[%c0, %c0_4] : memref<512x32xf32, #tpu.memory_space<vmem>>, vector<512x32xf32>
      %c0_5 = arith.constant 0 : index
      %c0_6 = arith.constant 0 : index
      %13 = vector.load %arg9[%c0_5, %c0_6] : memref<512x1xf32, #tpu.memory_space<vmem>>, vector<512x1xf32>
      %14 = tpu.reciprocal %13 {approx = true} : vector<512x1xf32> -> vector<512x1xf32>
      %15 = vector.broadcast %14 : vector<512x1xf32> to vector<512x32xf32>
      %16 = arith.mulf %12, %15 : vector<512x32xf32>
      %17 = vector.extract_strided_slice %16 {offsets = [0, 0], sizes = [128, 32], strides = [1, 1]} : vector<512x32xf32> to vector<128x32xf32>
      %18 = vector.extract_strided_slice %16 {offsets = [128, 0], sizes = [128, 32], strides = [1, 1]} : vector<512x32xf32> to vector<128x32xf32>
      %19 = vector.extract_strided_slice %16 {offsets = [256, 0], sizes = [128, 32], strides = [1, 1]} : vector<512x32xf32> to vector<128x32xf32>
      %20 = vector.extract_strided_slice %16 {offsets = [384, 0], sizes = [128, 32], strides = [1, 1]} : vector<512x32xf32> to vector<128x32xf32>
      %21 = tpu.concatenate %17, %18, %19, %20 in 1 : vector<128x32xf32>, vector<128x32xf32>, vector<128x32xf32>, vector<128x32xf32> -> vector<128x128xf32>
      %22 = arith.truncf %21 : vector<128x128xf32> to vector<128x128xbf16>
      %c0_7 = arith.constant 0 : index
      %c0_8 = arith.constant 0 : index
      %23 = vector.load %arg6[%c0_7, %c0_8] : memref<128x128xbf16, #tpu.memory_space<vmem>>, vector<128x128xbf16>
      %cst = arith.constant dense<0.000000e+00> : vector<128x128xf32>
      %24 = tpu.matmul %22, %23, %cst {dimension_numbers = #tpu.dot_dimension_numbers<[1], [1], [0], [0], [0, 0, 1, 0], [], []>} : vector<128x128xbf16>, vector<128x128xbf16>, vector<128x128xf32> -> vector<128x128xf32>
      %c0_9 = arith.constant 0 : index
      %c0_10 = arith.constant 0 : index
      %c0_11 = arith.constant 0 : index
      %25 = vector.load %arg7[%c0_9, %c0_10, %c0_11] : memref<1x128x128xf32, #tpu.memory_space<vmem>>, vector<1x128x128xf32>
      %26 = vector.shape_cast %25 : vector<1x128x128xf32> to vector<128x128xf32>
      %27 = vector.shape_cast %24 : vector<128x128xf32> to vector<1x128x128xf32>
      tpu.vector_store %arg7[%c0_9, %c0_10, %c0_11], %27 {strides = array<i32>} : memref<1x128x128xf32, #tpu.memory_space<vmem>>, vector<1x128x128xf32>,
    } else {
    }
    return
  }
  func.func @transform_0(%arg0: i32, %arg1: i32, %arg2: i32) -> (i32, i32, i32, i32) {
    %c0_i32 = arith.constant 0 : i32
    %c0_i32_0 = arith.constant 0 : i32
    %c0_i32_1 = arith.constant 0 : i32
    return %arg0, %c0_i32, %arg1, %c0_i32_0 : i32, i32, i32, i32
  }
  func.func @transform_1(%arg0: i32, %arg1: i32, %arg2: i32) -> (i32, i32, i32) {
    %c0_i32 = arith.constant 0 : i32
    %c0_i32_0 = arith.constant 0 : i32
    return %arg0, %arg2, %c0_i32 : i32, i32, i32
  }
  func.func @transform_2(%arg0: i32, %arg1: i32, %arg2: i32) -> (i32, i32, i32) {
    %c0_i32 = arith.constant 0 : i32
    %c0_i32_0 = arith.constant 0 : i32
    return %arg0, %arg2, %c0_i32 : i32, i32, i32
  }
  func.func @transform_3(%arg0: i32, %arg1: i32, %arg2: i32) -> (i32, i32) {
    %c0_i32 = arith.constant 0 : i32
    %c0_i32_0 = arith.constant 0 : i32
    %c0_i32_1 = arith.constant 0 : i32
    return %c0_i32, %c0_i32_0 : i32, i32
  }
  func.func @transform_4(%arg0: i32, %arg1: i32, %arg2: i32) -> (i32, i32, i32) {
    %c0_i32 = arith.constant 0 : i32
    %c0_i32_0 = arith.constant 0 : i32
    return %arg0, %arg1, %c0_i32 : i32, i32, i32
  }
}

</mosaic_0001>

<bundles_post_ra>
// kernel: attention_forward.2
= control target key start
LH: loop header
LB: loop body
LE: loop exit
PB: predicated region body
PF: predicated region fallthrough
CT: control target
= control target key end

     0   :  { %s3571_s27 = smov 0   ;;  %s3573_s28 = smov 0   ;;  %s5032_s0 = inlined_call_operand.vmem [shape: bf16[2,256,128], index: 0, kind: input, shape index: {}]   ;;  %s5033_s1 = inlined_call_operand.vmem [shape: bf16[128,128], index: 1, kind: input, shape index: {}]   ;;  %s5034_s2 = inlined_call_operand.vmem [shape: bf16[32,128], index: 2, kind: input, shape index: {}]   ;;  %s5035_s3 = inlined_call_operand.vmem [shape: bf16[32,128], index: 3, kind: input, shape index: {}]   ;;  %s5036_s4 = inlined_call_operand.vmem [shape: f32[256,32], index: 4, kind: input, shape index: {}]   ;;  %s5037_s5 = inlined_call_operand.vmem [shape: f32[256,32], index: 5, kind: input, shape index: {}]   ;;  %s5038_s6 = inlined_call_operand.vmem [shape: bf16[2,4,256,32], index: 6, kind: output, shape index: {0}]   ;;  %s5039_s7 = inlined_call_operand.vmem [shape: bf16[2,256,32], index: 7, kind: output, shape index: {1}]   ;;  %s5040_s8 = inlined_call_operand.vmem [shape: bf16[2,256,32], index: 8, kind: output, shape index: {2}]  }
   0x1   :  { %s3575_s29 = smov 0   ;;  %s3577_s30 = smov 0  }
   0x2   :  { %s3579_s9 = smov 0   ;;  %s3581_s10 = smov 0  }
   0x3   :  { %s3583_s11 = smov 0  }
   0x4 LB: > { %s28_s12 = sadd.s32 1, %s3509_s9  ;;  %s31_s13 = sadd.s32 1, %s3513_s10  ;;  %s3517_s11 = sphi %s3583_s11, %s19_s11   ;;  %s3513_s10 = sphi %s3581_s10, %s5170_s10   ;;  %s3509_s9 = sphi %s3579_s9, %s5169_s9   ;;  %s3505_s30 = sphi %s3577_s30, %s5168_s30   ;;  %s3501_s29 = sphi %s3575_s29, %s5167_s29   ;;  %s3497_s28 = sphi %s3573_s28, %s5166_s28   ;;  %s3493_s27 = sphi %s3571_s27, %s5165_s27  }
   0x5   : > { %p29_p0 = scmp.ge.s32.totalorder %s28_s12, 2  ;;  %s2977_s14 = sadd.s32 4294967295, %s3517_s11  }
   0x6   : > { %p193_p1 = scmp.ne.s32.totalorder %s3497_s28, %s3493_s27  ;;  %p194_p2 = scmp.eq.s32.totalorder %s2977_s14, 3 }
   0x7   : > { %s5172_s12 = smov (%p29_p0, %s28_s12), 0  ;;  %s5174_s13 = smov (!%p29_p0, %s31_s13), %s3513_s10 }
   0x8   : > { %s179_s15 = ssub.s32 %s3509_s9, %s5172_s12  ;;  %p33_p3 = scmp.ge.s32.totalorder %s5174_s13, 2 }
   0x9   : > { %p2981_p4 = scmp.ge.s32.totalorder %s3517_s11, 1  ;;  %p3615_p5 = por %p194_p2, %p193_p1 }
   0xa   : > { %p314_p6 = scmp.lt.s32.totalorder %s3517_s11, 5  ;;  %s5176_s13 = smov (%p33_p3, %s5174_s13), 0 }
   0xb   : > { %s178_s17 = ssub.s32 %s3513_s10, %s5176_s13  ;;  %s183_s19 = sadd.s32 1, %s3497_s28 }
   0xc   : > { %p315_p7 = pnand %p2981_p4, %p314_p6  ;;  %s180_s18 = sor.u32 %s179_s15, %s178_s17 }
   0xd   : > { %p181_p8 = scmp.eq.s32.totalorder %s180_s18, 0 }
   0xe   : > { %318 = sbr.rel (%p315_p7) target bundleno = 824 (0x338), region = 44 }
   0xf   : > { %s3626_s20 = scalar_select %p181_p8, %s3497_s28, %s183_s19  }
  0x15   : > { %v3433_v0 = vld [vmem:[%s5033_s1] sm:$0xff]   ;;  %s3631_s23 = sshll.u32 %s3501_s29, 4  ;;  %p380_p9 = scmp.lt.s32.totalorder %s3505_s30, 1  ;;  %v3435_v2 = vld [vmem:[%s5033_s1 + $0x8] sm:$0xff]   ;;  %v3438_v4 = vld [vmem:[%s5033_s1 + $0x10] sm:$0xff]   ;;  %vm1034_vm0 = vcmask 130048  }
  0x16   : > { %v3434_v1 = vld [vmem:[%s5034_s2] sm:$0xff]   ;;  %3298 = vmatprep.subr.bf16.mxu0 %v3433_v0  ;;  %p382_p10 = scmp.lt.s32.totalorder %s3631_s23, 31  ;;  %v3436_v3 = vld [vmem:[%s5034_s2 + $0x8] sm:$0xff]   ;;  %v3440_v6 = vld [vmem:[%s5033_s1 + $0x18] sm:$0xff]   ;;  %s5045_s14 = smov 32   ;;  %vm1147_vm1 = vcmask 257024  }
  0x17   : > { %3330 = vmatprep.subr.bf16.mxu1 %v3434_v1  ;;  %3299 = vmatpush3.bf16.xpose.msra.mxu0 %v3433_v0  ;;  %s381_s29 = scalar_select %p380_p9, %s3505_s30, 1  ;;  %v3443_v11 = vld [vmem:[%s5033_s1 + $0x20] sm:$0xff]   ;;  %v3444_v21 = vld [vmem:[%s5033_s1 + $0x28] sm:$0xff]   ;;  %v3447_v28 = vld [vmem:[%s5033_s1 + $0x30] sm:$0xff]  }
  0x18   : > { %3331 = vmatpush3.bf16.xpose.msra.mxu1 %v3434_v1  ;;  %3300 = vmatprep.subr.bf16.mxu0 %v3435_v2  ;;  %s3646_s18 = scalar_select %p382_p10, %s3631_s23, 31  ;;  %v3448_v33 = vld [vmem:[%s5033_s1 + $0x38] sm:$0xff]  }
  0x19   : > { %3332 = vmatprep.subr.bf16.mxu1 %v3436_v3  ;;  %s2984_s19 = sshll.u32 %s381_s29, 5  ;;  %s3522_s24 = smov 16  }
  0x1a   : > { %s385_s21 = sadd.s32 %s2984_s19, %s3646_s18  ;;  %s2987_s17 = sshll.u32 %s3646_s18, 3 }
  0x1b   : > { %s3649_s22 = sshll.u32 %s385_s21, 2  ;;  %s3673_s25 = scalar_lea.vmem %s5036_s4, %s2987_s17 }
  0x1c   : > { %s3655_s26 = scalar_lea.vmem %s5032_s0, %s3649_s22  ;;  %v3679_v9 = vld [vmem:[%s3673_s25 + $0x8] sm:$0xff]  ;;  %v3682_v10 = vld [vmem:[%s3673_s25] sm:$0xff]  ;;  %v3694_v12 = vld [vmem:[%s3673_s25 + $0x18] sm:$0xff]  ;;  %s5041_s19 = smov 64  }
  0x1d   : > { %v3437_v5 = vld [vmem:[%s3655_s26] sm:$0xff]   ;;  %v3666_v7 = vld [vmem:[%s3655_s26 + $0x8] sm:$0xff]   ;;  %v3676_v8 = vld [vmem:[%s3655_s26 + $0x10] sm:$0xff]   ;;  %1518 = vrot.lane.b32.xlu1 %v3679_v9, %s5045_s14  ;;  %s5043_s21 = smov 96   ;;  %s3523_s15 = smov 112  }
  0x1e   : > { %3334 = vmatprep.mubr.bf16.mxu1 %v3437_v5  ;;  %3314 = vmatprep.mubr.bf16.mxu0 %v3437_v5  ;;  %v3697_v13 = vld [vmem:[%s3673_s25 + $0x10] sm:$0xff]  ;;  %v3700_v14 = vld [vmem:[%s3655_s26 + $0x18] sm:$0xff]   ;;  %v3703_v15 = vld [vmem:[%s3655_s26 + $0x20] sm:$0xff]   ;;  %s3525_s29 = smov 48   ;;  %s4766_s18 = scalar_lea.vmem %s5040_s8, %s3649_s22 }
  0x1f   : > { %3301 = vmatpush3.bf16.xpose.msra.mxu0 %v3435_v2  ;;  %1516 = vrot.lane.b32.xlu0 %v3682_v10, %s5045_s14  ;;  %v3710_v16 = vld [vmem:[%s3673_s25 + $0x28] sm:$0xff]  ;;  %v3713_v17 = vld [vmem:[%s3673_s25 + $0x20] sm:$0xff]  ;;  %v3722_v18 = vld [vmem:[%s3673_s25 + $0x38] sm:$0xff] }
  0x20   : > { %3333 = vmatpush3.bf16.xpose.msra.mxu1 %v3436_v3  ;;  %3302 = vmatprep.subr.bf16.mxu0 %v3438_v4  ;;  %v3725_v19 = vld [vmem:[%s3673_s25 + $0x30] sm:$0xff]  ;;  %v3728_v20 = vld [vmem:[%s3655_s26 + $0x28] sm:$0xff]   ;;  %v3744_v24 = vld [vmem:[%s3673_s25 + $0x40] sm:$0xff] }
  0x21   : > { %1522 = vrot.lane.b32.xlu1 %v3694_v12, %s5045_s14  ;;  %v3734_v22 = vld [vmem:[%s3655_s26 + $0x30] sm:$0xff]   ;;  %v3741_v23 = vld [vmem:[%s3673_s25 + $0x48] sm:$0xff]  ;;  %v3753_v25 = vld [vmem:[%s3673_s25 + $0x58] sm:$0xff] }
  0x22   : > { %5056 = vst [vmem:[#allocation3_spill] sm:$0xff] %v3734_v22  ;;  %v3756_v26 = vld [vmem:[%s3673_s25 + $0x50] sm:$0xff]  ;;  %v3759_v27 = vld [vmem:[%s3655_s26 + $0x38] sm:$0xff]   ;;  %v3769_v29 = vld [vmem:[%s3673_s25 + $0x68] sm:$0xff]  ;;  %s3524_s26 = smov 80  }
  0x23   : > { %1520 = vrot.lane.b32.xlu0 %v3697_v13, %s5045_s14  ;;  %5057 = vst [vmem:[#allocation4_spill] sm:$0xff] %v3759_v27  ;;  %v3772_v30 = vld [vmem:[%s3673_s25 + $0x60] sm:$0xff]  ;;  %v3780_v31 = vld [vmem:[%s3673_s25 + $0x78] sm:$0xff]  ;;  %v3783_v32 = vld [vmem:[%s3673_s25 + $0x70] sm:$0xff] }
  0x25   : > { %1526 = vrot.lane.b32.xlu1 %v3710_v16, %s5045_s14 }
  0x27   : > { %3335 = vmatmul.mubr.bf16.vlgmr.msra.gmra.mrb[0].mxu1 %v3666_v7  ;;  %3303 = vmatpush3.bf16.xpose.msra.mxu0 %v3438_v4 }
  0x28   : > { %3304 = vmatprep.subr.bf16.mxu0 %v3440_v6  ;;  %3338 = vmatprep.mubr.bf16.mxu1 %v3676_v8 }
  0x29   : > { %1524 = vrot.lane.b32.xlu0 %v3713_v17, %s5045_s14  ;;  %1530 = vrot.lane.b32.xlu1 %v3722_v18, %s5045_s14 }
  0x2d   : > { %1528 = vrot.lane.b32.xlu0 %v3725_v19, %s5045_s14  ;;  %1534 = vrot.lane.b32.xlu1 %v3741_v23, %s5045_s14 }
  0x2f   : > { %3305 = vmatpush3.bf16.xpose.msra.mxu0 %v3440_v6  ;;  %3339 = vmatmul.mubr.bf16.gmra.mrb[4].mxu1 %v3700_v14 }
  0x30   : > { %3306 = vmatprep.subr.bf16.mxu0 %v3443_v11  ;;  %3342 = vmatprep.mubr.bf16.mxu1 %v3703_v15 }
  0x31   : > { %1532 = vrot.lane.b32.xlu0 %v3744_v24, %s5045_s14  ;;  %1538 = vrot.lane.b32.xlu1 %v3753_v25, %s5045_s14 }
  0x35   : > { %1536 = vrot.lane.b32.xlu0 %v3756_v26, %s5045_s14  ;;  %1542 = vrot.lane.b32.xlu1 %v3769_v29, %s5045_s14 }
  0x37   : > { %3307 = vmatpush3.bf16.xpose.msra.mxu0 %v3443_v11  ;;  %3343 = vmatmul.mubr.bf16.gmra.mrb[8].mxu1 %v3728_v20 }
  0x38   : > { %3308 = vmatprep.subr.bf16.mxu0 %v3444_v21  ;;  %3346 = vmatprep.mubr.bf16.mxu1 %v3734_v22 }
  0x39   : > { %1540 = vrot.lane.b32.xlu0 %v3772_v30, %s5045_s14  ;;  %1546 = vrot.lane.b32.xlu1 %v3780_v31, %s5045_s14 }
  0x3d   : > { %1544 = vrot.lane.b32.xlu0 %v3783_v32, %s5045_s14  ;;  %1855 = vrot.lane.b32.xlu1 %v3679_v9, %s5041_s19  ;;  %s4140_s14 = scalar_lea.vmem %s5037_s5, %s2987_s17 }
  0x3f   : > { %3309 = vmatpush3.bf16.xpose.msra.mxu0 %v3444_v21  ;;  %3347 = vmatmul.mubr.bf16.gmra.mrb[12].mxu1 %v3759_v27 }
  0x40   : > { %3310 = vmatprep.subr.bf16.mxu0 %v3447_v28  ;;  %3354 = vmatprep.mubr.bf16.mxu1 %v3437_v5 }
  0x41   : > { %1853 = vrot.lane.b32.xlu0 %v3682_v10, %s5041_s19  ;;  %1859 = vrot.lane.b32.xlu1 %v3694_v12, %s5041_s19 }
  0x45   : > { %1857 = vrot.lane.b32.xlu0 %v3697_v13, %s5041_s19  ;;  %1863 = vrot.lane.b32.xlu1 %v3710_v16, %s5041_s19 }
  0x47   : > { %3311 = vmatpush3.bf16.xpose.msra.mxu0 %v3447_v28 }
  0x48   : > { %3312 = vmatprep.subr.bf16.mxu0 %v3448_v33 }
  0x49   : > { %1861 = vrot.lane.b32.xlu0 %v3713_v17, %s5041_s19  ;;  %1867 = vrot.lane.b32.xlu1 %v3722_v18, %s5041_s19 }
  0x4d   : > { %1865 = vrot.lane.b32.xlu0 %v3725_v19, %s5041_s19  ;;  %1871 = vrot.lane.b32.xlu1 %v3741_v23, %s5041_s19 }
  0x4f   : > { %3313 = vmatpush3.bf16.xpose.msra.mxu0 %v3448_v33 }
  0x51   : > { %1869 = vrot.lane.b32.xlu0 %v3744_v24, %s5041_s19  ;;  %1875 = vrot.lane.b32.xlu1 %v3753_v25, %s5041_s19 }
  0x55   : > { %1873 = vrot.lane.b32.xlu0 %v3756_v26, %s5041_s19  ;;  %1879 = vrot.lane.b32.xlu1 %v3769_v29, %s5041_s19 }
  0x56   : > { %3315 = vmatmul.mubr.bf16.vlgmr.msra.gmra.mrb[0].mxu0 %v3666_v7 }
  0x57   : > { %3318 = vmatprep.mubr.bf16.mxu0 %v3676_v8 }
  0x59   : > { %1877 = vrot.lane.b32.xlu0 %v3772_v30, %s5041_s19  ;;  %1883 = vrot.lane.b32.xlu1 %v3780_v31, %s5041_s19 }
  0x5d   : > { %1881 = vrot.lane.b32.xlu0 %v3783_v32, %s5041_s19  ;;  %2190 = vrot.lane.b32.xlu1 %v3682_v10, %s5043_s21  ;;  %s4161_s19 = scalar_lea.vmem %s5039_s7, %s3649_s22  ;;  %s3162_s22 = sshll.u32 (%p3615_p5), %s3505_s30, 7 }
  0x5e   : > { %3319 = vmatmul.mubr.bf16.gmra.mrb[4].mxu0 %v3700_v14  ;;  %s2506_s16 = sadd.s32 (%p3615_p5), %s3162_s22, %s3631_s23 }
  0x5f   : > { %3322 = vmatprep.mubr.bf16.mxu0 %v3703_v15 }
  0x61   : > { %2192 = vrot.lane.b32.xlu0 %v3679_v9, %s5043_s21  ;;  %2194 = vrot.lane.b32.xlu1 %v3697_v13, %s5043_s21 }
  0x65   : > { %2196 = vrot.lane.b32.xlu0 %v3694_v12, %s5043_s21  ;;  %2198 = vrot.lane.b32.xlu1 %v3713_v17, %s5043_s21 }
  0x66   : > { %3323 = vmatmul.mubr.bf16.gmra.mrb[8].mxu0 %v3728_v20 }
  0x67   : > { %3326 = vmatprep.mubr.bf16.mxu0 %v3734_v22 }
  0x69   : > { %2200 = vrot.lane.b32.xlu0 %v3710_v16, %s5043_s21  ;;  %2202 = vrot.lane.b32.xlu1 %v3725_v19, %s5043_s21 }
  0x6d   : > { %2204 = vrot.lane.b32.xlu0 %v3722_v18, %s5043_s21  ;;  %2206 = vrot.lane.b32.xlu1 %v3744_v24, %s5043_s21 }
  0x6e   : > { %3327 = vmatmul.mubr.bf16.gmra.mrb[12].mxu0 %v3759_v27 }
  0x71   : > { %2208 = vrot.lane.b32.xlu0 %v3741_v23, %s5043_s21  ;;  %2210 = vrot.lane.b32.xlu1 %v3756_v26, %s5043_s21 }
  0x75   : > { %2212 = vrot.lane.b32.xlu0 %v3753_v25, %s5043_s21  ;;  %2214 = vrot.lane.b32.xlu1 %v3772_v30, %s5043_s21 }
  0x79   : > { %2216 = vrot.lane.b32.xlu0 %v3769_v29, %s5043_s21  ;;  %2218 = vrot.lane.b32.xlu1 %v3783_v32, %s5043_s21 }
  0x7d   : > { %2220 = vrot.lane.b32.xlu0 %v3780_v31, %s5043_s21  ;;  %s354_s21 = sand.u32 1, %s3493_s27  }
  0x8f   : > { %v3863_v34 = vpop.permute.xlu1 %1518 }
  0x90   : > { %5058 = vst [vmem:[#allocation5_spill] sm:$0xff] %v3863_v34 }
  0x91   : > { %v3865_v35 = vpop.permute.xlu0 %1516 }
  0x92   : > { %5059 = vst [vmem:[#allocation6_spill] sm:$0xff] %v3865_v35 }
  0x93   : > { %v3867_v36 = vpop.permute.xlu1 %1522 }
  0x94   : > { %5060 = vst [vmem:[#allocation7_spill] sm:$0xff] %v3867_v36 }
  0x95   : > { %v3869_v37 = vpop.permute.xlu0 %1520 }
  0x96   : > { %5061 = vst [vmem:[#allocation8_spill] sm:$0xff] %v3869_v37 }
  0x97   : > { %v3871_v38 = vpop.permute.xlu1 %1526 }
  0x98   : > { %5062 = vst [vmem:[#allocation9_spill] sm:$0xff] %v3871_v38 }
  0x9b   : > { %v3873_v39 = vpop.permute.xlu0 %1524  ;;  %v3875_v40 = vpop.permute.xlu1 %1530 }
  0x9c   : > { %5063 = vst [vmem:[#allocation10_spill] sm:$0xff] %v3873_v39  ;;  %5064 = vst [vmem:[#allocation11_spill] sm:$0xff] %v3875_v40 }
  0x9f   : > { %v3877_v41 = vpop.permute.xlu0 %1528  ;;  %v3879_v42 = vpop.permute.xlu1 %1534 }
  0xa0   : > { %5065 = vst [vmem:[#allocation12_spill] sm:$0xff] %v3877_v41  ;;  %5066 = vst [vmem:[#allocation13_spill] sm:$0xff] %v3879_v42 }
  0xa3   : > { %v3881_v43 = vpop.permute.xlu0 %1532  ;;  %v3893_v47 = vpop.permute.xlu1 %1538 }
  0xa4   : > { %5067 = vst [vmem:[#allocation14_spill] sm:$0xff] %v3881_v43  ;;  %5068 = vst [vmem:[#allocation15_spill] sm:$0xff] %v3893_v47 }
  0xa7   : > { %v3897_v49 = vpop.permute.xlu0 %1536  ;;  %v3905_v51 = vpop.permute.xlu1 %1542 }
  0xa8   : > { %5069 = vst [vmem:[#allocation16_spill] sm:$0xff] %v3897_v49  ;;  %5070 = vst [vmem:[#allocation17_spill] sm:$0xff] %v3905_v51 }
  0xab   : > { %v3913_v53 = vpop.permute.xlu0 %1540  ;;  %v3923_v56 = vpop.permute.xlu1 %1546 }
  0xac   : > { %5071 = vst [vmem:[#allocation18_spill] sm:$0xff] %v3913_v53  ;;  %5072 = vst [vmem:[#allocation19_spill] sm:$0xff] %v3923_v56 }
  0xaf   : > { %v3925_v57 = vpop.permute.xlu0 %1544  ;;  %v3939_v62 = vpop.permute.xlu1 %1855 }
  0xb0   : > { %5073 = vst [vmem:[#allocation20_spill] sm:$0xff] %v3925_v57  ;;  %5074 = vst [vmem:[#allocation21_spill] sm:$0xff] %v3939_v62 }
  0xb3   : > { %v3945_v63 = vpop.permute.xlu0 %1853  ;;  %v3955_v2 = vpop.permute.xlu1 %1859 }
  0xb4   : > { %5075 = vst [vmem:[#allocation22_spill] sm:$0xff] %v3945_v63  ;;  %5076 = vst [vmem:[#allocation23_spill] sm:$0xff] %v3955_v2 }
  0xb7   : > { %v3959_v4 = vpop.permute.xlu0 %1857  ;;  %v3967_v6 = vpop.permute.xlu1 %1863 }
  0xb8   : > { %5077 = vst [vmem:[#allocation24_spill] sm:$0xff] %v3959_v4  ;;  %5078 = vst [vmem:[#allocation25_spill] sm:$0xff] %v3967_v6 }
  0xbb   : > { %v3973_v11 = vpop.permute.xlu0 %1861  ;;  %v3979_v21 = vpop.permute.xlu1 %1867 }
  0xbc   : > { %5079 = vst [vmem:[#allocation26_spill] sm:$0xff] %v3973_v11  ;;  %5080 = vst [vmem:[#allocation27_spill] sm:$0xff] %v3979_v21 }
  0xbf   : > { %v3981_v28 = vpop.permute.xlu0 %1865  ;;  %v3987_v33 = vpop.permute.xlu1 %1871 }
  0xc0   : > { %5081 = vst [vmem:[#allocation28_spill] sm:$0xff] %v3981_v28  ;;  %5082 = vst [vmem:[#allocation29_spill] sm:$0xff] %v3987_v33 }
  0xc3   : > { %v3989_v51 = vpop.permute.xlu0 %1869  ;;  %v4005_v33 = vpop.permute.xlu1 %1875 }
  0xc4   : > { %5083 = vst [vmem:[#allocation30_spill] sm:$0xff] %v3989_v51  ;;  %5084 = vst [vmem:[#allocation31_spill] sm:$0xff] %v4005_v33 }
  0xc7   : > { %v4009_v47 = vpop.permute.xlu0 %1873  ;;  %v4017_v43 = vpop.permute.xlu1 %1879 }
  0xc8   : > { %5085 = vst [vmem:[#allocation32_spill] sm:$0xff] %v4009_v47  ;;  %5087 = vst [vmem:[#allocation34_spill] sm:$0xff] %v4017_v43 }
  0xcb   : > { %v4021_v38 = vpop.permute.xlu0 %1877  ;;  %v4035_v43 = vpop.permute.xlu1 %1883 }
  0xcc   : > { %5089 = vst [vmem:[#allocation36_spill] sm:$0xff] %v4021_v38  ;;  %5091 = vst [vmem:[#allocation38_spill] sm:$0xff] %v4035_v43 }
  0xcf   : > { %v4037_v49 = vpop.permute.xlu0 %1881  ;;  %v4051_v39 = vpop.permute.xlu1 %2190 }
  0xd0   : > { %5092 = vst [vmem:[#allocation39_spill] sm:$0xff] %v4037_v49  ;;  %5093 = vst [vmem:[#allocation40_spill] sm:$0xff] %v4051_v39 }
  0xd3   : > { %v4053_v62 = vpop.permute.xlu0 %2192  ;;  %v4071_v34 = vpop.permute.xlu1 %2194 }
  0xd4   : > { %5094 = vst [vmem:[#allocation41_spill] sm:$0xff] %v4053_v62  ;;  %5095 = vst [vmem:[#allocation42_spill] sm:$0xff] %v4071_v34 }
  0xd7   : > { %v4073_v41 = vpop.permute.xlu0 %2196  ;;  %v4079_v2 = vpop.permute.xlu1 %2198 }
  0xd8   : > { %5096 = vst [vmem:[#allocation43_spill] sm:$0xff] %v4073_v41  ;;  %5097 = vst [vmem:[#allocation44_spill] sm:$0xff] %v4079_v2 }
  0xdb   : > { %v4081_v39 = vpop.permute.xlu0 %2200  ;;  %v4091_v41 = vpop.permute.xlu1 %2202 }
  0xdc   : > { %5098 = vst [vmem:[#allocation45_spill] sm:$0xff] %v4081_v39  ;;  %5099 = vst [vmem:[#allocation46_spill] sm:$0xff] %v4091_v41 }
  0xdf   : > { %v4093_v36 = vpop.permute.xlu0 %2204  ;;  %v4099_v39 = vpop.permute.xlu1 %2206 }
  0xe0   : > { %5100 = vst [vmem:[#allocation47_spill] sm:$0xff] %v4093_v36  ;;  %5101 = vst [vmem:[#allocation48_spill] sm:$0xff] %v4099_v39 }
  0xe3   : > { %v4101_v2 = vpop.permute.xlu0 %2208  ;;  %v4111_v36 = vpop.permute.xlu1 %2210 }
  0xe4   : > { %5102 = vst [vmem:[#allocation49_spill] sm:$0xff] %v4101_v2  ;;  %5103 = vst [vmem:[#allocation50_spill] sm:$0xff] %v4111_v36 }
  0xe7   : > { %v4113_v41 = vpop.permute.xlu0 %2212  ;;  %v4119_v2 = vpop.permute.xlu1 %2214 }
  0xe8   : > { %5104 = vst [vmem:[#allocation51_spill] sm:$0xff] %v4113_v41  ;;  %5105 = vst [vmem:[#allocation52_spill] sm:$0xff] %v4119_v2 }
  0xeb   : > { %v4121_v39 = vpop.permute.xlu0 %2216  ;;  %v4131_v41 = vpop.permute.xlu1 %2218 }
  0xec   : > { %5106 = vst [vmem:[#allocation53_spill] sm:$0xff] %v4121_v39  ;;  %5107 = vst [vmem:[#allocation54_spill] sm:$0xff] %v4131_v41  ;;  %v4147_v39 = vld [vmem:[%s4140_s14 + $0x10] sm:$0xff] }
  0xef   : > { %v4133_v36 = vpop.permute.xlu0 %2220 }
  0xf0   : > { %5108 = vst [vmem:[#allocation55_spill] sm:$0xff] %v4133_v36 }
  0xfa   : > { %v3883_v44 = vpop.f32.mrb[0].mxu1 }
  0xfb   : > { %990 = vrot.lane.b32.xlu0 %v3883_v44, %s3522_s24  ;;  %942 = vrot.lane.b32.xlu1 %v3883_v44, %s3523_s15  ;;  %v3889_v45 = vpop.f32.mrb[1].mxu1  ;;  %v908_v63 = vmul.f32 %v3883_v44, %v3697_v13 }
  0xfc   : > { %v3891_v46 = vpop.f32.mrb[2].mxu1 }
  0xfd   : > { %v3895_v48 = vpop.f32.mrb[3].mxu1 }
  0xff   : > { %938 = vrot.lane.b32.xlu0 %v3889_v45, %s3523_s15  ;;  %944 = vrot.lane.b32.xlu1 %v3891_v46, %s3523_s15 }
 0x102   : > { %v3903_v50 = vpop.f32.mrb[4].mxu1 }
 0x103   : > { %986 = vrot.lane.b32.xlu0 %v3889_v45, %s3522_s24  ;;  %992 = vrot.lane.b32.xlu1 %v3891_v46, %s3522_s24  ;;  %v3911_v52 = vpop.f32.mrb[5].mxu1 }
 0x104   : > { %v3915_v54 = vpop.f32.mrb[6].mxu1 }
 0x105   : > { %v3917_v55 = vpop.f32.mrb[7].mxu1 }
 0x107   : > { %988 = vrot.lane.b32.xlu1 %v3895_v48, %s3522_s24  ;;  %940 = vrot.lane.b32.xlu0 %v3895_v48, %s3523_s15 }
 0x10a   : > { %v3927_v58 = vpop.f32.mrb[8].mxu1 }
 0x10b   : > { %950 = vrot.lane.b32.xlu0 %v3903_v50, %s3523_s15  ;;  %952 = vrot.lane.b32.xlu1 %v3915_v54, %s3523_s15  ;;  %v3933_v59 = vpop.f32.mrb[9].mxu1 }
 0x10c   : > { %v3935_v60 = vpop.f32.mrb[10].mxu1 }
 0x10d   : > { %v3937_v61 = vpop.f32.mrb[11].mxu1 }
 0x10f   : > { %998 = vrot.lane.b32.xlu0 %v3903_v50, %s3522_s24  ;;  %1000 = vrot.lane.b32.xlu1 %v3915_v54, %s3522_s24 }
 0x112   : > { %v3947_v0 = vpop.f32.mrb[12].mxu1 }
 0x113   : > { %946 = vrot.lane.b32.xlu0 %v3911_v52, %s3523_s15  ;;  %948 = vrot.lane.b32.xlu1 %v3917_v55, %s3523_s15  ;;  %v3953_v1 = vpop.f32.mrb[13].mxu1 }
 0x114   : > { %v3957_v3 = vpop.f32.mrb[14].mxu1 }
 0x115   : > { %v3961_v5 = vpop.f32.mrb[15].mxu1 }
 0x117   : > { %994 = vrot.lane.b32.xlu0 %v3911_v52, %s3522_s24  ;;  %996 = vrot.lane.b32.xlu1 %v3917_v55, %s3522_s24 }
 0x11b   : > { %958 = vrot.lane.b32.xlu0 %v3927_v58, %s3523_s15  ;;  %960 = vrot.lane.b32.xlu1 %v3935_v60, %s3523_s15 }
 0x11f   : > { %1006 = vrot.lane.b32.xlu0 %v3927_v58, %s3522_s24  ;;  %1008 = vrot.lane.b32.xlu1 %v3935_v60, %s3522_s24 }
 0x123   : > { %954 = vrot.lane.b32.xlu0 %v3933_v59, %s3523_s15  ;;  %956 = vrot.lane.b32.xlu1 %v3937_v61, %s3523_s15 }
 0x127   : > { %1002 = vrot.lane.b32.xlu0 %v3933_v59, %s3522_s24  ;;  %1004 = vrot.lane.b32.xlu1 %v3937_v61, %s3522_s24 }
 0x129   : > { %v3995_v56 = vpop.f32.mrb[0].mxu0 }
 0x12a   : > { %v3997_v53 = vpop.f32.mrb[1].mxu0 }
 0x12b   : > { %966 = vrot.lane.b32.xlu0 %v3947_v0, %s3523_s15  ;;  %968 = vrot.lane.b32.xlu1 %v3957_v3, %s3523_s15  ;;  %v4003_v42 = vpop.f32.mrb[2].mxu0 }
 0x12c   : > { %v4007_v57 = vpop.f32.mrb[3].mxu0 }
 0x12f   : > { %1014 = vrot.lane.b32.xlu0 %v3947_v0, %s3522_s24  ;;  %1016 = vrot.lane.b32.xlu1 %v3957_v3, %s3522_s24 }
 0x131   : > { %v4015_v51 = vpop.f32.mrb[4].mxu0 }
 0x132   : > { %5086 = vst [vmem:[#allocation33_spill] sm:$0xff] %v4015_v51  ;;  %v4019_v6 = vpop.f32.mrb[5].mxu0 }
 0x133   : > { %5088 = vst [vmem:[#allocation35_spill] sm:$0xff] %v4019_v6  ;;  %962 = vrot.lane.b32.xlu0 %v3953_v1, %s3523_s15  ;;  %964 = vrot.lane.b32.xlu1 %v3961_v5, %s3523_s15  ;;  %v4027_v33 = vpop.f32.mrb[6].mxu0 }
 0x134   : > { %5090 = vst [vmem:[#allocation37_spill] sm:$0xff] %v4027_v33  ;;  %v4029_v47 = vpop.f32.mrb[7].mxu0 }
 0x137   : > { %1010 = vrot.lane.b32.xlu0 %v3953_v1, %s3522_s24  ;;  %1012 = vrot.lane.b32.xlu1 %v3961_v5, %s3522_s24 }
 0x139   : > { %v4039_v38 = vpop.f32.mrb[8].mxu0 }
 0x13a   : > { %v4041_v21 = vpop.f32.mrb[9].mxu0 }
 0x13b   : > { %1280 = vrot.lane.b32.xlu0 %v3995_v56, %s3523_s15  ;;  %1282 = vrot.lane.b32.xlu1 %v4003_v42, %s3523_s15  ;;  %v4047_v40 = vpop.f32.mrb[10].mxu0 }
 0x13c   : > { %v4049_v11 = vpop.f32.mrb[11].mxu0 }
 0x13f   : > { %1328 = vrot.lane.b32.xlu0 %v3995_v56, %s3522_s24  ;;  %1330 = vrot.lane.b32.xlu1 %v4003_v42, %s3522_s24 }
 0x141   : > { %v4059_v43 = vpop.f32.mrb[12].mxu0 }
 0x142   : > { %v4061_v49 = vpop.f32.mrb[13].mxu0 }
 0x143   : > { %1584 = vrot.lane.b32.xlu0 %v3995_v56, %s3524_s26  ;;  %1586 = vrot.lane.b32.xlu1 %v4003_v42, %s3524_s26  ;;  %v4067_v28 = vpop.f32.mrb[14].mxu0 }
 0x144   : > { %v4069_v62 = vpop.f32.mrb[15].mxu0 }
 0x147   : > { %1921 = vrot.lane.b32.xlu0 %v3995_v56, %s3525_s29  ;;  %1923 = vrot.lane.b32.xlu1 %v4003_v42, %s3525_s29 }
 0x14b   : > { %1276 = vrot.lane.b32.xlu0 %v3997_v53, %s3523_s15  ;;  %1278 = vrot.lane.b32.xlu1 %v4007_v57, %s3523_s15 }
 0x14f   : > { %1324 = vrot.lane.b32.xlu0 %v3997_v53, %s3522_s24  ;;  %1326 = vrot.lane.b32.xlu1 %v4007_v57, %s3522_s24 }
 0x153   : > { %1580 = vrot.lane.b32.xlu0 %v3997_v53, %s3524_s26  ;;  %1582 = vrot.lane.b32.xlu1 %v4007_v57, %s3524_s26 }
 0x157   : > { %1917 = vrot.lane.b32.xlu0 %v3997_v53, %s3525_s29  ;;  %1919 = vrot.lane.b32.xlu1 %v4007_v57, %s3525_s29 }
 0x15b   : > { %1288 = vrot.lane.b32.xlu0 %v4015_v51, %s3523_s15  ;;  %1290 = vrot.lane.b32.xlu1 %v4027_v33, %s3523_s15 }
 0x15f   : > { %1336 = vrot.lane.b32.xlu0 %v4015_v51, %s3522_s24  ;;  %1338 = vrot.lane.b32.xlu1 %v4027_v33, %s3522_s24 }
 0x163   : > { %1592 = vrot.lane.b32.xlu0 %v4015_v51, %s3524_s26  ;;  %1594 = vrot.lane.b32.xlu1 %v4027_v33, %s3524_s26 }
 0x167   : > { %1929 = vrot.lane.b32.xlu0 %v4015_v51, %s3525_s29  ;;  %1931 = vrot.lane.b32.xlu1 %v4027_v33, %s3525_s29  ;;  %v909_v51 = vmul.f32 %v3891_v46, %v3694_v12  ;;  %v907_v46 = vmul.f32 %v3679_v9, %v3895_v48 }
 0x16b   : > { %1284 = vrot.lane.b32.xlu0 %v4019_v6, %s3523_s15  ;;  %1286 = vrot.lane.b32.xlu1 %v4029_v47, %s3523_s15 }
 0x16d   : > { %v991_v41 = vpop.permute.xlu0 %990  ;;  %v943_v36 = vpop.permute.xlu1 %942 }
 0x16e   : > { %v1037_v2 = vsel %vm1034_vm0, %v943_v36, %v991_v41  ;;  %v4168_v41 = vld [vmem:[%s4140_s14] sm:$0xff] }
 0x16f   : > { %v1053_v35 = vmul.f32 %v1037_v2, %v4147_v39  ;;  %1332 = vrot.lane.b32.xlu0 %v4019_v6, %s3522_s24  ;;  %1334 = vrot.lane.b32.xlu1 %v4029_v47, %s3522_s24  ;;  %v906_v2 = vmul.f32 %v3682_v10, %v3889_v45  ;;  %v4188_v45 = vld [vmem:[%s4140_s14 + $0x8] sm:$0xff] }
 0x171   : > { %v1069_v34 = vadd.f32 %v1053_v35, %v908_v63  ;;  %v939_v4 = vpop.permute.xlu0 %938  ;;  %v945_v37 = vpop.permute.xlu1 %944  ;;  %v4171_v35 = vld [vmem:[%s4140_s14 + $0x18] sm:$0xff] }
 0x173   : > { %v3168_v36 = vpack.c.bf16 %v1069_v34, %v1069_v34  ;;  %1588 = vrot.lane.b32.xlu0 %v4019_v6, %s3524_s26  ;;  %1590 = vrot.lane.b32.xlu1 %v4029_v47, %s3524_s26 }
 0x175   : > { %1150 = vst.msk [vmem:[%s4161_s19 + $0x8] sm:$0xf] %vm1147_vm1, %v3168_v36  ;;  %v987_v44 = vpop.permute.xlu0 %986  ;;  %v993_v63 = vpop.permute.xlu1 %992 }
 0x176   : > { %v1035_v34 = vsel %vm1034_vm0, %v939_v4, %v987_v44  ;;  %v1038_v33 = vsel %vm1034_vm0, %v945_v37, %v993_v63 }
 0x177   : > { %v1051_v27 = vmul.f32 %v1035_v34, %v4168_v41  ;;  %v1054_v22 = vmul.f32 %v1038_v33, %v4171_v35  ;;  %1925 = vrot.lane.b32.xlu0 %v4019_v6, %s3525_s29  ;;  %1927 = vrot.lane.b32.xlu1 %v4029_v47, %s3525_s29 }
 0x179   : > { %v1067_v4 = vadd.f32 %v1051_v27, %v906_v2  ;;  %v1070_v36 = vadd.f32 %v1054_v22, %v909_v51  ;;  %v989_v37 = vpop.permute.xlu1 %988  ;;  %v941_v44 = vpop.permute.xlu0 %940  ;;  %v4207_v2 = vld [vmem:[%s4140_s14 + $0x30] sm:$0xff] }
 0x17a   : > { %v1036_v33 = vsel %vm1034_vm0, %v941_v44, %v989_v37 }
 0x17b   : > { %v3166_v63 = vpack.c.bf16 %v1067_v4, %v1067_v4  ;;  %v3169_v34 = vpack.c.bf16 %v1070_v36, %v1070_v36  ;;  %v1052_v6 = vmul.f32 %v1036_v33, %v4188_v45  ;;  %1296 = vrot.lane.b32.xlu0 %v4039_v38, %s3523_s15  ;;  %1298 = vrot.lane.b32.xlu1 %v4047_v40, %s3523_s15  ;;  %v4210_v4 = vld [vmem:[%s4140_s14 + $0x38] sm:$0xff] }
 0x17c   : > { %v913_v33 = vmul.f32 %v3915_v54, %v3722_v18  ;;  %v4231_v54 = vld [vmem:[%s4140_s14 + $0x20] sm:$0xff] }
 0x17d   : > { %1148 = vst.msk [vmem:[%s4161_s19] sm:$0xf] %vm1147_vm1, %v3166_v63  ;;  %1151 = vst.msk [vmem:[%s4161_s19 + $0xc] sm:$0xf] %vm1147_vm1, %v3169_v34  ;;  %v1068_v22 = vadd.f32 %v1052_v6, %v907_v46  ;;  %v951_v27 = vpop.permute.xlu0 %950  ;;  %v953_v48 = vpop.permute.xlu1 %952  ;;  %v912_v6 = vmul.f32 %v3903_v50, %v3725_v19 }
 0x17f   : > { %v3167_v51 = vpack.c.bf16 %v1068_v22, %v1068_v22  ;;  %1344 = vrot.lane.b32.xlu0 %v4039_v38, %s3522_s24  ;;  %1346 = vrot.lane.b32.xlu1 %v4047_v40, %s3522_s24 }
 0x181   : > { %1149 = vst.msk [vmem:[%s4161_s19 + $0x4] sm:$0xf] %vm1147_vm1, %v3167_v51  ;;  %v999_v36 = vpop.permute.xlu0 %998  ;;  %v1001_v37 = vpop.permute.xlu1 %1000 }
 0x182   : > { %v1041_v44 = vsel %vm1034_vm0, %v951_v27, %v999_v36  ;;  %v1042_v46 = vsel %vm1034_vm0, %v953_v48, %v1001_v37  ;;  %v4234_v37 = vld [vmem:[%s4140_s14 + $0x28] sm:$0xff] }
 0x183   : > { %v1057_v63 = vmul.f32 %v1041_v44, %v4207_v2  ;;  %v1058_v34 = vmul.f32 %v1042_v46, %v4210_v4  ;;  %1600 = vrot.lane.b32.xlu0 %v4039_v38, %s3524_s26  ;;  %1602 = vrot.lane.b32.xlu1 %v4047_v40, %s3524_s26  ;;  %v910_v46 = vmul.f32 %v3713_v17, %v3911_v52 }
 0x185   : > { %v1073_v50 = vadd.f32 %v1057_v63, %v912_v6  ;;  %v1074_v22 = vadd.f32 %v1058_v34, %v913_v33  ;;  %v947_v27 = vpop.permute.xlu0 %946  ;;  %v949_v51 = vpop.permute.xlu1 %948  ;;  %v911_v34 = vmul.f32 %v3710_v16, %v3917_v55  ;;  %v4257_v16 = vld [vmem:[%s4140_s14 + $0x50] sm:$0xff]  ;;  %v4260_v55 = vld [vmem:[%s4140_s14 + $0x58] sm:$0xff] }
 0x187   : > { %v3172_v48 = vpack.c.bf16 %v1073_v50, %v1073_v50  ;;  %v3173_v36 = vpack.c.bf16 %v1074_v22, %v1074_v22  ;;  %1937 = vrot.lane.b32.xlu0 %v4039_v38, %s3525_s29  ;;  %1939 = vrot.lane.b32.xlu1 %v4047_v40, %s3525_s29 }
 0x189   : > { %1154 = vst.msk [vmem:[%s4161_s19 + $0x18] sm:$0xf] %vm1147_vm1, %v3172_v48  ;;  %1155 = vst.msk [vmem:[%s4161_s19 + $0x1c] sm:$0xf] %vm1147_vm1, %v3173_v36  ;;  %v995_v6 = vpop.permute.xlu0 %994  ;;  %v997_v44 = vpop.permute.xlu1 %996 }
 0x18a   : > { %v1039_v33 = vsel %vm1034_vm0, %v947_v27, %v995_v6  ;;  %v1040_v63 = vsel %vm1034_vm0, %v949_v51, %v997_v44 }
 0x18b   : > { %v1055_v50 = vmul.f32 %v1039_v33, %v4231_v54  ;;  %v1056_v22 = vmul.f32 %v1040_v63, %v4234_v37  ;;  %1292 = vrot.lane.b32.xlu0 %v4041_v21, %s3523_s15  ;;  %1294 = vrot.lane.b32.xlu1 %v4049_v11, %s3523_s15 }
 0x18d   : > { %v1071_v17 = vadd.f32 %v1055_v50, %v910_v46  ;;  %v1072_v52 = vadd.f32 %v1056_v22, %v911_v34  ;;  %v959_v27 = vpop.permute.xlu0 %958  ;;  %v961_v48 = vpop.permute.xlu1 %960  ;;  %v916_v46 = vmul.f32 %v3927_v58, %v3756_v26  ;;  %v917_v34 = vmul.f32 %v3935_v60, %v3753_v25  ;;  %v4283_v25 = vld [vmem:[%s4140_s14 + $0x40] sm:$0xff]  ;;  %v4286_v60 = vld [vmem:[%s4140_s14 + $0x48] sm:$0xff] }
 0x18f   : > { %v3170_v51 = vpack.c.bf16 %v1071_v17, %v1071_v17  ;;  %v3171_v36 = vpack.c.bf16 %v1072_v52, %v1072_v52  ;;  %1340 = vrot.lane.b32.xlu0 %v4041_v21, %s3522_s24  ;;  %1342 = vrot.lane.b32.xlu1 %v4049_v11, %s3522_s24 }
 0x191   : > { %1152 = vst.msk [vmem:[%s4161_s19 + $0x10] sm:$0xf] %vm1147_vm1, %v3170_v51  ;;  %1153 = vst.msk [vmem:[%s4161_s19 + $0x14] sm:$0xf] %vm1147_vm1, %v3171_v36  ;;  %v1007_v6 = vpop.permute.xlu0 %1006  ;;  %v1009_v44 = vpop.permute.xlu1 %1008 }
 0x192   : > { %v1045_v33 = vsel %vm1034_vm0, %v959_v27, %v1007_v6  ;;  %v1046_v63 = vsel %vm1034_vm0, %v961_v48, %v1009_v44  ;;  %v914_v6 = vmul.f32 %v3744_v24, %v3933_v59  ;;  %v3451_v24 = vld [vmem:[%s5035_s3] sm:$0xff]  }
 0x193   : > { %v1061_v50 = vmul.f32 %v1045_v33, %v4257_v16  ;;  %v1062_v22 = vmul.f32 %v1046_v63, %v4260_v55  ;;  %1596 = vrot.lane.b32.xlu0 %v4041_v21, %s3524_s26  ;;  %1598 = vrot.lane.b32.xlu1 %v4049_v11, %s3524_s26  ;;  %v915_v33 = vmul.f32 %v3741_v23, %v3937_v61 }
 0x194   : > { %3350 = vmatprep.subr.bf16.mxu1 %v3451_v24 }
 0x195   : > { %v1077_v26 = vadd.f32 %v1061_v50, %v916_v46  ;;  %v1078_v58 = vadd.f32 %v1062_v22, %v917_v34  ;;  %v955_v17 = vpop.permute.xlu0 %954  ;;  %v957_v52 = vpop.permute.xlu1 %956  ;;  %3351 = vmatpush3.bf16.xpose.msra.mxu1 %v3451_v24 }
 0x197   : > { %v3176_v27 = vpack.c.bf16 %v1077_v26, %v1077_v26  ;;  %v3177_v48 = vpack.c.bf16 %v1078_v58, %v1078_v58  ;;  %1933 = vrot.lane.b32.xlu0 %v4041_v21, %s3525_s29  ;;  %1935 = vrot.lane.b32.xlu1 %v4049_v11, %s3525_s29  ;;  %v4312_v58 = vld [vmem:[%s4140_s14 + $0x70] sm:$0xff] }
 0x199   : > { %1158 = vst.msk [vmem:[%s4161_s19 + $0x28] sm:$0xf] %vm1147_vm1, %v3176_v27  ;;  %1159 = vst.msk [vmem:[%s4161_s19 + $0x2c] sm:$0xf] %vm1147_vm1, %v3177_v48  ;;  %v1003_v51 = vpop.permute.xlu0 %1002  ;;  %v1005_v36 = vpop.permute.xlu1 %1004  ;;  %v920_v48 = vmul.f32 %v3947_v0, %v3783_v32 }
 0x19a   : > { %v1043_v44 = vsel %vm1034_vm0, %v955_v17, %v1003_v51  ;;  %v1044_v46 = vsel %vm1034_vm0, %v957_v52, %v1005_v36  ;;  %v4315_v17 = vld [vmem:[%s4140_s14 + $0x78] sm:$0xff] }
 0x19b   : > { %v1059_v63 = vmul.f32 %v1043_v44, %v4283_v25  ;;  %v1060_v34 = vmul.f32 %v1044_v46, %v4286_v60  ;;  %1304 = vrot.lane.b32.xlu0 %v4059_v43, %s3523_s15  ;;  %1306 = vrot.lane.b32.xlu1 %v4067_v28, %s3523_s15 }
 0x19d   : > { %v1075_v59 = vadd.f32 %v1059_v63, %v914_v6  ;;  %v1076_v23 = vadd.f32 %v1060_v34, %v915_v33  ;;  %v967_v61 = vpop.permute.xlu0 %966  ;;  %v969_v50 = vpop.permute.xlu1 %968  ;;  %v921_v6 = vmul.f32 %v3957_v3, %v3780_v31  ;;  %v4338_v31 = vld [vmem:[%s4140_s14 + $0x60] sm:$0xff]  ;;  %v4341_v3 = vld [vmem:[%s4140_s14 + $0x68] sm:$0xff]  ;;  %s3163_s14 = sshll.u32 (%p3615_p5), %s2506_s16, 2 }
 0x19f   : > { %v3174_v22 = vpack.c.bf16 %v1075_v59, %v1075_v59  ;;  %v3175_v26 = vpack.c.bf16 %v1076_v23, %v1076_v23  ;;  %1352 = vrot.lane.b32.xlu0 %v4059_v43, %s3522_s24  ;;  %1354 = vrot.lane.b32.xlu1 %v4067_v28, %s3522_s24 }
 0x1a1   : > { %1156 = vst.msk [vmem:[%s4161_s19 + $0x20] sm:$0xf] %vm1147_vm1, %v3174_v22  ;;  %1157 = vst.msk [vmem:[%s4161_s19 + $0x24] sm:$0xf] %vm1147_vm1, %v3175_v26  ;;  %v1015_v52 = vpop.permute.xlu0 %1014  ;;  %v1017_v27 = vpop.permute.xlu1 %1016  ;;  %v919_v26 = vmul.f32 %v3769_v29, %v3961_v5 }
 0x1a2   : > { %v1049_v51 = vsel %vm1034_vm0, %v967_v61, %v1015_v52  ;;  %v1050_v36 = vsel %vm1034_vm0, %v969_v50, %v1017_v27  ;;  %v918_v61 = vmul.f32 %v3772_v30, %v3953_v1  ;;  %v3452_v30 = vld [vmem:[%s5035_s3 + $0x8] sm:$0xff]  }
 0x1a3   : > { %v1065_v44 = vmul.f32 %v1049_v51, %v4312_v58  ;;  %v1066_v46 = vmul.f32 %v1050_v36, %v4315_v17  ;;  %1608 = vrot.lane.b32.xlu0 %v4059_v43, %s3524_s26  ;;  %1610 = vrot.lane.b32.xlu1 %v4067_v28, %s3524_s26 }
 0x1a4   : > { %3352 = vmatprep.subr.bf16.mxu1 %v3452_v30 }
 0x1a5   : > { %v1081_v32 = vadd.f32 %v1065_v44, %v920_v48  ;;  %v1082_v0 = vadd.f32 %v1066_v46, %v921_v6  ;;  %v963_v33 = vpop.permute.xlu0 %962  ;;  %v965_v63 = vpop.permute.xlu1 %964  ;;  %3353 = vmatpush3.bf16.xpose.msra.mxu1 %v3452_v30  ;;  %v1246_v46 = vmul.f32 %v3995_v56, %v3697_v13 }
 0x1a7   : > { %v3180_v34 = vpack.c.bf16 %v1081_v32, %v1081_v32  ;;  %v3181_v24 = vpack.c.bf16 %v1082_v0, %v1082_v0  ;;  %1945 = vrot.lane.b32.xlu0 %v4059_v43, %s3525_s29  ;;  %1947 = vrot.lane.b32.xlu1 %v4067_v28, %s3525_s29 }
 0x1a9   : > { %1162 = vst.msk [vmem:[%s4161_s19 + $0x38] sm:$0xf] %vm1147_vm1, %v3180_v34  ;;  %1163 = vst.msk [vmem:[%s4161_s19 + $0x3c] sm:$0xf] %vm1147_vm1, %v3181_v24  ;;  %v1011_v59 = vpop.permute.xlu0 %1010  ;;  %v1013_v23 = vpop.permute.xlu1 %1012 }
 0x1aa   : > { %v1047_v50 = vsel %vm1034_vm0, %v963_v33, %v1011_v59  ;;  %v1048_v22 = vsel %vm1034_vm0, %v965_v63, %v1013_v23  ;;  %v1247_v63 = vmul.f32 %v4003_v42, %v3694_v12 }
 0x1ab   : > { %v1063_v52 = vmul.f32 %v1047_v50, %v4338_v31  ;;  %v1064_v27 = vmul.f32 %v1048_v22, %v4341_v3  ;;  %1300 = vrot.lane.b32.xlu0 %v4061_v49, %s3523_s15  ;;  %1302 = vrot.lane.b32.xlu1 %v4069_v62, %s3523_s15  ;;  %s2982_s15 = sshll.u32 %s354_s21, 8 }
 0x1ac   : > { %3355 = vmatmul.mubr.bf16.vlgmr.msra.gmra.mrb[16].mxu1 %v3666_v7  ;;  %s4395_s27 = scalar_lea.vmem [#allocation2], %s2982_s15  ;;  %s4954_s15 = scalar_lea.vmem (%p3615_p5), %s5038_s6, %s3163_s14 }
 0x1ad   : > { %v1079_v1 = vadd.f32 %v1063_v52, %v918_v61  ;;  %v1080_v48 = vadd.f32 %v1064_v27, %v919_v26  ;;  %v1281_v51 = vpop.permute.xlu0 %1280  ;;  %v4362_v29 = vpop.permute.xlu1 %1282  ;;  %3358 = vmatprep.mubr.bf16.mxu1 %v3676_v8 }
 0x1af   : > { %v3178_v5 = vpack.c.bf16 %v1079_v1, %v1079_v1  ;;  %v3179_v36 = vpack.c.bf16 %v1080_v48, %v1080_v48  ;;  %1348 = vrot.lane.b32.xlu0 %v4061_v49, %s3522_s24  ;;  %1350 = vrot.lane.b32.xlu1 %v4069_v62, %s3522_s24  ;;  %s5109_s24 = smov 32  }
 0x1b1   : > { %1160 = vst.msk [vmem:[%s4161_s19 + $0x30] sm:$0xf] %vm1147_vm1, %v3178_v5  ;;  %1161 = vst.msk [vmem:[%s4161_s19 + $0x34] sm:$0xf] %vm1147_vm1, %v3179_v36  ;;  %v1329_v6 = vpop.permute.xlu0 %1328  ;;  %v4373_v44 = vpop.permute.xlu1 %1330 }
 0x1b2   : > { %v1374_v32 = vsel %vm1034_vm0, %v1281_v51, %v1329_v6  ;;  %v1375_v0 = vsel %vm1034_vm0, %v4362_v29, %v4373_v44 }
 0x1b3   : > { %v1390_v33 = vmul.f32 %v1374_v32, %v4147_v39  ;;  %v1391_v34 = vmul.f32 %v1375_v0, %v4171_v35  ;;  %1604 = vrot.lane.b32.xlu0 %v4061_v49, %s3524_s26  ;;  %1606 = vrot.lane.b32.xlu1 %v4069_v62, %s3524_s26  ;;  %s5110_s26 = smov 96   ;;  %v1245_v32 = vmul.f32 %v3679_v9, %v4007_v57 }
 0x1b4   : > { %3359 = vmatmul.mubr.bf16.gmra.mrb[20].mxu1 %v3700_v14 }
 0x1b5   : > { %v1406_v13 = vadd.f32 %v1390_v33, %v1246_v46  ;;  %v1407_v24 = vadd.f32 %v1391_v34, %v1247_v63  ;;  %v1585_v59 = vpop.permute.xlu0 %1584  ;;  %v1587_v23 = vpop.permute.xlu1 %1586  ;;  %3362 = vmatprep.mubr.bf16.mxu1 %v3703_v15 }
 0x1b6   : > { %v1630_v61 = vsel %vm1034_vm0, %v1585_v59, %v1281_v51 }
 0x1b7   : > { %v3200_v50 = vpack.c.bf16 %v1406_v13, %v1406_v13  ;;  %v3201_v22 = vpack.c.bf16 %v1407_v24, %v1407_v24  ;;  %1941 = vrot.lane.b32.xlu0 %v4061_v49, %s3525_s29  ;;  %1943 = vrot.lane.b32.xlu1 %v4069_v62, %s3525_s29  ;;  %v1646_v12 = vmul.f32 %v1630_v61, %v4147_v39  ;;  %s5111_s29 = smov 64   ;;  %v5112_v61 = vld [vmem:[#allocation3_spill] sm:$0xff] }
 0x1b9   : > { %1486 = vst.msk [vmem:[%s4395_s27 + $0x8] sm:$0xf] %vm1147_vm1, %v3200_v50  ;;  %1487 = vst.msk [vmem:[%s4395_s27 + $0xc] sm:$0xf] %vm1147_vm1, %v3201_v22  ;;  %v1922_v26 = vpop.permute.xlu0 %1921  ;;  %v1924_v52 = vpop.permute.xlu1 %1923 }
 0x1ba   : > { %v1967_v27 = vsel %vm1034_vm0, %v1922_v26, %v1585_v59  ;;  %v2256_v30 = vsel %vm1034_vm0, %v1329_v6, %v1922_v26 }
 0x1bb   : > { %v2272_v7 = vmul.f32 %v2256_v30, %v4147_v39  ;;  %1680 = vrot.lane.b32.xlu0 %v1646_v12, %s5109_s24  ;;  %v1983_v1 = vmul.f32 %v1967_v27, %v4147_v39  ;;  %v1244_v39 = vmul.f32 %v3682_v10, %v3997_v53  ;;  %v2257_v27 = vsel %vm1034_vm0, %v4373_v44, %v1924_v52  ;;  %v5114_v44 = vld [vmem:[#allocation33_spill] sm:$0xff] }
 0x1bc   : > { %3363 = vmatmul.mubr.bf16.gmra.mrb[24].mxu1 %v3728_v20  ;;  %v1631_v20 = vsel %vm1034_vm0, %v1587_v23, %v4362_v29 }
 0x1bd   : > { %v1277_v48 = vpop.permute.xlu0 %1276  ;;  %v1279_v51 = vpop.permute.xlu1 %1278  ;;  %2306 = vrot.lane.b32.xlu1 %v2272_v7, %s5110_s26  ;;  %3366 = vmatprep.mubr.bf16.mxu1 %v5112_v61 }
 0x1bf   : > { %2017 = vrot.lane.b32.xlu0 %v1983_v1, %s5111_s29  ;;  %v1647_v1 = vmul.f32 %v1631_v20, %v4171_v35 }
 0x1c1   : > { %v1325_v5 = vpop.permute.xlu0 %1324  ;;  %v1327_v8 = vpop.permute.xlu1 %1326 }
 0x1c2   : > { %v1372_v36 = vsel %vm1034_vm0, %v1277_v48, %v1325_v5  ;;  %v1373_v6 = vsel %vm1034_vm0, %v1279_v51, %v1327_v8 }
 0x1c3   : > { %v1388_v46 = vmul.f32 %v1372_v36, %v4168_v41  ;;  %v1389_v14 = vmul.f32 %v1373_v6, %v4188_v45  ;;  %v5113_v36 = vld [vmem:[#allocation4_spill] sm:$0xff] }
 0x1c4   : > { %3367 = vmatmul.mubr.bf16.gmra.mrb[28].mxu1 %v5113_v36  ;;  %v5116_v36 = vld [vmem:[#allocation35_spill] sm:$0xff] }
 0x1c5   : > { %v1404_v0 = vadd.f32 %v1388_v46, %v1244_v39  ;;  %v1405_v33 = vadd.f32 %v1389_v14, %v1245_v32  ;;  %v1581_v63 = vpop.permute.xlu0 %1580  ;;  %v1583_v15 = vpop.permute.xlu1 %1582  ;;  %v1250_v39 = vmul.f32 %v5114_v44, %v3725_v19  ;;  %v5115_v32 = vld [vmem:[#allocation37_spill] sm:$0xff] }
 0x1c6   : > { %v1628_v34 = vsel %vm1034_vm0, %v1581_v63, %v1277_v48  ;;  %v2273_v48 = vmul.f32 %v2257_v27, %v4171_v35  ;;  %v1251_v14 = vmul.f32 %v5115_v32, %v3722_v18  ;;  %v1629_v19 = vsel %vm1034_vm0, %v1583_v15, %v1279_v51 }
 0x1c7   : > { %v3198_v13 = vpack.c.bf16 %v1404_v0, %v1404_v0  ;;  %v3199_v24 = vpack.c.bf16 %v1405_v33, %v1405_v33  ;;  %v1644_v59 = vmul.f32 %v1628_v34, %v4168_v41 }
 0x1c9   : > { %1484 = vst.msk [vmem:[%s4395_s27] sm:$0xf] %vm1147_vm1, %v3198_v13  ;;  %1485 = vst.msk [vmem:[%s4395_s27 + $0x4] sm:$0xf] %vm1147_vm1, %v3199_v24  ;;  %v1918_v10 = vpop.permute.xlu0 %1917  ;;  %v1920_v9 = vpop.permute.xlu1 %1919  ;;  %1676 = vrot.lane.b32.xlu0 %v1644_v59, %s5109_s24  ;;  %v1645_v24 = vmul.f32 %v1629_v19, %v4188_v45 }
 0x1ca   : > { %v1965_v50 = vsel %vm1034_vm0, %v1918_v10, %v1581_v63  ;;  %v2254_v22 = vsel %vm1034_vm0, %v1325_v5, %v1918_v10  ;;  %v1968_v5 = vsel %vm1034_vm0, %v1924_v52, %v1587_v23 }
 0x1cb   : > { %v1981_v12 = vmul.f32 %v1965_v50, %v4168_v41  ;;  %v2270_v26 = vmul.f32 %v2254_v22, %v4168_v41  ;;  %v2255_v41 = vsel %vm1034_vm0, %v1327_v8, %v1920_v9  ;;  %v1984_v52 = vmul.f32 %v1968_v5, %v4171_v35 }
 0x1cc   : > { %v2271_v8 = vmul.f32 %v2255_v41, %v4188_v45  ;;  %v1966_v50 = vsel %vm1034_vm0, %v1920_v9, %v1583_v15  ;;  %v3453_v41 = vld [vmem:[%s3673_s25 + $0x20] sm:$0xff] }
 0x1cd   : > { %v1289_v30 = vpop.permute.xlu0 %1288  ;;  %v4437_v7 = vpop.permute.xlu1 %1290  ;;  %2013 = vrot.lane.b32.xlu0 %v1981_v12, %s5111_s29  ;;  %2302 = vrot.lane.b32.xlu1 %v2270_v26, %s5110_s26  ;;  %v1982_v26 = vmul.f32 %v1966_v50, %v4188_v45 }
 0x1d1   : > { %v1337_v29 = vpop.permute.xlu0 %1336  ;;  %v4446_v6 = vpop.permute.xlu1 %1338  ;;  %2308 = vrot.lane.b32.xlu0 %v2273_v48, %s5110_s26  ;;  %1682 = vrot.lane.b32.xlu1 %v1647_v1, %s5109_s24 }
 0x1d2   : > { %v1378_v46 = vsel %vm1034_vm0, %v1289_v30, %v1337_v29  ;;  %v1379_v23 = vsel %vm1034_vm0, %v4437_v7, %v4446_v6 }
 0x1d3   : > { %v1394_v0 = vmul.f32 %v1378_v46, %v4207_v2  ;;  %v1395_v33 = vmul.f32 %v1379_v23, %v4210_v4  ;;  %v3454_v46 = vld [vmem:[%s3673_s25 + $0x28] sm:$0xff] }
 0x1d5   : > { %v1410_v63 = vadd.f32 %v1394_v0, %v1250_v39  ;;  %v1411_v34 = vadd.f32 %v1395_v33, %v1251_v14  ;;  %v1593_v13 = vpop.permute.xlu0 %1592  ;;  %v1595_v18 = vpop.permute.xlu1 %1594  ;;  %2304 = vrot.lane.b32.xlu0 %v2271_v8, %s5110_s26  ;;  %2019 = vrot.lane.b32.xlu1 %v1984_v52, %s5111_s29  ;;  %v1249_v14 = vmul.f32 %v3454_v46, %v4029_v47 }
 0x1d6   : > { %v1634_v35 = vsel %vm1034_vm0, %v1593_v13, %v1289_v30  ;;  %v1635_v50 = vsel %vm1034_vm0, %v1595_v18, %v4437_v7 }
 0x1d7   : > { %v3204_v59 = vpack.c.bf16 %v1410_v63, %v1410_v63  ;;  %v3205_v10 = vpack.c.bf16 %v1411_v34, %v1411_v34  ;;  %v1650_v61 = vmul.f32 %v1634_v35, %v4207_v2 }
 0x1d9   : > { %1490 = vst.msk [vmem:[%s4395_s27 + $0x18] sm:$0xf] %vm1147_vm1, %v3204_v59  ;;  %1491 = vst.msk [vmem:[%s4395_s27 + $0x1c] sm:$0xf] %vm1147_vm1, %v3205_v10  ;;  %v1930_v51 = vpop.permute.xlu0 %1929  ;;  %v1932_v22 = vpop.permute.xlu1 %1931  ;;  %1688 = vrot.lane.b32.xlu0 %v1650_v61, %s5109_s24  ;;  %1678 = vrot.lane.b32.xlu1 %v1645_v24, %s5109_s24 }
 0x1da   : > { %v1971_v12 = vsel %vm1034_vm0, %v1930_v51, %v1593_v13  ;;  %v2260_v15 = vsel %vm1034_vm0, %v1337_v29, %v1930_v51  ;;  %v1248_v29 = vmul.f32 %v3453_v41, %v5116_v36  ;;  %v2261_v51 = vsel %vm1034_vm0, %v4446_v6, %v1932_v22  ;;  %v3455_v6 = vld [vmem:[%s3673_s25 + $0x50] sm:$0xff] }
 0x1db   : > { %v1987_v20 = vmul.f32 %v1971_v12, %v4207_v2  ;;  %v2276_v30 = vmul.f32 %v2260_v15, %v4207_v2  ;;  %v2277_v15 = vmul.f32 %v2261_v51, %v4210_v4 }
 0x1dd   : > { %v1285_v9 = vpop.permute.xlu0 %1284  ;;  %v1287_v27 = vpop.permute.xlu1 %1286  ;;  %2025 = vrot.lane.b32.xlu0 %v1987_v20, %s5111_s29  ;;  %2015 = vrot.lane.b32.xlu1 %v1982_v26, %s5111_s29  ;;  %v1651_v20 = vmul.f32 %v1635_v50, %v4210_v4 }
 0x1e1   : > { %v1333_v1 = vpop.permute.xlu0 %1332  ;;  %v1335_v48 = vpop.permute.xlu1 %1334  ;;  %2314 = vrot.lane.b32.xlu1 %v2276_v30, %s5110_s26 }
 0x1e2   : > { %v1376_v5 = vsel %vm1034_vm0, %v1285_v9, %v1333_v1  ;;  %v1377_v45 = vsel %vm1034_vm0, %v1287_v27, %v1335_v48 }
 0x1e3   : > { %v1392_v39 = vmul.f32 %v1376_v5, %v4231_v54  ;;  %v1393_v2 = vmul.f32 %v1377_v45, %v4234_v37  ;;  %v3456_v45 = vld [vmem:[%s3673_s25 + $0x58] sm:$0xff] }
 0x1e4   : > { %v1255_v41 = vmul.f32 %v3456_v45, %v4047_v40 }
 0x1e5   : > { %v1408_v23 = vadd.f32 %v1392_v39, %v1248_v29  ;;  %v1409_v52 = vadd.f32 %v1393_v2, %v1249_v14  ;;  %v1589_v8 = vpop.permute.xlu0 %1588  ;;  %v1591_v0 = vpop.permute.xlu1 %1590 }
 0x1e6   : > { %v1632_v33 = vsel %vm1034_vm0, %v1589_v8, %v1285_v9  ;;  %v1633_v46 = vsel %vm1034_vm0, %v1591_v0, %v1287_v27 }
 0x1e7   : > { %v3202_v19 = vpack.c.bf16 %v1408_v23, %v1408_v23  ;;  %v3203_v63 = vpack.c.bf16 %v1409_v52, %v1409_v52  ;;  %v1648_v34 = vmul.f32 %v1632_v33, %v4231_v54 }
 0x1e9   : > { %1488 = vst.msk [vmem:[%s4395_s27 + $0x10] sm:$0xf] %vm1147_vm1, %v3202_v19  ;;  %1489 = vst.msk [vmem:[%s4395_s27 + $0x14] sm:$0xf] %vm1147_vm1, %v3203_v63  ;;  %v1926_v13 = vpop.permute.xlu0 %1925  ;;  %v1928_v35 = vpop.permute.xlu1 %1927  ;;  %1684 = vrot.lane.b32.xlu0 %v1648_v34, %s5109_s24 }
 0x1ea   : > { %v1969_v24 = vsel %vm1034_vm0, %v1926_v13, %v1589_v8  ;;  %v2258_v59 = vsel %vm1034_vm0, %v1333_v1, %v1926_v13  ;;  %v2259_v9 = vsel %vm1034_vm0, %v1335_v48, %v1928_v35  ;;  %v1254_v1 = vmul.f32 %v3455_v6, %v4039_v38 }
 0x1eb   : > { %v1985_v10 = vmul.f32 %v1969_v24, %v4231_v54  ;;  %v2274_v61 = vmul.f32 %v2258_v59, %v4231_v54  ;;  %v1972_v54 = vsel %vm1034_vm0, %v1932_v22, %v1595_v18  ;;  %v2275_v48 = vmul.f32 %v2259_v9, %v4234_v37 }
 0x1ec   : > { %v1988_v22 = vmul.f32 %v1972_v54, %v4210_v4  ;;  %v1649_v8 = vmul.f32 %v1633_v46, %v4234_v37  ;;  %v1970_v34 = vsel %vm1034_vm0, %v1928_v35, %v1591_v0 }
 0x1ed   : > { %v1297_v12 = vpop.permute.xlu0 %1296  ;;  %v4506_v26 = vpop.permute.xlu1 %1298  ;;  %2021 = vrot.lane.b32.xlu0 %v1985_v10, %s5111_s29  ;;  %2310 = vrot.lane.b32.xlu1 %v2274_v61, %s5110_s26  ;;  %v1986_v59 = vmul.f32 %v1970_v34, %v4234_v37 }
 0x1f1   : > { %v1345_v7 = vpop.permute.xlu0 %1344  ;;  %v4514_v30 = vpop.permute.xlu1 %1346  ;;  %2316 = vrot.lane.b32.xlu0 %v2277_v15, %s5110_s26  ;;  %1690 = vrot.lane.b32.xlu1 %v1651_v20, %s5109_s24  ;;  %v3457_v15 = vld [vmem:[%s3673_s25 + $0x40] sm:$0xff] }
 0x1f2   : > { %v1382_v5 = vsel %vm1034_vm0, %v1297_v12, %v1345_v7  ;;  %v1383_v18 = vsel %vm1034_vm0, %v4506_v26, %v4514_v30  ;;  %v1252_v54 = vmul.f32 %v3457_v15, %v4041_v21 }
 0x1f3   : > { %v1398_v29 = vmul.f32 %v1382_v5, %v4257_v16  ;;  %v1399_v39 = vmul.f32 %v1383_v18, %v4260_v55 }
 0x1f5   : > { %v1414_v14 = vadd.f32 %v1398_v29, %v1254_v1  ;;  %v1415_v2 = vadd.f32 %v1399_v39, %v1255_v41  ;;  %v1601_v23 = vpop.permute.xlu0 %1600  ;;  %v1603_v52 = vpop.permute.xlu1 %1602  ;;  %2312 = vrot.lane.b32.xlu0 %v2275_v48, %s5110_s26  ;;  %2027 = vrot.lane.b32.xlu1 %v1988_v22, %s5111_s29 }
 0x1f6   : > { %v1638_v4 = vsel %vm1034_vm0, %v1601_v23, %v1297_v12 }
 0x1f7   : > { %v3208_v33 = vpack.c.bf16 %v1414_v14, %v1414_v14  ;;  %v3209_v19 = vpack.c.bf16 %v1415_v2, %v1415_v2  ;;  %v1654_v63 = vmul.f32 %v1638_v4, %v4257_v16 }
 0x1f9   : > { %1494 = vst.msk [vmem:[%s4395_s27 + $0x28] sm:$0xf] %vm1147_vm1, %v3208_v33  ;;  %1495 = vst.msk [vmem:[%s4395_s27 + $0x2c] sm:$0xf] %vm1147_vm1, %v3209_v19  ;;  %v1938_v27 = vpop.permute.xlu0 %1937  ;;  %v1940_v13 = vpop.permute.xlu1 %1939  ;;  %1696 = vrot.lane.b32.xlu0 %v1654_v63, %s5109_s24  ;;  %1686 = vrot.lane.b32.xlu1 %v1649_v8, %s5109_s24  ;;  %v1639_v8 = vsel %vm1034_vm0, %v1603_v52, %v4506_v26 }
 0x1fa   : > { %v1975_v24 = vsel %vm1034_vm0, %v1938_v27, %v1601_v23  ;;  %v2264_v0 = vsel %vm1034_vm0, %v1345_v7, %v1938_v27  ;;  %v3458_v7 = vld [vmem:[%s3673_s25 + $0x48] sm:$0xff]  ;;  %v2265_v33 = vsel %vm1034_vm0, %v4514_v30, %v1940_v13  ;;  %v1655_v34 = vmul.f32 %v1639_v8, %v4260_v55  ;;  %v3461_v8 = vld [vmem:[%s3673_s25 + $0x60] sm:$0xff] }
 0x1fb   : > { %v1991_v10 = vmul.f32 %v1975_v24, %v4257_v16  ;;  %v2280_v50 = vmul.f32 %v2264_v0, %v4257_v16  ;;  %v1253_v6 = vmul.f32 %v3458_v7, %v4049_v11  ;;  %v2281_v27 = vmul.f32 %v2265_v33, %v4260_v55 }
 0x1fc   : > { %v1256_v33 = vmul.f32 %v3461_v8, %v4061_v49  ;;  %v5120_v8 = vld [vmem:[#allocation6_spill] sm:$0xff] }
 0x1fd   : > { %v1293_v35 = vpop.permute.xlu0 %1292  ;;  %v1295_v61 = vpop.permute.xlu1 %1294  ;;  %2033 = vrot.lane.b32.xlu0 %v1991_v10, %s5111_s29  ;;  %2023 = vrot.lane.b32.xlu1 %v1986_v59, %s5111_s29  ;;  %v3459_v59 = vld [vmem:[%s3673_s25 + $0x70] sm:$0xff] }
 0x1fe   : > { %v1258_v10 = vmul.f32 %v3459_v59, %v4059_v43 }
 0x201   : > { %v1341_v51 = vpop.permute.xlu0 %1340  ;;  %v1343_v12 = vpop.permute.xlu1 %1342  ;;  %2322 = vrot.lane.b32.xlu1 %v2280_v50, %s5110_s26 }
 0x202   : > { %v1380_v20 = vsel %vm1034_vm0, %v1293_v35, %v1341_v51  ;;  %v1381_v37 = vsel %vm1034_vm0, %v1295_v61, %v1343_v12 }
 0x203   : > { %v1396_v9 = vmul.f32 %v1380_v20, %v4283_v25  ;;  %v1397_v16 = vmul.f32 %v1381_v37, %v4286_v60 }
 0x205   : > { %v1412_v1 = vadd.f32 %v1396_v9, %v1252_v54  ;;  %v1413_v5 = vadd.f32 %v1397_v16, %v1253_v6  ;;  %v1597_v45 = vpop.permute.xlu0 %1596  ;;  %v1599_v41 = vpop.permute.xlu1 %1598 }
 0x206   : > { %v1636_v18 = vsel %vm1034_vm0, %v1597_v45, %v1293_v35  ;;  %v3460_v35 = vld [vmem:[%s3673_s25 + $0x78] sm:$0xff]  ;;  %v1637_v37 = vsel %vm1034_vm0, %v1599_v41, %v1295_v61 }
 0x207   : > { %v3206_v22 = vpack.c.bf16 %v1412_v1, %v1412_v1  ;;  %v3207_v48 = vpack.c.bf16 %v1413_v5, %v1413_v5  ;;  %v1652_v29 = vmul.f32 %v1636_v18, %v4283_v25  ;;  %v1259_v50 = vmul.f32 %v3460_v35, %v4067_v28 }
 0x208   : > { %v1653_v6 = vmul.f32 %v1637_v37, %v4286_v60 }
 0x209   : > { %1492 = vst.msk [vmem:[%s4395_s27 + $0x20] sm:$0xf] %vm1147_vm1, %v3206_v22  ;;  %1493 = vst.msk [vmem:[%s4395_s27 + $0x24] sm:$0xf] %vm1147_vm1, %v3207_v48  ;;  %v1934_v39 = vpop.permute.xlu0 %1933  ;;  %v1936_v46 = vpop.permute.xlu1 %1935  ;;  %1692 = vrot.lane.b32.xlu0 %v1652_v29, %s5109_s24 }
 0x20a   : > { %v1973_v14 = vsel %vm1034_vm0, %v1934_v39, %v1597_v45  ;;  %v2262_v2 = vsel %vm1034_vm0, %v1341_v51, %v1934_v39  ;;  %v2263_v24 = vsel %vm1034_vm0, %v1343_v12, %v1936_v46  ;;  %v1974_v45 = vsel %vm1034_vm0, %v1936_v46, %v1599_v41 }
 0x20b   : > { %v1989_v23 = vmul.f32 %v1973_v14, %v4283_v25  ;;  %v2278_v4 = vmul.f32 %v2262_v2, %v4283_v25  ;;  %v1976_v25 = vsel %vm1034_vm0, %v1940_v13, %v1603_v52  ;;  %v2279_v51 = vmul.f32 %v2263_v24, %v4286_v60 }
 0x20c   : > { %v1992_v13 = vmul.f32 %v1976_v25, %v4260_v55  ;;  %v1990_v48 = vmul.f32 %v1974_v45, %v4286_v60 }
 0x20d   : > { %v1305_v19 = vpop.permute.xlu0 %1304  ;;  %2029 = vrot.lane.b32.xlu0 %v1989_v23, %s5111_s29  ;;  %v4575_v63 = vpop.permute.xlu1 %1306  ;;  %2318 = vrot.lane.b32.xlu1 %v2278_v4, %s5110_s26 }
 0x211   : > { %v1353_v26 = vpop.permute.xlu0 %1352  ;;  %2324 = vrot.lane.b32.xlu0 %v2281_v27, %s5110_s26  ;;  %v4583_v30 = vpop.permute.xlu1 %1354  ;;  %1698 = vrot.lane.b32.xlu1 %v1655_v34, %s5109_s24  ;;  %v3462_v34 = vld [vmem:[%s3673_s25 + $0x68] sm:$0xff] }
 0x212   : > { %v1386_v0 = vsel %vm1034_vm0, %v1305_v19, %v1353_v26  ;;  %v1387_v52 = vsel %vm1034_vm0, %v4575_v63, %v4583_v30  ;;  %v1257_v27 = vmul.f32 %v3462_v34, %v4069_v62 }
 0x213   : > { %v1402_v12 = vmul.f32 %v1386_v0, %v4312_v58  ;;  %v1403_v20 = vmul.f32 %v1387_v52, %v4315_v17 }
 0x215   : > { %v1418_v15 = vadd.f32 %v1402_v12, %v1258_v10  ;;  %v1419_v54 = vadd.f32 %v1403_v20, %v1259_v50  ;;  %v1609_v9 = vpop.permute.xlu0 %1608  ;;  %2320 = vrot.lane.b32.xlu0 %v2279_v51, %s5110_s26  ;;  %v1611_v7 = vpop.permute.xlu1 %1610  ;;  %2035 = vrot.lane.b32.xlu1 %v1992_v13, %s5111_s29 }
 0x216   : > { %v1642_v55 = vsel %vm1034_vm0, %v1609_v9, %v1305_v19  ;;  %v1643_v37 = vsel %vm1034_vm0, %v1611_v7, %v4575_v63 }
 0x217   : > { %v3212_v16 = vpack.c.bf16 %v1418_v15, %v1418_v15  ;;  %v3213_v1 = vpack.c.bf16 %v1419_v54, %v1419_v54  ;;  %v1658_v5 = vmul.f32 %v1642_v55, %v4312_v58  ;;  %v1659_v55 = vmul.f32 %v1643_v37, %v4315_v17 }
 0x219   : > { %1498 = vst.msk [vmem:[%s4395_s27 + $0x38] sm:$0xf] %vm1147_vm1, %v3212_v16  ;;  %1499 = vst.msk [vmem:[%s4395_s27 + $0x3c] sm:$0xf] %vm1147_vm1, %v3213_v1  ;;  %v1946_v61 = vpop.permute.xlu0 %1945  ;;  %1704 = vrot.lane.b32.xlu0 %v1658_v5, %s5109_s24  ;;  %v1948_v18 = vpop.permute.xlu1 %1947  ;;  %1694 = vrot.lane.b32.xlu1 %v1653_v6, %s5109_s24  ;;  %v5117_v1 = vld [vmem:[#allocation8_spill] sm:$0xff] }
 0x21a   : > { %v1979_v22 = vsel %vm1034_vm0, %v1946_v61, %v1609_v9  ;;  %v2268_v41 = vsel %vm1034_vm0, %v1353_v26, %v1946_v61  ;;  %v2269_v15 = vsel %vm1034_vm0, %v4583_v30, %v1948_v18  ;;  %v1980_v16 = vsel %vm1034_vm0, %v1948_v18, %v1611_v7 }
 0x21b   : > { %v1995_v29 = vmul.f32 %v1979_v22, %v4312_v58  ;;  %v2284_v14 = vmul.f32 %v2268_v41, %v4312_v58  ;;  %v2285_v6 = vmul.f32 %v2269_v15, %v4315_v17  ;;  %v1566_v63 = vmul.f32 %v3995_v56, %v5117_v1 }
 0x21c   : > { %v1996_v30 = vmul.f32 %v1980_v16, %v4315_v17 }
 0x21d   : > { %2041 = vrot.lane.b32.xlu0 %v1995_v29, %s5111_s29  ;;  %v1301_v39 = vpop.permute.xlu0 %1300  ;;  %2031 = vrot.lane.b32.xlu1 %v1990_v48, %s5111_s29  ;;  %v1303_v46 = vpop.permute.xlu1 %1302  ;;  %v5118_v48 = vld [vmem:[#allocation24_spill] sm:$0xff] }
 0x21e   : > { %v1903_v7 = vmul.f32 %v3995_v56, %v5118_v48 }
 0x221   : > { %v1349_v2 = vpop.permute.xlu0 %1348  ;;  %2330 = vrot.lane.b32.xlu1 %v2284_v14, %s5110_s26  ;;  %v1351_v23 = vpop.permute.xlu1 %1350  ;;  %v5119_v14 = vld [vmem:[#allocation42_spill] sm:$0xff] }
 0x222   : > { %v1384_v4 = vsel %vm1034_vm0, %v1301_v39, %v1349_v2  ;;  %v1385_v60 = vsel %vm1034_vm0, %v1303_v46, %v1351_v23 }
 0x223   : > { %v1400_v19 = vmul.f32 %v1384_v4, %v4338_v31  ;;  %v1401_v58 = vmul.f32 %v1385_v60, %v4341_v3 }
 0x225   : > { %v1416_v25 = vadd.f32 %v1400_v19, %v1256_v33  ;;  %v1417_v24 = vadd.f32 %v1401_v58, %v1257_v27  ;;  %v1605_v26 = vpop.permute.xlu0 %1604  ;;  %v1607_v50 = vpop.permute.xlu1 %1606  ;;  %v1564_v33 = vmul.f32 %v5120_v8, %v3997_v53  ;;  %v5121_v58 = vld [vmem:[#allocation22_spill] sm:$0xff] }
 0x226   : > { %v1640_v59 = vsel %vm1034_vm0, %v1605_v26, %v1301_v39  ;;  %v1641_v61 = vsel %vm1034_vm0, %v1607_v50, %v1303_v46 }
 0x227   : > { %v3210_v10 = vpack.c.bf16 %v1416_v25, %v1416_v25  ;;  %v3211_v0 = vpack.c.bf16 %v1417_v24, %v1417_v24  ;;  %v1656_v35 = vmul.f32 %v1640_v59, %v4338_v31  ;;  %v1657_v18 = vmul.f32 %v1641_v61, %v4341_v3  ;;  %v5127_v61 = vld [vmem:[#allocation5_spill] sm:$0xff] }
 0x228   : > { %v1901_v25 = vmul.f32 %v5121_v58, %v3997_v53 }
 0x229   : > { %1496 = vst.msk [vmem:[%s4395_s27 + $0x30] sm:$0xf] %vm1147_vm1, %v3210_v10  ;;  %1497 = vst.msk [vmem:[%s4395_s27 + $0x34] sm:$0xf] %vm1147_vm1, %v3211_v0  ;;  %1700 = vrot.lane.b32.xlu0 %v1656_v35, %s5109_s24  ;;  %v1942_v52 = vpop.permute.xlu0 %1941  ;;  %v1944_v54 = vpop.permute.xlu1 %1943 }
 0x22a   : > { %v1977_v13 = vsel %vm1034_vm0, %v1942_v52, %v1605_v26  ;;  %v2266_v51 = vsel %vm1034_vm0, %v1349_v2, %v1942_v52  ;;  %v1978_v39 = vsel %vm1034_vm0, %v1944_v54, %v1607_v50  ;;  %v2240_v2 = vmul.f32 %v3995_v56, %v5119_v14  ;;  %v5123_v50 = vld [vmem:[#allocation40_spill] sm:$0xff]  ;;  %v5129_v14 = vld [vmem:[#allocation21_spill] sm:$0xff] }
 0x22b   : > { %v1993_v12 = vmul.f32 %v1977_v13, %v4338_v31  ;;  %v2282_v20 = vmul.f32 %v2266_v51, %v4338_v31  ;;  %v2267_v31 = vsel %vm1034_vm0, %v1351_v23, %v1944_v54  ;;  %v1994_v46 = vmul.f32 %v1978_v39, %v4341_v3  ;;  %v5124_v51 = vld [vmem:[#allocation23_spill] sm:$0xff] }
 0x22c   : > { %v2283_v5 = vmul.f32 %v2267_v31, %v4341_v3  ;;  %v5122_v3 = vld [vmem:[#allocation7_spill] sm:$0xff]  ;;  %v2238_v52 = vmul.f32 %v5123_v50, %v3997_v53  ;;  %v5126_v31 = vld [vmem:[#allocation12_spill] sm:$0xff] }
 0x22d   : > { %2037 = vrot.lane.b32.xlu0 %v1993_v12, %s5111_s29  ;;  %2326 = vrot.lane.b32.xlu1 %v2282_v20, %s5110_s26  ;;  %v1681_v9 = vpop.permute.xlu0 %1680  ;;  %v1567_v24 = vmul.f32 %v4003_v42, %v5122_v3  ;;  %v1904_v12 = vmul.f32 %v4003_v42, %v5124_v51  ;;  %v1570_v1 = vmul.f32 %v5114_v44, %v5126_v31  ;;  %v5132_v3 = vld [vmem:[#allocation10_spill] sm:$0xff] }
 0x22e   : > { %v1726_v45 = vadd.f32 %v1681_v9, %v1566_v63  ;;  %v5125_v9 = vld [vmem:[#allocation43_spill] sm:$0xff] }
 0x22f   : > { %v2307_v17 = vpop.permute.xlu1 %2306 }
 0x230   : > { %v3216_v29 = vpack.c.bf16 %v1726_v45, %v1726_v45  ;;  %v2352_v23 = vadd.f32 %v2307_v17, %v2240_v2  ;;  %v1902_v2 = vmul.f32 %v5129_v14, %v4007_v57  ;;  %v5140_v14 = vld [vmem:[#allocation32_spill] sm:$0xff] }
 0x231   : > { %2332 = vrot.lane.b32.xlu0 %v2285_v6, %s5110_s26  ;;  %1706 = vrot.lane.b32.xlu1 %v1659_v55, %s5109_s24  ;;  %v2018_v22 = vpop.permute.xlu0 %2017  ;;  %v2241_v55 = vmul.f32 %v4003_v42, %v5125_v9 }
 0x232   : > { %v2063_v41 = vadd.f32 %v2018_v22, %v1903_v7  ;;  %v3248_v19 = vpack.c.bf16 %v2352_v23, %v2352_v23  ;;  %v1565_v22 = vmul.f32 %v5127_v61, %v4007_v57 }
 0x234   : > { %v3232_v4 = vpack.c.bf16 %v2063_v41, %v2063_v41 }
 0x235   : > { %2043 = vrot.lane.b32.xlu1 %v1996_v30, %s5111_s29  ;;  %2328 = vrot.lane.b32.xlu0 %v2283_v5, %s5110_s26 }
 0x239   : > { %1702 = vrot.lane.b32.xlu1 %v1657_v18, %s5109_s24  ;;  %1792 = vrot.lane.b32.xlu0 %v3216_v29, %s5110_s26  ;;  %v5128_v18 = vld [vmem:[#allocation28_spill] sm:$0xff] }
 0x23a   : > { %v1907_v29 = vmul.f32 %v5114_v44, %v5128_v18 }
 0x23b   : > { %v1677_v60 = vpop.permute.xlu0 %1676 }
 0x23c   : > { %v1724_v34 = vadd.f32 %v1677_v60, %v1564_v33 }
 0x23d   : > { %2129 = vrot.lane.b32.xlu0 %v3232_v4, %s5111_s29  ;;  %2039 = vrot.lane.b32.xlu1 %v1994_v46, %s5111_s29  ;;  %v5130_v46 = vld [vmem:[#allocation46_spill] sm:$0xff] }
 0x23e   : > { %v3214_v26 = vpack.c.bf16 %v1724_v34, %v1724_v34  ;;  %v2244_v23 = vmul.f32 %v5114_v44, %v5130_v46 }
 0x23f   : > { %v2014_v27 = vpop.permute.xlu0 %2013  ;;  %v2303_v56 = vpop.permute.xlu1 %2302 }
 0x240   : > { %v2061_v59 = vadd.f32 %v2014_v27, %v1901_v25  ;;  %v2350_v37 = vadd.f32 %v2303_v56, %v2238_v52  ;;  %v5134_v52 = vld [vmem:[#allocation44_spill] sm:$0xff] }
 0x241   : > { %2418 = vrot.lane.b32.xlu0 %v3248_v19, %s5109_s24  ;;  %v5131_v19 = vld [vmem:[#allocation41_spill] sm:$0xff] }
 0x242   : > { %v3230_v20 = vpack.c.bf16 %v2061_v59, %v2061_v59  ;;  %v3246_v63 = vpack.c.bf16 %v2350_v37, %v2350_v37  ;;  %v2239_v34 = vmul.f32 %v5131_v19, %v4007_v57  ;;  %v5135_v37 = vld [vmem:[#allocation11_spill] sm:$0xff] }
 0x243   : > { %v2309_v10 = vpop.permute.xlu0 %2308  ;;  %v1683_v0 = vpop.permute.xlu1 %1682 }
 0x244   : > { %v1727_v35 = vadd.f32 %v1683_v0, %v1567_v24  ;;  %v2353_v16 = vadd.f32 %v2309_v10, %v2241_v55  ;;  %v1568_v24 = vmul.f32 %v5132_v3, %v5116_v36  ;;  %v5133_v10 = vld [vmem:[#allocation26_spill] sm:$0xff] }
 0x245   : > { %1788 = vrot.lane.b32.xlu0 %v3214_v26, %s5110_s26  ;;  %v1905_v0 = vmul.f32 %v5133_v10, %v5116_v36 }
 0x246   : > { %v3217_v13 = vpack.c.bf16 %v1727_v35, %v1727_v35  ;;  %v3249_v42 = vpack.c.bf16 %v2353_v16, %v2353_v16 }
 0x247   : > { %v2305_v15 = vpop.permute.xlu0 %2304  ;;  %v2020_v54 = vpop.permute.xlu1 %2019 }
 0x248   : > { %v2064_v6 = vadd.f32 %v2020_v54, %v1904_v12  ;;  %1794 = vrot.lane.b32.xlu1 %v3217_v13, %s5110_s26  ;;  %v2351_v56 = vadd.f32 %v2305_v15, %v2239_v34  ;;  %v2242_v13 = vmul.f32 %v5134_v52, %v5116_v36  ;;  %v1571_v15 = vmul.f32 %v5115_v32, %v5135_v37 }
 0x249   : > { %2125 = vrot.lane.b32.xlu0 %v3230_v20, %s5111_s29 }
 0x24a   : > { %v3233_v53 = vpack.c.bf16 %v2064_v6, %v2064_v6  ;;  %v3247_v44 = vpack.c.bf16 %v2351_v56, %v2351_v56 }
 0x24b   : > { %v1689_v30 = vpop.permute.xlu0 %1688  ;;  %v1679_v5 = vpop.permute.xlu1 %1678 }
 0x24c   : > { %v1730_v45 = vadd.f32 %v1689_v30, %v1570_v1  ;;  %2131 = vrot.lane.b32.xlu1 %v3233_v53, %s5111_s29  ;;  %v1725_v7 = vadd.f32 %v1679_v5, %v1565_v22  ;;  %v5136_v53 = vld [vmem:[#allocation27_spill] sm:$0xff]  ;;  %v5138_v22 = vld [vmem:[#allocation16_spill] sm:$0xff] }
 0x24d   : > { %2414 = vrot.lane.b32.xlu0 %v3246_v63, %s5109_s24  ;;  %v1908_v31 = vmul.f32 %v5115_v32, %v5136_v53  ;;  %v5137_v63 = vld [vmem:[#allocation47_spill] sm:$0xff] }
 0x24e   : > { %v3220_v48 = vpack.c.bf16 %v1730_v45, %v1730_v45  ;;  %v3215_v4 = vpack.c.bf16 %v1725_v7, %v1725_v7  ;;  %v2245_v30 = vmul.f32 %v5115_v32, %v5137_v63 }
 0x24f   : > { %v2026_v41 = vpop.permute.xlu0 %2025  ;;  %v2016_v39 = vpop.permute.xlu1 %2015 }
 0x250   : > { %v2067_v17 = vadd.f32 %v2026_v41, %v1907_v29  ;;  %2420 = vrot.lane.b32.xlu1 %v3249_v42, %s5109_s24  ;;  %v2062_v8 = vadd.f32 %v2016_v39, %v1902_v2  ;;  %v1574_v42 = vmul.f32 %v4039_v38, %v5138_v22  ;;  %v5139_v29 = vld [vmem:[#allocation9_spill] sm:$0xff]  ;;  %v1911_v2 = vmul.f32 %v4039_v38, %v5140_v14 }
 0x251   : > { %1800 = vrot.lane.b32.xlu0 %v3220_v48, %s5110_s26  ;;  %v1569_v41 = vmul.f32 %v5139_v29, %v4029_v47 }
 0x252   : > { %v3236_v60 = vpack.c.bf16 %v2067_v17, %v2067_v17  ;;  %v3231_v58 = vpack.c.bf16 %v2062_v8, %v2062_v8 }
 0x253   : > { %v2315_v33 = vpop.permute.xlu1 %2314 }
 0x254   : > { %v2356_v27 = vadd.f32 %v2315_v33, %v2244_v23  ;;  %1790 = vrot.lane.b32.xlu1 %v3215_v4, %s5110_s26  ;;  %v5142_v33 = vld [vmem:[#allocation50_spill] sm:$0xff] }
 0x255   : > { %2137 = vrot.lane.b32.xlu0 %v3236_v60, %s5111_s29  ;;  %v5141_v60 = vld [vmem:[#allocation25_spill] sm:$0xff]  ;;  %v2248_v19 = vmul.f32 %v4039_v38, %v5142_v33 }
 0x256   : > { %v3252_v25 = vpack.c.bf16 %v2356_v27, %v2356_v27  ;;  %v1906_v8 = vmul.f32 %v5141_v60, %v4029_v47 }
 0x258   : > { %2127 = vrot.lane.b32.xlu1 %v3231_v58, %s5111_s29 }
 0x259   : > { %2426 = vrot.lane.b32.xlu0 %v3252_v25, %s5109_s24  ;;  %v5143_v25 = vld [vmem:[#allocation45_spill] sm:$0xff] }
 0x25b   : > { %v1685_v26 = vpop.permute.xlu0 %1684 }
 0x25c   : > { %v1728_v59 = vadd.f32 %v1685_v26, %v1568_v24  ;;  %2416 = vrot.lane.b32.xlu1 %v3247_v44, %s5109_s24  ;;  %v2243_v44 = vmul.f32 %v5143_v25, %v4029_v47 }
 0x25e   : > { %v3218_v57 = vpack.c.bf16 %v1728_v59, %v1728_v59 }
 0x25f   : > { %v2022_v35 = vpop.permute.xlu0 %2021  ;;  %v2311_v50 = vpop.permute.xlu1 %2310 }
 0x260   : > { %v2065_v51 = vadd.f32 %v2022_v35, %v1905_v0  ;;  %1796 = vrot.lane.b32.xlu0 %v3218_v57, %s5110_s26  ;;  %v2354_v20 = vadd.f32 %v2311_v50, %v2242_v13  ;;  %v5144_v57 = vld [vmem:[#allocation14_spill] sm:$0xff] }
 0x261   : > { %v1572_v10 = vmul.f32 %v5144_v57, %v4041_v21  ;;  %v5145_v50 = vld [vmem:[#allocation30_spill] sm:$0xff]  ;;  %v5154_v57 = vld [vmem:[#allocation49_spill] sm:$0xff] }
 0x262   : > { %v3234_v12 = vpack.c.bf16 %v2065_v51, %v2065_v51  ;;  %v3250_v6 = vpack.c.bf16 %v2354_v20, %v2354_v20  ;;  %v1909_v52 = vmul.f32 %v5145_v50, %v4041_v21 }
 0x263   : > { %v2317_v54 = vpop.permute.xlu0 %2316  ;;  %v1691_v9 = vpop.permute.xlu1 %1690 }
 0x264   : > { %v1731_v55 = vadd.f32 %v1691_v9, %v1571_v15  ;;  %2133 = vrot.lane.b32.xlu0 %v3234_v12, %s5111_s29  ;;  %v2357_v45 = vadd.f32 %v2317_v54, %v2245_v30  ;;  %v5146_v12 = vld [vmem:[#allocation48_spill] sm:$0xff]  ;;  %v5147_v9 = vld [vmem:[#allocation15_spill] sm:$0xff] }
 0x265   : > { %v2246_v20 = vmul.f32 %v5146_v12, %v4041_v21 }
 0x266   : > { %v3221_v16 = vpack.c.bf16 %v1731_v55, %v1731_v55  ;;  %v3253_v39 = vpack.c.bf16 %v2357_v45, %v2357_v45  ;;  %v1575_v55 = vmul.f32 %v4047_v40, %v5147_v9 }
 0x267   : > { %v2313_v1 = vpop.permute.xlu0 %2312  ;;  %v2028_v36 = vpop.permute.xlu1 %2027 }
 0x268   : > { %v2068_v5 = vadd.f32 %v2028_v36, %v1908_v31  ;;  %2422 = vrot.lane.b32.xlu0 %v3250_v6, %s5109_s24  ;;  %1802 = vrot.lane.b32.xlu1 %v3221_v16, %s5110_s26  ;;  %v2355_v24 = vadd.f32 %v2313_v1, %v2243_v44  ;;  %v5148_v36 = vld [vmem:[#allocation31_spill] sm:$0xff] }
 0x269   : > { %v1912_v63 = vmul.f32 %v4047_v40, %v5148_v36 }
 0x26a   : > { %v3237_v61 = vpack.c.bf16 %v2068_v5, %v2068_v5  ;;  %v3251_v38 = vpack.c.bf16 %v2355_v24, %v2355_v24  ;;  %v5149_v5 = vld [vmem:[#allocation51_spill] sm:$0xff] }
 0x26b   : > { %v1697_v48 = vpop.permute.xlu0 %1696  ;;  %v1687_v7 = vpop.permute.xlu1 %1686  ;;  %v2249_v45 = vmul.f32 %v4047_v40, %v5149_v5 }
 0x26c   : > { %v1734_v18 = vadd.f32 %v1697_v48, %v1574_v42  ;;  %2139 = vrot.lane.b32.xlu1 %v3237_v61, %s5111_s29  ;;  %v1729_v17 = vadd.f32 %v1687_v7, %v1569_v41  ;;  %v5150_v48 = vld [vmem:[#allocation20_spill] sm:$0xff] }
 0x26d   : > { %v1578_v7 = vmul.f32 %v4059_v43, %v5150_v48 }
 0x26e   : > { %v3224_v32 = vpack.c.bf16 %v1734_v18, %v1734_v18  ;;  %v3219_v34 = vpack.c.bf16 %v1729_v17, %v1729_v17 }
 0x26f   : > { %v2034_v46 = vpop.permute.xlu0 %2033  ;;  %v2024_v23 = vpop.permute.xlu1 %2023 }
 0x270   : > { %v2071_v4 = vadd.f32 %v2034_v46, %v1911_v2  ;;  %1808 = vrot.lane.b32.xlu0 %v3224_v32, %s5110_s26  ;;  %2428 = vrot.lane.b32.xlu1 %v3253_v39, %s5109_s24  ;;  %v2066_v56 = vadd.f32 %v2024_v23, %v1906_v8  ;;  %v5151_v39 = vld [vmem:[#allocation13_spill] sm:$0xff]  ;;  %v5152_v23 = vld [vmem:[#allocation39_spill] sm:$0xff] }
 0x271   : > { %v1573_v32 = vmul.f32 %v5151_v39, %v4049_v11 }
 0x272   : > { %v3240_v27 = vpack.c.bf16 %v2071_v4, %v2071_v4  ;;  %v3235_v26 = vpack.c.bf16 %v2066_v56, %v2066_v56  ;;  %v1915_v4 = vmul.f32 %v4059_v43, %v5152_v23 }
 0x273   : > { %v2323_v58 = vpop.permute.xlu1 %2322 }
 0x274   : > { %v2360_v3 = vadd.f32 %v2323_v58, %v2248_v19  ;;  %2145 = vrot.lane.b32.xlu0 %v3240_v27, %s5111_s29  ;;  %1798 = vrot.lane.b32.xlu1 %v3219_v34, %s5110_s26  ;;  %v5153_v19 = vld [vmem:[#allocation29_spill] sm:$0xff] }
 0x275   : > { %v1910_v34 = vmul.f32 %v5153_v19, %v4049_v11 }
 0x276   : > { %v3256_v59 = vpack.c.bf16 %v2360_v3, %v2360_v3 }
 0x278   : > { %2135 = vrot.lane.b32.xlu1 %v3235_v26, %s5111_s29  ;;  %2434 = vrot.lane.b32.xlu0 %v3256_v59, %s5109_s24 }
 0x27b   : > { %v1693_v0 = vpop.permute.xlu0 %1692 }
 0x27c   : > { %v1732_v35 = vadd.f32 %v1693_v0, %v1572_v10  ;;  %2424 = vrot.lane.b32.xlu1 %v3251_v38, %s5109_s24  ;;  %v2247_v10 = vmul.f32 %v5154_v57, %v4049_v11 }
 0x27e   : > { %v3222_v47 = vpack.c.bf16 %v1732_v35, %v1732_v35 }
 0x27f   : > { %v2030_v13 = vpop.permute.xlu0 %2029  ;;  %v2319_v51 = vpop.permute.xlu1 %2318 }
 0x280   : > { %v2069_v37 = vadd.f32 %v2030_v13, %v1909_v52  ;;  %1804 = vrot.lane.b32.xlu0 %v3222_v47, %s5110_s26  ;;  %v2358_v54 = vadd.f32 %v2319_v51, %v2246_v20  ;;  %v3356_v40 = vpop.f32.mrb[16].mxu1 }
 0x281   : > { %v3184_v17 = vpack.c.bf16 %v3356_v40, %v3356_v40  ;;  %v811_v27 = vpop.f32.mrb[17].mxu1  ;;  %v5159_v40 = vld [vmem:[#allocation54_spill] sm:$0xff] }
 0x282   : > { %v3238_v15 = vpack.c.bf16 %v2069_v37, %v2069_v37  ;;  %v3254_v31 = vpack.c.bf16 %v2358_v54, %v2358_v54  ;;  %v3182_v56 = vpack.c.bf16 %v811_v27, %v811_v27  ;;  %v3357_v58 = vpop.f32.mrb[18].mxu1  ;;  %v5155_v37 = vld [vmem:[#allocation18_spill] sm:$0xff] }
 0x283   : > { %v2325_v6 = vpop.permute.xlu0 %2324  ;;  %v1699_v16 = vpop.permute.xlu1 %1698  ;;  %1230 = vst.msk [vmem:[%s4766_s18 + $0x8] sm:$0xf] %vm1147_vm1, %v3184_v17  ;;  %v3185_v24 = vpack.c.bf16 %v3357_v58, %v3357_v58  ;;  %v2252_v17 = vmul.f32 %v4059_v43, %v5159_v40 }
 0x284   : > { %v1735_v53 = vadd.f32 %v1699_v16, %v1575_v55  ;;  %2141 = vrot.lane.b32.xlu0 %v3238_v15, %s5111_s29  ;;  %v2361_v22 = vadd.f32 %v2325_v6, %v2249_v45  ;;  %v814_v26 = vpop.f32.mrb[19].mxu1  ;;  %1228 = vst.msk [vmem:[%s4766_s18] sm:$0xf] %vm1147_vm1, %v3182_v56  ;;  %v1576_v15 = vmul.f32 %v5155_v37, %v4061_v49 }
 0x285   : > { %v3183_v59 = vpack.c.bf16 %v814_v26, %v814_v26  ;;  %1231 = vst.msk [vmem:[%s4766_s18 + $0xc] sm:$0xf] %vm1147_vm1, %v3185_v24 }
 0x286   : > { %v3225_v1 = vpack.c.bf16 %v1735_v53, %v1735_v53  ;;  %v3257_v14 = vpack.c.bf16 %v2361_v22, %v2361_v22 }
 0x287   : > { %v2321_v21 = vpop.permute.xlu0 %2320  ;;  %v2036_v30 = vpop.permute.xlu1 %2035  ;;  %1229 = vst.msk [vmem:[%s4766_s18 + $0x4] sm:$0xf] %vm1147_vm1, %v3183_v59 }
 0x288   : > { %v2072_v61 = vadd.f32 %v2036_v30, %v1912_v63  ;;  %2430 = vrot.lane.b32.xlu0 %v3254_v31, %s5109_s24  ;;  %1810 = vrot.lane.b32.xlu1 %v3225_v1, %s5110_s26  ;;  %v3360_v38 = vpop.f32.mrb[20].mxu1  ;;  %v2359_v35 = vadd.f32 %v2321_v21, %v2247_v10  ;;  %v5156_v31 = vld [vmem:[#allocation36_spill] sm:$0xff] }
 0x289   : > { %v3188_v0 = vpack.c.bf16 %v3360_v38, %v3360_v38  ;;  %v827_v50 = vpop.f32.mrb[21].mxu1  ;;  %v1913_v1 = vmul.f32 %v5156_v31, %v4061_v49  ;;  %v5157_v21 = vld [vmem:[#allocation52_spill] sm:$0xff] }
 0x28a   : > { %v3241_v42 = vpack.c.bf16 %v2072_v61, %v2072_v61  ;;  %v3186_v11 = vpack.c.bf16 %v827_v50, %v827_v50  ;;  %v3361_v52 = vpop.f32.mrb[22].mxu1  ;;  %v3255_v12 = vpack.c.bf16 %v2359_v35, %v2359_v35  ;;  %v2250_v30 = vmul.f32 %v5157_v21, %v4061_v49 }
 0x28b   : > { %v1705_v18 = vpop.permute.xlu0 %1704  ;;  %v1695_v29 = vpop.permute.xlu1 %1694  ;;  %1234 = vst.msk [vmem:[%s4766_s18 + $0x18] sm:$0xf] %vm1147_vm1, %v3188_v0  ;;  %v3189_v13 = vpack.c.bf16 %v3361_v52, %v3361_v52 }
 0x28c   : > { %v1738_v41 = vadd.f32 %v1705_v18, %v1578_v7  ;;  %2147 = vrot.lane.b32.xlu1 %v3241_v42, %s5111_s29  ;;  %v1733_v46 = vadd.f32 %v1695_v29, %v1573_v32  ;;  %v830_v51 = vpop.f32.mrb[23].mxu1  ;;  %1232 = vst.msk [vmem:[%s4766_s18 + $0x10] sm:$0xf] %vm1147_vm1, %v3186_v11  ;;  %v5158_v7 = vld [vmem:[#allocation19_spill] sm:$0xff] }
 0x28d   : > { %v3187_v54 = vpack.c.bf16 %v830_v51, %v830_v51  ;;  %1235 = vst.msk [vmem:[%s4766_s18 + $0x1c] sm:$0xf] %vm1147_vm1, %v3189_v13  ;;  %v1579_v18 = vmul.f32 %v4067_v28, %v5158_v7  ;;  %v5163_v13 = vld [vmem:[#allocation53_spill] sm:$0xff] }
 0x28e   : > { %v3228_v2 = vpack.c.bf16 %v1738_v41, %v1738_v41  ;;  %v3223_v25 = vpack.c.bf16 %v1733_v46, %v1733_v46  ;;  %v2251_v51 = vmul.f32 %v5163_v13, %v4069_v62 }
 0x28f   : > { %v2042_v60 = vpop.permute.xlu0 %2041  ;;  %v2032_v8 = vpop.permute.xlu1 %2031  ;;  %1233 = vst.msk [vmem:[%s4766_s18 + $0x14] sm:$0xf] %vm1147_vm1, %v3187_v54  ;;  %v5164_v54 = vld [vmem:[#allocation55_spill] sm:$0xff] }
 0x290   : > { %v2075_v33 = vadd.f32 %v2042_v60, %v1915_v4  ;;  %1816 = vrot.lane.b32.xlu0 %v3228_v2, %s5110_s26  ;;  %2436 = vrot.lane.b32.xlu1 %v3257_v14, %s5109_s24  ;;  %v2070_v3 = vadd.f32 %v2032_v8, %v1910_v34  ;;  %v3364_v55 = vpop.f32.mrb[24].mxu1  ;;  %v5160_v8 = vld [vmem:[#allocation38_spill] sm:$0xff] }
 0x291   : > { %v3192_v16 = vpack.c.bf16 %v3364_v55, %v3364_v55  ;;  %v843_v45 = vpop.f32.mrb[25].mxu1 }
 0x292   : > { %v3244_v44 = vpack.c.bf16 %v2075_v33, %v2075_v33  ;;  %v3239_v47 = vpack.c.bf16 %v2070_v3, %v2070_v3  ;;  %v3190_v61 = vpack.c.bf16 %v843_v45, %v843_v45  ;;  %v3365_v22 = vpop.f32.mrb[26].mxu1  ;;  %v1916_v33 = vmul.f32 %v4067_v28, %v5160_v8  ;;  %v5161_v3 = vld [vmem:[#allocation17_spill] sm:$0xff] }
 0x293   : > { %v2331_v20 = vpop.permute.xlu1 %2330  ;;  %1238 = vst.msk [vmem:[%s4766_s18 + $0x28] sm:$0xf] %vm1147_vm1, %v3192_v16  ;;  %v3193_v29 = vpack.c.bf16 %v3365_v22, %v3365_v22  ;;  %v846_v41 = vpop.f32.mrb[27].mxu1  ;;  %v1577_v24 = vmul.f32 %v5161_v3, %v4069_v62 }
 0x294   : > { %2153 = vrot.lane.b32.xlu0 %v3244_v44, %s5111_s29  ;;  %1806 = vrot.lane.b32.xlu1 %v3223_v25, %s5110_s26  ;;  %1236 = vst.msk [vmem:[%s4766_s18 + $0x20] sm:$0xf] %vm1147_vm1, %v3190_v61  ;;  %v3191_v49 = vpack.c.bf16 %v846_v41, %v846_v41  ;;  %v2364_v23 = vadd.f32 %v2331_v20, %v2252_v17 }
 0x295   : > { %1239 = vst.msk [vmem:[%s4766_s18 + $0x2c] sm:$0xf] %vm1147_vm1, %v3193_v29 }
 0x296   : > { %1237 = vst.msk [vmem:[%s4766_s18 + $0x24] sm:$0xf] %vm1147_vm1, %v3191_v49  ;;  %v3260_v25 = vpack.c.bf16 %v2364_v23, %v2364_v23 }
 0x297   : > { %v3368_v2 = vpop.f32.mrb[28].mxu1 }
 0x298   : > { %2143 = vrot.lane.b32.xlu1 %v3239_v47, %s5111_s29  ;;  %v3196_v46 = vpack.c.bf16 %v3368_v2, %v3368_v2  ;;  %v859_v27 = vpop.f32.mrb[29].mxu1  ;;  %v5162_v47 = vld [vmem:[#allocation34_spill] sm:$0xff] }
 0x299   : > { %v3194_v56 = vpack.c.bf16 %v859_v27, %v859_v27  ;;  %v3369_v58 = vpop.f32.mrb[30].mxu1  ;;  %v1914_v50 = vmul.f32 %v5162_v47, %v4069_v62  ;;  %v2540_v47 = vld [vmem:[%s4395_s27 + $0x20] sm:$0xff] (%p3615_p5)  }
 0x29a   : > { %1242 = vst.msk [vmem:[%s4766_s18 + $0x38] sm:$0xf] %vm1147_vm1, %v3196_v46  ;;  %v3197_v26 = vpack.c.bf16 %v3369_v58, %v3369_v58  ;;  %v862_v59 = vpop.f32.mrb[31].mxu1  ;;  %2541 = vst [vmem:[%s4954_s15 + $0x20] sm:$0xff] (%p3615_p5), %v2540_v47  }
 0x29b   : > { %v1701_v9 = vpop.permute.xlu0 %1700  ;;  %1240 = vst.msk [vmem:[%s4766_s18 + $0x30] sm:$0xf] %vm1147_vm1, %v3194_v56  ;;  %v3195_v10 = vpack.c.bf16 %v862_v59, %v862_v59 }
 0x29c   : > { %v1736_v6 = vadd.f32 %v1701_v9, %v1576_v15  ;;  %2432 = vrot.lane.b32.xlu1 %v3255_v12, %s5109_s24  ;;  %1243 = vst.msk [vmem:[%s4766_s18 + $0x3c] sm:$0xf] %vm1147_vm1, %v3197_v26  ;;  %v2253_v9 = vmul.f32 %v4067_v28, %v5164_v54 }
 0x29d   : > { %1241 = vst.msk [vmem:[%s4766_s18 + $0x34] sm:$0xf] %vm1147_vm1, %v3195_v10  ;;  %v2528_v10 = vld [vmem:[%s4395_s27 + $0x8] sm:$0xff] (%p3615_p5)  }
 0x29e   : > { %v3226_v53 = vpack.c.bf16 %v1736_v6, %v1736_v6  ;;  %2529 = vst [vmem:[%s4954_s15 + $0x8] sm:$0xff] (%p3615_p5), %v2528_v10  }
 0x29f   : > { %v2038_v36 = vpop.permute.xlu0 %2037  ;;  %v2327_v63 = vpop.permute.xlu1 %2326 }
 0x2a0   : > { %v2073_v5 = vadd.f32 %v2038_v36, %v1913_v1  ;;  %1812 = vrot.lane.b32.xlu0 %v3226_v53, %s5110_s26  ;;  %v2362_v48 = vadd.f32 %v2327_v63, %v2250_v30 }
 0x2a2   : > { %v3242_v42 = vpack.c.bf16 %v2073_v5, %v2073_v5  ;;  %v3258_v4 = vpack.c.bf16 %v2362_v48, %v2362_v48 }
 0x2a3   : > { %v2333_v39 = vpop.permute.xlu0 %2332  ;;  %v1707_v32 = vpop.permute.xlu1 %1706 }
 0x2a4   : > { %v1739_v14 = vadd.f32 %v1707_v32, %v1579_v18  ;;  %2149 = vrot.lane.b32.xlu0 %v3242_v42, %s5111_s29  ;;  %v2365_v62 = vadd.f32 %v2333_v39, %v2253_v9 }
 0x2a6   : > { %v3229_v60 = vpack.c.bf16 %v1739_v14, %v1739_v14  ;;  %v3261_v16 = vpack.c.bf16 %v2365_v62, %v2365_v62 }
 0x2a7   : > { %v2329_v19 = vpop.permute.xlu0 %2328  ;;  %v2044_v34 = vpop.permute.xlu1 %2043 }
 0x2a8   : > { %v2076_v43 = vadd.f32 %v2044_v34, %v1916_v33  ;;  %2438 = vrot.lane.b32.xlu0 %v3258_v4, %s5109_s24  ;;  %1818 = vrot.lane.b32.xlu1 %v3229_v60, %s5110_s26  ;;  %v2363_v20 = vadd.f32 %v2329_v19, %v2251_v51 }
 0x2aa   : > { %v3245_v44 = vpack.c.bf16 %v2076_v43, %v2076_v43  ;;  %v3259_v55 = vpack.c.bf16 %v2363_v20, %v2363_v20 }
 0x2ab   : > { %v1793_v38 = vpop.permute.xlu0 %1792  ;;  %v1703_v57 = vpop.permute.xlu1 %1702 }
 0x2ac   : > { %3082 = vst.msk [vmem:[%s4395_s27 + $0x48] sm:$0xf] %vm1147_vm1, %v1793_v38  ;;  %v1737_v0 = vadd.f32 %v1703_v57, %v1577_v24  ;;  %2442 = vrot.lane.b32.xlu0 %v3260_v25, %s5109_s24  ;;  %2155 = vrot.lane.b32.xlu1 %v3245_v44, %s5111_s29  ;;  %v2524_v57 = vld [vmem:[%s4395_s27] sm:$0xff] (%p3615_p5)  }
 0x2ad   : > { %2525 = vst [vmem:[%s4954_s15] sm:$0xff] (%p3615_p5), %v2524_v57  }
 0x2ae   : > { %v3227_v35 = vpack.c.bf16 %v1737_v0, %v1737_v0  ;;  %v2532_v0 = vld [vmem:[%s4395_s27 + $0x10] sm:$0xff] (%p3615_p5)  }
 0x2af   : > { %v2130_v11 = vpop.permute.xlu0 %2129  ;;  %v2040_v52 = vpop.permute.xlu1 %2039  ;;  %2533 = vst [vmem:[%s4954_s15 + $0x10] sm:$0xff] (%p3615_p5), %v2532_v0  }
 0x2b0   : > { %3114 = vst.msk [vmem:[%s4395_s27 + $0x88] sm:$0xf] %vm1147_vm1, %v2130_v11  ;;  %v2074_v12 = vadd.f32 %v2040_v52, %v1914_v50  ;;  %1814 = vrot.lane.b32.xlu1 %v3227_v35, %s5110_s26  ;;  %v2536_v35 = vld [vmem:[%s4395_s27 + $0x18] sm:$0xff] (%p3615_p5)   ;;  %v2544_v50 = vld [vmem:[%s4395_s27 + $0x28] sm:$0xff] (%p3615_p5)  }
 0x2b1   : > { %v2548_v11 = vld [vmem:[%s4395_s27 + $0x30] sm:$0xff] (%p3615_p5)   ;;  %v2552_v52 = vld [vmem:[%s4395_s27 + $0x38] sm:$0xff] (%p3615_p5)   ;;  %2537 = vst [vmem:[%s4954_s15 + $0x18] sm:$0xff] (%p3615_p5), %v2536_v35   ;;  %2545 = vst [vmem:[%s4954_s15 + $0x28] sm:$0xff] (%p3615_p5), %v2544_v50  }
 0x2b2   : > { %v3243_v37 = vpack.c.bf16 %v2074_v12, %v2074_v12  ;;  %2549 = vst [vmem:[%s4954_s15 + $0x30] sm:$0xff] (%p3615_p5), %v2548_v11   ;;  %2553 = vst [vmem:[%s4954_s15 + $0x38] sm:$0xff] (%p3615_p5), %v2552_v52  }
 0x2b3   : > { %v2419_v15 = vpop.permute.xlu0 %2418 }
 0x2b4   : > { %3146 = vst.msk [vmem:[%s4395_s27 + $0xc8] sm:$0xf] %vm1147_vm1, %v2419_v15  ;;  %2151 = vrot.lane.b32.xlu1 %v3243_v37, %s5111_s29 }
 0x2b7   : > { %v1789_v6 = vpop.permute.xlu0 %1788 }
 0x2b8   : > { %3080 = vst.msk [vmem:[%s4395_s27 + $0x40] sm:$0xf] %vm1147_vm1, %v1789_v6  ;;  %2440 = vrot.lane.b32.xlu1 %v3259_v55, %s5109_s24 }
 0x2ba   : > { %v1795_v53 = vpop.permute.xlu1 %1794 }
 0x2bb   : > { %3083 = vst.msk [vmem:[%s4395_s27 + $0x4c] sm:$0xf] %vm1147_vm1, %v1795_v53  ;;  %v2126_v28 = vpop.permute.xlu0 %2125 }
 0x2bc   : > { %3112 = vst.msk [vmem:[%s4395_s27 + $0x80] sm:$0xf] %vm1147_vm1, %v2126_v28  ;;  %2444 = vrot.lane.b32.xlu1 %v3261_v16, %s5109_s24 }
 0x2be   : > { %v2132_v31 = vpop.permute.xlu1 %2131 }
 0x2bf   : > { %3115 = vst.msk [vmem:[%s4395_s27 + $0x8c] sm:$0xf] %vm1147_vm1, %v2132_v31  ;;  %v2415_v1 = vpop.permute.xlu0 %2414 }
 0x2c0   : > { %3144 = vst.msk [vmem:[%s4395_s27 + $0xc0] sm:$0xf] %vm1147_vm1, %v2415_v1 }
 0x2c2   : > { %v2421_v36 = vpop.permute.xlu1 %2420  ;;  %v2560_v51 = vld [vmem:[%s4395_s27 + $0x48] sm:$0xff] (%p3615_p5)  }
 0x2c3   : > { %3147 = vst.msk [vmem:[%s4395_s27 + $0xcc] sm:$0xf] %vm1147_vm1, %v2421_v36  ;;  %v1801_v63 = vpop.permute.xlu0 %1800  ;;  %2561 = vst [vmem:[%s4954_s15 + $0x88] sm:$0xff] (%p3615_p5), %v2560_v51  }
 0x2c4   : > { %3086 = vst.msk [vmem:[%s4395_s27 + $0x58] sm:$0xf] %vm1147_vm1, %v1801_v63 }
 0x2c6   : > { %v1791_v21 = vpop.permute.xlu1 %1790  ;;  %v2592_v55 = vld [vmem:[%s4395_s27 + $0x88] sm:$0xff] (%p3615_p5)  }
 0x2c7   : > { %3081 = vst.msk [vmem:[%s4395_s27 + $0x44] sm:$0xf] %vm1147_vm1, %v1791_v21  ;;  %v2138_v30 = vpop.permute.xlu0 %2137  ;;  %2593 = vst [vmem:[%s4954_s15 + $0x108] sm:$0xff] (%p3615_p5), %v2592_v55  }
 0x2c8   : > { %3118 = vst.msk [vmem:[%s4395_s27 + $0x98] sm:$0xf] %vm1147_vm1, %v2138_v30 }
 0x2ca   : > { %v2128_v5 = vpop.permute.xlu1 %2127  ;;  %v2624_v63 = vld [vmem:[%s4395_s27 + $0xc8] sm:$0xff] (%p3615_p5)  }
 0x2cb   : > { %3113 = vst.msk [vmem:[%s4395_s27 + $0x84] sm:$0xf] %vm1147_vm1, %v2128_v5  ;;  %v2427_v45 = vpop.permute.xlu0 %2426  ;;  %2625 = vst [vmem:[%s4954_s15 + $0x188] sm:$0xff] (%p3615_p5), %v2624_v63  }
 0x2cc   : > { %3150 = vst.msk [vmem:[%s4395_s27 + $0xd8] sm:$0xf] %vm1147_vm1, %v2427_v45 }
 0x2ce   : > { %v2417_v61 = vpop.permute.xlu1 %2416  ;;  %v2556_v13 = vld [vmem:[%s4395_s27 + $0x40] sm:$0xff] (%p3615_p5)  }
 0x2cf   : > { %3145 = vst.msk [vmem:[%s4395_s27 + $0xc4] sm:$0xf] %vm1147_vm1, %v2417_v61  ;;  %2557 = vst [vmem:[%s4954_s15 + $0x80] sm:$0xff] (%p3615_p5), %v2556_v13  }
 0x2d2   : > { %v1797_v22 = vpop.permute.xlu0 %1796  ;;  %v2588_v62 = vld [vmem:[%s4395_s27 + $0x80] sm:$0xff] (%p3615_p5)  }
 0x2d3   : > { %3084 = vst.msk [vmem:[%s4395_s27 + $0x50] sm:$0xf] %vm1147_vm1, %v1797_v22  ;;  %2589 = vst [vmem:[%s4954_s15 + $0x100] sm:$0xff] (%p3615_p5), %v2588_v62  }
 0x2d6   : > { %v2134_v42 = vpop.permute.xlu0 %2133  ;;  %v2620_v36 = vld [vmem:[%s4395_s27 + $0xc0] sm:$0xff] (%p3615_p5)  }
 0x2d7   : > { %3116 = vst.msk [vmem:[%s4395_s27 + $0x90] sm:$0xf] %vm1147_vm1, %v2134_v42  ;;  %2621 = vst [vmem:[%s4954_s15 + $0x180] sm:$0xff] (%p3615_p5), %v2620_v36  }
 0x2da   : > { %v2423_v48 = vpop.permute.xlu0 %2422  ;;  %v1803_v7 = vpop.permute.xlu1 %1802 }
 0x2db   : > { %3148 = vst.msk [vmem:[%s4395_s27 + $0xd0] sm:$0xf] %vm1147_vm1, %v2423_v48  ;;  %3087 = vst.msk [vmem:[%s4395_s27 + $0x5c] sm:$0xf] %vm1147_vm1, %v1803_v7 }
 0x2de   : > { %v2140_v18 = vpop.permute.xlu1 %2139 }
 0x2df   : > { %3119 = vst.msk [vmem:[%s4395_s27 + $0x9c] sm:$0xf] %vm1147_vm1, %v2140_v18 }
 0x2e2   : > { %v1809_v29 = vpop.permute.xlu0 %1808  ;;  %v2429_v41 = vpop.permute.xlu1 %2428  ;;  %v2568_v20 = vld [vmem:[%s4395_s27 + $0x58] sm:$0xff] (%p3615_p5)  }
 0x2e3   : > { %3090 = vst.msk [vmem:[%s4395_s27 + $0x68] sm:$0xf] %vm1147_vm1, %v1809_v29  ;;  %3151 = vst.msk [vmem:[%s4395_s27 + $0xdc] sm:$0xf] %vm1147_vm1, %v2429_v41 }
 0x2e4   : > { %2569 = vst [vmem:[%s4954_s15 + $0x98] sm:$0xff] (%p3615_p5), %v2568_v20  }
 0x2e6   : > { %v2146_v39 = vpop.permute.xlu0 %2145  ;;  %v1799_v32 = vpop.permute.xlu1 %1798  ;;  %v2600_v16 = vld [vmem:[%s4395_s27 + $0x98] sm:$0xff] (%p3615_p5)  }
 0x2e7   : > { %3122 = vst.msk [vmem:[%s4395_s27 + $0xa8] sm:$0xf] %vm1147_vm1, %v2146_v39  ;;  %3085 = vst.msk [vmem:[%s4395_s27 + $0x54] sm:$0xf] %vm1147_vm1, %v1799_v32 }
 0x2e8   : > { %2601 = vst [vmem:[%s4954_s15 + $0x118] sm:$0xff] (%p3615_p5), %v2600_v16  }
 0x2ea   : > { %v2435_v49 = vpop.permute.xlu0 %2434  ;;  %v2136_v40 = vpop.permute.xlu1 %2135  ;;  %v2632_v30 = vld [vmem:[%s4395_s27 + $0xd8] sm:$0xff] (%p3615_p5)  }
 0x2eb   : > { %3154 = vst.msk [vmem:[%s4395_s27 + $0xe8] sm:$0xf] %vm1147_vm1, %v2435_v49  ;;  %3117 = vst.msk [vmem:[%s4395_s27 + $0x94] sm:$0xf] %vm1147_vm1, %v2136_v40 }
 0x2ec   : > { %2633 = vst [vmem:[%s4954_s15 + $0x198] sm:$0xff] (%p3615_p5), %v2632_v30  }
 0x2ee   : > { %v2425_v17 = vpop.permute.xlu1 %2424  ;;  %v2564_v12 = vld [vmem:[%s4395_s27 + $0x50] sm:$0xff] (%p3615_p5)  }
 0x2ef   : > { %3149 = vst.msk [vmem:[%s4395_s27 + $0xd4] sm:$0xf] %vm1147_vm1, %v2425_v17  ;;  %2565 = vst [vmem:[%s4954_s15 + $0x90] sm:$0xff] (%p3615_p5), %v2564_v12  }
 0x2f2   : > { %v1805_v14 = vpop.permute.xlu0 %1804  ;;  %v2596_v6 = vld [vmem:[%s4395_s27 + $0x90] sm:$0xff] (%p3615_p5)  }
 0x2f3   : > { %3088 = vst.msk [vmem:[%s4395_s27 + $0x60] sm:$0xf] %vm1147_vm1, %v1805_v14  ;;  %2597 = vst [vmem:[%s4954_s15 + $0x110] sm:$0xff] (%p3615_p5), %v2596_v6  }
 0x2f6   : > { %v2142_v2 = vpop.permute.xlu0 %2141  ;;  %v2628_v21 = vld [vmem:[%s4395_s27 + $0xd0] sm:$0xff] (%p3615_p5)  }
 0x2f7   : > { %3120 = vst.msk [vmem:[%s4395_s27 + $0xa0] sm:$0xf] %vm1147_vm1, %v2142_v2  ;;  %2629 = vst [vmem:[%s4954_s15 + $0x190] sm:$0xff] (%p3615_p5), %v2628_v21  }
 0x2fa   : > { %v2431_v46 = vpop.permute.xlu0 %2430  ;;  %v1811_v23 = vpop.permute.xlu1 %1810 }
 0x2fb   : > { %3152 = vst.msk [vmem:[%s4395_s27 + $0xe0] sm:$0xf] %vm1147_vm1, %v2431_v46  ;;  %3091 = vst.msk [vmem:[%s4395_s27 + $0x6c] sm:$0xf] %vm1147_vm1, %v1811_v23 }
 0x2fe   : > { %v2148_v4 = vpop.permute.xlu1 %2147 }
 0x2ff   : > { %3123 = vst.msk [vmem:[%s4395_s27 + $0xac] sm:$0xf] %vm1147_vm1, %v2148_v4 }
 0x302   : > { %v1817_v60 = vpop.permute.xlu0 %1816  ;;  %v2437_v8 = vpop.permute.xlu1 %2436  ;;  %v2576_v15 = vld [vmem:[%s4395_s27 + $0x68] sm:$0xff] (%p3615_p5)  }
 0x303   : > { %3094 = vst.msk [vmem:[%s4395_s27 + $0x78] sm:$0xf] %vm1147_vm1, %v1817_v60  ;;  %3155 = vst.msk [vmem:[%s4395_s27 + $0xec] sm:$0xf] %vm1147_vm1, %v2437_v8 }
 0x304   : > { %2577 = vst [vmem:[%s4954_s15 + $0xa8] sm:$0xff] (%p3615_p5), %v2576_v15  }
 0x306   : > { %v2154_v33 = vpop.permute.xlu0 %2153  ;;  %v1807_v19 = vpop.permute.xlu1 %1806  ;;  %v2608_v28 = vld [vmem:[%s4395_s27 + $0xa8] sm:$0xff] (%p3615_p5)  }
 0x307   : > { %3126 = vst.msk [vmem:[%s4395_s27 + $0xb8] sm:$0xf] %vm1147_vm1, %v2154_v33  ;;  %3089 = vst.msk [vmem:[%s4395_s27 + $0x64] sm:$0xf] %vm1147_vm1, %v1807_v19 }
 0x308   : > { %2609 = vst [vmem:[%s4954_s15 + $0x128] sm:$0xff] (%p3615_p5), %v2608_v28  }
 0x30a   : > { %v2144_v34 = vpop.permute.xlu1 %2143  ;;  %v2640_v45 = vld [vmem:[%s4395_s27 + $0xe8] sm:$0xff] (%p3615_p5)  }
 0x30b   : > { %3121 = vst.msk [vmem:[%s4395_s27 + $0xa4] sm:$0xf] %vm1147_vm1, %v2144_v34  ;;  %2641 = vst [vmem:[%s4954_s15 + $0x1a8] sm:$0xff] (%p3615_p5), %v2640_v45  }
 0x30e   : > { %v2433_v43 = vpop.permute.xlu1 %2432  ;;  %v2572_v37 = vld [vmem:[%s4395_s27 + $0x60] sm:$0xff] (%p3615_p5)  }
 0x30f   : > { %3153 = vst.msk [vmem:[%s4395_s27 + $0xe4] sm:$0xf] %vm1147_vm1, %v2433_v43  ;;  %2573 = vst [vmem:[%s4954_s15 + $0xa0] sm:$0xff] (%p3615_p5), %v2572_v37  }
 0x312   : > { %v1813_v27 = vpop.permute.xlu0 %1812  ;;  %v2604_v53 = vld [vmem:[%s4395_s27 + $0xa0] sm:$0xff] (%p3615_p5)  }
 0x313   : > { %3092 = vst.msk [vmem:[%s4395_s27 + $0x70] sm:$0xf] %vm1147_vm1, %v1813_v27  ;;  %2605 = vst [vmem:[%s4954_s15 + $0x120] sm:$0xff] (%p3615_p5), %v2604_v53  }
 0x316   : > { %v2150_v56 = vpop.permute.xlu0 %2149  ;;  %v2636_v5 = vld [vmem:[%s4395_s27 + $0xe0] sm:$0xff] (%p3615_p5)  }
 0x317   : > { %3124 = vst.msk [vmem:[%s4395_s27 + $0xb0] sm:$0xf] %vm1147_vm1, %v2150_v56  ;;  %2637 = vst [vmem:[%s4954_s15 + $0x1a0] sm:$0xff] (%p3615_p5), %v2636_v5  }
 0x31a   : > { %v2439_v58 = vpop.permute.xlu0 %2438  ;;  %v1819_v25 = vpop.permute.xlu1 %1818 }
 0x31b   : > { %3156 = vst.msk [vmem:[%s4395_s27 + $0xf0] sm:$0xf] %vm1147_vm1, %v2439_v58  ;;  %3095 = vst.msk [vmem:[%s4395_s27 + $0x7c] sm:$0xf] %vm1147_vm1, %v1819_v25 }
 0x31e   : > { %v2443_v44 = vpop.permute.xlu0 %2442  ;;  %v2156_v3 = vpop.permute.xlu1 %2155 }
 0x31f   : > { %3158 = vst.msk [vmem:[%s4395_s27 + $0xf8] sm:$0xf] %vm1147_vm1, %v2443_v44  ;;  %3127 = vst.msk [vmem:[%s4395_s27 + $0xbc] sm:$0xf] %vm1147_vm1, %v2156_v3 }
 0x322   : > { %v1815_v24 = vpop.permute.xlu1 %1814  ;;  %v2584_v9 = vld [vmem:[%s4395_s27 + $0x78] sm:$0xff] (%p3615_p5)  }
 0x323   : > { %3093 = vst.msk [vmem:[%s4395_s27 + $0x74] sm:$0xf] %vm1147_vm1, %v1815_v24  ;;  %2585 = vst [vmem:[%s4954_s15 + $0xb8] sm:$0xff] (%p3615_p5), %v2584_v9  }
 0x326   : > { %v2152_v26 = vpop.permute.xlu1 %2151  ;;  %v2616_v1 = vld [vmem:[%s4395_s27 + $0xb8] sm:$0xff] (%p3615_p5)  }
 0x327   : > { %3125 = vst.msk [vmem:[%s4395_s27 + $0xb4] sm:$0xf] %vm1147_vm1, %v2152_v26  ;;  %2617 = vst [vmem:[%s4954_s15 + $0x138] sm:$0xff] (%p3615_p5), %v2616_v1  }
 0x329   : > { %2503 = sbr.rel (!%p3615_p5) target bundleno = 824 (0x338), region = 48 }
 0x32a   : > { %v2441_v59 = vpop.permute.xlu1 %2440  ;;  %v2580_v54 = vld [vmem:[%s4395_s27 + $0x70] sm:$0xff] (%p3615_p5)  }
 0x32b   : > { %3157 = vst.msk [vmem:[%s4395_s27 + $0xf4] sm:$0xf] %vm1147_vm1, %v2441_v59  ;;  %2581 = vst [vmem:[%s4954_s15 + $0xb0] sm:$0xff] (%p3615_p5), %v2580_v54  }
 0x32e   : > { %v2445_v38 = vpop.permute.xlu1 %2444  ;;  %v2612_v31 = vld [vmem:[%s4395_s27 + $0xb0] sm:$0xff] (%p3615_p5)  }
 0x32f   : > { %3159 = vst.msk [vmem:[%s4395_s27 + $0xfc] sm:$0xf] %vm1147_vm1, %v2445_v38  ;;  %2613 = vst [vmem:[%s4954_s15 + $0x130] sm:$0xff] (%p3615_p5), %v2612_v31  }
 0x332   : > { %v2644_v61 = vld [vmem:[%s4395_s27 + $0xf0] sm:$0xff]  }
 0x333   : > { %2645 = vst [vmem:[%s4954_s15 + $0x1b0] sm:$0xff] %v2644_v61  }
 0x336   : > { %v2648_v22 = vld [vmem:[%s4395_s27 + $0xf8] sm:$0xff]  }
 0x337   : > { %2649 = vst [vmem:[%s4954_s15 + $0x1b8] sm:$0xff] %v2648_v22  }
 0x338 PF: > { %s19_s11 = sadd.s32 1, %s3517_s11   ;;  %s5165_s27 = smov %s3497_s28 }
 0x339   : > { %p16_p11 = scmp.ge.s32.totalorder %s19_s11, 6   ;;  %s5166_s28 = smov %s3626_s20 }
 0x33a   : > { %s5167_s29 = smov %s3509_s9  ;;  %s5168_s30 = smov %s3513_s10 }
 0x33b   : > { %s5169_s9 = smov %s5172_s12  ;;  %s5170_s10 = smov %s5176_s13 }
 0x33c   :  { %18 = sbr.rel (!%p16_p11) target bundleno = 4 (0x4), region = 148 }

// kernel: attention_forward.3
= control target key start
LH: loop header
LB: loop body
LE: loop exit
PB: predicated region body
PF: predicated region fallthrough
CT: control target
= control target key end

     0   :  { %s10093_s0 = inlined_call_operand.vmem [shape: bf16[2,4,256,32], index: 0, kind: input, shape index: {}]   ;;  %s10094_s1 = inlined_call_operand.vmem [shape: bf16[2,256,32], index: 1, kind: input, shape index: {}]   ;;  %s10095_s2 = inlined_call_operand.vmem [shape: bf16[2,256,32], index: 2, kind: input, shape index: {}]   ;;  %s10096_s3 = inlined_call_operand.vmem [shape: bf16[128,128], index: 3, kind: input, shape index: {}]   ;;  %s10097_s4 = inlined_call_operand.hbm [shape: f32[2,256,128], index: 4, kind: output, shape index: {}]  }
   0x1   :  { %10247 = sst [smem:[#allocation131_spill]] %s10093_s0 }
   0x2   :  { %9 = vsyncpa [#allocation7], 0 }
   0x3   :  { %11 = vsyncpa [#allocation7 + $0x1], 0  ;;  %s7271_s15 = smov 0   ;;  %s7273_s16 = smov 0  }
   0x4   :  { %s7275_s17 = smov 0   ;;  %s7277_s18 = smov 0  }
   0x5   :  { %s7279_s19 = smov 0   ;;  %s7281_s20 = smov 0  }
   0x6   :  { %s7283_s21 = smov 0   ;;  %s7285_s22 = smov 0  }
   0x7   :  { %s7287_s23 = smov 0   ;;  %s7289_s24 = smov 0  }
   0x8 LB: > { %10248 = sst [smem:[#allocation9_spill]] %s7226_s22  ;;  %s6036_s25 = sadd.s32 4294967295, %s7234_s24   ;;  %s7234_s24 = sphi %s7289_s24, %s17_s24   ;;  %s7230_s23 = sphi %s7287_s23, %s10604_s23   ;;  %s7226_s22 = sphi %s7285_s22, %s10603_s22   ;;  %s7222_s21 = sphi %s7283_s21, %s10609_s21   ;;  %s7218_s20 = sphi %s7281_s20, %s10601_s20   ;;  %s7214_s19 = sphi %s7279_s19, %s10600_s19   ;;  %s7210_s18 = sphi %s7277_s18, %s10608_s18   ;;  %s7206_s17 = sphi %s7275_s17, %s10607_s17   ;;  %s7202_s16 = sphi %s7273_s16, %s10606_s16   ;;  %s7198_s15 = sphi %s7271_s15, %s10605_s15  }
   0x9   : > { %10249 = sst [smem:[#allocation10_spill]] %s7230_s23  ;;  %s6037_s26 = sadd.s32 4294967294, %s7234_s24  }
   0xa   : > { %s29_s27 = sadd.s32 1, %s7222_s21  ;;  %s32_s28 = sadd.s32 1, %s7226_s22 }
   0xb   : > { %p30_p0 = scmp.ge.s32.totalorder %s29_s27, 2  ;;  %s36_s29 = sadd.s32 1, %s7230_s23 }
   0xc   : > { %p52_p1 = scmp.ne.s32.totalorder %s7206_s17, %s7202_s16  ;;  %p53_p2 = scmp.eq.s32.totalorder %s7234_s24, 0 }
   0xd   : > { %s10611_s27 = smov (%p30_p0, %s29_s27), 0  ;;  %s10613_s28 = smov (!%p30_p0, %s32_s28), %s7226_s22 }
   0xe   : > { %10250 = sst [smem:[#allocation11_spill]] %s10611_s27  ;;  %p161_p3 = scmp.eq.s32.totalorder %s6036_s25, 7 }
   0xf   : > { %p34_p4 = scmp.ge.s32.totalorder %s10613_s28, 2  ;;  %p166_p5 = scmp.ne.s32.totalorder %s7202_s16, %s7198_s15 }
  0x10   : > { %p7334_p6 = por %p53_p2, %p52_p1  ;;  %p7338_p7 = por %p161_p3, %p52_p1 }
  0x11   : > { %s10615_s28 = smov (%p34_p4, %s10613_s28), 0  ;;  %s10617_s29 = smov (!%p34_p4, %s36_s29), %s7230_s23 }
  0x12   : > { %10253 = sst [smem:[#allocation12_spill]] %s10615_s28  ;;  %p167_p8 = scmp.eq.s32.totalorder %s6037_s26, 7 }
  0x13   : > { %p38_p9 = scmp.ge.s32.totalorder %s10617_s29, 2  ;;  %s41_s6 = ssub.s32 %s7226_s22, %s10615_s28 }
  0x14   : > { %p7347_p10 = por %p167_p8, %p166_p5  ;;  %s45_s10 = sadd.s32 1, %s7206_s17 }
  0x15   : > { %s10619_s29 = smov (%p38_p9, %s10617_s29), 0  ;;  %p6039_p12 = scmp.ge.s32.totalorder %s7234_s24, 8 }
  0x16   : > { %10255 = sst [smem:[#allocation13_spill]] %s10619_s29  ;;  %s40_s8 = ssub.s32 %s7230_s23, %s10619_s29 }
  0x17   : > { %s42_s9 = sor.u32 %s41_s6, %s40_s8  ;;  %186 = sbr.rel (%p6039_p12) target bundleno = 56 (0x38), region = 20 }
  0x18   : > { %p43_p11 = scmp.eq.s32.totalorder %s42_s9, 0 }
  0x1a   : > { %s7357_s11 = scalar_select %p43_p11, %s7206_s17, %s45_s10  }
  0x1e   : > { %189 = sbr.rel (!%p7334_p6) target bundleno = 56 (0x38), region = 24  ;;  %s191_s12 = sand.u32 (%p7334_p6), 1, %s7206_s17  }
  0x1f   : > { %s6041_s13 = sshll.u32 (%p7334_p6), %s7226_s22, 4  ;;  %s6040_s14 = sshll.u32 (%p7334_p6), %s191_s12, 8 }
  0x20   : > { %s6042_s25 = sshll.u32 (%p7334_p6), %s7230_s23, 7  ;;  %s10256_s0 = sld [smem:[#allocation131_spill]] (%p7334_p6) }
  0x21   : > { %s196_s26 = sadd.s32 (%p7334_p6), %s6042_s25, %s6041_s13  ;;  %s7373_s30 = scalar_lea.vmem (%p7334_p6), [#allocation5], %s6040_s14 }
  0x22   : > { %s6043_s29 = sshll.u32 (%p7334_p6), %s196_s26, 2 }
  0x26   : > { %s7368_s9 = scalar_lea.vmem %s10256_s0, %s6043_s29 }
  0x27   : > { %v214_v0 = vld [vmem:[%s7368_s9] sm:$0xff]   ;;  %v218_v1 = vld [vmem:[%s7368_s9 + $0x8] sm:$0xff]   ;;  %v222_v2 = vld [vmem:[%s7368_s9 + $0x10] sm:$0xff]  }
  0x28   : > { %215 = vst [vmem:[%s7373_s30] sm:$0xff] %v214_v0   ;;  %219 = vst [vmem:[%s7373_s30 + $0x8] sm:$0xff] %v218_v1   ;;  %v226_v3 = vld [vmem:[%s7368_s9 + $0x18] sm:$0xff]   ;;  %v230_v4 = vld [vmem:[%s7368_s9 + $0x20] sm:$0xff]  }
  0x29   : > { %223 = vst [vmem:[%s7373_s30 + $0x10] sm:$0xff] %v222_v2   ;;  %v234_v5 = vld [vmem:[%s7368_s9 + $0x28] sm:$0xff]   ;;  %227 = vst [vmem:[%s7373_s30 + $0x18] sm:$0xff] %v226_v3   ;;  %v238_v6 = vld [vmem:[%s7368_s9 + $0x30] sm:$0xff]  }
  0x2a   : > { %231 = vst [vmem:[%s7373_s30 + $0x20] sm:$0xff] %v230_v4   ;;  %235 = vst [vmem:[%s7373_s30 + $0x28] sm:$0xff] %v234_v5   ;;  %v242_v7 = vld [vmem:[%s7368_s9 + $0x38] sm:$0xff]   ;;  %v246_v8 = vld [vmem:[%s7368_s9 + $0x80] sm:$0xff]  }
  0x2b   : > { %239 = vst [vmem:[%s7373_s30 + $0x30] sm:$0xff] %v238_v6   ;;  %243 = vst [vmem:[%s7373_s30 + $0x38] sm:$0xff] %v242_v7   ;;  %v250_v9 = vld [vmem:[%s7368_s9 + $0x88] sm:$0xff]   ;;  %v254_v10 = vld [vmem:[%s7368_s9 + $0x90] sm:$0xff]  }
  0x2c   : > { %247 = vst [vmem:[%s7373_s30 + $0x40] sm:$0xff] %v246_v8   ;;  %v258_v11 = vld [vmem:[%s7368_s9 + $0x98] sm:$0xff]   ;;  %251 = vst [vmem:[%s7373_s30 + $0x48] sm:$0xff] %v250_v9   ;;  %v262_v12 = vld [vmem:[%s7368_s9 + $0xa0] sm:$0xff]  }
  0x2d   : > { %255 = vst [vmem:[%s7373_s30 + $0x50] sm:$0xff] %v254_v10   ;;  %259 = vst [vmem:[%s7373_s30 + $0x58] sm:$0xff] %v258_v11   ;;  %v266_v13 = vld [vmem:[%s7368_s9 + $0xa8] sm:$0xff]   ;;  %v270_v14 = vld [vmem:[%s7368_s9 + $0xb0] sm:$0xff]  }
  0x2e   : > { %263 = vst [vmem:[%s7373_s30 + $0x60] sm:$0xff] %v262_v12   ;;  %267 = vst [vmem:[%s7373_s30 + $0x68] sm:$0xff] %v266_v13   ;;  %v274_v15 = vld [vmem:[%s7368_s9 + $0xb8] sm:$0xff]   ;;  %v278_v16 = vld [vmem:[%s7368_s9 + $0x100] sm:$0xff]  }
  0x2f   : > { %271 = vst [vmem:[%s7373_s30 + $0x70] sm:$0xff] %v270_v14   ;;  %v282_v17 = vld [vmem:[%s7368_s9 + $0x108] sm:$0xff]   ;;  %275 = vst [vmem:[%s7373_s30 + $0x78] sm:$0xff] %v274_v15   ;;  %v286_v18 = vld [vmem:[%s7368_s9 + $0x110] sm:$0xff]  }
  0x30   : > { %279 = vst [vmem:[%s7373_s30 + $0x80] sm:$0xff] %v278_v16   ;;  %283 = vst [vmem:[%s7373_s30 + $0x88] sm:$0xff] %v282_v17   ;;  %v290_v19 = vld [vmem:[%s7368_s9 + $0x118] sm:$0xff]   ;;  %v294_v20 = vld [vmem:[%s7368_s9 + $0x120] sm:$0xff]  }
  0x31   : > { %287 = vst [vmem:[%s7373_s30 + $0x90] sm:$0xff] %v286_v18   ;;  %291 = vst [vmem:[%s7373_s30 + $0x98] sm:$0xff] %v290_v19   ;;  %v298_v21 = vld [vmem:[%s7368_s9 + $0x128] sm:$0xff]   ;;  %v302_v22 = vld [vmem:[%s7368_s9 + $0x130] sm:$0xff]  }
  0x32   : > { %295 = vst [vmem:[%s7373_s30 + $0xa0] sm:$0xff] %v294_v20   ;;  %v306_v23 = vld [vmem:[%s7368_s9 + $0x138] sm:$0xff]   ;;  %299 = vst [vmem:[%s7373_s30 + $0xa8] sm:$0xff] %v298_v21   ;;  %v310_v24 = vld [vmem:[%s7368_s9 + $0x180] sm:$0xff]  }
  0x33   : > { %303 = vst [vmem:[%s7373_s30 + $0xb0] sm:$0xff] %v302_v22   ;;  %307 = vst [vmem:[%s7373_s30 + $0xb8] sm:$0xff] %v306_v23   ;;  %v314_v25 = vld [vmem:[%s7368_s9 + $0x188] sm:$0xff]   ;;  %v318_v26 = vld [vmem:[%s7368_s9 + $0x190] sm:$0xff]  }
  0x34   : > { %311 = vst [vmem:[%s7373_s30 + $0xc0] sm:$0xff] %v310_v24   ;;  %315 = vst [vmem:[%s7373_s30 + $0xc8] sm:$0xff] %v314_v25   ;;  %v322_v27 = vld [vmem:[%s7368_s9 + $0x198] sm:$0xff]   ;;  %v326_v28 = vld [vmem:[%s7368_s9 + $0x1a0] sm:$0xff]  }
  0x35   : > { %319 = vst [vmem:[%s7373_s30 + $0xd0] sm:$0xff] %v318_v26   ;;  %v330_v29 = vld [vmem:[%s7368_s9 + $0x1a8] sm:$0xff]   ;;  %323 = vst [vmem:[%s7373_s30 + $0xd8] sm:$0xff] %v322_v27   ;;  %v334_v30 = vld [vmem:[%s7368_s9 + $0x1b0] sm:$0xff]  }
  0x36   : > { %327 = vst [vmem:[%s7373_s30 + $0xe0] sm:$0xff] %v326_v28   ;;  %331 = vst [vmem:[%s7373_s30 + $0xe8] sm:$0xff] %v330_v29   ;;  %v338_v31 = vld [vmem:[%s7368_s9 + $0x1b8] sm:$0xff]  }
  0x37   : > { %335 = vst [vmem:[%s7373_s30 + $0xf0] sm:$0xff] %v334_v30   ;;  %339 = vst [vmem:[%s7373_s30 + $0xf8] sm:$0xff] %v338_v31  }
  0x38 PF: > { %p6044_p13 = scmp.ge.s32.totalorder %s7234_s24, 1  ;;  %p517_p0 = scmp.lt.s32.totalorder %s7234_s24, 9 }
  0x3a   : > { %p518_p1 = pnand %p6044_p13, %p517_p0 }
  0x3b   : > { %s7439_s29 = sand.u32 (!%p518_p1), 1, %s7202_s16   ;;  %s6047_s10 = sshll.u32 (!%p518_p1), %s7210_s18, 4 }
  0x3c   : > { %521 = sbr.rel (%p518_p1) target bundleno = 1771 (0x6eb), region = 73  ;;  %s6045_s12 = sshll.u32 (!%p518_p1), %s7439_s29, 8 }
  0x3d   : > { %s6046_s13 = sshll.u32 (!%p518_p1), %s7439_s29, 7  ;;  %p569_p2 = scmp.lt.s32.totalorder (!%p518_p1), %s7218_s20, 1 }
  0x3e   : > { %p571_p3 = scmp.lt.s32.totalorder (!%p518_p1), %s6047_s10, 31  ;;  %s7456_s23 = scalar_lea.vmem (!%p518_p1), [#allocation5], %s6045_s12 }
  0x3f   : > { %s7458_s22 = scalar_lea.vmem (!%p518_p1), [#allocation6], %s6046_s13  ;;  %p6053_p4 = scmp.ne.s32.totalorder (!%p518_p1), %s7210_s18, 0 }
  0x43   : > { %s570_s14 = scalar_select %p569_p2, %s7218_s20, 1 }
  0x44   : > { %s10621_s10 = smov (!%p571_p3, %s6047_s10), 31  ;;  %593 = sbr.rel (%p6053_p4) target bundleno = 166 (0xa6), region = 81 }
  0x45   : > { %s6048_s25 = sshll.u32 %s570_s14, 5  ;;  %vm594_vm0 = vcmask (!%p6053_p4), 7168   ;;  %vm723_vm1 = vcmask (!%p6053_p4), 261120   ;;  %v7236_v32 = vmov (!%p6053_p4), -inf   ;;  %v7237_v33 = vmov (!%p6053_p4), 0.0  }
  0x46   : > { %s574_s26 = sadd.s32 %s6048_s25, %s10621_s10  ;;  %595 = vst.msk [vmem:[#allocation2] sm:$0xff] (!%p6053_p4), %vm594_vm0, %v7236_v32  ;;  %596 = vst.msk [vmem:[#allocation2 + $0x8] sm:$0xff] (!%p6053_p4), %vm594_vm0, %v7236_v32 }
  0x47   : > { %s6049_s6 = sshll.u32 %s574_s26, 2  ;;  %597 = vst.msk [vmem:[#allocation2 + $0x10] sm:$0xff] (!%p6053_p4), %vm594_vm0, %v7236_v32  ;;  %598 = vst.msk [vmem:[#allocation2 + $0x18] sm:$0xff] (!%p6053_p4), %vm594_vm0, %v7236_v32 }
  0x48   : > { %s7449_s30 = scalar_lea.vmem %s10094_s1, %s6049_s6  ;;  %s7454_s27 = scalar_lea.vmem %s10095_s2, %s6049_s6  ;;  %599 = vst.msk [vmem:[#allocation2 + $0x20] sm:$0xff] (!%p6053_p4), %vm594_vm0, %v7236_v32  ;;  %600 = vst.msk [vmem:[#allocation2 + $0x28] sm:$0xff] (!%p6053_p4), %vm594_vm0, %v7236_v32 }
  0x49   : > { %601 = vst.msk [vmem:[#allocation2 + $0x30] sm:$0xff] (!%p6053_p4), %vm594_vm0, %v7236_v32  ;;  %602 = vst.msk [vmem:[#allocation2 + $0x38] sm:$0xff] (!%p6053_p4), %vm594_vm0, %v7236_v32 }
  0x4a   : > { %603 = vst.msk [vmem:[#allocation2 + $0x40] sm:$0xff] (!%p6053_p4), %vm594_vm0, %v7236_v32  ;;  %604 = vst.msk [vmem:[#allocation2 + $0x48] sm:$0xff] (!%p6053_p4), %vm594_vm0, %v7236_v32 }
  0x4b   : > { %605 = vst.msk [vmem:[#allocation2 + $0x50] sm:$0xff] %vm594_vm0, %v7236_v32  ;;  %606 = vst.msk [vmem:[#allocation2 + $0x58] sm:$0xff] %vm594_vm0, %v7236_v32 }
  0x4c   : > { %607 = vst.msk [vmem:[#allocation2 + $0x60] sm:$0xff] %vm594_vm0, %v7236_v32  ;;  %608 = vst.msk [vmem:[#allocation2 + $0x68] sm:$0xff] %vm594_vm0, %v7236_v32 }
  0x4d   : > { %609 = vst.msk [vmem:[#allocation2 + $0x70] sm:$0xff] %vm594_vm0, %v7236_v32  ;;  %610 = vst.msk [vmem:[#allocation2 + $0x78] sm:$0xff] %vm594_vm0, %v7236_v32 }
  0x4e   : > { %611 = vst.msk [vmem:[#allocation2 + $0x80] sm:$0xff] %vm594_vm0, %v7236_v32  ;;  %612 = vst.msk [vmem:[#allocation2 + $0x88] sm:$0xff] %vm594_vm0, %v7236_v32 }
  0x4f   : > { %613 = vst.msk [vmem:[#allocation2 + $0x90] sm:$0xff] %vm594_vm0, %v7236_v32  ;;  %614 = vst.msk [vmem:[#allocation2 + $0x98] sm:$0xff] %vm594_vm0, %v7236_v32 }
  0x50   : > { %615 = vst.msk [vmem:[#allocation2 + $0xa0] sm:$0xff] %vm594_vm0, %v7236_v32  ;;  %616 = vst.msk [vmem:[#allocation2 + $0xa8] sm:$0xff] %vm594_vm0, %v7236_v32 }
  0x51   : > { %617 = vst.msk [vmem:[#allocation2 + $0xb0] sm:$0xff] %vm594_vm0, %v7236_v32  ;;  %618 = vst.msk [vmem:[#allocation2 + $0xb8] sm:$0xff] %vm594_vm0, %v7236_v32 }
  0x52   : > { %619 = vst.msk [vmem:[#allocation2 + $0xc0] sm:$0xff] %vm594_vm0, %v7236_v32  ;;  %620 = vst.msk [vmem:[#allocation2 + $0xc8] sm:$0xff] %vm594_vm0, %v7236_v32 }
  0x53   : > { %621 = vst.msk [vmem:[#allocation2 + $0xd0] sm:$0xff] %vm594_vm0, %v7236_v32  ;;  %622 = vst.msk [vmem:[#allocation2 + $0xd8] sm:$0xff] %vm594_vm0, %v7236_v32 }
  0x54   : > { %623 = vst.msk [vmem:[#allocation2 + $0xe0] sm:$0xff] %vm594_vm0, %v7236_v32  ;;  %624 = vst.msk [vmem:[#allocation2 + $0xe8] sm:$0xff] %vm594_vm0, %v7236_v32 }
  0x55   : > { %625 = vst.msk [vmem:[#allocation2 + $0xf0] sm:$0xff] %vm594_vm0, %v7236_v32  ;;  %626 = vst.msk [vmem:[#allocation2 + $0xf8] sm:$0xff] %vm594_vm0, %v7236_v32 }
  0x56   : > { %627 = vst.msk [vmem:[#allocation2 + $0x100] sm:$0xff] %vm594_vm0, %v7236_v32  ;;  %628 = vst.msk [vmem:[#allocation2 + $0x108] sm:$0xff] %vm594_vm0, %v7236_v32 }
  0x57   : > { %629 = vst.msk [vmem:[#allocation2 + $0x110] sm:$0xff] %vm594_vm0, %v7236_v32  ;;  %630 = vst.msk [vmem:[#allocation2 + $0x118] sm:$0xff] %vm594_vm0, %v7236_v32 }
  0x58   : > { %631 = vst.msk [vmem:[#allocation2 + $0x120] sm:$0xff] %vm594_vm0, %v7236_v32  ;;  %632 = vst.msk [vmem:[#allocation2 + $0x128] sm:$0xff] %vm594_vm0, %v7236_v32 }
  0x59   : > { %633 = vst.msk [vmem:[#allocation2 + $0x130] sm:$0xff] %vm594_vm0, %v7236_v32  ;;  %634 = vst.msk [vmem:[#allocation2 + $0x138] sm:$0xff] %vm594_vm0, %v7236_v32 }
  0x5a   : > { %635 = vst.msk [vmem:[#allocation2 + $0x140] sm:$0xff] %vm594_vm0, %v7236_v32  ;;  %636 = vst.msk [vmem:[#allocation2 + $0x148] sm:$0xff] %vm594_vm0, %v7236_v32 }
  0x5b   : > { %637 = vst.msk [vmem:[#allocation2 + $0x150] sm:$0xff] %vm594_vm0, %v7236_v32  ;;  %638 = vst.msk [vmem:[#allocation2 + $0x158] sm:$0xff] %vm594_vm0, %v7236_v32 }
  0x5c   : > { %639 = vst.msk [vmem:[#allocation2 + $0x160] sm:$0xff] %vm594_vm0, %v7236_v32  ;;  %640 = vst.msk [vmem:[#allocation2 + $0x168] sm:$0xff] %vm594_vm0, %v7236_v32 }
  0x5d   : > { %641 = vst.msk [vmem:[#allocation2 + $0x170] sm:$0xff] %vm594_vm0, %v7236_v32  ;;  %642 = vst.msk [vmem:[#allocation2 + $0x178] sm:$0xff] %vm594_vm0, %v7236_v32 }
  0x5e   : > { %643 = vst.msk [vmem:[#allocation2 + $0x180] sm:$0xff] %vm594_vm0, %v7236_v32  ;;  %644 = vst.msk [vmem:[#allocation2 + $0x188] sm:$0xff] %vm594_vm0, %v7236_v32 }
  0x5f   : > { %645 = vst.msk [vmem:[#allocation2 + $0x190] sm:$0xff] %vm594_vm0, %v7236_v32  ;;  %646 = vst.msk [vmem:[#allocation2 + $0x198] sm:$0xff] %vm594_vm0, %v7236_v32 }
  0x60   : > { %647 = vst.msk [vmem:[#allocation2 + $0x1a0] sm:$0xff] %vm594_vm0, %v7236_v32  ;;  %648 = vst.msk [vmem:[#allocation2 + $0x1a8] sm:$0xff] %vm594_vm0, %v7236_v32 }
  0x61   : > { %649 = vst.msk [vmem:[#allocation2 + $0x1b0] sm:$0xff] %vm594_vm0, %v7236_v32  ;;  %650 = vst.msk [vmem:[#allocation2 + $0x1b8] sm:$0xff] %vm594_vm0, %v7236_v32 }
  0x62   : > { %651 = vst.msk [vmem:[#allocation2 + $0x1c0] sm:$0xff] %vm594_vm0, %v7236_v32  ;;  %652 = vst.msk [vmem:[#allocation2 + $0x1c8] sm:$0xff] %vm594_vm0, %v7236_v32 }
  0x63   : > { %653 = vst.msk [vmem:[#allocation2 + $0x1d0] sm:$0xff] %vm594_vm0, %v7236_v32  ;;  %654 = vst.msk [vmem:[#allocation2 + $0x1d8] sm:$0xff] %vm594_vm0, %v7236_v32 }
  0x64   : > { %655 = vst.msk [vmem:[#allocation2 + $0x1e0] sm:$0xff] %vm594_vm0, %v7236_v32  ;;  %656 = vst.msk [vmem:[#allocation2 + $0x1e8] sm:$0xff] %vm594_vm0, %v7236_v32 }
  0x65   : > { %657 = vst.msk [vmem:[#allocation2 + $0x1f0] sm:$0xff] %vm594_vm0, %v7236_v32  ;;  %658 = vst.msk [vmem:[#allocation2 + $0x1f8] sm:$0xff] %vm594_vm0, %v7236_v32 }
  0x66   : > { %659 = vst.msk [vmem:[#allocation3] sm:$0xff] %vm594_vm0, %v7237_v33  ;;  %660 = vst.msk [vmem:[#allocation3 + $0x8] sm:$0xff] %vm594_vm0, %v7237_v33 }
  0x67   : > { %661 = vst.msk [vmem:[#allocation3 + $0x10] sm:$0xff] %vm594_vm0, %v7237_v33  ;;  %662 = vst.msk [vmem:[#allocation3 + $0x18] sm:$0xff] %vm594_vm0, %v7237_v33 }
  0x68   : > { %663 = vst.msk [vmem:[#allocation3 + $0x20] sm:$0xff] %vm594_vm0, %v7237_v33  ;;  %664 = vst.msk [vmem:[#allocation3 + $0x28] sm:$0xff] %vm594_vm0, %v7237_v33 }
  0x69   : > { %665 = vst.msk [vmem:[#allocation3 + $0x30] sm:$0xff] %vm594_vm0, %v7237_v33  ;;  %666 = vst.msk [vmem:[#allocation3 + $0x38] sm:$0xff] %vm594_vm0, %v7237_v33 }
  0x6a   : > { %667 = vst.msk [vmem:[#allocation3 + $0x40] sm:$0xff] %vm594_vm0, %v7237_v33  ;;  %668 = vst.msk [vmem:[#allocation3 + $0x48] sm:$0xff] %vm594_vm0, %v7237_v33 }
  0x6b   : > { %669 = vst.msk [vmem:[#allocation3 + $0x50] sm:$0xff] %vm594_vm0, %v7237_v33  ;;  %670 = vst.msk [vmem:[#allocation3 + $0x58] sm:$0xff] %vm594_vm0, %v7237_v33 }
  0x6c   : > { %671 = vst.msk [vmem:[#allocation3 + $0x60] sm:$0xff] %vm594_vm0, %v7237_v33  ;;  %672 = vst.msk [vmem:[#allocation3 + $0x68] sm:$0xff] %vm594_vm0, %v7237_v33 }
  0x6d   : > { %673 = vst.msk [vmem:[#allocation3 + $0x70] sm:$0xff] %vm594_vm0, %v7237_v33  ;;  %674 = vst.msk [vmem:[#allocation3 + $0x78] sm:$0xff] %vm594_vm0, %v7237_v33 }
  0x6e   : > { %675 = vst.msk [vmem:[#allocation3 + $0x80] sm:$0xff] %vm594_vm0, %v7237_v33  ;;  %676 = vst.msk [vmem:[#allocation3 + $0x88] sm:$0xff] %vm594_vm0, %v7237_v33 }
  0x6f   : > { %677 = vst.msk [vmem:[#allocation3 + $0x90] sm:$0xff] %vm594_vm0, %v7237_v33  ;;  %678 = vst.msk [vmem:[#allocation3 + $0x98] sm:$0xff] %vm594_vm0, %v7237_v33 }
  0x70   : > { %679 = vst.msk [vmem:[#allocation3 + $0xa0] sm:$0xff] %vm594_vm0, %v7237_v33  ;;  %680 = vst.msk [vmem:[#allocation3 + $0xa8] sm:$0xff] %vm594_vm0, %v7237_v33 }
  0x71   : > { %681 = vst.msk [vmem:[#allocation3 + $0xb0] sm:$0xff] %vm594_vm0, %v7237_v33  ;;  %682 = vst.msk [vmem:[#allocation3 + $0xb8] sm:$0xff] %vm594_vm0, %v7237_v33 }
  0x72   : > { %683 = vst.msk [vmem:[#allocation3 + $0xc0] sm:$0xff] %vm594_vm0, %v7237_v33  ;;  %684 = vst.msk [vmem:[#allocation3 + $0xc8] sm:$0xff] %vm594_vm0, %v7237_v33 }
  0x73   : > { %685 = vst.msk [vmem:[#allocation3 + $0xd0] sm:$0xff] %vm594_vm0, %v7237_v33  ;;  %686 = vst.msk [vmem:[#allocation3 + $0xd8] sm:$0xff] %vm594_vm0, %v7237_v33 }
  0x74   : > { %687 = vst.msk [vmem:[#allocation3 + $0xe0] sm:$0xff] %vm594_vm0, %v7237_v33  ;;  %688 = vst.msk [vmem:[#allocation3 + $0xe8] sm:$0xff] %vm594_vm0, %v7237_v33 }
  0x75   : > { %689 = vst.msk [vmem:[#allocation3 + $0xf0] sm:$0xff] %vm594_vm0, %v7237_v33  ;;  %690 = vst.msk [vmem:[#allocation3 + $0xf8] sm:$0xff] %vm594_vm0, %v7237_v33 }
  0x76   : > { %691 = vst.msk [vmem:[#allocation3 + $0x100] sm:$0xff] %vm594_vm0, %v7237_v33  ;;  %692 = vst.msk [vmem:[#allocation3 + $0x108] sm:$0xff] %vm594_vm0, %v7237_v33 }
  0x77   : > { %693 = vst.msk [vmem:[#allocation3 + $0x110] sm:$0xff] %vm594_vm0, %v7237_v33  ;;  %694 = vst.msk [vmem:[#allocation3 + $0x118] sm:$0xff] %vm594_vm0, %v7237_v33 }
  0x78   : > { %695 = vst.msk [vmem:[#allocation3 + $0x120] sm:$0xff] %vm594_vm0, %v7237_v33  ;;  %696 = vst.msk [vmem:[#allocation3 + $0x128] sm:$0xff] %vm594_vm0, %v7237_v33 }
  0x79   : > { %697 = vst.msk [vmem:[#allocation3 + $0x130] sm:$0xff] %vm594_vm0, %v7237_v33  ;;  %698 = vst.msk [vmem:[#allocation3 + $0x138] sm:$0xff] %vm594_vm0, %v7237_v33 }
  0x7a   : > { %699 = vst.msk [vmem:[#allocation3 + $0x140] sm:$0xff] %vm594_vm0, %v7237_v33  ;;  %700 = vst.msk [vmem:[#allocation3 + $0x148] sm:$0xff] %vm594_vm0, %v7237_v33 }
  0x7b   : > { %701 = vst.msk [vmem:[#allocation3 + $0x150] sm:$0xff] %vm594_vm0, %v7237_v33  ;;  %702 = vst.msk [vmem:[#allocation3 + $0x158] sm:$0xff] %vm594_vm0, %v7237_v33 }
  0x7c   : > { %703 = vst.msk [vmem:[#allocation3 + $0x160] sm:$0xff] %vm594_vm0, %v7237_v33  ;;  %704 = vst.msk [vmem:[#allocation3 + $0x168] sm:$0xff] %vm594_vm0, %v7237_v33 }
  0x7d   : > { %705 = vst.msk [vmem:[#allocation3 + $0x170] sm:$0xff] %vm594_vm0, %v7237_v33  ;;  %706 = vst.msk [vmem:[#allocation3 + $0x178] sm:$0xff] %vm594_vm0, %v7237_v33 }
  0x7e   : > { %707 = vst.msk [vmem:[#allocation3 + $0x180] sm:$0xff] %vm594_vm0, %v7237_v33  ;;  %708 = vst.msk [vmem:[#allocation3 + $0x188] sm:$0xff] %vm594_vm0, %v7237_v33 }
  0x7f   : > { %709 = vst.msk [vmem:[#allocation3 + $0x190] sm:$0xff] %vm594_vm0, %v7237_v33  ;;  %710 = vst.msk [vmem:[#allocation3 + $0x198] sm:$0xff] %vm594_vm0, %v7237_v33 }
  0x80   : > { %711 = vst.msk [vmem:[#allocation3 + $0x1a0] sm:$0xff] %vm594_vm0, %v7237_v33  ;;  %712 = vst.msk [vmem:[#allocation3 + $0x1a8] sm:$0xff] %vm594_vm0, %v7237_v33 }
  0x81   : > { %713 = vst.msk [vmem:[#allocation3 + $0x1b0] sm:$0xff] %vm594_vm0, %v7237_v33  ;;  %714 = vst.msk [vmem:[#allocation3 + $0x1b8] sm:$0xff] %vm594_vm0, %v7237_v33 }
  0x82   : > { %715 = vst.msk [vmem:[#allocation3 + $0x1c0] sm:$0xff] %vm594_vm0, %v7237_v33  ;;  %716 = vst.msk [vmem:[#allocation3 + $0x1c8] sm:$0xff] %vm594_vm0, %v7237_v33 }
  0x83   : > { %717 = vst.msk [vmem:[#allocation3 + $0x1d0] sm:$0xff] %vm594_vm0, %v7237_v33  ;;  %718 = vst.msk [vmem:[#allocation3 + $0x1d8] sm:$0xff] %vm594_vm0, %v7237_v33 }
  0x84   : > { %719 = vst.msk [vmem:[#allocation3 + $0x1e0] sm:$0xff] %vm594_vm0, %v7237_v33  ;;  %720 = vst.msk [vmem:[#allocation3 + $0x1e8] sm:$0xff] %vm594_vm0, %v7237_v33 }
  0x85   : > { %721 = vst.msk [vmem:[#allocation3 + $0x1f0] sm:$0xff] %vm594_vm0, %v7237_v33  ;;  %722 = vst.msk [vmem:[#allocation3 + $0x1f8] sm:$0xff] %vm594_vm0, %v7237_v33 }
  0x86   : > { %724 = vst.msk [vmem:[#allocation4] sm:$0xff] %vm723_vm1, %v7237_v33  ;;  %725 = vst.msk [vmem:[#allocation4 + $0x8] sm:$0xff] %vm723_vm1, %v7237_v33 }
  0x87   : > { %726 = vst.msk [vmem:[#allocation4 + $0x10] sm:$0xff] %vm723_vm1, %v7237_v33  ;;  %727 = vst.msk [vmem:[#allocation4 + $0x18] sm:$0xff] %vm723_vm1, %v7237_v33 }
  0x88   : > { %728 = vst.msk [vmem:[#allocation4 + $0x20] sm:$0xff] %vm723_vm1, %v7237_v33  ;;  %729 = vst.msk [vmem:[#allocation4 + $0x28] sm:$0xff] %vm723_vm1, %v7237_v33 }
  0x89   : > { %730 = vst.msk [vmem:[#allocation4 + $0x30] sm:$0xff] %vm723_vm1, %v7237_v33  ;;  %731 = vst.msk [vmem:[#allocation4 + $0x38] sm:$0xff] %vm723_vm1, %v7237_v33 }
  0x8a   : > { %732 = vst.msk [vmem:[#allocation4 + $0x40] sm:$0xff] %vm723_vm1, %v7237_v33  ;;  %733 = vst.msk [vmem:[#allocation4 + $0x48] sm:$0xff] %vm723_vm1, %v7237_v33 }
  0x8b   : > { %734 = vst.msk [vmem:[#allocation4 + $0x50] sm:$0xff] %vm723_vm1, %v7237_v33  ;;  %735 = vst.msk [vmem:[#allocation4 + $0x58] sm:$0xff] %vm723_vm1, %v7237_v33 }
  0x8c   : > { %736 = vst.msk [vmem:[#allocation4 + $0x60] sm:$0xff] %vm723_vm1, %v7237_v33  ;;  %737 = vst.msk [vmem:[#allocation4 + $0x68] sm:$0xff] %vm723_vm1, %v7237_v33 }
  0x8d   : > { %738 = vst.msk [vmem:[#allocation4 + $0x70] sm:$0xff] %vm723_vm1, %v7237_v33  ;;  %739 = vst.msk [vmem:[#allocation4 + $0x78] sm:$0xff] %vm723_vm1, %v7237_v33 }
  0x8e   : > { %740 = vst.msk [vmem:[#allocation4 + $0x80] sm:$0xff] %vm723_vm1, %v7237_v33  ;;  %741 = vst.msk [vmem:[#allocation4 + $0x88] sm:$0xff] %vm723_vm1, %v7237_v33 }
  0x8f   : > { %742 = vst.msk [vmem:[#allocation4 + $0x90] sm:$0xff] %vm723_vm1, %v7237_v33  ;;  %743 = vst.msk [vmem:[#allocation4 + $0x98] sm:$0xff] %vm723_vm1, %v7237_v33 }
  0x90   : > { %744 = vst.msk [vmem:[#allocation4 + $0xa0] sm:$0xff] %vm723_vm1, %v7237_v33  ;;  %745 = vst.msk [vmem:[#allocation4 + $0xa8] sm:$0xff] %vm723_vm1, %v7237_v33 }
  0x91   : > { %746 = vst.msk [vmem:[#allocation4 + $0xb0] sm:$0xff] %vm723_vm1, %v7237_v33  ;;  %747 = vst.msk [vmem:[#allocation4 + $0xb8] sm:$0xff] %vm723_vm1, %v7237_v33 }
  0x92   : > { %748 = vst.msk [vmem:[#allocation4 + $0xc0] sm:$0xff] %vm723_vm1, %v7237_v33  ;;  %749 = vst.msk [vmem:[#allocation4 + $0xc8] sm:$0xff] %vm723_vm1, %v7237_v33 }
  0x93   : > { %750 = vst.msk [vmem:[#allocation4 + $0xd0] sm:$0xff] %vm723_vm1, %v7237_v33  ;;  %751 = vst.msk [vmem:[#allocation4 + $0xd8] sm:$0xff] %vm723_vm1, %v7237_v33 }
  0x94   : > { %752 = vst.msk [vmem:[#allocation4 + $0xe0] sm:$0xff] %vm723_vm1, %v7237_v33  ;;  %753 = vst.msk [vmem:[#allocation4 + $0xe8] sm:$0xff] %vm723_vm1, %v7237_v33 }
  0x95   : > { %754 = vst.msk [vmem:[#allocation4 + $0xf0] sm:$0xff] %vm723_vm1, %v7237_v33  ;;  %755 = vst.msk [vmem:[#allocation4 + $0xf8] sm:$0xff] %vm723_vm1, %v7237_v33 }
  0x96   : > { %756 = vst.msk [vmem:[#allocation4 + $0x100] sm:$0xff] %vm723_vm1, %v7237_v33  ;;  %757 = vst.msk [vmem:[#allocation4 + $0x108] sm:$0xff] %vm723_vm1, %v7237_v33 }
  0x97   : > { %758 = vst.msk [vmem:[#allocation4 + $0x110] sm:$0xff] %vm723_vm1, %v7237_v33  ;;  %759 = vst.msk [vmem:[#allocation4 + $0x118] sm:$0xff] %vm723_vm1, %v7237_v33 }
  0x98   : > { %760 = vst.msk [vmem:[#allocation4 + $0x120] sm:$0xff] %vm723_vm1, %v7237_v33  ;;  %761 = vst.msk [vmem:[#allocation4 + $0x128] sm:$0xff] %vm723_vm1, %v7237_v33 }
  0x99   : > { %762 = vst.msk [vmem:[#allocation4 + $0x130] sm:$0xff] %vm723_vm1, %v7237_v33  ;;  %763 = vst.msk [vmem:[#allocation4 + $0x138] sm:$0xff] %vm723_vm1, %v7237_v33 }
  0x9a   : > { %764 = vst.msk [vmem:[#allocation4 + $0x140] sm:$0xff] %vm723_vm1, %v7237_v33  ;;  %765 = vst.msk [vmem:[#allocation4 + $0x148] sm:$0xff] %vm723_vm1, %v7237_v33 }
  0x9b   : > { %766 = vst.msk [vmem:[#allocation4 + $0x150] sm:$0xff] %vm723_vm1, %v7237_v33  ;;  %767 = vst.msk [vmem:[#allocation4 + $0x158] sm:$0xff] %vm723_vm1, %v7237_v33 }
  0x9c   : > { %768 = vst.msk [vmem:[#allocation4 + $0x160] sm:$0xff] %vm723_vm1, %v7237_v33  ;;  %769 = vst.msk [vmem:[#allocation4 + $0x168] sm:$0xff] %vm723_vm1, %v7237_v33 }
  0x9d   : > { %770 = vst.msk [vmem:[#allocation4 + $0x170] sm:$0xff] %vm723_vm1, %v7237_v33  ;;  %771 = vst.msk [vmem:[#allocation4 + $0x178] sm:$0xff] %vm723_vm1, %v7237_v33 }
  0x9e   : > { %772 = vst.msk [vmem:[#allocation4 + $0x180] sm:$0xff] %vm723_vm1, %v7237_v33  ;;  %773 = vst.msk [vmem:[#allocation4 + $0x188] sm:$0xff] %vm723_vm1, %v7237_v33 }
  0x9f   : > { %774 = vst.msk [vmem:[#allocation4 + $0x190] sm:$0xff] %vm723_vm1, %v7237_v33  ;;  %775 = vst.msk [vmem:[#allocation4 + $0x198] sm:$0xff] %vm723_vm1, %v7237_v33 }
  0xa0   : > { %776 = vst.msk [vmem:[#allocation4 + $0x1a0] sm:$0xff] %vm723_vm1, %v7237_v33  ;;  %777 = vst.msk [vmem:[#allocation4 + $0x1a8] sm:$0xff] %vm723_vm1, %v7237_v33 }
  0xa1   : > { %778 = vst.msk [vmem:[#allocation4 + $0x1b0] sm:$0xff] %vm723_vm1, %v7237_v33  ;;  %779 = vst.msk [vmem:[#allocation4 + $0x1b8] sm:$0xff] %vm723_vm1, %v7237_v33 }
  0xa2   : > { %780 = vst.msk [vmem:[#allocation4 + $0x1c0] sm:$0xff] %vm723_vm1, %v7237_v33  ;;  %781 = vst.msk [vmem:[#allocation4 + $0x1c8] sm:$0xff] %vm723_vm1, %v7237_v33 }
  0xa3   : > { %782 = vst.msk [vmem:[#allocation4 + $0x1d0] sm:$0xff] %vm723_vm1, %v7237_v33  ;;  %783 = vst.msk [vmem:[#allocation4 + $0x1d8] sm:$0xff] %vm723_vm1, %v7237_v33 }
  0xa4   : > { %784 = vst.msk [vmem:[#allocation4 + $0x1e0] sm:$0xff] %vm723_vm1, %v7237_v33  ;;  %785 = vst.msk [vmem:[#allocation4 + $0x1e8] sm:$0xff] %vm723_vm1, %v7237_v33 }
  0xa5   : > { %786 = vst.msk [vmem:[#allocation4 + $0x1f0] sm:$0xff] %vm723_vm1, %v7237_v33  ;;  %787 = vst.msk [vmem:[#allocation4 + $0x1f8] sm:$0xff] %vm723_vm1, %v7237_v33 }
  0xa6 PF: > { %s6054_s0 = sshll.u32 %s7214_s19, 7  ;;  %s6055_s28 = sshll.u32 %s7210_s18, 7 }
  0xa7   : > { %s790_s10 = sadd.s32 127, %s6054_s0 }
  0xa8   : > { %p6056_p5 = scmp.gt.s32.totalorder %s6055_s28, %s790_s10 }
  0xaa   : > { %794 = sbr.rel (%p6056_p5) target bundleno = 1170 (0x492), region = 85 }
  0xb1   : > { %v6562_v34 = vld [vmem:[%s7449_s30] sm:$0xff]   ;;  %vm1091_vm2 = vcmask 261120   ;;  %v6563_v35 = vld [vmem:[%s7449_s30 + $0x8] sm:$0xff]   ;;  %v6564_v37 = vld [vmem:[%s7449_s30 + $0x10] sm:$0xff]   ;;  %v1501_v18 = vlaneseq  ;;  %v7945_v24 = vstv %s6054_s0 }
  0xb2   : > { %6456 = vmatprep.subr.msk.bf16.mxu0 %vm1091_vm2, %v6562_v34  ;;  %v1189_v36 = vsel %vm1091_vm2, %v6562_v34, 0  ;;  %v1192_v38 = vsel %vm1091_vm2, %v6563_v35, 0  ;;  %v6570_v39 = vld [vmem:[%s7456_s23] sm:$0xff]   ;;  %v1195_v40 = vsel %vm1091_vm2, %v6564_v37, 0  ;;  %v6565_v41 = vld [vmem:[%s7449_s30 + $0x18] sm:$0xff]   ;;  %v6567_v44 = vld [vmem:[%s7449_s30 + $0x28] sm:$0xff]   ;;  %v2401_v25 = vstv %s6055_s28 }
  0xb3   : > { %6249 = vmatpush3.bf16.xpose.msra.mxu0 %v1189_v36  ;;  %6264 = vmatprep.mubr.msk.bf16.mxu0 %vm1091_vm2, %v6570_v39  ;;  %v1198_v42 = vsel %vm1091_vm2, %v6565_v41, 0  ;;  %v6566_v43 = vld [vmem:[%s7449_s30 + $0x20] sm:$0xff]   ;;  %v1204_v46 = vsel %vm1091_vm2, %v6567_v44, 0  ;;  %v6568_v47 = vld [vmem:[%s7449_s30 + $0x30] sm:$0xff]   ;;  %v6569_v49 = vld [vmem:[%s7449_s30 + $0x38] sm:$0xff]   ;;  %v7939_v19 = vshrl.u32 %v1501_v18, 7 }
  0xb4   : > { %6457 = vmatprep.subr.msk.bf16.mxu0 %vm1091_vm2, %v6563_v35  ;;  %v1201_v45 = vsel %vm1091_vm2, %v6566_v43, 0  ;;  %v1207_v48 = vsel %vm1091_vm2, %v6568_v47, 0  ;;  %v1210_v50 = vsel %vm1091_vm2, %v6569_v49, 0  ;;  %v6571_v51 = vld [vmem:[%s7456_s23 + $0x8] sm:$0xff]   ;;  %v6572_v52 = vld [vmem:[%s7456_s23 + $0x10] sm:$0xff]   ;;  %v6573_v53 = vld [vmem:[%s7456_s23 + $0x18] sm:$0xff]  }
  0xb5   : > { %v6574_v54 = vld [vmem:[%s7456_s23 + $0x20] sm:$0xff]   ;;  %v6575_v55 = vld [vmem:[%s7456_s23 + $0x28] sm:$0xff]   ;;  %v6576_v56 = vld [vmem:[%s7456_s23 + $0x30] sm:$0xff]   ;;  %v1504_v20 = vadd.s32 16, %v7939_v19  ;;  %v2400_v22 = vand.u32 127, %v1501_v18  ;;  %v1505_v23 = vadd.s32 24, %v7939_v19 }
  0xb6   : > { %v6577_v57 = vld [vmem:[%s7456_s23 + $0x38] sm:$0xff]   ;;  %v6578_v58 = vld [vmem:[%s7456_s23 + $0x40] sm:$0xff]   ;;  %v6579_v59 = vld [vmem:[%s7456_s23 + $0x48] sm:$0xff]   ;;  %v1570_v26 = vand.u32 127, %v7939_v19  ;;  %v1503_v27 = vadd.s32 8, %v7939_v19  ;;  %v1508_v31 = vadd.s32 48, %v7939_v19 }
  0xb7   : > { %v6580_v60 = vld [vmem:[%s7456_s23 + $0x50] sm:$0xff]   ;;  %v6581_v61 = vld [vmem:[%s7456_s23 + $0x58] sm:$0xff]   ;;  %v6582_v62 = vld [vmem:[%s7456_s23 + $0x60] sm:$0xff]   ;;  %v1584_v21 = vand.u32 127, %v1504_v20  ;;  %v7952_v29 = vadd.s32 %v2401_v25, %v2400_v22  ;;  %v1591_v30 = vand.u32 127, %v1505_v23  ;;  %v1509_v34 = vadd.s32 56, %v7939_v19 }
  0xb8   : > { %v6583_v63 = vld [vmem:[%s7456_s23 + $0x68] sm:$0xff]   ;;  %v6584_v0 = vld [vmem:[%s7456_s23 + $0x70] sm:$0xff]   ;;  %v6585_v1 = vld [vmem:[%s7456_s23 + $0x78] sm:$0xff]   ;;  %v2335_v32 = vadd.s32 %v7945_v24, %v1570_v26  ;;  %v1577_v33 = vand.u32 127, %v1503_v27  ;;  %v1612_v36 = vand.u32 127, %v1508_v31  ;;  %v1520_v25 = vadd.s32 144, %v7939_v19 }
  0xb9   : > { %v6586_v2 = vld [vmem:[%s7456_s23 + $0x80] sm:$0xff]   ;;  %v6587_v3 = vld [vmem:[%s7456_s23 + $0x88] sm:$0xff]   ;;  %v6588_v4 = vld [vmem:[%s7456_s23 + $0x90] sm:$0xff]   ;;  %v2337_v28 = vadd.s32 %v7945_v24, %v1584_v21  ;;  %v2338_v35 = vadd.s32 %v7945_v24, %v1591_v30  ;;  %v7238_v21 = vmov 0  }
  0xba   : > { %v6589_v5 = vld [vmem:[%s7456_s23 + $0x98] sm:$0xff]   ;;  %v6590_v6 = vld [vmem:[%s7456_s23 + $0xa0] sm:$0xff]   ;;  %v6591_v7 = vld [vmem:[%s7456_s23 + $0xa8] sm:$0xff]   ;;  %vm2403_vm4 = vcmp.le.s32.totalorder %v7952_v29, %v2335_v32  ;;  %6560 = vset.pattern.permute.xlu1 %v7238_v21  ;;  %6561 = vset.pattern.permute.xlu0 %v7238_v21  ;;  %v1521_v32 = vadd.s32 152, %v7939_v19 }
  0xbb   : > { %6251 = vmatpush3.bf16.xpose.msra.mxu0 %v1192_v38  ;;  %v6592_v8 = vld [vmem:[%s7456_s23 + $0xb0] sm:$0xff]   ;;  %v6593_v9 = vld [vmem:[%s7456_s23 + $0xb8] sm:$0xff]   ;;  %v6594_v10 = vld [vmem:[%s7456_s23 + $0xc0] sm:$0xff]   ;;  %vm2405_vm3 = vcmp.le.s32.totalorder %v7952_v29, %v2337_v28  ;;  %v1506_v38 = vadd.s32 32, %v7939_v19  ;;  %vm2406_vm5 = vcmp.le.s32.totalorder %v7952_v29, %v2338_v35 }
  0xbc   : > { %6458 = vmatprep.subr.msk.bf16.mxu0 %vm1091_vm2, %v6564_v37  ;;  %v6595_v11 = vld [vmem:[%s7456_s23 + $0xc8] sm:$0xff]   ;;  %v6596_v12 = vld [vmem:[%s7456_s23 + $0xd0] sm:$0xff]   ;;  %v6597_v13 = vld [vmem:[%s7456_s23 + $0xd8] sm:$0xff]   ;;  %v2336_v37 = vadd.s32 %v7945_v24, %v1577_v33 }
  0xbd   : > { %v6598_v14 = vld [vmem:[%s7456_s23 + $0xe0] sm:$0xff]   ;;  %v6599_v15 = vld [vmem:[%s7456_s23 + $0xe8] sm:$0xff]   ;;  %v6600_v16 = vld [vmem:[%s7456_s23 + $0xf0] sm:$0xff]  }
  0xbe   : > { %v6601_v17 = vld [vmem:[%s7456_s23 + $0xf8] sm:$0xff]   ;;  %vm2404_vm6 = vcmp.le.s32.totalorder %v7952_v29, %v2336_v37  ;;  %v1518_v37 = vadd.s32 128, %v7939_v19 }
  0xc3   : > { %6253 = vmatpush3.bf16.xpose.msra.mxu0 %v1195_v40  ;;  %v1619_v40 = vand.u32 127, %v1509_v34  ;;  %v1696_v34 = vand.u32 127, %v1520_v25 }
  0xc4   : > { %6459 = vmatprep.subr.msk.bf16.mxu0 %vm1091_vm2, %v6565_v41  ;;  %v1507_v41 = vadd.s32 40, %v7939_v19 }
  0xcb   : > { %6255 = vmatpush3.bf16.xpose.msra.mxu0 %v1198_v42 }
  0xcc   : > { %6460 = vmatprep.subr.msk.bf16.mxu0 %vm1091_vm2, %v6566_v43 }
  0xd3   : > { %6257 = vmatpush3.bf16.xpose.msra.mxu0 %v1201_v45 }
  0xd4   : > { %6461 = vmatprep.subr.msk.bf16.mxu0 %vm1091_vm2, %v6567_v44 }
  0xdb   : > { %6259 = vmatpush3.bf16.xpose.msra.mxu0 %v1204_v46  ;;  %v2341_v46 = vadd.s32 %v7945_v24, %v1612_v36 }
  0xdc   : > { %6462 = vmatprep.subr.msk.bf16.mxu0 %vm1091_vm2, %v6568_v47  ;;  %v1512_v47 = vadd.s32 80, %v7939_v19 }
  0xdd   : > { %vm2409_vm7 = vcmp.le.s32.totalorder %v7952_v29, %v2341_v46 }
  0xe3   : > { %6261 = vmatpush3.bf16.xpose.msra.mxu0 %v1207_v48 }
  0xe4   : > { %6463 = vmatprep.subr.msk.bf16.mxu0 %vm1091_vm2, %v6569_v49  ;;  %v1598_v49 = vand.u32 127, %v1506_v38 }
  0xeb   : > { %6263 = vmatpush3.bf16.xpose.msra.mxu0 %v1210_v50  ;;  %v2342_v50 = vadd.s32 %v7945_v24, %v1619_v40  ;;  %v1703_v40 = vand.u32 127, %v1521_v32 }
  0xed   : > { %vm2410_vm8 = vcmp.le.s32.totalorder %v7952_v29, %v2342_v50 }
  0xf2   : > { %6265 = vmatmul.mubr.msk.bf16.vlgmr.msra.gmra.mrb[0].mxu0 %vm1091_vm2, %v6571_v51  ;;  %v1605_v51 = vand.u32 127, %v1507_v41  ;;  %v1519_v41 = vadd.s32 136, %v7939_v19 }
  0xf3   : > { %6268 = vmatprep.mubr.msk.bf16.mxu0 %vm1091_vm2, %v6572_v52  ;;  %v1513_v52 = vadd.s32 88, %v7939_v19 }
  0xfa   : > { %6269 = vmatmul.mubr.msk.bf16.gmra.mrb[4].mxu0 %vm1091_vm2, %v6573_v53 }
  0xfb   : > { %6272 = vmatprep.mubr.msk.bf16.mxu0 %vm1091_vm2, %v6574_v54 }
 0x102   : > { %6273 = vmatmul.mubr.msk.bf16.gmra.mrb[8].mxu0 %vm1091_vm2, %v6575_v55  ;;  %v1640_v55 = vand.u32 127, %v1512_v47  ;;  %v2353_v47 = vadd.s32 %v7945_v24, %v1696_v34 }
 0x103   : > { %6276 = vmatprep.mubr.msk.bf16.mxu0 %vm1091_vm2, %v6576_v56  ;;  %v2339_v56 = vadd.s32 %v7945_v24, %v1598_v49 }
 0x105   : > { %vm2407_vm9 = vcmp.le.s32.totalorder %v7952_v29, %v2339_v56  ;;  %v1525_v56 = vadd.s32 184, %v7939_v19 }
 0x10a   : > { %6277 = vmatmul.mubr.msk.bf16.gmra.mrb[12].mxu0 %vm1091_vm2, %v6577_v57  ;;  %v1510_v57 = vadd.s32 64, %v7939_v19 }
 0x10b   : > { %6280 = vmatprep.mubr.msk.bf16.mxu0 %vm1091_vm2, %v6578_v58  ;;  %v1511_v58 = vadd.s32 72, %v7939_v19 }
 0x112   : > { %6281 = vmatmul.mubr.msk.bf16.gmra.mrb[16].mxu0 %vm1091_vm2, %v6579_v59 }
 0x113   : > { %6284 = vmatprep.mubr.msk.bf16.mxu0 %vm1091_vm2, %v6580_v60  ;;  %v2340_v60 = vadd.s32 %v7945_v24, %v1605_v51  ;;  %v1682_v51 = vand.u32 127, %v1518_v37  ;;  %v1532_v37 = vadd.s32 240, %v7939_v19 }
 0x115   : > { %vm2408_vm10 = vcmp.le.s32.totalorder %v7952_v29, %v2340_v60  ;;  %v2351_v60 = vadd.s32 %v7945_v24, %v1682_v51 }
 0x11a   : > { %6285 = vmatmul.mubr.msk.bf16.gmra.mrb[20].mxu0 %vm1091_vm2, %v6581_v61  ;;  %v1647_v61 = vand.u32 127, %v1513_v52  ;;  %v2354_v52 = vadd.s32 %v7945_v24, %v1703_v40 }
 0x11b   : > { %6288 = vmatprep.mubr.msk.bf16.mxu0 %vm1091_vm2, %v6582_v62 }
 0x122   : > { %6289 = vmatmul.mubr.msk.bf16.gmra.mrb[24].mxu0 %vm1091_vm2, %v6583_v63 }
 0x123   : > { %6292 = vmatprep.mubr.msk.bf16.mxu0 %vm1091_vm2, %v6584_v0 }
 0x12a   : > { %6293 = vmatmul.mubr.msk.bf16.gmra.mrb[28].mxu0 %vm1091_vm2, %v6585_v1  ;;  %v2345_v1 = vadd.s32 %v7945_v24, %v1640_v55  ;;  %v1689_v55 = vand.u32 127, %v1519_v41 }
 0x12b   : > { %6296 = vmatprep.mubr.msk.bf16.mxu0 %vm1091_vm2, %v6586_v2  ;;  %v1516_v2 = vadd.s32 112, %v7939_v19 }
 0x12c   : > { %vm2413_vm11 = vcmp.le.s32.totalorder %v7952_v29, %v2345_v1  ;;  %v1731_v1 = vand.u32 127, %v1525_v56 }
 0x132   : > { %6297 = vmatmul.mubr.msk.bf16.gmra.mrb[32].mxu0 %vm1091_vm2, %v6587_v3 }
 0x133   : > { %6300 = vmatprep.mubr.msk.bf16.mxu0 %vm1091_vm2, %v6588_v4 }
 0x13a   : > { %6301 = vmatmul.mubr.msk.bf16.gmra.mrb[36].mxu0 %vm1091_vm2, %v6589_v5  ;;  %v1626_v5 = vand.u32 127, %v1510_v57 }
 0x13b   : > { %6304 = vmatprep.mubr.msk.bf16.mxu0 %vm1091_vm2, %v6590_v6  ;;  %v1633_v6 = vand.u32 127, %v1511_v58 }
 0x142   : > { %6305 = vmatmul.mubr.msk.bf16.gmra.mrb[40].mxu0 %vm1091_vm2, %v6591_v7  ;;  %v2346_v7 = vadd.s32 %v7945_v24, %v1647_v61  ;;  %v1522_v61 = vadd.s32 160, %v7939_v19 }
 0x143   : > { %6308 = vmatprep.mubr.msk.bf16.mxu0 %vm1091_vm2, %v6592_v8  ;;  %v1517_v8 = vadd.s32 120, %v7939_v19 }
 0x144   : > { %vm2414_vm12 = vcmp.le.s32.totalorder %v7952_v29, %v2346_v7 }
 0x14a   : > { %6309 = vmatmul.mubr.msk.bf16.gmra.mrb[44].mxu0 %vm1091_vm2, %v6593_v9 }
 0x14b   : > { %6312 = vmatprep.mubr.msk.bf16.mxu0 %vm1091_vm2, %v6594_v10  ;;  %v1668_v10 = vand.u32 127, %v1516_v2  ;;  %v1523_v2 = vadd.s32 168, %v7939_v19 }
 0x14d   : > { %v2349_v23 = vadd.s32 %v7945_v24, %v1668_v10 }
 0x14f   : > { %vm2417_vm15 = vcmp.le.s32.totalorder %v7952_v29, %v2349_v23  ;;  %v1526_v23 = vadd.s32 192, %v7939_v19 }
 0x151   : > { %v1738_v40 = vand.u32 127, %v1526_v23 }
 0x152   : > { %6313 = vmatmul.mubr.msk.bf16.gmra.mrb[48].mxu0 %vm1091_vm2, %v6595_v11 }
 0x153   : > { %6316 = vmatprep.mubr.msk.bf16.mxu0 %vm1091_vm2, %v6596_v12  ;;  %v2343_v12 = vadd.s32 %v7945_v24, %v1626_v5  ;;  %v2359_v51 = vadd.s32 %v7945_v24, %v1738_v40 }
 0x155   : > { %vm2411_vm13 = vcmp.le.s32.totalorder %v7952_v29, %v2343_v12 }
 0x15a   : > { %6317 = vmatmul.mubr.msk.bf16.gmra.mrb[52].mxu0 %vm1091_vm2, %v6597_v13  ;;  %v2344_v13 = vadd.s32 %v7945_v24, %v1633_v6 }
 0x15b   : > { %6320 = vmatprep.mubr.msk.bf16.mxu0 %vm1091_vm2, %v6598_v14  ;;  %v1514_v14 = vadd.s32 96, %v7939_v19 }
 0x15c   : > { %vm2412_vm14 = vcmp.le.s32.totalorder %v7952_v29, %v2344_v13  ;;  %v1710_v13 = vand.u32 127, %v1522_v61 }
 0x15d   : > { %v1654_v28 = vand.u32 127, %v1514_v14  ;;  %v2358_v14 = vadd.s32 %v7945_v24, %v1731_v1 }
 0x15f   : > { %v2347_v36 = vadd.s32 %v7945_v24, %v1654_v28 }
 0x161   : > { %vm2415_vm1 = vcmp.le.s32.totalorder %v7952_v29, %v2347_v36 }
 0x162   : > { %6321 = vmatmul.mubr.msk.bf16.gmra.mrb[56].mxu0 %vm1091_vm2, %v6599_v15 }
 0x163   : > { %6324 = vmatprep.mubr.msk.bf16.mxu0 %vm1091_vm2, %v6600_v16  ;;  %v1675_v16 = vand.u32 127, %v1517_v8  ;;  %v1528_v8 = vadd.s32 208, %v7939_v19 }
 0x165   : > { %v2350_v30 = vadd.s32 %v7945_v24, %v1675_v16  ;;  %v1529_v16 = vadd.s32 216, %v7939_v19 }
 0x167   : > { %vm2418_vm0 = vcmp.le.s32.totalorder %v7952_v29, %v2350_v30  ;;  %v1759_v28 = vand.u32 127, %v1529_v16  ;;  %v1527_v30 = vadd.s32 200, %v7939_v19 }
 0x169   : > { %v2362_v41 = vadd.s32 %v7945_v24, %v1759_v28  ;;  %v1535_v28 = vadd.s32 264, %v7939_v19 }
 0x16a   : > { %6325 = vmatmul.mubr.msk.bf16.gmra.mrb[60].mxu0 %vm1091_vm2, %v6601_v17  ;;  %v1515_v17 = vadd.s32 104, %v7939_v19 }
 0x16c   : > { %v1661_v31 = vand.u32 127, %v1515_v17 }
 0x1c5   : > { %v6266_v39 = vpop.f32.mrb[0].mxu0 }
 0x1c6   : > { %v1246_v42 = vpop.f32.mrb[1].mxu0  ;;  %v7963_v43 = vsel %vm2405_vm3, %v6266_v39, -3.4028235e+38  ;;  %v2348_v39 = vadd.s32 %v7945_v24, %v1661_v31 }
 0x1c7   : > { %2599 = vmax.xlane.f32.xlu1 %v7963_v43  ;;  %v6267_v44 = vpop.f32.mrb[2].mxu0  ;;  %v7966_v45 = vsel %vm2403_vm4, %v1246_v42, -3.4028235e+38  ;;  %vm2421_vm4 = vcmp.le.s32.totalorder %v7952_v29, %v2353_v47 }
 0x1c8   : > { %2595 = vmax.xlane.f32.xlu0 %v7966_v45  ;;  %v1249_v48 = vpop.f32.mrb[3].mxu0  ;;  %v7975_v53 = vsel %vm2406_vm5, %v6267_v44, -3.4028235e+38  ;;  %vm2416_vm3 = vcmp.le.s32.totalorder %v7952_v29, %v2348_v39  ;;  %vm2422_vm5 = vcmp.le.s32.totalorder %v7952_v29, %v2354_v52  ;;  %v1530_v52 = vadd.s32 224, %v7939_v19 }
 0x1c9   : > { %v7978_v54 = vsel %vm2404_vm6, %v1249_v48, -3.4028235e+38  ;;  %v1524_v48 = vadd.s32 176, %v7939_v19  ;;  %vm2419_vm6 = vcmp.le.s32.totalorder %v7952_v29, %v2351_v60  ;;  %v1531_v60 = vadd.s32 232, %v7939_v19 }
 0x1cb   : > { %2601 = vmax.xlane.f32.xlu1 %v7975_v53  ;;  %v1724_v58 = vand.u32 127, %v1524_v48  ;;  %v1780_v48 = vand.u32 127, %v1532_v37  ;;  %v1540_v37 = vadd.s32 304, %v7939_v19 }
 0x1cc   : > { %2597 = vmax.xlane.f32.xlu0 %v7978_v54 }
 0x1cd   : > { %v6270_v59 = vpop.f32.mrb[4].mxu0  ;;  %v2357_v7 = vadd.s32 %v7945_v24, %v1724_v58  ;;  %v2365_v1 = vadd.s32 %v7945_v24, %v1780_v48  ;;  %v1541_v48 = vadd.s32 312, %v7939_v19 }
 0x1ce   : > { %v1262_v62 = vpop.f32.mrb[5].mxu0  ;;  %v7987_v63 = vsel %vm2409_vm7, %v6270_v59, -3.4028235e+38 }
 0x1cf   : > { %v6271_v0 = vpop.f32.mrb[6].mxu0  ;;  %v7999_v9 = vsel %vm2407_vm9, %v1262_v62, -3.4028235e+38  ;;  %vm2426_vm9 = vcmp.le.s32.totalorder %v7952_v29, %v2358_v14 }
 0x1d0   : > { %2607 = vmax.xlane.f32.xlu0 %v7987_v63  ;;  %v1265_v3 = vpop.f32.mrb[7].mxu0  ;;  %v7992_v4 = vsel %vm2410_vm8, %v6271_v0, -3.4028235e+38  ;;  %v2352_v0 = vadd.s32 %v7945_v24, %v1689_v55  ;;  %vm2425_vm8 = vcmp.le.s32.totalorder %v7952_v29, %v2357_v7  ;;  %v1766_v7 = vand.u32 127, %v1530_v52 }
 0x1d1   : > { %2609 = vmax.xlane.f32.xlu1 %v7992_v4  ;;  %v8003_v11 = vsel %vm2408_vm10, %v1265_v3, -3.4028235e+38  ;;  %v1836_v52 = vand.u32 127, %v1540_v37 }
 0x1d2   : > { %vm2420_vm7 = vcmp.le.s32.totalorder %v7952_v29, %v2352_v0 }
 0x1d4   : > { %2603 = vmax.xlane.f32.xlu0 %v7999_v9 }
 0x1d5   : > { %2605 = vmax.xlane.f32.xlu1 %v8003_v11  ;;  %v6274_v15 = vpop.f32.mrb[8].mxu0 }
 0x1d6   : > { %v1278_v18 = vpop.f32.mrb[9].mxu0  ;;  %v8011_v20 = vsel %vm2413_vm11, %v6274_v15, -3.4028235e+38  ;;  %v1717_v15 = vand.u32 127, %v1523_v2  ;;  %v1536_v2 = vadd.s32 272, %v7939_v19 }
 0x1d7   : > { %v6275_v22 = vpop.f32.mrb[10].mxu0  ;;  %v8023_v33 = vsel %vm2411_vm13, %v1278_v18, -3.4028235e+38  ;;  %v1752_v18 = vand.u32 127, %v1528_v8  ;;  %vm2430_vm13 = vcmp.le.s32.totalorder %v7952_v29, %v2362_v41 }
 0x1d8   : > { %2615 = vmax.xlane.f32.xlu0 %v8011_v20  ;;  %v1281_v26 = vpop.f32.mrb[11].mxu0  ;;  %v8016_v27 = vsel %vm2414_vm12, %v6275_v22, -3.4028235e+38  ;;  %v2355_v22 = vadd.s32 %v7945_v24, %v1710_v13  ;;  %v1537_v13 = vadd.s32 280, %v7939_v19 }
 0x1d9   : > { %2617 = vmax.xlane.f32.xlu1 %v8016_v27  ;;  %v8027_v35 = vsel %vm2412_vm14, %v1281_v26, -3.4028235e+38  ;;  %v2356_v26 = vadd.s32 %v7945_v24, %v1717_v15  ;;  %v2361_v36 = vadd.s32 %v7945_v24, %v1752_v18  ;;  %vm2427_vm14 = vcmp.le.s32.totalorder %v7952_v29, %v2359_v51 }
 0x1da   : > { %vm2423_vm10 = vcmp.le.s32.totalorder %v7952_v29, %v2355_v22  ;;  %v1808_v15 = vand.u32 127, %v1536_v2  ;;  %v2363_v18 = vadd.s32 %v7945_v24, %v1766_v7  ;;  %v1534_v22 = vadd.s32 256, %v7939_v19 }
 0x1db   : > { %vm2424_vm11 = vcmp.le.s32.totalorder %v7952_v29, %v2356_v26  ;;  %vm2429_vm12 = vcmp.le.s32.totalorder %v7952_v29, %v2361_v36  ;;  %v1815_v26 = vand.u32 127, %v1537_v13 }
 0x1dc   : > { %2611 = vmax.xlane.f32.xlu0 %v8023_v33  ;;  %v2369_v36 = vadd.s32 %v7945_v24, %v1808_v15  ;;  %v1794_v41 = vand.u32 127, %v1534_v22 }
 0x1dd   : > { %2613 = vmax.xlane.f32.xlu1 %v8027_v35  ;;  %v6278_v38 = vpop.f32.mrb[12].mxu0 }
 0x1de   : > { %v1294_v42 = vpop.f32.mrb[13].mxu0  ;;  %v8035_v44 = vsel %vm2417_vm15, %v6278_v38, -3.4028235e+38 }
 0x1df   : > { %v6279_v46 = vpop.f32.mrb[14].mxu0  ;;  %v8047_v57 = vsel %vm2415_vm1, %v1294_v42, -3.4028235e+38  ;;  %v1745_v42 = vand.u32 127, %v1527_v30 }
 0x1e0   : > { %2623 = vmax.xlane.f32.xlu0 %v8035_v44  ;;  %v1297_v49 = vpop.f32.mrb[15].mxu0  ;;  %v8040_v50 = vsel %vm2418_vm0, %v6279_v46, -3.4028235e+38  ;;  %10257 = vst [vmem:[#allocation14_spill] sm:$0xff] %v8047_v57  ;;  %v1533_v46 = vadd.s32 248, %v7939_v19  ;;  %vm2433_vm0 = vcmp.le.s32.totalorder %v7952_v29, %v2365_v1  ;;  %v1539_v1 = vadd.s32 296, %v7939_v19 }
 0x1e1   : > { %2625 = vmax.xlane.f32.xlu1 %v8040_v50  ;;  %v8051_v59 = vsel %vm2416_vm3, %v1297_v49, -3.4028235e+38  ;;  %v2360_v56 = vadd.s32 %v7945_v24, %v1745_v42  ;;  %vm2431_vm3 = vcmp.le.s32.totalorder %v7952_v29, %v2363_v18  ;;  %v2370_v42 = vadd.s32 %v7945_v24, %v1815_v26 }
 0x1e2   : > { %v1787_v58 = vand.u32 127, %v1533_v46  ;;  %v1801_v46 = vand.u32 127, %v1535_v28 }
 0x1e3   : > { %vm2428_vm15 = vcmp.le.s32.totalorder %v7952_v29, %v2360_v56  ;;  %v2367_v56 = vadd.s32 %v7945_v24, %v1794_v41 }
 0x1e4   : > { %2619 = vmax.xlane.f32.xlu0 %v8047_v57  ;;  %v2366_v8 = vadd.s32 %v7945_v24, %v1787_v58  ;;  %v1538_v58 = vadd.s32 288, %v7939_v19 }
 0x1e5   : > { %2621 = vmax.xlane.f32.xlu1 %v8051_v59  ;;  %v6282_v62 = vpop.f32.mrb[16].mxu0 }
 0x1e6   : > { %v1310_v3 = vpop.f32.mrb[17].mxu0  ;;  %v8059_v5 = vsel %vm2421_vm4, %v6282_v62, -3.4028235e+38  ;;  %vm2434_vm1 = vcmp.le.s32.totalorder %v7952_v29, %v2366_v8  ;;  %v2373_v8 = vadd.s32 %v7945_v24, %v1836_v52  ;;  %v1822_v18 = vand.u32 127, %v1538_v58 }
 0x1e7   : > { %10258 = vst [vmem:[#allocation15_spill] sm:$0xff] %v8059_v5  ;;  %v6283_v6 = vpop.f32.mrb[18].mxu0  ;;  %v8071_v17 = vsel %vm2419_vm6, %v1310_v3, -3.4028235e+38  ;;  %vm2438_vm6 = vcmp.le.s32.totalorder %v7952_v29, %v2370_v42  ;;  %v1543_v42 = vadd.s32 328, %v7939_v19  ;;  %v1548_v58 = vadd.s32 368, %v7939_v19 }
 0x1e8   : > { %2631 = vmax.xlane.f32.xlu0 %v8059_v5  ;;  %v1313_v10 = vpop.f32.mrb[19].mxu0  ;;  %v8064_v12 = vsel %vm2422_vm5, %v6283_v6, -3.4028235e+38  ;;  %10260 = vst [vmem:[#allocation17_spill] sm:$0xff] %v8071_v17  ;;  %vm2437_vm5 = vcmp.le.s32.totalorder %v7952_v29, %v2369_v36  ;;  %v1542_v36 = vadd.s32 320, %v7939_v19 }
 0x1e9   : > { %10259 = vst [vmem:[#allocation16_spill] sm:$0xff] %v8064_v12  ;;  %2633 = vmax.xlane.f32.xlu1 %v8064_v12  ;;  %v8075_v21 = vsel %vm2420_vm7, %v1313_v10, -3.4028235e+38  ;;  %v1773_v10 = vand.u32 127, %v1531_v60  ;;  %vm2435_vm7 = vcmp.le.s32.totalorder %v7952_v29, %v2367_v56 }
 0x1ea   : > { %10261 = vst [vmem:[#allocation18_spill] sm:$0xff] %v8075_v21 }
 0x1ec   : > { %2627 = vmax.xlane.f32.xlu0 %v8071_v17  ;;  %v8647_v17 = vld [vmem:[#allocation2 + $0x130] sm:$0xff] }
 0x1ed   : > { %2629 = vmax.xlane.f32.xlu1 %v8075_v21  ;;  %v6286_v25 = vpop.f32.mrb[20].mxu0  ;;  %10320 = vst [vmem:[#allocation77_spill] sm:$0xff] %v8647_v17 }
 0x1ee   : > { %v1326_v31 = vpop.f32.mrb[21].mxu0  ;;  %v8083_v32 = vsel %vm2425_vm8, %v6286_v25, -3.4028235e+38  ;;  %v2364_v25 = vadd.s32 %v7945_v24, %v1773_v10  ;;  %v1544_v10 = vadd.s32 336, %v7939_v19 }
 0x1ef   : > { %10262 = vst [vmem:[#allocation19_spill] sm:$0xff] %v8083_v32  ;;  %v6287_v34 = vpop.f32.mrb[22].mxu0  ;;  %v8095_v47 = vsel %vm2423_vm10, %v1326_v31, -3.4028235e+38 }
 0x1f0   : > { %2639 = vmax.xlane.f32.xlu0 %v8083_v32  ;;  %v1329_v38 = vpop.f32.mrb[23].mxu0  ;;  %v8088_v39 = vsel %vm2426_vm9, %v6287_v34, -3.4028235e+38  ;;  %10264 = vst [vmem:[#allocation21_spill] sm:$0xff] %v8095_v47  ;;  %vm2432_vm4 = vcmp.le.s32.totalorder %v7952_v29, %v2364_v25  ;;  %v1545_v25 = vadd.s32 344, %v7939_v19  ;;  %vm2441_vm9 = vcmp.le.s32.totalorder %v7952_v29, %v2373_v8 }
 0x1f1   : > { %10263 = vst [vmem:[#allocation20_spill] sm:$0xff] %v8088_v39  ;;  %2641 = vmax.xlane.f32.xlu1 %v8088_v39  ;;  %v8099_v49 = vsel %vm2424_vm11, %v1329_v38, -3.4028235e+38  ;;  %v1864_v28 = vand.u32 127, %v1544_v10  ;;  %v1892_v10 = vand.u32 127, %v1548_v58 }
 0x1f2   : > { %10265 = vst [vmem:[#allocation22_spill] sm:$0xff] %v8099_v49  ;;  %v1871_v41 = vand.u32 127, %v1545_v25 }
 0x1f3   : > { %v2377_v56 = vadd.s32 %v7945_v24, %v1864_v28 }
 0x1f4   : > { %2635 = vmax.xlane.f32.xlu0 %v8095_v47 }
 0x1f5   : > { %2637 = vmax.xlane.f32.xlu1 %v8099_v49  ;;  %v6290_v55 = vpop.f32.mrb[24].mxu0 }
 0x1f6   : > { %v1342_v61 = vpop.f32.mrb[25].mxu0  ;;  %v8107_v62 = vsel %vm2429_vm12, %v6290_v55, -3.4028235e+38 }
 0x1f7   : > { %10266 = vst [vmem:[#allocation23_spill] sm:$0xff] %v8107_v62  ;;  %v6291_v0 = vpop.f32.mrb[26].mxu0  ;;  %v8119_v14 = vsel %vm2427_vm14, %v1342_v61, -3.4028235e+38  ;;  %v2368_v61 = vadd.s32 %v7945_v24, %v1801_v46 }
 0x1f8   : > { %2647 = vmax.xlane.f32.xlu0 %v8107_v62  ;;  %v1345_v3 = vpop.f32.mrb[27].mxu0  ;;  %v8112_v6 = vsel %vm2430_vm13, %v6291_v0, -3.4028235e+38  ;;  %10268 = vst [vmem:[#allocation25_spill] sm:$0xff] %v8119_v14  ;;  %v1843_v0 = vand.u32 127, %v1541_v48  ;;  %vm2445_vm13 = vcmp.le.s32.totalorder %v7952_v29, %v2377_v56 }
 0x1f9   : > { %10267 = vst [vmem:[#allocation24_spill] sm:$0xff] %v8112_v6  ;;  %2649 = vmax.xlane.f32.xlu1 %v8112_v6  ;;  %v8123_v16 = vsel %vm2428_vm15, %v1345_v3, -3.4028235e+38  ;;  %vm2436_vm8 = vcmp.le.s32.totalorder %v7952_v29, %v2368_v61 }
 0x1fa   : > { %10269 = vst [vmem:[#allocation26_spill] sm:$0xff] %v8123_v16  ;;  %v2374_v22 = vadd.s32 %v7945_v24, %v1843_v0  ;;  %v1850_v0 = vand.u32 127, %v1542_v36 }
 0x1fc   : > { %2643 = vmax.xlane.f32.xlu0 %v8119_v14  ;;  %vm2442_vm10 = vcmp.le.s32.totalorder %v7952_v29, %v2374_v22  ;;  %v1546_v22 = vadd.s32 352, %v7939_v19 }
 0x1fd   : > { %2645 = vmax.xlane.f32.xlu1 %v8123_v16  ;;  %v6294_v23 = vpop.f32.mrb[28].mxu0 }
 0x1fe   : > { %v1358_v30 = vpop.f32.mrb[29].mxu0  ;;  %v8131_v31 = vsel %vm2433_vm0, %v6294_v23, -3.4028235e+38  ;;  %v1829_v23 = vand.u32 127, %v1539_v1  ;;  %v2378_v1 = vadd.s32 %v7945_v24, %v1871_v41  ;;  %v2381_v41 = vadd.s32 %v7945_v24, %v1892_v10 }
 0x1ff   : > { %10270 = vst [vmem:[#allocation27_spill] sm:$0xff] %v8131_v31  ;;  %v6295_v34 = vpop.f32.mrb[30].mxu0  ;;  %v8143_v51 = vsel %vm2431_vm3, %v1358_v30, -3.4028235e+38  ;;  %v1878_v56 = vand.u32 127, %v1546_v22 }
 0x200   : > { %2655 = vmax.xlane.f32.xlu0 %v8131_v31  ;;  %v1361_v38 = vpop.f32.mrb[31].mxu0  ;;  %v8136_v40 = vsel %vm2434_vm1, %v6295_v34, -3.4028235e+38  ;;  %10272 = vst [vmem:[#allocation29_spill] sm:$0xff] %v8143_v51  ;;  %v2371_v34 = vadd.s32 %v7945_v24, %v1822_v18  ;;  %v2375_v18 = vadd.s32 %v7945_v24, %v1850_v0  ;;  %vm2446_vm14 = vcmp.le.s32.totalorder %v7952_v29, %v2378_v1 }
 0x201   : > { %10271 = vst [vmem:[#allocation28_spill] sm:$0xff] %v8136_v40  ;;  %2657 = vmax.xlane.f32.xlu1 %v8136_v40  ;;  %v8147_v55 = vsel %vm2432_vm4, %v1361_v38, -3.4028235e+38  ;;  %v2372_v38 = vadd.s32 %v7945_v24, %v1829_v23  ;;  %v1553_v0 = vadd.s32 408, %v7939_v19  ;;  %vm2449_vm1 = vcmp.le.s32.totalorder %v7952_v29, %v2381_v41 }
 0x202   : > { %10273 = vst [vmem:[#allocation30_spill] sm:$0xff] %v8147_v55  ;;  %vm2439_vm11 = vcmp.le.s32.totalorder %v7952_v29, %v2371_v34  ;;  %v1547_v34 = vadd.s32 360, %v7939_v19  ;;  %vm2443_vm15 = vcmp.le.s32.totalorder %v7952_v29, %v2375_v18  ;;  %v2379_v10 = vadd.s32 %v7945_v24, %v1878_v56 }
 0x203   : > { %vm2440_vm12 = vcmp.le.s32.totalorder %v7952_v29, %v2372_v38  ;;  %v1550_v18 = vadd.s32 384, %v7939_v19 }
 0x204   : > { %2651 = vmax.xlane.f32.xlu0 %v8143_v51  ;;  %vm2447_vm4 = vcmp.le.s32.totalorder %v7952_v29, %v2379_v10 }
 0x205   : > { %2653 = vmax.xlane.f32.xlu1 %v8147_v55  ;;  %v6298_v60 = vpop.f32.mrb[32].mxu0 }
 0x206   : > { %v1374_v2 = vpop.f32.mrb[33].mxu0  ;;  %v8155_v3 = vsel %vm2437_vm5, %v6298_v60, -3.4028235e+38 }
 0x207   : > { %10274 = vst [vmem:[#allocation31_spill] sm:$0xff] %v8155_v3  ;;  %v6299_v7 = vpop.f32.mrb[34].mxu0  ;;  %v8167_v26 = vsel %vm2435_vm7, %v1374_v2, -3.4028235e+38  ;;  %v1857_v2 = vand.u32 127, %v1543_v42  ;;  %v1552_v42 = vadd.s32 400, %v7939_v19 }
 0x208   : > { %2663 = vmax.xlane.f32.xlu0 %v8155_v3  ;;  %v1377_v13 = vpop.f32.mrb[35].mxu0  ;;  %v8160_v15 = vsel %vm2438_vm6, %v6299_v7, -3.4028235e+38  ;;  %10276 = vst [vmem:[#allocation33_spill] sm:$0xff] %v8167_v26  ;;  %v1549_v7 = vadd.s32 376, %v7939_v19 }
 0x209   : > { %10275 = vst [vmem:[#allocation32_spill] sm:$0xff] %v8160_v15  ;;  %2665 = vmax.xlane.f32.xlu1 %v8160_v15  ;;  %v8171_v30 = vsel %vm2436_vm8, %v1377_v13, -3.4028235e+38  ;;  %v2376_v25 = vadd.s32 %v7945_v24, %v1857_v2  ;;  %v1920_v2 = vand.u32 127, %v1552_v42  ;;  %v1556_v42 = vadd.s32 432, %v7939_v19 }
 0x20a   : > { %10277 = vst [vmem:[#allocation34_spill] sm:$0xff] %v8171_v30  ;;  %v1899_v28 = vand.u32 127, %v1549_v7 }
 0x20b   : > { %vm2444_vm0 = vcmp.le.s32.totalorder %v7952_v29, %v2376_v25  ;;  %v1927_v25 = vand.u32 127, %v1553_v0  ;;  %v2385_v41 = vadd.s32 %v7945_v24, %v1920_v2 }
 0x20c   : > { %2659 = vmax.xlane.f32.xlu0 %v8167_v26  ;;  %v2382_v58 = vadd.s32 %v7945_v24, %v1899_v28  ;;  %v1551_v28 = vadd.s32 392, %v7939_v19 }
 0x20d   : > { %2661 = vmax.xlane.f32.xlu1 %v8171_v30  ;;  %v6302_v37 = vpop.f32.mrb[36].mxu0  ;;  %vm2453_vm6 = vcmp.le.s32.totalorder %v7952_v29, %v2385_v41 }
 0x20e   : > { %v1390_v46 = vpop.f32.mrb[37].mxu0  ;;  %v8179_v48 = vsel %vm2441_vm9, %v6302_v37, -3.4028235e+38  ;;  %vm2450_vm3 = vcmp.le.s32.totalorder %v7952_v29, %v2382_v58  ;;  %v1906_v58 = vand.u32 127, %v1550_v18  ;;  %v1913_v0 = vand.u32 127, %v1551_v28 }
 0x20f   : > { %10278 = vst [vmem:[#allocation35_spill] sm:$0xff] %v8179_v48  ;;  %v6303_v52 = vpop.f32.mrb[38].mxu0  ;;  %v8191_v8 = vsel %vm2439_vm11, %v1390_v46, -3.4028235e+38  ;;  %v1554_v18 = vadd.s32 416, %v7939_v19 }
 0x210   : > { %2671 = vmax.xlane.f32.xlu0 %v8179_v48  ;;  %v1393_v60 = vpop.f32.mrb[39].mxu0  ;;  %v8184_v61 = vsel %vm2442_vm10, %v6303_v52, -3.4028235e+38  ;;  %10280 = vst [vmem:[#allocation37_spill] sm:$0xff] %v8191_v8  ;;  %v2383_v10 = vadd.s32 %v7945_v24, %v1906_v58  ;;  %v1560_v58 = vadd.s32 464, %v7939_v19 }
 0x211   : > { %10279 = vst [vmem:[#allocation36_spill] sm:$0xff] %v8184_v61  ;;  %2673 = vmax.xlane.f32.xlu1 %v8184_v61  ;;  %v8195_v13 = vsel %vm2440_vm12, %v1393_v60, -3.4028235e+38  ;;  %v1885_v60 = vand.u32 127, %v1547_v34 }
 0x212   : > { %10281 = vst [vmem:[#allocation38_spill] sm:$0xff] %v8195_v13  ;;  %vm2451_vm8 = vcmp.le.s32.totalorder %v7952_v29, %v2383_v10 }
 0x214   : > { %2667 = vmax.xlane.f32.xlu0 %v8191_v8  ;;  %v6609_v8 = vld [vmem:[%s7454_s27 + $0x38] sm:$0xff]  }
 0x215   : > { %2669 = vmax.xlane.f32.xlu1 %v8195_v13  ;;  %v6306_v23 = vpop.f32.mrb[40].mxu0 }
 0x216   : > { %v1406_v36 = vpop.f32.mrb[41].mxu0  ;;  %v8203_v37 = vsel %vm2445_vm13, %v6306_v23, -3.4028235e+38  ;;  %v2380_v23 = vadd.s32 %v7945_v24, %v1885_v60  ;;  %v2386_v60 = vadd.s32 %v7945_v24, %v1927_v25  ;;  %v2384_v25 = vadd.s32 %v7945_v24, %v1913_v0 }
 0x217   : > { %10282 = vst [vmem:[#allocation39_spill] sm:$0xff] %v8203_v37  ;;  %v6307_v38 = vpop.f32.mrb[42].mxu0  ;;  %v8215_v1 = vsel %vm2443_vm15, %v1406_v36, -3.4028235e+38 }
 0x218   : > { %2679 = vmax.xlane.f32.xlu0 %v8203_v37  ;;  %v1409_v46 = vpop.f32.mrb[43].mxu0  ;;  %v8208_v52 = vsel %vm2446_vm14, %v6307_v38, -3.4028235e+38  ;;  %10284 = vst [vmem:[#allocation41_spill] sm:$0xff] %v8215_v1  ;;  %vm2448_vm5 = vcmp.le.s32.totalorder %v7952_v29, %v2380_v23  ;;  %vm2454_vm7 = vcmp.le.s32.totalorder %v7952_v29, %v2386_v60  ;;  %v1934_v60 = vand.u32 127, %v1554_v18 }
 0x219   : > { %10283 = vst [vmem:[#allocation40_spill] sm:$0xff] %v8208_v52  ;;  %2681 = vmax.xlane.f32.xlu1 %v8208_v52  ;;  %v8219_v7 = vsel %vm2444_vm0, %v1409_v46, -3.4028235e+38  ;;  %vm2452_vm9 = vcmp.le.s32.totalorder %v7952_v29, %v2384_v25  ;;  %v1558_v18 = vadd.s32 448, %v7939_v19 }
 0x21a   : > { %10285 = vst [vmem:[#allocation42_spill] sm:$0xff] %v8219_v7  ;;  %v2387_v10 = vadd.s32 %v7945_v24, %v1934_v60  ;;  %v1564_v60 = vadd.s32 496, %v7939_v19 }
 0x21c   : > { %2675 = vmax.xlane.f32.xlu0 %v8215_v1  ;;  %vm2455_vm12 = vcmp.le.s32.totalorder %v7952_v29, %v2387_v10 }
 0x21d   : > { %2677 = vmax.xlane.f32.xlu1 %v8219_v7  ;;  %v6310_v22 = vpop.f32.mrb[44].mxu0  ;;  %v8401_v7 = vld [vmem:[#allocation2 + $0x70] sm:$0xff] }
 0x21e   : > { %v1422_v34 = vpop.f32.mrb[45].mxu0  ;;  %v8227_v36 = vsel %vm2449_vm1, %v6310_v22, -3.4028235e+38  ;;  %v1557_v22 = vadd.s32 440, %v7939_v19 }
 0x21f   : > { %10286 = vst [vmem:[#allocation43_spill] sm:$0xff] %v8227_v36  ;;  %v6311_v38 = vpop.f32.mrb[46].mxu0  ;;  %v8239_v2 = vsel %vm2447_vm4, %v1422_v34, -3.4028235e+38  ;;  %v1555_v34 = vadd.s32 424, %v7939_v19 }
 0x220   : > { %2687 = vmax.xlane.f32.xlu0 %v8227_v36  ;;  %v1425_v46 = vpop.f32.mrb[47].mxu0  ;;  %v8232_v56 = vsel %vm2450_vm3, %v6311_v38, -3.4028235e+38  ;;  %10288 = vst [vmem:[#allocation45_spill] sm:$0xff] %v8239_v2  ;;  %v1948_v36 = vand.u32 127, %v1556_v42  ;;  %v1955_v28 = vand.u32 127, %v1557_v22 }
 0x221   : > { %10287 = vst [vmem:[#allocation44_spill] sm:$0xff] %v8232_v56  ;;  %2689 = vmax.xlane.f32.xlu1 %v8232_v56  ;;  %v8243_v38 = vsel %vm2448_vm5, %v1425_v46, -3.4028235e+38  ;;  %v1941_v22 = vand.u32 127, %v1555_v34 }
 0x222   : > { %10289 = vst [vmem:[#allocation46_spill] sm:$0xff] %v8243_v38  ;;  %v2389_v46 = vadd.s32 %v7945_v24, %v1948_v36  ;;  %v2390_v0 = vadd.s32 %v7945_v24, %v1955_v28 }
 0x223   : > { %v2388_v28 = vadd.s32 %v7945_v24, %v1941_v22 }
 0x224   : > { %2683 = vmax.xlane.f32.xlu0 %v8239_v2  ;;  %vm2457_vm10 = vcmp.le.s32.totalorder %v7952_v29, %v2389_v46  ;;  %vm2458_vm11 = vcmp.le.s32.totalorder %v7952_v29, %v2390_v0  ;;  %v1962_v0 = vand.u32 127, %v1558_v18  ;;  %v1562_v18 = vadd.s32 480, %v7939_v19 }
 0x225   : > { %2685 = vmax.xlane.f32.xlu1 %v8243_v38  ;;  %v6314_v23 = vpop.f32.mrb[48].mxu0  ;;  %vm2456_vm13 = vcmp.le.s32.totalorder %v7952_v29, %v2388_v28 }
 0x226   : > { %v1438_v41 = vpop.f32.mrb[49].mxu0  ;;  %v8251_v42 = vsel %vm2453_vm6, %v6314_v23, -3.4028235e+38  ;;  %v1561_v23 = vadd.s32 472, %v7939_v19  ;;  %v2391_v10 = vadd.s32 %v7945_v24, %v1962_v0 }
 0x227   : > { %10290 = vst [vmem:[#allocation47_spill] sm:$0xff] %v8251_v42  ;;  %v6315_v2 = vpop.f32.mrb[50].mxu0  ;;  %v8263_v36 = vsel %vm2451_vm8, %v1438_v41, -3.4028235e+38  ;;  %v1559_v41 = vadd.s32 456, %v7939_v19 }
 0x228   : > { %2695 = vmax.xlane.f32.xlu0 %v8251_v42  ;;  %v1441_v56 = vpop.f32.mrb[51].mxu0  ;;  %v8256_v38 = vsel %vm2454_vm7, %v6315_v2, -3.4028235e+38  ;;  %10292 = vst [vmem:[#allocation49_spill] sm:$0xff] %v8263_v36  ;;  %v1976_v42 = vand.u32 127, %v1560_v58  ;;  %v1983_v34 = vand.u32 127, %v1561_v23  ;;  %vm2459_vm0 = vcmp.le.s32.totalorder %v7952_v29, %v2391_v10 }
 0x229   : > { %10291 = vst [vmem:[#allocation48_spill] sm:$0xff] %v8256_v38  ;;  %2697 = vmax.xlane.f32.xlu1 %v8256_v38  ;;  %v8267_v2 = vsel %vm2452_vm9, %v1441_v56, -3.4028235e+38  ;;  %v1969_v23 = vand.u32 127, %v1559_v41  ;;  %vm3811_vm7 = vcmask 7168  }
 0x22a   : > { %10293 = vst [vmem:[#allocation50_spill] sm:$0xff] %v8267_v2  ;;  %v2393_v56 = vadd.s32 %v7945_v24, %v1976_v42  ;;  %v2394_v22 = vadd.s32 %v7945_v24, %v1983_v34 }
 0x22b   : > { %v2392_v34 = vadd.s32 %v7945_v24, %v1969_v23 }
 0x22c   : > { %2691 = vmax.xlane.f32.xlu0 %v8263_v36  ;;  %vm2461_vm14 = vcmp.le.s32.totalorder %v7952_v29, %v2393_v56  ;;  %vm2462_vm15 = vcmp.le.s32.totalorder %v7952_v29, %v2394_v22 }
 0x22d   : > { %2693 = vmax.xlane.f32.xlu1 %v8267_v2  ;;  %v6318_v25 = vpop.f32.mrb[52].mxu0  ;;  %vm2460_vm1 = vcmp.le.s32.totalorder %v7952_v29, %v2392_v34 }
 0x22e   : > { %v1454_v46 = vpop.f32.mrb[53].mxu0  ;;  %v8275_v58 = vsel %vm2457_vm10, %v6318_v25, -3.4028235e+38  ;;  %v1565_v25 = vadd.s32 504, %v7939_v19 }
 0x22f   : > { %10294 = vst [vmem:[#allocation51_spill] sm:$0xff] %v8275_v58  ;;  %v6319_v36 = vpop.f32.mrb[54].mxu0  ;;  %v8287_v42 = vsel %vm2455_vm12, %v1454_v46, -3.4028235e+38  ;;  %v1563_v46 = vadd.s32 488, %v7939_v19 }
 0x230   : > { %2703 = vmax.xlane.f32.xlu0 %v8275_v58  ;;  %v1457_v38 = vpop.f32.mrb[55].mxu0  ;;  %v8280_v2 = vsel %vm2458_vm11, %v6319_v36, -3.4028235e+38  ;;  %10296 = vst [vmem:[#allocation53_spill] sm:$0xff] %v8287_v42  ;;  %v2004_v58 = vand.u32 127, %v1564_v60  ;;  %v2011_v41 = vand.u32 127, %v1565_v25 }
 0x231   : > { %10295 = vst [vmem:[#allocation52_spill] sm:$0xff] %v8280_v2  ;;  %2705 = vmax.xlane.f32.xlu1 %v8280_v2  ;;  %v8291_v36 = vsel %vm2456_vm13, %v1457_v38, -3.4028235e+38  ;;  %v1997_v22 = vand.u32 127, %v1563_v46 }
 0x232   : > { %10297 = vst [vmem:[#allocation54_spill] sm:$0xff] %v8291_v36  ;;  %v2397_v38 = vadd.s32 %v7945_v24, %v2004_v58  ;;  %v2398_v19 = vadd.s32 %v7945_v24, %v2011_v41 }
 0x233   : > { %v2396_v10 = vadd.s32 %v7945_v24, %v1997_v22 }
 0x234   : > { %2699 = vmax.xlane.f32.xlu0 %v8287_v42  ;;  %vm2465_vm3 = vcmp.le.s32.totalorder %v7952_v29, %v2397_v38  ;;  %vm2466_vm4 = vcmp.le.s32.totalorder %v7952_v29, %v2398_v19  ;;  %v2533_v38 = vld [vmem:[#allocation2 + $0x10] sm:$0xff]  ;;  %v6603_v19 = vld [vmem:[%s7454_s27 + $0x8] sm:$0xff]  }
 0x235   : > { %2701 = vmax.xlane.f32.xlu1 %v8291_v36  ;;  %v6322_v28 = vpop.f32.mrb[56].mxu0  ;;  %v1990_v36 = vand.u32 127, %v1562_v18  ;;  %vm2464_vm6 = vcmp.le.s32.totalorder %v7952_v29, %v2396_v10  ;;  %v2534_v10 = vld [vmem:[#allocation2 + $0x18] sm:$0xff] }
 0x236   : > { %v1470_v56 = vpop.f32.mrb[57].mxu0  ;;  %v8299_v60 = vsel %vm2461_vm14, %v6322_v28, -3.4028235e+38 }
 0x237   : > { %10298 = vst [vmem:[#allocation55_spill] sm:$0xff] %v8299_v60  ;;  %v6323_v42 = vpop.f32.mrb[58].mxu0  ;;  %v8309_v23 = vsel %vm2459_vm0, %v1470_v56, -3.4028235e+38  ;;  %v2395_v25 = vadd.s32 %v7945_v24, %v1990_v36  ;;  %v6602_v56 = vld [vmem:[%s7454_s27] sm:$0xff]  }
 0x238   : > { %2711 = vmax.xlane.f32.xlu0 %v8299_v60  ;;  %v1473_v0 = vpop.f32.mrb[59].mxu0  ;;  %v8303_v2 = vsel %vm2462_vm15, %v6323_v42, -3.4028235e+38  ;;  %10300 = vst [vmem:[#allocation57_spill] sm:$0xff] %v8309_v23  ;;  %6328 = vmatprep.subr.bf16.mxu1 %v6602_v56  ;;  %v8368_v60 = vld [vmem:[#allocation2 + $0x58] sm:$0xff] }
 0x239   : > { %10299 = vst [vmem:[#allocation56_spill] sm:$0xff] %v8303_v2  ;;  %2713 = vmax.xlane.f32.xlu1 %v8303_v2  ;;  %v8313_v58 = vsel %vm2460_vm1, %v1473_v0, -3.4028235e+38  ;;  %vm2463_vm5 = vcmp.le.s32.totalorder %v7952_v29, %v2395_v25  ;;  %6329 = vmatpush3.bf16.msra.mxu1 %v6602_v56  ;;  %v2531_v0 = vld [vmem:[#allocation2] sm:$0xff]  ;;  %v6607_v2 = vld [vmem:[%s7454_s27 + $0x28] sm:$0xff]  }
 0x23a   : > { %10301 = vst [vmem:[#allocation58_spill] sm:$0xff] %v8313_v58  ;;  %6330 = vmatprep.subr.bf16.mxu1 %v6603_v19 }
 0x23c   : > { %2707 = vmax.xlane.f32.xlu0 %v8309_v23 }
 0x23d   : > { %2709 = vmax.xlane.f32.xlu1 %v8313_v58  ;;  %v6326_v42 = vpop.f32.mrb[60].mxu0  ;;  %6331 = vmatpush3.bf16.msra.mxu1 %v6603_v19 }
 0x23e   : > { %v1486_v18 = vpop.f32.mrb[61].mxu0  ;;  %v8319_v28 = vsel %vm2465_vm3, %v6326_v42, -3.4028235e+38 }
 0x23f   : > { %10302 = vst [vmem:[#allocation59_spill] sm:$0xff] %v8319_v28  ;;  %v6327_v34 = vpop.f32.mrb[62].mxu0  ;;  %v8327_v36 = vsel %vm2463_vm5, %v1486_v18, -3.4028235e+38  ;;  %v8336_v18 = vld [vmem:[#allocation2 + $0x8] sm:$0xff] }
 0x240   : > { %2719 = vmax.xlane.f32.xlu0 %v8319_v28  ;;  %v1489_v41 = vpop.f32.mrb[63].mxu0  ;;  %v8322_v46 = vsel %vm2466_vm4, %v6327_v34, -3.4028235e+38  ;;  %10304 = vst [vmem:[#allocation61_spill] sm:$0xff] %v8327_v36  ;;  %v6604_v34 = vld [vmem:[%s7454_s27 + $0x10] sm:$0xff]  }
 0x241   : > { %10303 = vst [vmem:[#allocation60_spill] sm:$0xff] %v8322_v46  ;;  %2721 = vmax.xlane.f32.xlu1 %v8322_v46  ;;  %v8330_v24 = vsel %vm2464_vm6, %v1489_v41, -3.4028235e+38  ;;  %6332 = vmatprep.subr.bf16.mxu1 %v6604_v34 }
 0x242   : > { %10305 = vst [vmem:[#allocation62_spill] sm:$0xff] %v8330_v24  ;;  %6333 = vmatpush3.bf16.msra.mxu1 %v6604_v34  ;;  %v6606_v34 = vld [vmem:[%s7454_s27 + $0x20] sm:$0xff]  }
 0x244   : > { %2715 = vmax.xlane.f32.xlu0 %v8327_v36 }
 0x245   : > { %2717 = vmax.xlane.f32.xlu1 %v8330_v24 }
 0x254   : > { %v2600_v22 = vpop.xlane.xlu1 %2599 }
 0x255   : > { %v2725_v25 = vmax.f32 %v2533_v38, %v2600_v22  ;;  %v2596_v42 = vpop.xlane.xlu0 %2595 }
 0x256   : > { %v2723_v29 = vmax.f32 %v2531_v0, %v2596_v42  ;;  %v8344_v42 = vld [vmem:[#allocation2 + $0x30] sm:$0xff] }
 0x257   : > { %4823 = vst.msk [vmem:[#allocation2 + $0x10] sm:$0xff] %vm3811_vm7, %v2725_v25  ;;  %2991 = vperm.xlu1 %6560, %v2725_v25  }
 0x258   : > { %v2787_v41 = vsub.f32 %v2531_v0, %v2723_v29  ;;  %4821 = vst.msk [vmem:[#allocation2] sm:$0xff] %vm3811_vm7, %v2723_v29  ;;  %v2602_v56 = vpop.xlane.xlu1 %2601  ;;  %v6605_v0 = vld [vmem:[%s7454_s27 + $0x18] sm:$0xff]  }
 0x259   : > { %v2726_v36 = vmax.f32 %v2534_v10, %v2602_v56  ;;  %v2598_v46 = vpop.xlane.xlu0 %2597  ;;  %v2538_v56 = vld [vmem:[#allocation2 + $0x38] sm:$0xff]  ;;  %6334 = vmatprep.subr.bf16.mxu1 %v6605_v0 }
 0x25a   : > { %v2851_v22 = vmul.f32 1.442695, %v2787_v41  ;;  %v8341_v28 = vmax.f32 %v8336_v18, %v2598_v46  ;;  %2981 = vperm.xlu0 %6561, %v2723_v29   ;;  %6335 = vmatpush3.bf16.msra.mxu1 %v6605_v0 }
 0x25b   : > { %v2790_v19 = vsub.f32 %v2534_v10, %v2726_v36  ;;  %4824 = vst.msk [vmem:[#allocation2 + $0x18] sm:$0xff] %vm3811_vm7, %v2726_v36  ;;  %2996 = vperm.xlu1 %6560, %v2726_v36   ;;  %v8353_v36 = vld [vmem:[#allocation2 + $0x20] sm:$0xff]  ;;  %6336 = vmatprep.subr.bf16.mxu1 %v6606_v34 }
 0x25c   : > { %6610 = vpow2.f32 %v2851_v22  ;;  %4822 = vst.msk [vmem:[#allocation2 + $0x8] sm:$0xff] %vm3811_vm7, %v8341_v28  ;;  %v2789_v22 = vsub.f32 %v2533_v38, %v2725_v25 }
 0x25d   : > { %v2857_v24 = vmul.f32 1.442695, %v2790_v19  ;;  %v2608_v41 = vpop.xlane.xlu0 %2607  ;;  %v2536_v19 = vld [vmem:[#allocation2 + $0x28] sm:$0xff] }
 0x25e   : > { %v8350_v46 = vmax.f32 %v8344_v42, %v2608_v41  ;;  %v2610_v29 = vpop.xlane.xlu1 %2609  ;;  %6337 = vmatpush3.bf16.msra.mxu1 %v6606_v34  ;;  %v2855_v38 = vmul.f32 1.442695, %v2789_v22  ;;  %v6608_v22 = vld [vmem:[%s7454_s27 + $0x30] sm:$0xff]  }
 0x25f   : > { %6612 = vpow2.f32 %v2857_v24  ;;  %v2730_v10 = vmax.f32 %v2538_v56, %v2610_v29  ;;  %2986 = vperm.xlu1 %6560, %v8341_v28   ;;  %v8363_v29 = vld [vmem:[#allocation2 + $0x50] sm:$0xff]  ;;  %6338 = vmatprep.subr.bf16.mxu1 %v6607_v2 }
 0x260   : > { %4827 = vst.msk [vmem:[#allocation2 + $0x30] sm:$0xff] %vm3811_vm7, %v8350_v46  ;;  %6614 = vpow2.f32 %v2855_v38  ;;  %v2788_v38 = vsub.f32 %v8336_v18, %v8341_v28 }
 0x261   : > { %4828 = vst.msk [vmem:[#allocation2 + $0x38] sm:$0xff] %vm3811_vm7, %v2730_v10  ;;  %v2604_v23 = vpop.xlane.xlu0 %2603  ;;  %v2794_v25 = vsub.f32 %v2538_v56, %v2730_v10  ;;  %v8381_v56 = vld [vmem:[#allocation2 + $0x40] sm:$0xff] }
 0x262   : > { %v8360_v41 = vmax.f32 %v8353_v36, %v2604_v23  ;;  %v2606_v24 = vpop.xlane.xlu1 %2605  ;;  %6339 = vmatpush3.bf16.msra.mxu1 %v6607_v2 }
 0x263   : > { %v2728_v0 = vmax.f32 %v2536_v19, %v2606_v24  ;;  %3011 = vperm.xlu1 %6560, %v8350_v46   ;;  %v2865_v52 = vmul.f32 1.442695, %v2794_v25  ;;  %6340 = vmatprep.subr.bf16.mxu1 %v6608_v22 }
 0x264   : > { %4825 = vst.msk [vmem:[#allocation2 + $0x20] sm:$0xff] %vm3811_vm7, %v8360_v41 }
 0x265   : > { %4826 = vst.msk [vmem:[#allocation2 + $0x28] sm:$0xff] %vm3811_vm7, %v2728_v0  ;;  %v2616_v23 = vpop.xlane.xlu0 %2615  ;;  %6616 = vpow2.f32 %v2865_v52  ;;  %v2792_v61 = vsub.f32 %v2536_v19, %v2728_v0  ;;  %v8417_v52 = vld [vmem:[#allocation2 + $0x60] sm:$0xff]  ;;  %v2793_v19 = vsub.f32 %v8344_v42, %v8350_v46 }
 0x266   : > { %v8371_v58 = vpop.eup %6610  ;;  %v8374_v34 = vmax.f32 %v8363_v29, %v2616_v23  ;;  %v2618_v24 = vpop.xlane.xlu1 %2617  ;;  %v8386_v23 = vld [vmem:[#allocation2 + $0x48] sm:$0xff]  ;;  %6341 = vmatpush3.bf16.msra.mxu1 %v6608_v22 }
 0x267   : > { %10306 = vst [vmem:[#allocation63_spill] sm:$0xff] %v8371_v58  ;;  %v8377_v1 = vmax.f32 %v8368_v60, %v2618_v24  ;;  %3942 = vperm.xlu0 %6561, %v8371_v58   ;;  %3001 = vperm.xlu1 %6560, %v8360_v41   ;;  %v2863_v42 = vmul.f32 1.442695, %v2793_v19 }
 0x268   : > { %4831 = vst.msk [vmem:[#allocation2 + $0x50] sm:$0xff] %vm3811_vm7, %v8374_v34  ;;  %6342 = vmatprep.subr.bf16.mxu1 %v6609_v8 }
 0x269   : > { %v8388_v37 = vpop.eup %6612  ;;  %4832 = vst.msk [vmem:[#allocation2 + $0x58] sm:$0xff] %vm3811_vm7, %v8377_v1  ;;  %v2612_v2 = vpop.xlane.xlu0 %2611  ;;  %v2798_v46 = vsub.f32 %v8368_v60, %v8377_v1  ;;  %v2791_v60 = vsub.f32 %v8353_v36, %v8360_v41  ;;  %v8475_v36 = vld [vmem:[#allocation2 + $0xb0] sm:$0xff] }
 0x26a   : > { %10307 = vst [vmem:[#allocation64_spill] sm:$0xff] %v8388_v37  ;;  %v8393_v24 = vmax.f32 %v8381_v56, %v2612_v2  ;;  %v2614_v58 = vpop.xlane.xlu1 %2613  ;;  %v8406_v2 = vld [vmem:[#allocation2 + $0x78] sm:$0xff]  ;;  %6343 = vmatpush3.bf16.msra.mxu1 %v6609_v8 }
 0x26b   : > { %v8398_v25 = vmax.f32 %v8386_v23, %v2614_v58  ;;  %3957 = vperm.xlu0 %6561, %v8388_v37   ;;  %3016 = vperm.xlu1 %6560, %v2730_v10   ;;  %v2853_v10 = vmul.f32 1.442695, %v2788_v38  ;;  %v2861_v37 = vmul.f32 1.442695, %v2792_v61  ;;  %v8427_v38 = vpop.eup %6614  ;;  %v8437_v61 = vld [vmem:[#allocation2 + $0x90] sm:$0xff] }
 0x26c   : > { %4829 = vst.msk [vmem:[#allocation2 + $0x40] sm:$0xff] %vm3811_vm7, %v8393_v24  ;;  %10308 = vst [vmem:[#allocation65_spill] sm:$0xff] %v8427_v38  ;;  %v2873_v19 = vmul.f32 1.442695, %v2798_v46  ;;  %v2859_v41 = vmul.f32 1.442695, %v2791_v60 }
 0x26d   : > { %4830 = vst.msk [vmem:[#allocation2 + $0x48] sm:$0xff] %vm3811_vm7, %v8398_v25  ;;  %v2624_v28 = vpop.xlane.xlu0 %2623  ;;  %6618 = vpow2.f32 %v2853_v10  ;;  %v8481_v46 = vld [vmem:[#allocation2 + $0xb8] sm:$0xff] }
 0x26e   : > { %v8411_v58 = vmax.f32 %v8401_v7, %v2624_v28  ;;  %v2626_v18 = vpop.xlane.xlu1 %2625  ;;  %v8423_v28 = vld [vmem:[#allocation2 + $0x68] sm:$0xff]  ;;  %6620 = vpow2.f32 %v2861_v37 }
 0x26f   : > { %v8414_v22 = vmax.f32 %v8406_v2, %v2626_v18  ;;  %3036 = vperm.xlu0 %6561, %v8377_v1   ;;  %3006 = vperm.xlu1 %6560, %v2728_v0   ;;  %v8457_v1 = vld [vmem:[#allocation2 + $0x80] sm:$0xff]  ;;  %6622 = vpow2.f32 %v2863_v42  ;;  %v2796_v42 = vsub.f32 %v8386_v23, %v8398_v25 }
 0x270   : > { %4835 = vst.msk [vmem:[#allocation2 + $0x70] sm:$0xff] %vm3811_vm7, %v8411_v58  ;;  %6624 = vpow2.f32 %v2873_v19  ;;  %v8497_v23 = vld [vmem:[#allocation2 + $0xa0] sm:$0xff]  ;;  %v2801_v62 = vsub.f32 %v8401_v7, %v8411_v58 }
 0x271   : > { %4836 = vst.msk [vmem:[#allocation2 + $0x78] sm:$0xff] %vm3811_vm7, %v8414_v22  ;;  %v2620_v8 = vpop.xlane.xlu0 %2619  ;;  %6626 = vpow2.f32 %v2859_v41  ;;  %v2869_v51 = vmul.f32 1.442695, %v2796_v42  ;;  %v2802_v42 = vsub.f32 %v8406_v2, %v8414_v22  ;;  %v8537_v2 = vld [vmem:[#allocation2 + $0xc0] sm:$0xff] }
 0x272   : > { %v8430_v18 = vmax.f32 %v8417_v52, %v2620_v8  ;;  %v2622_v0 = vpop.xlane.xlu1 %2621  ;;  %v8443_v8 = vld [vmem:[#allocation2 + $0x98] sm:$0xff] }
 0x273   : > { %v8433_v48 = vmax.f32 %v8423_v28, %v2622_v0  ;;  %3026 = vperm.xlu0 %6561, %v8398_v25   ;;  %3952 = vperm.xlu1 %6560, %v8427_v38   ;;  %v8447_v0 = vpop.eup %6616  ;;  %v2797_v25 = vsub.f32 %v8363_v29, %v8374_v34  ;;  %v8517_v29 = vld [vmem:[#allocation2 + $0xd0] sm:$0xff]  ;;  %6628 = vpow2.f32 %v2869_v51 }
 0x274   : > { %4833 = vst.msk [vmem:[#allocation2 + $0x60] sm:$0xff] %vm3811_vm7, %v8430_v18  ;;  %10309 = vst [vmem:[#allocation66_spill] sm:$0xff] %v8447_v0  ;;  %v2799_v32 = vsub.f32 %v8417_v52, %v8430_v18 }
 0x275   : > { %4834 = vst.msk [vmem:[#allocation2 + $0x68] sm:$0xff] %vm3811_vm7, %v8433_v48  ;;  %v2632_v10 = vpop.xlane.xlu0 %2631 }
 0x276   : > { %v8450_v38 = vmax.f32 %v8437_v61, %v2632_v10  ;;  %v2634_v13 = vpop.xlane.xlu1 %2633  ;;  %v8463_v10 = vld [vmem:[#allocation2 + $0x88] sm:$0xff] }
 0x277   : > { %v8453_v37 = vmax.f32 %v8443_v8, %v2634_v13  ;;  %3977 = vperm.xlu0 %6561, %v8447_v0   ;;  %3031 = vperm.xlu1 %6560, %v8374_v34   ;;  %v2871_v34 = vmul.f32 1.442695, %v2797_v25  ;;  %v2881_v25 = vmul.f32 1.442695, %v2802_v42  ;;  %v2800_v42 = vsub.f32 %v8423_v28, %v8433_v48  ;;  %v8579_v28 = vld [vmem:[#allocation2 + $0xe0] sm:$0xff] }
 0x278   : > { %4839 = vst.msk [vmem:[#allocation2 + $0x90] sm:$0xff] %vm3811_vm7, %v8450_v38 }
 0x279   : > { %4840 = vst.msk [vmem:[#allocation2 + $0x98] sm:$0xff] %vm3811_vm7, %v8453_v37  ;;  %v2628_v13 = vpop.xlane.xlu0 %2627  ;;  %6630 = vpow2.f32 %v2871_v34  ;;  %v2877_v16 = vmul.f32 1.442695, %v2800_v42  ;;  %v2879_v42 = vmul.f32 1.442695, %v2801_v62  ;;  %v2806_v47 = vsub.f32 %v8443_v8, %v8453_v37 }
 0x27a   : > { %v8468_v0 = vmax.f32 %v8457_v1, %v2628_v13  ;;  %v2630_v26 = vpop.xlane.xlu1 %2629  ;;  %v8483_v13 = vpop.eup %6618  ;;  %6632 = vpow2.f32 %v2881_v25 }
 0x27b   : > { %v8471_v15 = vmax.f32 %v8463_v10, %v2630_v26  ;;  %3056 = vperm.xlu0 %6561, %v8414_v22   ;;  %3021 = vperm.xlu1 %6560, %v8393_v24   ;;  %10310 = vst [vmem:[#allocation67_spill] sm:$0xff] %v8483_v13  ;;  %v8487_v3 = vpop.eup %6620  ;;  %v2795_v22 = vsub.f32 %v8381_v56, %v8393_v24  ;;  %v8557_v56 = vld [vmem:[#allocation2 + $0xf0] sm:$0xff]  ;;  %v2889_v49 = vmul.f32 1.442695, %v2806_v47 }
 0x27c   : > { %4837 = vst.msk [vmem:[#allocation2 + $0x80] sm:$0xff] %vm3811_vm7, %v8468_v0  ;;  %10311 = vst [vmem:[#allocation68_spill] sm:$0xff] %v8487_v3  ;;  %v8507_v40 = vpop.eup %6622 }
 0x27d   : > { %4838 = vst.msk [vmem:[#allocation2 + $0x88] sm:$0xff] %vm3811_vm7, %v8471_v15  ;;  %v2640_v26 = vpop.xlane.xlu0 %2639  ;;  %10312 = vst [vmem:[#allocation69_spill] sm:$0xff] %v8507_v40  ;;  %v8527_v31 = vpop.eup %6624  ;;  %v2867_v24 = vmul.f32 1.442695, %v2795_v22  ;;  %v2804_v12 = vsub.f32 %v8463_v10, %v8471_v15  ;;  %v8669_v10 = vld [vmem:[#allocation2 + $0x120] sm:$0xff] }
 0x27e   : > { %v8490_v30 = vmax.f32 %v8475_v36, %v2640_v26  ;;  %v2642_v60 = vpop.xlane.xlu1 %2641  ;;  %v8503_v26 = vld [vmem:[#allocation2 + $0xa8] sm:$0xff]  ;;  %10313 = vst [vmem:[#allocation70_spill] sm:$0xff] %v8527_v31  ;;  %v8547_v14 = vpop.eup %6626  ;;  %10323 = vst [vmem:[#allocation80_spill] sm:$0xff] %v8669_v10 }
 0x27f   : > { %v8493_v19 = vmax.f32 %v8481_v46, %v2642_v60  ;;  %3967 = vperm.xlu0 %6561, %v8487_v3   ;;  %3947 = vperm.xlu1 %6560, %v8483_v13   ;;  %10314 = vst [vmem:[#allocation71_spill] sm:$0xff] %v8547_v14  ;;  %6634 = vpow2.f32 %v2867_v24  ;;  %v2885_v21 = vmul.f32 1.442695, %v2804_v12 }
 0x280   : > { %4843 = vst.msk [vmem:[#allocation2 + $0xb0] sm:$0xff] %vm3811_vm7, %v8490_v30  ;;  %6636 = vpow2.f32 %v2877_v16 }
 0x281   : > { %4844 = vst.msk [vmem:[#allocation2 + $0xb8] sm:$0xff] %vm3811_vm7, %v8493_v19  ;;  %v2636_v60 = vpop.xlane.xlu0 %2635  ;;  %6638 = vpow2.f32 %v2879_v42 }
 0x282   : > { %v8510_v3 = vmax.f32 %v8497_v23, %v2636_v60  ;;  %v2638_v13 = vpop.xlane.xlu1 %2637  ;;  %v8523_v60 = vld [vmem:[#allocation2 + $0xd8] sm:$0xff]  ;;  %6640 = vpow2.f32 %v2889_v49 }
 0x283   : > { %v8513_v41 = vmax.f32 %v8503_v26, %v2638_v13  ;;  %3046 = vperm.xlu0 %6561, %v8433_v48   ;;  %3972 = vperm.xlu1 %6560, %v8507_v40  }
 0x284   : > { %4841 = vst.msk [vmem:[#allocation2 + $0xa0] sm:$0xff] %vm3811_vm7, %v8510_v3 }
 0x285   : > { %4842 = vst.msk [vmem:[#allocation2 + $0xa8] sm:$0xff] %vm3811_vm7, %v8513_v41  ;;  %v2648_v13 = vpop.xlane.xlu0 %2647 }
 0x286   : > { %v8530_v40 = vmax.f32 %v8517_v29, %v2648_v13  ;;  %v2650_v55 = vpop.xlane.xlu1 %2649  ;;  %v8543_v13 = vld [vmem:[#allocation2 + $0xc8] sm:$0xff] }
 0x287   : > { %v8533_v51 = vmax.f32 %v8523_v60, %v2650_v55  ;;  %3997 = vperm.xlu0 %6561, %v8527_v31   ;;  %3051 = vperm.xlu1 %6560, %v8411_v58   ;;  %v8601_v58 = vld [vmem:[#allocation2 + $0x110] sm:$0xff] }
 0x288   : > { %4847 = vst.msk [vmem:[#allocation2 + $0xd0] sm:$0xff] %vm3811_vm7, %v8530_v40  ;;  %10317 = vst [vmem:[#allocation74_spill] sm:$0xff] %v8601_v58 }
 0x289   : > { %4848 = vst.msk [vmem:[#allocation2 + $0xd8] sm:$0xff] %vm3811_vm7, %v8533_v51  ;;  %v2644_v55 = vpop.xlane.xlu0 %2643 }
 0x28a   : > { %v8550_v31 = vmax.f32 %v8537_v2, %v2644_v55  ;;  %v2646_v6 = vpop.xlane.xlu1 %2645  ;;  %v8565_v55 = vld [vmem:[#allocation2 + $0xf8] sm:$0xff] }
 0x28b   : > { %v8553_v34 = vmax.f32 %v8543_v13, %v2646_v6  ;;  %3076 = vperm.xlu0 %6561, %v8453_v37   ;;  %3962 = vperm.xlu1 %6560, %v8547_v14   ;;  %v8569_v14 = vpop.eup %6628  ;;  %v8623_v37 = vld [vmem:[#allocation2 + $0x100] sm:$0xff] }
 0x28c   : > { %4845 = vst.msk [vmem:[#allocation2 + $0xc0] sm:$0xff] %vm3811_vm7, %v8550_v31  ;;  %10315 = vst [vmem:[#allocation72_spill] sm:$0xff] %v8569_v14 }
 0x28d   : > { %4846 = vst.msk [vmem:[#allocation2 + $0xc8] sm:$0xff] %vm3811_vm7, %v8553_v34  ;;  %v2656_v6 = vpop.xlane.xlu0 %2655 }
 0x28e   : > { %v8572_v22 = vmax.f32 %v8557_v56, %v2656_v6  ;;  %v2658_v25 = vpop.xlane.xlu1 %2657  ;;  %v8587_v6 = vld [vmem:[#allocation2 + $0xe8] sm:$0xff] }
 0x28f   : > { %v8575_v48 = vmax.f32 %v8565_v55, %v2658_v25  ;;  %3987 = vperm.xlu0 %6561, %v8569_v14   ;;  %3041 = vperm.xlu1 %6560, %v8430_v18   ;;  %v8591_v14 = vpop.eup %6630 }
 0x290   : > { %4851 = vst.msk [vmem:[#allocation2 + $0xf0] sm:$0xff] %vm3811_vm7, %v8572_v22  ;;  %10316 = vst [vmem:[#allocation73_spill] sm:$0xff] %v8591_v14 }
 0x291   : > { %4852 = vst.msk [vmem:[#allocation2 + $0xf8] sm:$0xff] %vm3811_vm7, %v8575_v48  ;;  %v2652_v25 = vpop.xlane.xlu0 %2651 }
 0x292   : > { %v8594_v24 = vmax.f32 %v8579_v28, %v2652_v25  ;;  %v2654_v39 = vpop.xlane.xlu1 %2653  ;;  %v8609_v25 = vld [vmem:[#allocation2 + $0x118] sm:$0xff] }
 0x293   : > { %v8597_v7 = vmax.f32 %v8587_v6, %v2654_v39  ;;  %3066 = vperm.xlu0 %6561, %v8471_v15   ;;  %3992 = vperm.xlu1 %6560, %v8591_v14   ;;  %v8613_v14 = vpop.eup %6632 }
 0x294   : > { %4849 = vst.msk [vmem:[#allocation2 + $0xe0] sm:$0xff] %vm3811_vm7, %v8594_v24  ;;  %10318 = vst [vmem:[#allocation75_spill] sm:$0xff] %v8613_v14  ;;  %v8637_v42 = vpop.eup %6634 }
 0x295   : > { %4850 = vst.msk [vmem:[#allocation2 + $0xe8] sm:$0xff] %vm3811_vm7, %v8597_v7  ;;  %v2664_v39 = vpop.xlane.xlu0 %2663  ;;  %10319 = vst [vmem:[#allocation76_spill] sm:$0xff] %v8637_v42 }
 0x296   : > { %v8616_v62 = vmax.f32 %v8601_v58, %v2664_v39  ;;  %v2666_v16 = vpop.xlane.xlu1 %2665  ;;  %v8631_v39 = vld [vmem:[#allocation2 + $0x108] sm:$0xff] }
 0x297   : > { %v8619_v8 = vmax.f32 %v8609_v25, %v2666_v16  ;;  %4017 = vperm.xlu0 %6561, %v8613_v14   ;;  %3071 = vperm.xlu1 %6560, %v8450_v38   ;;  %v2875_v16 = vmul.f32 1.442695, %v2799_v32 }
 0x298   : > { %4855 = vst.msk [vmem:[#allocation2 + $0x110] sm:$0xff] %vm3811_vm7, %v8616_v62 }
 0x299   : > { %4856 = vst.msk [vmem:[#allocation2 + $0x118] sm:$0xff] %vm3811_vm7, %v8619_v8  ;;  %v2660_v14 = vpop.xlane.xlu0 %2659  ;;  %6642 = vpow2.f32 %v2875_v16 }
 0x29a   : > { %v8640_v52 = vmax.f32 %v8623_v37, %v2660_v14  ;;  %v2662_v47 = vpop.xlane.xlu1 %2661  ;;  %v8653_v14 = vld [vmem:[#allocation2 + $0x138] sm:$0xff]  ;;  %6644 = vpow2.f32 %v2885_v21 }
 0x29b   : > { %v8643_v18 = vmax.f32 %v8631_v39, %v2662_v47  ;;  %3096 = vperm.xlu0 %6561, %v8493_v19   ;;  %3982 = vperm.xlu1 %6560, %v8637_v42   ;;  %10321 = vst [vmem:[#allocation78_spill] sm:$0xff] %v8653_v14  ;;  %v8659_v42 = vpop.eup %6636  ;;  %v2805_v47 = vsub.f32 %v8437_v61, %v8450_v38  ;;  %v8691_v38 = vld [vmem:[#allocation2 + $0x150] sm:$0xff] }
 0x29c   : > { %4853 = vst.msk [vmem:[#allocation2 + $0x100] sm:$0xff] %vm3811_vm7, %v8640_v52  ;;  %10322 = vst [vmem:[#allocation79_spill] sm:$0xff] %v8659_v42  ;;  %v8681_v58 = vpop.eup %6638 }
 0x29d   : > { %4854 = vst.msk [vmem:[#allocation2 + $0x108] sm:$0xff] %vm3811_vm7, %v8643_v18  ;;  %v2672_v5 = vpop.xlane.xlu0 %2671  ;;  %10324 = vst [vmem:[#allocation81_spill] sm:$0xff] %v8681_v58  ;;  %v2887_v61 = vmul.f32 1.442695, %v2805_v47 }
 0x29e   : > { %v8662_v32 = vmax.f32 %v8647_v17, %v2672_v5  ;;  %v2674_v49 = vpop.xlane.xlu1 %2673  ;;  %v8675_v5 = vld [vmem:[#allocation2 + $0x128] sm:$0xff]  ;;  %10325 = vst [vmem:[#allocation82_spill] sm:$0xff] %v8691_v38 }
 0x29f   : > { %v8665_v15 = vmax.f32 %v8653_v14, %v2674_v49  ;;  %4007 = vperm.xlu0 %6561, %v8659_v42   ;;  %3061 = vperm.xlu1 %6560, %v8468_v0   ;;  %v2810_v49 = vsub.f32 %v8481_v46, %v8493_v19  ;;  %v8713_v19 = vld [vmem:[#allocation2 + $0x140] sm:$0xff]  ;;  %6646 = vpow2.f32 %v2887_v61 }
 0x2a0   : > { %4859 = vst.msk [vmem:[#allocation2 + $0x130] sm:$0xff] %vm3811_vm7, %v8662_v32  ;;  %10328 = vst [vmem:[#allocation85_spill] sm:$0xff] %v8713_v19 }
 0x2a1   : > { %4860 = vst.msk [vmem:[#allocation2 + $0x138] sm:$0xff] %vm3811_vm7, %v8665_v15  ;;  %v2668_v42 = vpop.xlane.xlu0 %2667  ;;  %v2897_v14 = vmul.f32 1.442695, %v2810_v49 }
 0x2a2   : > { %v8684_v16 = vmax.f32 %v8669_v10, %v2668_v42  ;;  %v2670_v17 = vpop.xlane.xlu1 %2669  ;;  %v8697_v42 = vld [vmem:[#allocation2 + $0x158] sm:$0xff] }
 0x2a3   : > { %v8687_v12 = vmax.f32 %v8675_v5, %v2670_v17  ;;  %3086 = vperm.xlu0 %6561, %v8513_v41   ;;  %4012 = vperm.xlu1 %6560, %v8681_v58   ;;  %10326 = vst [vmem:[#allocation83_spill] sm:$0xff] %v8697_v42  ;;  %v8703_v58 = vpop.eup %6640  ;;  %v2803_v17 = vsub.f32 %v8457_v1, %v8468_v0  ;;  %v8735_v1 = vld [vmem:[#allocation2 + $0x170] sm:$0xff]  ;;  %6648 = vpow2.f32 %v2897_v14 }
 0x2a4   : > { %4857 = vst.msk [vmem:[#allocation2 + $0x120] sm:$0xff] %vm3811_vm7, %v8684_v16  ;;  %10327 = vst [vmem:[#allocation84_spill] sm:$0xff] %v8703_v58 }
 0x2a5   : > { %4858 = vst.msk [vmem:[#allocation2 + $0x128] sm:$0xff] %vm3811_vm7, %v8687_v12  ;;  %v2680_v10 = vpop.xlane.xlu0 %2679  ;;  %10331 = vst [vmem:[#allocation88_spill] sm:$0xff] %v8735_v1  ;;  %v2883_v49 = vmul.f32 1.442695, %v2803_v17 }
 0x2a6   : > { %v8706_v47 = vmax.f32 %v8691_v38, %v2680_v10  ;;  %v2682_v21 = vpop.xlane.xlu1 %2681  ;;  %v8719_v10 = vld [vmem:[#allocation2 + $0x148] sm:$0xff]  ;;  %v8725_v38 = vpop.eup %6642 }
 0x2a7   : > { %v8709_v46 = vmax.f32 %v8697_v42, %v2682_v21  ;;  %4037 = vperm.xlu0 %6561, %v8703_v58   ;;  %3091 = vperm.xlu1 %6560, %v8490_v30   ;;  %10329 = vst [vmem:[#allocation86_spill] sm:$0xff] %v8719_v10  ;;  %10330 = vst [vmem:[#allocation87_spill] sm:$0xff] %v8725_v38  ;;  %v2808_v21 = vsub.f32 %v8503_v26, %v8513_v41  ;;  %v8755_v26 = vld [vmem:[#allocation2 + $0x160] sm:$0xff]  ;;  %6650 = vpow2.f32 %v2883_v49 }
 0x2a8   : > { %4863 = vst.msk [vmem:[#allocation2 + $0x150] sm:$0xff] %vm3811_vm7, %v8706_v47  ;;  %10334 = vst [vmem:[#allocation91_spill] sm:$0xff] %v8755_v26  ;;  %v2809_v41 = vsub.f32 %v8475_v36, %v8490_v30  ;;  %v8775_v30 = vld [vmem:[#allocation2 + $0x190] sm:$0xff] }
 0x2a9   : > { %4864 = vst.msk [vmem:[#allocation2 + $0x158] sm:$0xff] %vm3811_vm7, %v8709_v46  ;;  %v2676_v58 = vpop.xlane.xlu0 %2675  ;;  %v2893_v17 = vmul.f32 1.442695, %v2808_v21  ;;  %10337 = vst [vmem:[#allocation94_spill] sm:$0xff] %v8775_v30  ;;  %v2814_v21 = vsub.f32 %v8523_v60, %v8533_v51  ;;  %v8795_v60 = vld [vmem:[#allocation2 + $0x180] sm:$0xff] }
 0x2aa   : > { %v8728_v61 = vmax.f32 %v8713_v19, %v2676_v58  ;;  %v2678_v57 = vpop.xlane.xlu1 %2677  ;;  %v8741_v58 = vld [vmem:[#allocation2 + $0x178] sm:$0xff]  ;;  %v8745_v19 = vpop.eup %6644  ;;  %v2895_v36 = vmul.f32 1.442695, %v2809_v41  ;;  %10340 = vst [vmem:[#allocation97_spill] sm:$0xff] %v8795_v60 }
 0x2ab   : > { %v8731_v0 = vmax.f32 %v8719_v10, %v2678_v57  ;;  %3116 = vperm.xlu0 %6561, %v8533_v51   ;;  %4002 = vperm.xlu1 %6560, %v8725_v38   ;;  %10332 = vst [vmem:[#allocation89_spill] sm:$0xff] %v8741_v58  ;;  %10333 = vst [vmem:[#allocation90_spill] sm:$0xff] %v8745_v19  ;;  %6652 = vpow2.f32 %v2893_v17  ;;  %v2807_v51 = vsub.f32 %v8497_v23, %v8510_v3 }
 0x2ac   : > { %4861 = vst.msk [vmem:[#allocation2 + $0x140] sm:$0xff] %vm3811_vm7, %v8728_v61  ;;  %6654 = vpow2.f32 %v2895_v36  ;;  %v2905_v17 = vmul.f32 1.442695, %v2814_v21  ;;  %v2812_v21 = vsub.f32 %v8543_v13, %v8553_v34  ;;  %v8835_v13 = vld [vmem:[#allocation2 + $0x1a0] sm:$0xff]  ;;  %v2816_v10 = vsub.f32 %v8587_v6, %v8597_v7 }
 0x2ad   : > { %4862 = vst.msk [vmem:[#allocation2 + $0x148] sm:$0xff] %vm3811_vm7, %v8731_v0  ;;  %v2688_v57 = vpop.xlane.xlu0 %2687  ;;  %v2891_v23 = vmul.f32 1.442695, %v2807_v51  ;;  %10346 = vst [vmem:[#allocation103_spill] sm:$0xff] %v8835_v13  ;;  %v8916_v6 = vld [vmem:[#allocation2 + $0x1e0] sm:$0xff] }
 0x2ae   : > { %v8748_v38 = vmax.f32 %v8735_v1, %v2688_v57  ;;  %v2690_v42 = vpop.xlane.xlu1 %2689  ;;  %v8761_v57 = vld [vmem:[#allocation2 + $0x168] sm:$0xff]  ;;  %v8765_v1 = vpop.eup %6646  ;;  %6656 = vpow2.f32 %v2905_v17  ;;  %v2901_v17 = vmul.f32 1.442695, %v2812_v21  ;;  %v2818_v21 = vsub.f32 %v8565_v55, %v8575_v48  ;;  %v8875_v55 = vld [vmem:[#allocation2 + $0x1c0] sm:$0xff]  ;;  %10362 = vst [vmem:[#allocation118_spill] sm:$0xff] %v8916_v6 }
 0x2af   : > { %v8751_v14 = vmax.f32 %v8741_v58, %v2690_v42  ;;  %4027 = vperm.xlu0 %6561, %v8745_v19   ;;  %3081 = vperm.xlu1 %6560, %v8510_v3   ;;  %10335 = vst [vmem:[#allocation92_spill] sm:$0xff] %v8761_v57  ;;  %10336 = vst [vmem:[#allocation93_spill] sm:$0xff] %v8765_v1  ;;  %v8815_v3 = vld [vmem:[#allocation2 + $0x1b0] sm:$0xff]  ;;  %6658 = vpow2.f32 %v2891_v23 }
 0x2b0   : > { %4867 = vst.msk [vmem:[#allocation2 + $0x170] sm:$0xff] %vm3811_vm7, %v8748_v38  ;;  %10343 = vst [vmem:[#allocation100_spill] sm:$0xff] %v8815_v3  ;;  %6660 = vpow2.f32 %v2901_v17  ;;  %v8879_v17 = vld [vmem:[#allocation2 + $0x1c8] sm:$0xff] }
 0x2b1   : > { %4868 = vst.msk [vmem:[#allocation2 + $0x178] sm:$0xff] %vm3811_vm7, %v8751_v14  ;;  %v2684_v42 = vpop.xlane.xlu0 %2683  ;;  %10353 = vst [vmem:[#allocation110_spill] sm:$0xff] %v8875_v55 }
 0x2b2   : > { %v8768_v19 = vmax.f32 %v8755_v26, %v2684_v42  ;;  %v2686_v58 = vpop.xlane.xlu1 %2685  ;;  %v8781_v42 = vld [vmem:[#allocation2 + $0x198] sm:$0xff]  ;;  %v8785_v26 = vpop.eup %6648  ;;  %10354 = vst [vmem:[#allocation111_spill] sm:$0xff] %v8879_v17 }
 0x2b3   : > { %v8771_v49 = vmax.f32 %v8761_v57, %v2686_v58  ;;  %3106 = vperm.xlu0 %6561, %v8553_v34   ;;  %4032 = vperm.xlu1 %6560, %v8765_v1   ;;  %10338 = vst [vmem:[#allocation95_spill] sm:$0xff] %v8781_v42  ;;  %10339 = vst [vmem:[#allocation96_spill] sm:$0xff] %v8785_v26  ;;  %v2813_v34 = vsub.f32 %v8517_v29, %v8530_v40 }
 0x2b4   : > { %4865 = vst.msk [vmem:[#allocation2 + $0x160] sm:$0xff] %vm3811_vm7, %v8768_v19 }
 0x2b5   : > { %4866 = vst.msk [vmem:[#allocation2 + $0x168] sm:$0xff] %vm3811_vm7, %v8771_v49  ;;  %v2696_v58 = vpop.xlane.xlu0 %2695  ;;  %v2903_v29 = vmul.f32 1.442695, %v2813_v34 }
 0x2b6   : > { %v8788_v1 = vmax.f32 %v8775_v30, %v2696_v58  ;;  %v2698_v57 = vpop.xlane.xlu1 %2697  ;;  %v8801_v58 = vld [vmem:[#allocation2 + $0x188] sm:$0xff]  ;;  %v8805_v30 = vpop.eup %6650 }
 0x2b7   : > { %v8791_v41 = vmax.f32 %v8781_v42, %v2698_v57  ;;  %4057 = vperm.xlu0 %6561, %v8785_v26   ;;  %3111 = vperm.xlu1 %6560, %v8530_v40   ;;  %10341 = vst [vmem:[#allocation98_spill] sm:$0xff] %v8801_v58  ;;  %10342 = vst [vmem:[#allocation99_spill] sm:$0xff] %v8805_v30  ;;  %v8855_v40 = vld [vmem:[#allocation2 + $0x1d0] sm:$0xff]  ;;  %6662 = vpow2.f32 %v2903_v29 }
 0x2b8   : > { %4871 = vst.msk [vmem:[#allocation2 + $0x190] sm:$0xff] %vm3811_vm7, %v8788_v1  ;;  %10349 = vst [vmem:[#allocation106_spill] sm:$0xff] %v8855_v40  ;;  %v8893_v29 = vld [vmem:[#allocation2 + $0x1f0] sm:$0xff] }
 0x2b9   : > { %4872 = vst.msk [vmem:[#allocation2 + $0x198] sm:$0xff] %vm3811_vm7, %v8791_v41  ;;  %v2692_v57 = vpop.xlane.xlu0 %2691  ;;  %10356 = vst [vmem:[#allocation113_spill] sm:$0xff] %v8893_v29 }
 0x2ba   : > { %v8808_v26 = vmax.f32 %v8795_v60, %v2692_v57  ;;  %v2694_v42 = vpop.xlane.xlu1 %2693  ;;  %v8821_v57 = vld [vmem:[#allocation2 + $0x1b8] sm:$0xff]  ;;  %v8825_v60 = vpop.eup %6652 }
 0x2bb   : > { %v8811_v36 = vmax.f32 %v8801_v58, %v2694_v42  ;;  %3136 = vperm.xlu0 %6561, %v8575_v48   ;;  %4022 = vperm.xlu1 %6560, %v8805_v30   ;;  %10344 = vst [vmem:[#allocation101_spill] sm:$0xff] %v8821_v57  ;;  %10345 = vst [vmem:[#allocation102_spill] sm:$0xff] %v8825_v60  ;;  %v2913_v48 = vmul.f32 1.442695, %v2818_v21  ;;  %v10357_v21 = vsub.f32 %v8537_v2, %v8550_v31 }
 0x2bc   : > { %4869 = vst.msk [vmem:[#allocation2 + $0x180] sm:$0xff] %vm3811_vm7, %v8808_v26 }
 0x2bd   : > { %4870 = vst.msk [vmem:[#allocation2 + $0x188] sm:$0xff] %vm3811_vm7, %v8811_v36  ;;  %v2704_v42 = vpop.xlane.xlu0 %2703  ;;  %6664 = vpow2.f32 %v2913_v48  ;;  %v8920_v48 = vld [vmem:[#allocation2 + $0x1e8] sm:$0xff] }
 0x2be   : > { %v8828_v30 = vmax.f32 %v8815_v3, %v2704_v42  ;;  %v2706_v58 = vpop.xlane.xlu1 %2705  ;;  %v8841_v42 = vld [vmem:[#allocation2 + $0x1a8] sm:$0xff]  ;;  %v8845_v3 = vpop.eup %6654  ;;  %10363 = vst [vmem:[#allocation119_spill] sm:$0xff] %v8920_v48 }
 0x2bf   : > { %v8831_v51 = vmax.f32 %v8821_v57, %v2706_v58  ;;  %4047 = vperm.xlu0 %6561, %v8825_v60   ;;  %3101 = vperm.xlu1 %6560, %v8550_v31   ;;  %10347 = vst [vmem:[#allocation104_spill] sm:$0xff] %v8841_v42  ;;  %10348 = vst [vmem:[#allocation105_spill] sm:$0xff] %v8845_v3 }
 0x2c0   : > { %4875 = vst.msk [vmem:[#allocation2 + $0x1b0] sm:$0xff] %vm3811_vm7, %v8828_v30 }
 0x2c1   : > { %4876 = vst.msk [vmem:[#allocation2 + $0x1b8] sm:$0xff] %vm3811_vm7, %v8831_v51  ;;  %v2700_v58 = vpop.xlane.xlu0 %2699 }
 0x2c2   : > { %v8848_v60 = vmax.f32 %v8835_v13, %v2700_v58  ;;  %v2702_v57 = vpop.xlane.xlu1 %2701  ;;  %v8861_v58 = vld [vmem:[#allocation2 + $0x1d8] sm:$0xff]  ;;  %v8865_v13 = vpop.eup %6656 }
 0x2c3   : > { %v8851_v23 = vmax.f32 %v8841_v42, %v2702_v57  ;;  %3126 = vperm.xlu0 %6561, %v8597_v7   ;;  %4052 = vperm.xlu1 %6560, %v8845_v3   ;;  %10350 = vst [vmem:[#allocation107_spill] sm:$0xff] %v8861_v58  ;;  %10351 = vst [vmem:[#allocation108_spill] sm:$0xff] %v8865_v13  ;;  %v2909_v7 = vmul.f32 1.442695, %v2816_v10  ;;  %v10366_v10 = vsub.f32 %v8557_v56, %v8572_v22 }
 0x2c4   : > { %4873 = vst.msk [vmem:[#allocation2 + $0x1a0] sm:$0xff] %vm3811_vm7, %v8848_v60 }
 0x2c5   : > { %4874 = vst.msk [vmem:[#allocation2 + $0x1a8] sm:$0xff] %vm3811_vm7, %v8851_v23  ;;  %v2712_v57 = vpop.xlane.xlu0 %2711 }
 0x2c6   : > { %v8868_v3 = vmax.f32 %v8855_v40, %v2712_v57  ;;  %v2714_v42 = vpop.xlane.xlu1 %2713  ;;  %v8883_v40 = vpop.eup %6658 }
 0x2c7   : > { %v8871_v34 = vmax.f32 %v8861_v58, %v2714_v42  ;;  %4077 = vperm.xlu0 %6561, %v8865_v13   ;;  %3131 = vperm.xlu1 %6560, %v8572_v22   ;;  %10355 = vst [vmem:[#allocation112_spill] sm:$0xff] %v8883_v40 }
 0x2c8   : > { %10352 = vst [vmem:[#allocation109_spill] sm:$0xff] %v8868_v3  ;;  %4879 = vst.msk [vmem:[#allocation2 + $0x1d0] sm:$0xff] %vm3811_vm7, %v8868_v3  ;;  %v2899_v3 = vmul.f32 1.442695, %v10357_v21 }
 0x2c9   : > { %4880 = vst.msk [vmem:[#allocation2 + $0x1d8] sm:$0xff] %vm3811_vm7, %v8871_v34  ;;  %v2708_v57 = vpop.xlane.xlu0 %2707 }
 0x2ca   : > { %v8886_v42 = vmax.f32 %v8875_v55, %v2708_v57  ;;  %v2710_v13 = vpop.xlane.xlu1 %2709  ;;  %v8902_v57 = vld [vmem:[#allocation2 + $0x1f8] sm:$0xff]  ;;  %6666 = vpow2.f32 %v2899_v3  ;;  %v2911_v3 = vmul.f32 1.442695, %v10366_v10 }
 0x2cb   : > { %v8889_v58 = vmax.f32 %v8879_v17, %v2710_v13  ;;  %3156 = vperm.xlu0 %6561, %v8619_v8   ;;  %4042 = vperm.xlu1 %6560, %v8883_v40   ;;  %10358 = vst [vmem:[#allocation114_spill] sm:$0xff] %v8902_v57  ;;  %v8906_v40 = vpop.eup %6660  ;;  %6668 = vpow2.f32 %v2909_v7  ;;  %v10369_v7 = vsub.f32 %v8579_v28, %v8594_v24 }
 0x2cc   : > { %4877 = vst.msk [vmem:[#allocation2 + $0x1c0] sm:$0xff] %vm3811_vm7, %v8886_v42  ;;  %10359 = vst [vmem:[#allocation115_spill] sm:$0xff] %v8906_v40  ;;  %6670 = vpow2.f32 %v2911_v3 }
 0x2cd   : > { %4878 = vst.msk [vmem:[#allocation2 + $0x1c8] sm:$0xff] %vm3811_vm7, %v8889_v58  ;;  %v2720_v13 = vpop.xlane.xlu0 %2719  ;;  %v2907_v10 = vmul.f32 1.442695, %v10369_v7 }
 0x2ce   : > { %v8909_v55 = vmax.f32 %v8893_v29, %v2720_v13  ;;  %v2722_v31 = vpop.xlane.xlu1 %2721  ;;  %v8924_v13 = vpop.eup %6662 }
 0x2cf   : > { %v8912_v2 = vmax.f32 %v8902_v57, %v2722_v31  ;;  %4067 = vperm.xlu0 %6561, %v8906_v40   ;;  %3121 = vperm.xlu1 %6560, %v8594_v24   ;;  %10364 = vst [vmem:[#allocation120_spill] sm:$0xff] %v8924_v13  ;;  %6672 = vpow2.f32 %v2907_v10 }
 0x2d0   : > { %10360 = vst [vmem:[#allocation116_spill] sm:$0xff] %v8909_v55  ;;  %4883 = vst.msk [vmem:[#allocation2 + $0x1f0] sm:$0xff] %vm3811_vm7, %v8909_v55 }
 0x2d1   : > { %10361 = vst [vmem:[#allocation117_spill] sm:$0xff] %v8912_v2  ;;  %4884 = vst.msk [vmem:[#allocation2 + $0x1f8] sm:$0xff] %vm3811_vm7, %v8912_v2  ;;  %v2716_v21 = vpop.xlane.xlu0 %2715 }
 0x2d2   : > { %v8927_v31 = vmax.f32 %v8916_v6, %v2716_v21  ;;  %v2718_v40 = vpop.xlane.xlu1 %2717  ;;  %v8941_v21 = vpop.eup %6664 }
 0x2d3   : > { %v8930_v29 = vmax.f32 %v8920_v48, %v2718_v40  ;;  %3146 = vperm.xlu0 %6561, %v8643_v18   ;;  %4072 = vperm.xlu1 %6560, %v8924_v13   ;;  %10367 = vst [vmem:[#allocation122_spill] sm:$0xff] %v8941_v21 }
 0x2d4   : > { %10365 = vst [vmem:[#allocation121_spill] sm:$0xff] %v8927_v31  ;;  %4881 = vst.msk [vmem:[#allocation2 + $0x1e0] sm:$0xff] %vm3811_vm7, %v8927_v31  ;;  %v8945_v13 = vpop.eup %6666 }
 0x2d5   : > { %4882 = vst.msk [vmem:[#allocation2 + $0x1e8] sm:$0xff] %vm3811_vm7, %v8930_v29  ;;  %10368 = vst [vmem:[#allocation123_spill] sm:$0xff] %v8945_v13  ;;  %v8958_v31 = vpop.eup %6668 }
 0x2d6   : > { %v2992_v57 = vpop.permute.xlu1 %2991  ;;  %10371 = vst [vmem:[#allocation124_spill] sm:$0xff] %v8958_v31 }
 0x2d7   : > { %4097 = vperm.xlu0 %6561, %v8941_v21   ;;  %3151 = vperm.xlu1 %6560, %v8616_v62   ;;  %v10370_v21 = vsub.f32 %v8631_v39, %v8643_v18  ;;  %v3301_v48 = vsub.f32 %v7963_v43, %v2992_v57  ;;  %v8963_v39 = vpop.eup %6670 }
 0x2d8   : > { %10372 = vst [vmem:[#allocation125_spill] sm:$0xff] %v8963_v39 }
 0x2d9   : > { %v2982_v40 = vpop.permute.xlu0 %2981  ;;  %v2917_v3 = vmul.f32 1.442695, %v10370_v21 }
 0x2da   : > { %v3299_v56 = vsub.f32 %v7966_v45, %v2982_v40  ;;  %v2997_v22 = vpop.permute.xlu1 %2996 }
 0x2db   : > { %v3302_v6 = vsub.f32 %v7975_v53, %v2997_v22  ;;  %3176 = vperm.xlu0 %6561, %v8665_v15   ;;  %4062 = vperm.xlu1 %6560, %v8945_v13   ;;  %6674 = vpow2.f32 %v2917_v3  ;;  %v3367_v53 = vmul.f32 1.442695, %v3301_v48 }
 0x2dc   : > { %v3363_v17 = vmul.f32 1.442695, %v3299_v56 }
 0x2dd   : > { %v3369_v45 = vmul.f32 1.442695, %v3302_v6  ;;  %v8973_v6 = vpop.eup %6672 }
 0x2de   : > { %v2987_v40 = vpop.permute.xlu1 %2986  ;;  %6676 = vpow2.f32 %v3363_v17  ;;  %10373 = vst [vmem:[#allocation126_spill] sm:$0xff] %v8973_v6 }
 0x2df   : > { %v3300_v28 = vsub.f32 %v7978_v54, %v2987_v40  ;;  %4087 = vperm.xlu0 %6561, %v8958_v31   ;;  %3141 = vperm.xlu1 %6560, %v8640_v52   ;;  %6678 = vpow2.f32 %v3369_v45  ;;  %v2819_v54 = vsub.f32 %v8623_v37, %v8640_v52 }
 0x2e1   : > { %v3365_v24 = vmul.f32 1.442695, %v3300_v28  ;;  %v2915_v17 = vmul.f32 1.442695, %v2819_v54 }
 0x2e2   : > { %v3012_v43 = vpop.permute.xlu1 %3011 }
 0x2e3   : > { %6680 = vpow2.f32 %v3365_v24  ;;  %3166 = vperm.xlu0 %6561, %v8687_v12   ;;  %4092 = vperm.xlu1 %6560, %v8963_v39   ;;  %v3305_v3 = vsub.f32 %v7987_v63, %v3012_v43 }
 0x2e4   : > { %6682 = vpow2.f32 %v3367_v53 }
 0x2e5   : > { %v8975_v48 = vpop.eup %6674  ;;  %6684 = vpow2.f32 %v2915_v17  ;;  %v3375_v63 = vmul.f32 1.442695, %v3305_v3 }
 0x2e6   : > { %v8969_v18 = vpop.permute.xlu0 %3942  ;;  %v3002_v57 = vpop.permute.xlu1 %3001  ;;  %10374 = vst [vmem:[#allocation127_spill] sm:$0xff] %v8975_v48 }
 0x2e7   : > { %3196 = vperm.xlu0 %6561, %v8709_v46   ;;  %3171 = vperm.xlu1 %6560, %v8662_v32   ;;  %v3303_v21 = vsub.f32 %v7999_v9, %v3002_v57 }
 0x2e8   : > { %v8980_v7 = vpop.eup %6676 }
 0x2e9   : > { %v8985_v52 = vpop.eup %6678  ;;  %v3371_v9 = vmul.f32 1.442695, %v3303_v21 }
 0x2ea   : > { %v8978_v56 = vpop.permute.xlu0 %3957  ;;  %v3017_v22 = vpop.permute.xlu1 %3016 }
 0x2eb   : > { %v3306_v37 = vsub.f32 %v7992_v4, %v3017_v22  ;;  %4107 = vperm.xlu0 %6561, %v8975_v48   ;;  %4082 = vperm.xlu1 %6560, %v8973_v6   ;;  %6686 = vpow2.f32 %v3371_v9 }
 0x2ed   : > { %v8987_v10 = vpop.eup %6680  ;;  %v3377_v4 = vmul.f32 1.442695, %v3306_v37 }
 0x2ee   : > { %v8990_v45 = vpop.eup %6682  ;;  %v3037_v40 = vpop.permute.xlu0 %3036  ;;  %v4324_v53 = vpack.c.bf16 %v8987_v10, %v8980_v7 }
 0x2ef   : > { %v3007_v28 = vpop.permute.xlu1 %3006  ;;  %3186 = vperm.xlu0 %6561, %v8731_v0   ;;  %3161 = vperm.xlu1 %6560, %v8684_v16   ;;  %v4325_v54 = vpack.c.bf16 %v8985_v52, %v8990_v45  ;;  %6688 = vpow2.f32 %v3377_v4  ;;  %v3310_v9 = vsub.f32 %v8016_v27, %v3037_v40 }
 0x2f0   : > { %v3304_v24 = vsub.f32 %v8003_v11, %v3007_v28  ;;  %6344 = vmatprep.mubr.bf16.mxu1 %v4324_v53  ;;  %v9003_v11 = vpop.eup %6684 }
 0x2f1   : > { %6345 = vmatmul.mubr.bf16.vlgmr.msra.gmra.mrb[0].mxu1 %v4325_v54  ;;  %10375 = vst [vmem:[#allocation128_spill] sm:$0xff] %v9003_v11 }
 0x2f2   : > { %v3373_v43 = vmul.f32 1.442695, %v3304_v24  ;;  %v3027_v57 = vpop.permute.xlu0 %3026 }
 0x2f3   : > { %v8999_v17 = vpop.permute.xlu1 %3952  ;;  %3216 = vperm.xlu0 %6561, %v8751_v14   ;;  %3191 = vperm.xlu1 %6560, %v8706_v47   ;;  %v3308_v21 = vsub.f32 %v8027_v35, %v3027_v57 }
 0x2f4   : > { %6690 = vpow2.f32 %v3373_v43 }
 0x2f5   : > { %6692 = vpow2.f32 %v3375_v63  ;;  %v3381_v28 = vmul.f32 1.442695, %v3308_v21  ;;  %v9015_v35 = vpop.eup %6686 }
 0x2f6   : > { %v9006_v22 = vpop.permute.xlu0 %3977 }
 0x2f7   : > { %v3032_v37 = vpop.permute.xlu1 %3031  ;;  %3206 = vperm.xlu0 %6561, %v8771_v49   ;;  %4102 = vperm.xlu1 %6560, %v9003_v11   ;;  %6694 = vpow2.f32 %v3381_v28  ;;  %v10378_v11 = vsub.f32 %v8609_v25, %v8619_v8 }
 0x2f8   : > { %v3309_v3 = vsub.f32 %v8011_v20, %v3032_v37  ;;  %v3385_v20 = vmul.f32 1.442695, %v3310_v9 }
 0x2f9   : > { %v9017_v63 = vpop.eup %6688  ;;  %v2921_v6 = vmul.f32 1.442695, %v10378_v11 }
 0x2fa   : > { %v3057_v53 = vpop.permute.xlu0 %3056  ;;  %v3383_v24 = vmul.f32 1.442695, %v3309_v3 }
 0x2fb   : > { %v3022_v4 = vpop.permute.xlu1 %3021  ;;  %3236 = vperm.xlu0 %6561, %v8791_v41   ;;  %3181 = vperm.xlu1 %6560, %v8728_v61  }
 0x2fc   : > { %v3307_v54 = vsub.f32 %v8023_v33, %v3022_v4  ;;  %6696 = vpow2.f32 %v3383_v24 }
 0x2fe   : > { %v3379_v43 = vmul.f32 1.442695, %v3307_v54  ;;  %v9019_v57 = vpop.eup %6690  ;;  %v9021_v27 = vpop.permute.xlu0 %3967 }
 0x2ff   : > { %10376 = vst [vmem:[#allocation129_spill] sm:$0xff] %v9021_v27  ;;  %v9023_v40 = vpop.permute.xlu1 %3947  ;;  %v9025_v21 = vpop.eup %6692  ;;  %3226 = vperm.xlu0 %6561, %v8811_v36   ;;  %3211 = vperm.xlu1 %6560, %v8748_v38   ;;  %v4326_v33 = vpack.c.bf16 %v9019_v57, %v9015_v35 }
 0x300   : > { %6698 = vpow2.f32 %v3379_v43  ;;  %v4327_v37 = vpack.c.bf16 %v9017_v63, %v9025_v21 }
 0x301   : > { %6700 = vpow2.f32 %v3385_v20  ;;  %6348 = vmatprep.mubr.bf16.mxu1 %v4326_v33  ;;  %v9041_v24 = vpop.eup %6694 }
 0x302   : > { %6349 = vmatmul.mubr.bf16.gmra.mrb[4].mxu1 %v4327_v37  ;;  %v3047_v3 = vpop.permute.xlu0 %3046  ;;  %6702 = vpow2.f32 %v2921_v6 }
 0x303   : > { %v9033_v9 = vpop.permute.xlu1 %3972  ;;  %3256 = vperm.xlu0 %6561, %v8831_v51   ;;  %3201 = vperm.xlu1 %6560, %v8768_v19   ;;  %v3312_v20 = vsub.f32 %v8051_v59, %v3047_v3 }
 0x305   : > { %v3389_v13 = vmul.f32 1.442695, %v3312_v20  ;;  %v10383_v20 = vld [vmem:[#allocation86_spill] sm:$0xff] }
 0x306   : > { %v9037_v28 = vpop.permute.xlu0 %3997  ;;  %v9043_v54 = vpop.eup %6696 }
 0x307   : > { %10377 = vst [vmem:[#allocation130_spill] sm:$0xff] %v9037_v28  ;;  %v3052_v4 = vpop.permute.xlu1 %3051  ;;  %3246 = vperm.xlu0 %6561, %v8851_v23   ;;  %3231 = vperm.xlu1 %6560, %v8788_v1   ;;  %v10380_v28 = vld [vmem:[#allocation14_spill] sm:$0xff] }
 0x308   : > { %v3313_v33 = vsub.f32 %v8035_v44, %v3052_v4  ;;  %v10379_v44 = vsub.f32 %v8675_v5, %v8687_v12  ;;  %v3314_v4 = vsub.f32 %v8040_v50, %v3057_v53 }
 0x30a   : > { %v9046_v43 = vpop.eup %6698  ;;  %v9049_v37 = vpop.permute.xlu0 %3076  ;;  %v2925_v3 = vmul.f32 1.442695, %v10379_v44  ;;  %v3391_v25 = vmul.f32 1.442695, %v3313_v33  ;;  %v3393_v5 = vmul.f32 1.442695, %v3314_v4  ;;  %v2828_v33 = vsub.f32 %v10383_v20, %v8731_v0 }
 0x30b   : > { %v9051_v48 = vpop.permute.xlu1 %3962  ;;  %v9053_v31 = vpop.eup %6700  ;;  %3276 = vperm.xlu0 %6561, %v8871_v34   ;;  %3221 = vperm.xlu1 %6560, %v8808_v26   ;;  %v4328_v59 = vpack.c.bf16 %v9041_v24, %v9046_v43 }
 0x30c   : > { %v4329_v39 = vpack.c.bf16 %v9053_v31, %v9043_v54  ;;  %6704 = vpow2.f32 %v2925_v3  ;;  %v2933_v0 = vmul.f32 1.442695, %v2828_v33 }
 0x30d   : > { %6352 = vmatprep.mubr.bf16.mxu1 %v4328_v59  ;;  %6706 = vpow2.f32 %v3389_v13  ;;  %v10384_v13 = vld [vmem:[#allocation77_spill] sm:$0xff]  ;;  %v10385_v59 = vld [vmem:[#allocation80_spill] sm:$0xff] }
 0x30e   : > { %6353 = vmatmul.mubr.bf16.gmra.mrb[8].mxu1 %v4329_v39  ;;  %v9068_v8 = vpop.permute.xlu0 %3987  ;;  %6708 = vpow2.f32 %v3391_v25  ;;  %v10381_v39 = vld [vmem:[#allocation78_spill] sm:$0xff]  ;;  %v2823_v44 = vsub.f32 %v10385_v59, %v8684_v16 }
 0x30f   : > { %v3042_v11 = vpop.permute.xlu1 %3041  ;;  %3266 = vperm.xlu0 %6561, %v8889_v58   ;;  %3251 = vperm.xlu1 %6560, %v8828_v30   ;;  %v10382_v6 = vsub.f32 %v10381_v39, %v8665_v15  ;;  %v10387_v25 = vld [vmem:[#allocation74_spill] sm:$0xff]  ;;  %v10389_v15 = vld [vmem:[#allocation109_spill] sm:$0xff] }
 0x310   : > { %v3311_v27 = vsub.f32 %v10380_v28, %v3042_v11  ;;  %v10388_v11 = vsub.f32 %v10387_v25, %v8616_v62  ;;  %v10392_v16 = vld [vmem:[#allocation18_spill] sm:$0xff]  ;;  %v2923_v59 = vmul.f32 1.442695, %v2823_v44  ;;  %v10397_v44 = vld [vmem:[#allocation16_spill] sm:$0xff] }
 0x311   : > { %v2929_v28 = vmul.f32 1.442695, %v10382_v6 }
 0x312   : > { %v3387_v50 = vmul.f32 1.442695, %v3311_v27  ;;  %v3067_v12 = vpop.permute.xlu0 %3066  ;;  %v2825_v27 = vsub.f32 %v10384_v13, %v8662_v32  ;;  %v9095_v32 = vpop.eup %6702 }
 0x313   : > { %v9073_v53 = vpop.permute.xlu1 %3992  ;;  %3296 = vperm.xlu0 %6561, %v8912_v2   ;;  %3241 = vperm.xlu1 %6560, %v8848_v60   ;;  %10391 = vst [vmem:[#allocation78_spill] sm:$0xff] %v9095_v32  ;;  %v3316_v20 = vsub.f32 %v10392_v16, %v3067_v12 }
 0x314   : > { %6710 = vpow2.f32 %v3387_v50  ;;  %v2919_v50 = vmul.f32 1.442695, %v10388_v11  ;;  %v2927_v6 = vmul.f32 1.442695, %v2825_v27 }
 0x315   : > { %6712 = vpow2.f32 %v3393_v5  ;;  %v10390_v5 = vld [vmem:[#allocation92_spill] sm:$0xff] }
 0x316   : > { %v9086_v3 = vpop.permute.xlu0 %4017  ;;  %6714 = vpow2.f32 %v2929_v28  ;;  %v2832_v39 = vsub.f32 %v10390_v5, %v8771_v49  ;;  %v9098_v13 = vpop.eup %6704  ;;  %v10395_v28 = vld [vmem:[#allocation83_spill] sm:$0xff]  ;;  %v3397_v5 = vmul.f32 1.442695, %v3316_v20  ;;  %v10401_v20 = vld [vmem:[#allocation89_spill] sm:$0xff] }
 0x317   : > { %10386 = vst [vmem:[#allocation14_spill] sm:$0xff] %v9086_v3  ;;  %v3072_v4 = vpop.permute.xlu1 %3071  ;;  %3286 = vperm.xlu0 %6561, %v8930_v29   ;;  %3271 = vperm.xlu1 %6560, %v10389_v15   ;;  %10393 = vst [vmem:[#allocation86_spill] sm:$0xff] %v9098_v13  ;;  %v10394_v3 = vld [vmem:[#allocation15_spill] sm:$0xff]  ;;  %v9105_v2 = vpop.eup %6706  ;;  %6716 = vpow2.f32 %v2919_v50  ;;  %v10396_v49 = vsub.f32 %v10395_v28, %v8709_v46 }
 0x318   : > { %v3317_v62 = vsub.f32 %v10394_v3, %v3072_v4  ;;  %v9112_v12 = vpop.eup %6708  ;;  %6718 = vpow2.f32 %v2933_v0  ;;  %v2941_v27 = vmul.f32 1.442695, %v2832_v39  ;;  %v3318_v3 = vsub.f32 %v10397_v44, %v9049_v37  ;;  %v10399_v0 = vld [vmem:[#allocation85_spill] sm:$0xff] }
 0x319   : > { %v2937_v33 = vmul.f32 1.442695, %v10396_v49  ;;  %6720 = vpow2.f32 %v2927_v6  ;;  %v2827_v39 = vsub.f32 %v10399_v0, %v8728_v61 }
 0x31a   : > { %v9101_v25 = vpop.permute.xlu0 %3096  ;;  %6722 = vpow2.f32 %v2923_v59  ;;  %v3399_v46 = vmul.f32 1.442695, %v3317_v62  ;;  %v2834_v59 = vsub.f32 %v10401_v20, %v8751_v14  ;;  %v3401_v62 = vmul.f32 1.442695, %v3318_v3  ;;  %v10405_v14 = vld [vmem:[#allocation121_spill] sm:$0xff]  ;;  %v10406_v3 = vld [vmem:[#allocation98_spill] sm:$0xff] }
 0x31b   : > { %v9103_v11 = vpop.permute.xlu1 %3982  ;;  %4117 = vperm.xlu0 %6561, %v9095_v32   ;;  %3261 = vperm.xlu1 %6560, %v8886_v42   ;;  %6724 = vpow2.f32 %v2937_v33  ;;  %v10400_v32 = vld [vmem:[#allocation17_spill] sm:$0xff] }
 0x31c   : > { %6726 = vpow2.f32 %v2941_v27  ;;  %v2945_v27 = vmul.f32 1.442695, %v2834_v59 }
 0x31d   : > { %6728 = vpow2.f32 %v3397_v5  ;;  %v2836_v5 = vsub.f32 %v10406_v3, %v8811_v36  ;;  %v10413_v36 = vld [vmem:[#allocation95_spill] sm:$0xff] }
 0x31e   : > { %v9116_v4 = vpop.eup %6710  ;;  %v9120_v16 = vpop.permute.xlu0 %4007  ;;  %6730 = vpow2.f32 %v3399_v46  ;;  %v10408_v46 = vld [vmem:[#allocation88_spill] sm:$0xff] }
 0x31f   : > { %v9118_v50 = vpop.eup %6712  ;;  %10398 = vst [vmem:[#allocation77_spill] sm:$0xff] %v9120_v16  ;;  %v3062_v28 = vpop.permute.xlu1 %3061  ;;  %v4330_v49 = vpack.c.bf16 %v9105_v2, %v9116_v4  ;;  %4127 = vperm.xlu0 %6561, %v9098_v13   ;;  %3291 = vperm.xlu1 %6560, %v8909_v55   ;;  %v2931_v13 = vmul.f32 1.442695, %v2827_v39  ;;  %v2949_v3 = vmul.f32 1.442695, %v2836_v5  ;;  %v10421_v5 = vld [vmem:[#allocation20_spill] sm:$0xff] }
 0x320   : > { %v3315_v37 = vsub.f32 %v10400_v32, %v3062_v28  ;;  %v4331_v6 = vpack.c.bf16 %v9118_v50, %v9112_v12  ;;  %v9133_v44 = vpop.eup %6714  ;;  %v10404_v28 = vld [vmem:[#allocation82_spill] sm:$0xff] }
 0x321   : > { %6356 = vmatprep.mubr.bf16.mxu1 %v4330_v49  ;;  %10402 = vst [vmem:[#allocation80_spill] sm:$0xff] %v9133_v44  ;;  %v2829_v0 = vsub.f32 %v10404_v28, %v8706_v47  ;;  %v9143_v49 = vpop.eup %6716  ;;  %v10410_v47 = vld [vmem:[#allocation91_spill] sm:$0xff] }
 0x322   : > { %v3395_v33 = vmul.f32 1.442695, %v3315_v37  ;;  %6357 = vmatmul.mubr.bf16.gmra.mrb[12].mxu1 %v4331_v6  ;;  %v3087_v61 = vpop.permute.xlu0 %3086  ;;  %10407 = vst [vmem:[#allocation109_spill] sm:$0xff] %v9143_v49  ;;  %v2833_v37 = vsub.f32 %v10408_v46, %v8748_v38  ;;  %v9147_v6 = vpop.eup %6718  ;;  %v2831_v39 = vsub.f32 %v10410_v47, %v8768_v19  ;;  %v10415_v19 = vld [vmem:[#allocation104_spill] sm:$0xff] }
 0x323   : > { %v9135_v32 = vpop.permute.xlu1 %4012  ;;  %4137 = vperm.xlu0 %6561, %v9133_v44   ;;  %3281 = vperm.xlu1 %6560, %v10405_v14   ;;  %10409 = vst [vmem:[#allocation92_spill] sm:$0xff] %v9147_v6  ;;  %v9153_v28 = vpop.eup %6720  ;;  %v2935_v59 = vmul.f32 1.442695, %v2829_v0  ;;  %v2840_v46 = vsub.f32 %v10415_v19, %v8851_v23 }
 0x324   : > { %10403 = vst [vmem:[#allocation74_spill] sm:$0xff] %v9135_v32  ;;  %6732 = vpow2.f32 %v3395_v33  ;;  %10412 = vst [vmem:[#allocation15_spill] sm:$0xff] %v9153_v28  ;;  %v9159_v38 = vpop.eup %6722  ;;  %v2943_v44 = vmul.f32 1.442695, %v2833_v37  ;;  %v2939_v55 = vmul.f32 1.442695, %v2831_v39  ;;  %v3322_v37 = vsub.f32 %v10421_v5, %v9101_v25 }
 0x325   : > { %6734 = vpow2.f32 %v3401_v62  ;;  %v2838_v62 = vsub.f32 %v10413_v36, %v8791_v41  ;;  %10414 = vst [vmem:[#allocation83_spill] sm:$0xff] %v9159_v38  ;;  %v9163_v47 = vpop.eup %6724  ;;  %v10419_v41 = vld [vmem:[#allocation19_spill] sm:$0xff] }
 0x326   : > { %v9151_v20 = vpop.permute.xlu0 %4037  ;;  %6736 = vpow2.f32 %v2931_v13  ;;  %10416 = vst [vmem:[#allocation16_spill] sm:$0xff] %v9163_v47  ;;  %v9166_v13 = vpop.eup %6726 }
 0x327   : > { %10411 = vst [vmem:[#allocation18_spill] sm:$0xff] %v9151_v20  ;;  %v3092_v33 = vpop.permute.xlu1 %3091  ;;  %4147 = vperm.xlu0 %6561, %v9147_v6   ;;  %4112 = vperm.xlu1 %6560, %v9143_v49   ;;  %6738 = vpow2.f32 %v2945_v27  ;;  %v10417_v20 = vld [vmem:[#allocation22_spill] sm:$0xff]  ;;  %10418 = vst [vmem:[#allocation85_spill] sm:$0xff] %v9166_v13  ;;  %v9173_v16 = vpop.eup %6728  ;;  %v2953_v27 = vmul.f32 1.442695, %v2838_v62 }
 0x328   : > { %v3320_v0 = vsub.f32 %v10417_v20, %v3087_v61  ;;  %v3321_v36 = vsub.f32 %v10419_v41, %v3092_v33  ;;  %6740 = vpow2.f32 %v2935_v59  ;;  %v9177_v23 = vpop.eup %6730  ;;  %v2957_v61 = vmul.f32 1.442695, %v2840_v46 }
 0x329   : > { %6742 = vpow2.f32 %v2949_v3  ;;  %v10423_v3 = vld [vmem:[#allocation97_spill] sm:$0xff] }
 0x32a   : > { %v9169_v6 = vpop.permute.xlu0 %3116  ;;  %6744 = vpow2.f32 %v2943_v44  ;;  %v3405_v20 = vmul.f32 1.442695, %v3320_v0  ;;  %v3407_v59 = vmul.f32 1.442695, %v3321_v36  ;;  %v2835_v46 = vsub.f32 %v10423_v3, %v8808_v26  ;;  %v10425_v44 = vld [vmem:[#allocation101_spill] sm:$0xff]  ;;  %v10429_v3 = vld [vmem:[#allocation94_spill] sm:$0xff] }
 0x32b   : > { %v9171_v49 = vpop.permute.xlu1 %4002  ;;  %4157 = vperm.xlu0 %6561, %v9163_v47   ;;  %4122 = vperm.xlu1 %6560, %v9159_v38   ;;  %6746 = vpow2.f32 %v2939_v55  ;;  %v10424_v47 = vld [vmem:[#allocation21_spill] sm:$0xff]  ;;  %v2842_v0 = vsub.f32 %v10425_v44, %v8831_v51  ;;  %v3409_v36 = vmul.f32 1.442695, %v3322_v37 }
 0x32c   : > { %10420 = vst [vmem:[#allocation17_spill] sm:$0xff] %v9171_v49  ;;  %6748 = vpow2.f32 %v2953_v27  ;;  %v2947_v38 = vmul.f32 1.442695, %v2835_v46 }
 0x32d   : > { %6750 = vpow2.f32 %v2957_v61  ;;  %v2961_v51 = vmul.f32 1.442695, %v2842_v0  ;;  %v10430_v61 = vld [vmem:[#allocation107_spill] sm:$0xff] }
 0x32e   : > { %v9181_v39 = vpop.eup %6732  ;;  %v9185_v62 = vpop.permute.xlu0 %4027  ;;  %6752 = vpow2.f32 %v3405_v20  ;;  %v2846_v37 = vsub.f32 %v10430_v61, %v8871_v34  ;;  %v10437_v34 = vld [vmem:[#allocation111_spill] sm:$0xff] }
 0x32f   : > { %v9183_v33 = vpop.eup %6734  ;;  %10422 = vst [vmem:[#allocation89_spill] sm:$0xff] %v9185_v62  ;;  %v3082_v19 = vpop.permute.xlu1 %3081  ;;  %v4332_v41 = vpack.c.bf16 %v9173_v16, %v9181_v39  ;;  %4167 = vperm.xlu0 %6561, %v9166_v13   ;;  %4132 = vperm.xlu1 %6560, %v9153_v28   ;;  %6754 = vpow2.f32 %v3407_v59  ;;  %v2837_v13 = vsub.f32 %v10429_v3, %v8788_v1  ;;  %v10432_v59 = vld [vmem:[#allocation100_spill] sm:$0xff]  ;;  %v10434_v1 = vld [vmem:[#allocation103_spill] sm:$0xff] }
 0x330   : > { %v3319_v25 = vsub.f32 %v10424_v47, %v3082_v19  ;;  %v4333_v55 = vpack.c.bf16 %v9183_v33, %v9177_v23  ;;  %v9198_v5 = vpop.eup %6736  ;;  %v2839_v46 = vsub.f32 %v10434_v1, %v8848_v60  ;;  %v2969_v3 = vmul.f32 1.442695, %v2846_v37  ;;  %v10439_v60 = vld [vmem:[#allocation119_spill] sm:$0xff] }
 0x331   : > { %6360 = vmatprep.mubr.bf16.mxu1 %v4332_v41  ;;  %10426 = vst [vmem:[#allocation82_spill] sm:$0xff] %v9198_v5  ;;  %v9200_v26 = vpop.eup %6738  ;;  %v2841_v41 = vsub.f32 %v10432_v59, %v8828_v30  ;;  %v2951_v0 = vmul.f32 1.442695, %v2837_v13  ;;  %v2848_v61 = vsub.f32 %v10439_v60, %v8930_v29 }
 0x332   : > { %v3403_v27 = vmul.f32 1.442695, %v3319_v25  ;;  %6361 = vmatmul.mubr.bf16.gmra.mrb[16].mxu1 %v4333_v55  ;;  %10427 = vst [vmem:[#allocation121_spill] sm:$0xff] %v9200_v26  ;;  %v3107_v47 = vpop.permute.xlu0 %3106  ;;  %v9210_v20 = vpop.eup %6740 }
 0x333   : > { %v9202_v19 = vpop.permute.xlu1 %4032  ;;  %4177 = vperm.xlu0 %6561, %v9200_v26   ;;  %4142 = vperm.xlu1 %6560, %v9198_v5   ;;  %10431 = vst [vmem:[#allocation88_spill] sm:$0xff] %v9210_v20  ;;  %v9214_v25 = vpop.eup %6742  ;;  %v2959_v1 = vmul.f32 1.442695, %v2841_v41  ;;  %v10441_v26 = vld [vmem:[#allocation26_spill] sm:$0xff]  ;;  %v2955_v5 = vmul.f32 1.442695, %v2839_v46 }
 0x334   : > { %10428 = vst [vmem:[#allocation98_spill] sm:$0xff] %v9202_v19  ;;  %6756 = vpow2.f32 %v3403_v27  ;;  %10433 = vst [vmem:[#allocation91_spill] sm:$0xff] %v9214_v25  ;;  %v9220_v27 = vpop.eup %6744  ;;  %v3324_v13 = vsub.f32 %v10441_v26, %v3107_v47  ;;  %v2973_v26 = vmul.f32 1.442695, %v2848_v61  ;;  %v10445_v47 = vld [vmem:[#allocation24_spill] sm:$0xff] }
 0x335   : > { %6758 = vpow2.f32 %v3409_v36  ;;  %10436 = vst [vmem:[#allocation104_spill] sm:$0xff] %v9220_v27  ;;  %v2844_v36 = vsub.f32 %v10437_v34, %v8889_v58  ;;  %v9226_v30 = vpop.eup %6746  ;;  %v10443_v58 = vld [vmem:[#allocation23_spill] sm:$0xff]  ;;  %v3326_v37 = vsub.f32 %v10445_v47, %v9169_v6 }
 0x336   : > { %v9218_v55 = vpop.permute.xlu0 %4057  ;;  %6760 = vpow2.f32 %v2947_v38  ;;  %10438 = vst [vmem:[#allocation22_spill] sm:$0xff] %v9226_v30  ;;  %v9230_v59 = vpop.eup %6748  ;;  %v3413_v46 = vmul.f32 1.442695, %v3324_v13 }
 0x337   : > { %10435 = vst [vmem:[#allocation95_spill] sm:$0xff] %v9218_v55  ;;  %v3112_v44 = vpop.permute.xlu1 %3111  ;;  %4187 = vperm.xlu0 %6561, %v9214_v25   ;;  %4152 = vperm.xlu1 %6560, %v9210_v20   ;;  %6762 = vpow2.f32 %v2961_v51  ;;  %10440 = vst [vmem:[#allocation19_spill] sm:$0xff] %v9230_v59  ;;  %v9233_v38 = vpop.eup %6750  ;;  %v2965_v51 = vmul.f32 1.442695, %v2844_v36  ;;  %v3417_v13 = vmul.f32 1.442695, %v3326_v37 }
 0x338   : > { %10442 = vst [vmem:[#allocation20_spill] sm:$0xff] %v9233_v38  ;;  %v3325_v34 = vsub.f32 %v10443_v58, %v3112_v44  ;;  %v9240_v28 = vpop.eup %6752  ;;  %6764 = vpow2.f32 %v2951_v0 }
 0x339   : > { %v9244_v29 = vpop.eup %6754  ;;  %6766 = vpow2.f32 %v2969_v3  ;;  %v10447_v3 = vld [vmem:[#allocation25_spill] sm:$0xff] }
 0x33a   : > { %v9236_v25 = vpop.permute.xlu0 %3136  ;;  %6768 = vpow2.f32 %v2959_v1  ;;  %v3415_v0 = vmul.f32 1.442695, %v3325_v34  ;;  %v10448_v1 = vld [vmem:[#allocation106_spill] sm:$0xff] }
 0x33b   : > { %v9238_v20 = vpop.permute.xlu1 %4022  ;;  %4197 = vperm.xlu0 %6561, %v9230_v59   ;;  %4162 = vperm.xlu1 %6560, %v9226_v30   ;;  %6770 = vpow2.f32 %v2955_v5  ;;  %v2845_v5 = vsub.f32 %v10448_v1, %v10389_v15  ;;  %v10462_v59 = vld [vmem:[#allocation27_spill] sm:$0xff] }
 0x33c   : > { %10444 = vst [vmem:[#allocation97_spill] sm:$0xff] %v9238_v20  ;;  %6772 = vpow2.f32 %v2965_v51 }
 0x33d   : > { %6774 = vpow2.f32 %v2973_v26  ;;  %v2967_v15 = vmul.f32 1.442695, %v2845_v5  ;;  %v10452_v26 = vld [vmem:[#allocation110_spill] sm:$0xff] }
 0x33e   : > { %v9248_v41 = vpop.eup %6756  ;;  %v9252_v36 = vpop.permute.xlu0 %4047  ;;  %6776 = vpow2.f32 %v3413_v46  ;;  %v2843_v37 = vsub.f32 %v10452_v26, %v8886_v42  ;;  %v10458_v42 = vld [vmem:[#allocation118_spill] sm:$0xff] }
 0x33f   : > { %v9250_v44 = vpop.eup %6758  ;;  %10446 = vst [vmem:[#allocation21_spill] sm:$0xff] %v9252_v36  ;;  %v3102_v60 = vpop.permute.xlu1 %3101  ;;  %v4334_v58 = vpack.c.bf16 %v9240_v28, %v9248_v41  ;;  %4207 = vperm.xlu0 %6561, %v9233_v38   ;;  %4172 = vperm.xlu1 %6560, %v9220_v27   ;;  %6778 = vpow2.f32 %v3415_v0  ;;  %v10460_v26 = vld [vmem:[#allocation30_spill] sm:$0xff] }
 0x340   : > { %v3323_v61 = vsub.f32 %v10447_v3, %v3102_v60  ;;  %v4335_v6 = vpack.c.bf16 %v9250_v44, %v9244_v29  ;;  %v9263_v34 = vpop.eup %6760  ;;  %v2963_v5 = vmul.f32 1.442695, %v2843_v37  ;;  %v10464_v37 = vld [vmem:[#allocation28_spill] sm:$0xff] }
 0x341   : > { %6364 = vmatprep.mubr.bf16.mxu1 %v4334_v58  ;;  %10449 = vst [vmem:[#allocation101_spill] sm:$0xff] %v9263_v34  ;;  %v9265_v51 = vpop.eup %6762 }
 0x342   : > { %v3411_v47 = vmul.f32 1.442695, %v3323_v61  ;;  %6365 = vmatmul.mubr.bf16.gmra.mrb[20].mxu1 %v4335_v6  ;;  %10450 = vst [vmem:[#allocation94_spill] sm:$0xff] %v9265_v51  ;;  %v3127_v60 = vpop.permute.xlu0 %3126  ;;  %v9273_v58 = vpop.eup %6764 }
 0x343   : > { %v9267_v3 = vpop.permute.xlu1 %4052  ;;  %4217 = vperm.xlu0 %6561, %v9265_v51   ;;  %4182 = vperm.xlu1 %6560, %v9263_v34   ;;  %10453 = vst [vmem:[#allocation100_spill] sm:$0xff] %v9273_v58  ;;  %v9275_v46 = vpop.eup %6766  ;;  %v3328_v38 = vsub.f32 %v10460_v26, %v3127_v60  ;;  %v3330_v60 = vsub.f32 %v10464_v37, %v9236_v25 }
 0x344   : > { %10451 = vst [vmem:[#allocation107_spill] sm:$0xff] %v9267_v3  ;;  %6780 = vpow2.f32 %v3411_v47  ;;  %10454 = vst [vmem:[#allocation103_spill] sm:$0xff] %v9275_v46  ;;  %v9279_v6 = vpop.eup %6768 }
 0x345   : > { %6782 = vpow2.f32 %v3417_v13  ;;  %10456 = vst [vmem:[#allocation119_spill] sm:$0xff] %v9279_v6  ;;  %v9283_v1 = vpop.eup %6770  ;;  %v2847_v13 = vsub.f32 %v10458_v42, %v10405_v14  ;;  %v3421_v26 = vmul.f32 1.442695, %v3328_v38  ;;  %v3425_v38 = vmul.f32 1.442695, %v3330_v60 }
 0x346   : > { %v9277_v61 = vpop.permute.xlu0 %4077  ;;  %10457 = vst [vmem:[#allocation26_spill] sm:$0xff] %v9283_v1  ;;  %6784 = vpow2.f32 %v2967_v15  ;;  %v9287_v47 = vpop.eup %6772 }
 0x347   : > { %10455 = vst [vmem:[#allocation111_spill] sm:$0xff] %v9277_v61  ;;  %v3132_v0 = vpop.permute.xlu1 %3131  ;;  %4237 = vperm.xlu0 %6561, %v9275_v46   ;;  %4192 = vperm.xlu1 %6560, %v9273_v58   ;;  %10459 = vst [vmem:[#allocation23_spill] sm:$0xff] %v9287_v47  ;;  %v9290_v51 = vpop.eup %6774  ;;  %6786 = vpow2.f32 %v2963_v5  ;;  %v2971_v14 = vmul.f32 1.442695, %v2847_v13 }
 0x348   : > { %10461 = vst [vmem:[#allocation24_spill] sm:$0xff] %v9290_v51  ;;  %v3329_v34 = vsub.f32 %v10462_v59, %v3132_v0  ;;  %v9295_v46 = vpop.eup %6776 }
 0x349   : > { %v9299_v15 = vpop.eup %6778  ;;  %6788 = vpow2.f32 %v2971_v14 }
 0x34a   : > { %v3157_v30 = vpop.permute.xlu0 %3156  ;;  %v3423_v0 = vmul.f32 1.442695, %v3329_v34  ;;  %6790 = vpow2.f32 %v3421_v26  ;;  %v10473_v26 = vld [vmem:[#allocation31_spill] sm:$0xff] }
 0x34b   : > { %v9293_v27 = vpop.permute.xlu1 %4042  ;;  %4227 = vperm.xlu0 %6561, %v9287_v47   ;;  %4202 = vperm.xlu1 %6560, %v9283_v1   ;;  %v10466_v1 = vld [vmem:[#allocation29_spill] sm:$0xff] }
 0x34c   : > { %10463 = vst [vmem:[#allocation25_spill] sm:$0xff] %v9293_v27  ;;  %6792 = vpow2.f32 %v3423_v0  ;;  %v10479_v27 = vld [vmem:[#allocation38_spill] sm:$0xff] }
 0x34e   : > { %v9303_v42 = vpop.eup %6780  ;;  %v9307_v58 = vpop.permute.xlu0 %4067 }
 0x34f   : > { %v9305_v59 = vpop.eup %6782  ;;  %10465 = vst [vmem:[#allocation106_spill] sm:$0xff] %v9307_v58  ;;  %v3122_v61 = vpop.permute.xlu1 %3121  ;;  %v4336_v47 = vpack.c.bf16 %v9295_v46, %v9303_v42  ;;  %4247 = vperm.xlu0 %6561, %v9290_v51   ;;  %4212 = vperm.xlu1 %6560, %v9279_v6  }
 0x350   : > { %v3327_v36 = vsub.f32 %v10466_v1, %v3122_v61  ;;  %v4337_v25 = vpack.c.bf16 %v9305_v59, %v9299_v15  ;;  %v9316_v5 = vpop.eup %6784 }
 0x351   : > { %6368 = vmatprep.mubr.bf16.mxu1 %v4336_v47  ;;  %10467 = vst [vmem:[#allocation110_spill] sm:$0xff] %v9316_v5  ;;  %v9321_v61 = vpop.eup %6786  ;;  %v10471_v47 = vld [vmem:[#allocation34_spill] sm:$0xff] }
 0x352   : > { %v3419_v34 = vmul.f32 1.442695, %v3327_v36  ;;  %6369 = vmatmul.mubr.bf16.gmra.mrb[24].mxu1 %v4337_v25  ;;  %v3147_v13 = vpop.permute.xlu0 %3146  ;;  %10469 = vst [vmem:[#allocation30_spill] sm:$0xff] %v9321_v61 }
 0x353   : > { %v9318_v37 = vpop.permute.xlu1 %4072  ;;  %4232 = vperm.xlu1 %6560, %v9316_v5   ;;  %v3332_v36 = vsub.f32 %v10471_v47, %v3147_v13  ;;  %v9327_v60 = vpop.eup %6788  ;;  %v10475_v5 = vld [vmem:[#allocation32_spill] sm:$0xff] }
 0x354   : > { %10468 = vst [vmem:[#allocation118_spill] sm:$0xff] %v9318_v37  ;;  %6794 = vpow2.f32 %v3419_v34  ;;  %10472 = vst [vmem:[#allocation28_spill] sm:$0xff] %v9327_v60  ;;  %v9332_v34 = vpop.eup %6790  ;;  %v3334_v6 = vsub.f32 %v10475_v5, %v3157_v30 }
 0x355   : > { %6796 = vpow2.f32 %v3425_v38 }
 0x356   : > { %v9323_v1 = vpop.permute.xlu0 %4097  ;;  %v9335_v38 = vpop.eup %6792  ;;  %v3433_v55 = vmul.f32 1.442695, %v3334_v6  ;;  %v10482_v6 = vld [vmem:[#allocation35_spill] sm:$0xff] }
 0x357   : > { %10470 = vst [vmem:[#allocation27_spill] sm:$0xff] %v9323_v1  ;;  %v3152_v14 = vpop.permute.xlu1 %3151  ;;  %4222 = vperm.xlu1 %6560, %v9321_v61   ;;  %v3429_v61 = vmul.f32 1.442695, %v3332_v36 }
 0x358   : > { %v3333_v0 = vsub.f32 %v10473_v26, %v3152_v14 }
 0x359   : > { %6798 = vpow2.f32 %v3429_v61 }
 0x35a   : > { %v3177_v25 = vpop.permute.xlu0 %3176  ;;  %v3431_v13 = vmul.f32 1.442695, %v3333_v0 }
 0x35b   : > { %v9330_v51 = vpop.permute.xlu1 %4062  ;;  %4242 = vperm.xlu1 %6560, %v9327_v60  }
 0x35c   : > { %10474 = vst [vmem:[#allocation29_spill] sm:$0xff] %v9330_v51  ;;  %v10477_v51 = vld [vmem:[#allocation33_spill] sm:$0xff]  ;;  %6800 = vpow2.f32 %v3431_v13  ;;  %v10483_v13 = vld [vmem:[#allocation36_spill] sm:$0xff] }
 0x35e   : > { %v9338_v1 = vpop.eup %6794  ;;  %v9342_v47 = vpop.permute.xlu0 %4087 }
 0x35f   : > { %v9340_v58 = vpop.eup %6796  ;;  %10476 = vst [vmem:[#allocation34_spill] sm:$0xff] %v9342_v47  ;;  %v3142_v14 = vpop.permute.xlu1 %3141  ;;  %v4338_v26 = vpack.c.bf16 %v9332_v34, %v9338_v1 }
 0x360   : > { %v3331_v37 = vsub.f32 %v10477_v51, %v3142_v14  ;;  %v4339_v60 = vpack.c.bf16 %v9340_v58, %v9335_v38 }
 0x361   : > { %6372 = vmatprep.mubr.bf16.mxu1 %v4338_v26  ;;  %v3338_v26 = vsub.f32 %v10483_v13, %v3177_v25 }
 0x362   : > { %v3427_v30 = vmul.f32 1.442695, %v3331_v37  ;;  %6373 = vmatmul.mubr.bf16.gmra.mrb[28].mxu1 %v4339_v60  ;;  %v3167_v5 = vpop.permute.xlu0 %3166 }
 0x363   : > { %v9349_v36 = vpop.permute.xlu1 %4092  ;;  %v3336_v3 = vsub.f32 %v10479_v27, %v3167_v5  ;;  %v9356_v14 = vpop.eup %6798 }
 0x364   : > { %10478 = vst [vmem:[#allocation31_spill] sm:$0xff] %v9349_v36  ;;  %6802 = vpow2.f32 %v3427_v30 }
 0x365   : > { %6804 = vpow2.f32 %v3433_v55  ;;  %v3437_v55 = vmul.f32 1.442695, %v3336_v3 }
 0x366   : > { %v3197_v0 = vpop.permute.xlu0 %3196  ;;  %v9359_v37 = vpop.eup %6800 }
 0x367   : > { %v3172_v47 = vpop.permute.xlu1 %3171  ;;  %6806 = vpow2.f32 %v3437_v55 }
 0x368   : > { %v3337_v61 = vsub.f32 %v10482_v6, %v3172_v47  ;;  %v3441_v6 = vmul.f32 1.442695, %v3338_v26  ;;  %v10488_v26 = vld [vmem:[#allocation40_spill] sm:$0xff] }
 0x36a   : > { %v9352_v62 = vpop.permute.xlu0 %4107 }
 0x36b   : > { %10480 = vst [vmem:[#allocation32_spill] sm:$0xff] %v9352_v62  ;;  %v9354_v51 = vpop.permute.xlu1 %4082  ;;  %v3439_v62 = vmul.f32 1.442695, %v3337_v61 }
 0x36c   : > { %10481 = vst [vmem:[#allocation33_spill] sm:$0xff] %v9354_v51  ;;  %v10484_v51 = vld [vmem:[#allocation37_spill] sm:$0xff] }
 0x36d   : > { %6808 = vpow2.f32 %v3439_v62  ;;  %v10489_v62 = vld [vmem:[#allocation41_spill] sm:$0xff] }
 0x36e   : > { %v9361_v60 = vpop.eup %6802  ;;  %v3187_v36 = vpop.permute.xlu0 %3186  ;;  %3623 = vadd.xlane.f32.xlu0 %v8990_v45  ;;  %v10485_v45 = vld [vmem:[#allocation42_spill] sm:$0xff] }
 0x36f   : > { %v9364_v30 = vpop.eup %6804  ;;  %v3162_v27 = vpop.permute.xlu1 %3161  ;;  %v4340_v5 = vpack.c.bf16 %v9356_v14, %v9361_v60  ;;  %v3340_v13 = vsub.f32 %v10485_v45, %v3187_v36 }
 0x370   : > { %v3335_v20 = vsub.f32 %v10484_v51, %v3162_v27  ;;  %v4341_v47 = vpack.c.bf16 %v9364_v30, %v9359_v37  ;;  %v10487_v27 = vld [vmem:[#allocation39_spill] sm:$0xff] }
 0x371   : > { %6376 = vmatprep.mubr.bf16.mxu1 %v4340_v5 }
 0x372   : > { %v3435_v19 = vmul.f32 1.442695, %v3335_v20  ;;  %6377 = vmatmul.mubr.bf16.gmra.mrb[32].mxu1 %v4341_v47  ;;  %v3217_v25 = vpop.permute.xlu0 %3216  ;;  %3621 = vadd.xlane.f32.xlu0 %v8987_v10  ;;  %v3342_v20 = vsub.f32 %v10488_v26, %v3197_v0  ;;  %v3445_v47 = vmul.f32 1.442695, %v3340_v13 }
 0x373   : > { %v3192_v3 = vpop.permute.xlu1 %3191 }
 0x374   : > { %6810 = vpow2.f32 %v3435_v19  ;;  %v3341_v5 = vsub.f32 %v10487_v27, %v3192_v3  ;;  %v3449_v45 = vmul.f32 1.442695, %v3342_v20  ;;  %v10490_v3 = vld [vmem:[#allocation46_spill] sm:$0xff] }
 0x375   : > { %6812 = vpow2.f32 %v3441_v6  ;;  %v9381_v6 = vpop.eup %6806 }
 0x376   : > { %v3207_v61 = vpop.permute.xlu0 %3206  ;;  %3631 = vadd.xlane.f32.xlu0 %v9025_v21  ;;  %v3447_v49 = vmul.f32 1.442695, %v3341_v5  ;;  %6814 = vpow2.f32 %v3445_v47  ;;  %v10491_v5 = vld [vmem:[#allocation43_spill] sm:$0xff] }
 0x377   : > { %v9375_v51 = vpop.permute.xlu1 %4102  ;;  %v9383_v36 = vpop.eup %6808  ;;  %v3344_v27 = vsub.f32 %v10490_v3, %v3207_v61  ;;  %v10492_v61 = vld [vmem:[#allocation44_spill] sm:$0xff]  ;;  %v10493_v3 = vld [vmem:[#allocation45_spill] sm:$0xff] }
 0x378   : > { %10486 = vst [vmem:[#allocation38_spill] sm:$0xff] %v9375_v51  ;;  %6816 = vpow2.f32 %v3447_v49 }
 0x37a   : > { %v3237_v55 = vpop.permute.xlu0 %3236  ;;  %3627 = vadd.xlane.f32.xlu0 %v9015_v35 }
 0x37b   : > { %v3182_v10 = vpop.permute.xlu1 %3181 }
 0x37c   : > { %v3339_v19 = vsub.f32 %v10489_v62, %v3182_v10  ;;  %v3346_v10 = vsub.f32 %v10492_v61, %v3217_v25 }
 0x37e   : > { %v3443_v21 = vmul.f32 1.442695, %v3339_v19  ;;  %v9385_v32 = vpop.eup %6810  ;;  %v3227_v0 = vpop.permute.xlu0 %3226  ;;  %3639 = vadd.xlane.f32.xlu0 %v9043_v54  ;;  %v3453_v54 = vmul.f32 1.442695, %v3344_v27  ;;  %v10495_v27 = vld [vmem:[#allocation47_spill] sm:$0xff] }
 0x37f   : > { %v3212_v13 = vpop.permute.xlu1 %3211  ;;  %v9389_v35 = vpop.eup %6812  ;;  %3619 = vadd.xlane.f32.xlu1 %v8980_v7  ;;  %v4342_v20 = vpack.c.bf16 %v9381_v6, %v9385_v32 }
 0x380   : > { %v3345_v26 = vsub.f32 %v10491_v5, %v3212_v13  ;;  %6818 = vpow2.f32 %v3443_v21  ;;  %v4343_v47 = vpack.c.bf16 %v9389_v35, %v9383_v36  ;;  %v3457_v13 = vmul.f32 1.442695, %v3346_v10  ;;  %v10494_v5 = vld [vmem:[#allocation50_spill] sm:$0xff] }
 0x381   : > { %6820 = vpow2.f32 %v3449_v45  ;;  %6380 = vmatprep.mubr.bf16.mxu1 %v4342_v20  ;;  %v3348_v51 = vsub.f32 %v10494_v5, %v3227_v0 }
 0x382   : > { %6381 = vmatmul.mubr.bf16.gmra.mrb[36].mxu1 %v4343_v47  ;;  %v3257_v62 = vpop.permute.xlu0 %3256  ;;  %3635 = vadd.xlane.f32.xlu0 %v9046_v43  ;;  %v3455_v19 = vmul.f32 1.442695, %v3345_v26  ;;  %6822 = vpow2.f32 %v3453_v54  ;;  %v9405_v43 = vpop.eup %6814 }
 0x383   : > { %v3202_v49 = vpop.permute.xlu1 %3201  ;;  %3625 = vadd.xlane.f32.xlu1 %v8985_v52  ;;  %v9407_v26 = vpop.eup %6816  ;;  %v10496_v52 = vld [vmem:[#allocation48_spill] sm:$0xff]  ;;  %v3461_v0 = vmul.f32 1.442695, %v3348_v51 }
 0x384   : > { %v3343_v7 = vsub.f32 %v10493_v3, %v3202_v49  ;;  %6824 = vpow2.f32 %v3455_v19  ;;  %v3350_v47 = vsub.f32 %v10496_v52, %v3237_v55  ;;  %v10500_v52 = vld [vmem:[#allocation52_spill] sm:$0xff] }
 0x386   : > { %v3451_v21 = vmul.f32 1.442695, %v3343_v7  ;;  %v3247_v45 = vpop.permute.xlu0 %3246  ;;  %3647 = vadd.xlane.f32.xlu0 %v9112_v12  ;;  %v3465_v7 = vmul.f32 1.442695, %v3350_v47  ;;  %v3354_v47 = vsub.f32 %v10500_v52, %v3257_v62 }
 0x387   : > { %v3232_v25 = vpop.permute.xlu1 %3231  ;;  %3633 = vadd.xlane.f32.xlu1 %v9017_v63  ;;  %v10497_v63 = vld [vmem:[#allocation49_spill] sm:$0xff] }
 0x388   : > { %v3349_v20 = vsub.f32 %v10495_v27, %v3232_v25  ;;  %6826 = vpow2.f32 %v3451_v21  ;;  %v10499_v25 = vld [vmem:[#allocation51_spill] sm:$0xff] }
 0x389   : > { %6828 = vpow2.f32 %v3457_v13  ;;  %v10498_v13 = vld [vmem:[#allocation54_spill] sm:$0xff] }
 0x38a   : > { %v9410_v61 = vpop.eup %6818  ;;  %v9412_v10 = vpop.permute.xlu0 %3276  ;;  %3643 = vadd.xlane.f32.xlu0 %v9116_v4  ;;  %v3463_v49 = vmul.f32 1.442695, %v3349_v20  ;;  %6830 = vpow2.f32 %v3461_v0  ;;  %v3352_v4 = vsub.f32 %v10498_v13, %v3247_v45 }
 0x38b   : > { %v3222_v12 = vpop.permute.xlu1 %3221  ;;  %v9415_v54 = vpop.eup %6820  ;;  %3629 = vadd.xlane.f32.xlu1 %v9019_v57  ;;  %v4344_v3 = vpack.c.bf16 %v9405_v43, %v9410_v61 }
 0x38c   : > { %v3347_v19 = vsub.f32 %v10497_v63, %v3222_v12  ;;  %v4345_v55 = vpack.c.bf16 %v9415_v54, %v9407_v26  ;;  %6832 = vpow2.f32 %v3463_v49  ;;  %v9427_v27 = vpop.eup %6822  ;;  %v3469_v45 = vmul.f32 1.442695, %v3352_v4  ;;  %v10501_v63 = vld [vmem:[#allocation53_spill] sm:$0xff]  ;;  %v10503_v4 = vld [vmem:[#allocation55_spill] sm:$0xff] }
 0x38d   : > { %6384 = vmatprep.mubr.bf16.mxu1 %v4344_v3 }
 0x38e   : > { %v3459_v51 = vmul.f32 1.442695, %v3347_v19  ;;  %6385 = vmatmul.mubr.bf16.gmra.mrb[40].mxu1 %v4345_v55  ;;  %v3267_v21 = vpop.permute.xlu0 %3266  ;;  %3655 = vadd.xlane.f32.xlu0 %v9177_v23  ;;  %v9429_v20 = vpop.eup %6824  ;;  %v3473_v55 = vmul.f32 1.442695, %v3354_v47 }
 0x38f   : > { %v3252_v5 = vpop.permute.xlu1 %3251  ;;  %3641 = vadd.xlane.f32.xlu1 %v9053_v31 }
 0x390   : > { %v3353_v57 = vsub.f32 %v10499_v25, %v3252_v5  ;;  %6834 = vpow2.f32 %v3459_v51 }
 0x391   : > { %6836 = vpow2.f32 %v3465_v7  ;;  %v10502_v7 = vld [vmem:[#allocation58_spill] sm:$0xff] }
 0x392   : > { %v9432_v0 = vpop.eup %6826  ;;  %3651 = vadd.xlane.f32.xlu0 %v9181_v39  ;;  %v3471_v49 = vmul.f32 1.442695, %v3353_v57  ;;  %v3297_v3 = vpop.permute.xlu0 %3296  ;;  %v3356_v51 = vsub.f32 %v10502_v7, %v3267_v21  ;;  %6838 = vpow2.f32 %v3469_v45  ;;  %v10504_v21 = vld [vmem:[#allocation56_spill] sm:$0xff] }
 0x393   : > { %v3242_v23 = vpop.permute.xlu1 %3241  ;;  %v9435_v12 = vpop.eup %6828  ;;  %3637 = vadd.xlane.f32.xlu1 %v9041_v24  ;;  %v4346_v31 = vpack.c.bf16 %v9427_v27, %v9432_v0  ;;  %v3358_v57 = vsub.f32 %v10504_v21, %v9412_v10 }
 0x394   : > { %v3351_v19 = vsub.f32 %v10501_v63, %v3242_v23  ;;  %v4347_v62 = vpack.c.bf16 %v9435_v12, %v9429_v20  ;;  %6840 = vpow2.f32 %v3471_v49  ;;  %v9447_v5 = vpop.eup %6830  ;;  %v3477_v52 = vmul.f32 1.442695, %v3356_v51  ;;  %v10507_v51 = vld [vmem:[#allocation59_spill] sm:$0xff] }
 0x395   : > { %6388 = vmatprep.mubr.bf16.mxu1 %v4346_v31  ;;  %v3481_v31 = vmul.f32 1.442695, %v3358_v57 }
 0x396   : > { %v3467_v13 = vmul.f32 1.442695, %v3351_v19  ;;  %6389 = vmatmul.mubr.bf16.gmra.mrb[44].mxu1 %v4347_v62  ;;  %3663 = vadd.xlane.f32.xlu0 %v9244_v29  ;;  %v9449_v25 = vpop.eup %6832  ;;  %v3287_v45 = vpop.permute.xlu0 %3286  ;;  %v10506_v62 = vld [vmem:[#allocation62_spill] sm:$0xff] }
 0x397   : > { %v3272_v39 = vpop.permute.xlu1 %3271  ;;  %3649 = vadd.xlane.f32.xlu1 %v9118_v50  ;;  %v10505_v50 = vld [vmem:[#allocation57_spill] sm:$0xff] }
 0x398   : > { %v3357_v24 = vsub.f32 %v10503_v4, %v3272_v39  ;;  %6842 = vpow2.f32 %v3467_v13  ;;  %v10508_v4 = vld [vmem:[#allocation60_spill] sm:$0xff] }
 0x399   : > { %6844 = vpow2.f32 %v3473_v55  ;;  %v3360_v55 = vsub.f32 %v10506_v62, %v3287_v45 }
 0x39a   : > { %v9453_v47 = vpop.eup %6834  ;;  %v3479_v29 = vmul.f32 1.442695, %v3357_v24  ;;  %3659 = vadd.xlane.f32.xlu0 %v9248_v41  ;;  %6846 = vpow2.f32 %v3477_v52  ;;  %v3362_v24 = vsub.f32 %v10508_v4, %v3297_v3  ;;  %v3876_v4 = vld [vmem:[#allocation4] sm:$0xff] }
 0x39b   : > { %v3262_v23 = vpop.permute.xlu1 %3261  ;;  %v9456_v49 = vpop.eup %6836  ;;  %3645 = vadd.xlane.f32.xlu1 %v9105_v2  ;;  %v4348_v19 = vpack.c.bf16 %v9447_v5, %v9453_v47  ;;  %v3485_v21 = vmul.f32 1.442695, %v3360_v55 }
 0x39c   : > { %v3355_v63 = vsub.f32 %v10505_v50, %v3262_v23  ;;  %v4349_v10 = vpack.c.bf16 %v9456_v49, %v9449_v25  ;;  %6848 = vpow2.f32 %v3479_v29  ;;  %v9468_v13 = vpop.eup %6838  ;;  %v10509_v29 = vld [vmem:[#allocation61_spill] sm:$0xff]  ;;  %v3489_v3 = vmul.f32 1.442695, %v3362_v24 }
 0x39d   : > { %6392 = vmatprep.mubr.bf16.mxu1 %v4348_v19 }
 0x39e   : > { %v3475_v7 = vmul.f32 1.442695, %v3355_v63  ;;  %6393 = vmatmul.mubr.bf16.gmra.mrb[48].mxu1 %v4349_v10  ;;  %3671 = vadd.xlane.f32.xlu0 %v9299_v15  ;;  %v9470_v39 = vpop.eup %6840  ;;  %v9492_v10 = vpop.permute.xlu0 %4117 }
 0x39f   : > { %v3292_v41 = vpop.permute.xlu1 %3291  ;;  %3657 = vadd.xlane.f32.xlu1 %v9183_v33 }
 0x3a0   : > { %6850 = vpow2.f32 %v3475_v7  ;;  %v3361_v2 = vsub.f32 %v10507_v51, %v3292_v41 }
 0x3a1   : > { %6852 = vpow2.f32 %v3481_v31 }
 0x3a2   : > { %v9473_v57 = vpop.eup %6842  ;;  %v3487_v52 = vmul.f32 1.442695, %v3361_v2  ;;  %3667 = vadd.xlane.f32.xlu0 %v9303_v42  ;;  %6854 = vpow2.f32 %v3485_v21  ;;  %v9505_v55 = vpop.permute.xlu0 %4127 }
 0x3a3   : > { %v3282_v15 = vpop.permute.xlu1 %3281  ;;  %v9476_v45 = vpop.eup %6844  ;;  %3653 = vadd.xlane.f32.xlu1 %v9173_v16  ;;  %v4350_v33 = vpack.c.bf16 %v9468_v13, %v9473_v57 }
 0x3a4   : > { %v3359_v23 = vsub.f32 %v10509_v29, %v3282_v15  ;;  %v4351_v50 = vpack.c.bf16 %v9476_v45, %v9470_v39  ;;  %6856 = vpow2.f32 %v3487_v52  ;;  %v9485_v42 = vpop.eup %6846 }
 0x3a5   : > { %6396 = vmatprep.mubr.bf16.mxu1 %v4350_v33 }
 0x3a6   : > { %v3483_v63 = vmul.f32 1.442695, %v3359_v23  ;;  %6397 = vmatmul.mubr.bf16.gmra.mrb[52].mxu1 %v4351_v50  ;;  %3679 = vadd.xlane.f32.xlu0 %v9335_v38  ;;  %v9488_v16 = vpop.eup %6848  ;;  %v9520_v51 = vpop.permute.xlu0 %4137 }
 0x3a7   : > { %3665 = vadd.xlane.f32.xlu1 %v9250_v44 }
 0x3a8   : > { %6858 = vpow2.f32 %v3483_v63 }
 0x3a9   : > { %6860 = vpow2.f32 %v3489_v3  ;;  %v3883_v3 = vld [vmem:[#allocation4 + $0x38] sm:$0xff] }
 0x3aa   : > { %v9490_v19 = vpop.eup %6850  ;;  %3675 = vadd.xlane.f32.xlu0 %v9338_v1 }
 0x3ab   : > { %v4352_v31 = vpack.c.bf16 %v9485_v42, %v9490_v19  ;;  %v9497_v62 = vpop.eup %6852  ;;  %3661 = vadd.xlane.f32.xlu1 %v9240_v28 }
 0x3ac   : > { %v4353_v44 = vpack.c.bf16 %v9497_v62, %v9488_v16  ;;  %v9503_v38 = vpop.eup %6854 }
 0x3ad   : > { %6400 = vmatprep.mubr.bf16.mxu1 %v4352_v31 }
 0x3ae   : > { %6401 = vmatmul.mubr.bf16.gmra.mrb[56].mxu1 %v4353_v44  ;;  %3687 = vadd.xlane.f32.xlu0 %v9359_v37  ;;  %v9508_v1 = vpop.eup %6856 }
 0x3af   : > { %3673 = vadd.xlane.f32.xlu1 %v9305_v59  ;;  %v9524_v59 = vpop.permute.xlu1 %4112 }
 0x3b2   : > { %v9510_v7 = vpop.eup %6858  ;;  %3683 = vadd.xlane.f32.xlu0 %v9361_v60  ;;  %v9527_v60 = vpop.permute.xlu0 %4147 }
 0x3b3   : > { %v4354_v28 = vpack.c.bf16 %v9503_v38, %v9510_v7  ;;  %v9515_v41 = vpop.eup %6860  ;;  %3669 = vadd.xlane.f32.xlu1 %v9295_v46  ;;  %v3878_v46 = vld [vmem:[#allocation4 + $0x10] sm:$0xff]  ;;  %v9532_v2 = vpop.permute.xlu1 %4122 }
 0x3b4   : > { %v4355_v37 = vpack.c.bf16 %v9515_v41, %v9508_v1 }
 0x3b5   : > { %6404 = vmatprep.mubr.bf16.mxu1 %v4354_v28 }
 0x3b6   : > { %6405 = vmatmul.mubr.bf16.gmra.mrb[60].mxu1 %v4355_v37  ;;  %3695 = vadd.xlane.f32.xlu0 %v9383_v36  ;;  %v9534_v24 = vpop.permute.xlu0 %4157  ;;  %v3879_v36 = vld [vmem:[#allocation4 + $0x18] sm:$0xff] }
 0x3b7   : > { %3681 = vadd.xlane.f32.xlu1 %v9340_v58  ;;  %v4262_v58 = vmul.f32 %v8999_v17, %v3878_v46  ;;  %v9542_v29 = vpop.permute.xlu1 %4132  ;;  %v10510_v37 = vld [vmem:[#allocation129_spill] sm:$0xff] }
 0x3ba   : > { %3691 = vadd.xlane.f32.xlu0 %v9385_v32  ;;  %v3877_v32 = vld [vmem:[#allocation4 + $0x8] sm:$0xff] }
 0x3bb   : > { %3677 = vadd.xlane.f32.xlu1 %v9332_v34  ;;  %v4260_v34 = vmul.f32 %v8969_v18, %v3876_v4  ;;  %v4261_v15 = vmul.f32 %v9023_v40, %v3877_v32  ;;  %v3887_v32 = vld [vmem:[#allocation4 + $0x58] sm:$0xff] }
 0x3be   : > { %3703 = vadd.xlane.f32.xlu0 %v9407_v26  ;;  %v4263_v26 = vmul.f32 %v8978_v56, %v3879_v36  ;;  %v9554_v56 = vpop.permute.xlu1 %4142 }
 0x3bf   : > { %3689 = vadd.xlane.f32.xlu1 %v9364_v30 }
 0x3c2   : > { %3699 = vadd.xlane.f32.xlu0 %v9410_v61  ;;  %v9545_v61 = vpop.permute.xlu0 %4167  ;;  %v9560_v50 = vpop.permute.xlu1 %4152 }
 0x3c3   : > { %3685 = vadd.xlane.f32.xlu1 %v9356_v14 }
 0x3c4   : > { %v6346_v21 = vpop.f32.mrb[0].mxu1 }
 0x3c5   : > { %v4695_v30 = vadd.f32 %v6346_v21, %v4262_v58  ;;  %v4438_v52 = vpop.f32.mrb[1].mxu1  ;;  %v3885_v21 = vld [vmem:[#allocation4 + $0x48] sm:$0xff] }
 0x3c6   : > { %v4693_v23 = vadd.f32 %v4438_v52, %v4260_v34  ;;  %v6347_v33 = vpop.f32.mrb[2].mxu1  ;;  %3711 = vadd.xlane.f32.xlu0 %v9429_v20  ;;  %v9556_v40 = vpop.permute.xlu0 %4177  ;;  %v3880_v20 = vld [vmem:[#allocation4 + $0x20] sm:$0xff] }
 0x3c7   : > { %4759 = vst.msk [vmem:[#allocation4 + $0x10] sm:$0xff] %vm1091_vm2, %v4695_v30  ;;  %v4696_v17 = vadd.f32 %v6347_v33, %v4263_v26  ;;  %v4441_v14 = vpop.f32.mrb[3].mxu1  ;;  %3697 = vadd.xlane.f32.xlu1 %v9389_v35  ;;  %v3882_v35 = vld [vmem:[#allocation4 + $0x30] sm:$0xff]  ;;  %v4264_v31 = vmul.f32 %v9051_v48, %v3880_v20  ;;  %v9572_v36 = vpop.permute.xlu1 %4162  ;;  %v10511_v52 = vld [vmem:[#allocation130_spill] sm:$0xff]  ;;  %v4269_v33 = vmul.f32 %v9068_v8, %v3885_v21 }
 0x3c8   : > { %4757 = vst.msk [vmem:[#allocation4] sm:$0xff] %vm1091_vm2, %v4693_v23  ;;  %v4694_v18 = vadd.f32 %v4441_v14, %v4261_v15  ;;  %v4271_v15 = vmul.f32 %v10511_v52, %v3887_v32  ;;  %v3493_v21 = vld [vmem:[#allocation3 + $0x10] sm:$0xff] }
 0x3c9   : > { %4760 = vst.msk [vmem:[#allocation4 + $0x18] sm:$0xff] %vm1091_vm2, %v4696_v17 }
 0x3ca   : > { %4758 = vst.msk [vmem:[#allocation4 + $0x8] sm:$0xff] %vm1091_vm2, %v4694_v18  ;;  %3707 = vadd.xlane.f32.xlu0 %v9432_v0  ;;  %v9563_v63 = vpop.permute.xlu0 %4187  ;;  %v4266_v0 = vmul.f32 %v9033_v9, %v3882_v35  ;;  %v10513_v35 = vld [vmem:[#allocation114_spill] sm:$0xff] }
 0x3cb   : > { %3693 = vadd.xlane.f32.xlu1 %v9381_v6  ;;  %v3881_v6 = vld [vmem:[#allocation4 + $0x28] sm:$0xff]  ;;  %v9582_v58 = vpop.permute.xlu1 %4172 }
 0x3cc   : > { %v4265_v46 = vmul.f32 %v10510_v37, %v3881_v6  ;;  %v10516_v37 = vld [vmem:[#allocation14_spill] sm:$0xff] }
 0x3ce   : > { %3719 = vadd.xlane.f32.xlu0 %v9449_v25  ;;  %v4267_v25 = vmul.f32 %v9006_v22, %v3883_v3  ;;  %v9575_v48 = vpop.permute.xlu0 %4197  ;;  %v3890_v3 = vld [vmem:[#allocation4 + $0x70] sm:$0xff] }
 0x3cf   : > { %3705 = vadd.xlane.f32.xlu1 %v9415_v54  ;;  %v9594_v14 = vpop.permute.xlu1 %4182 }
 0x3d2   : > { %3715 = vadd.xlane.f32.xlu0 %v9453_v47  ;;  %v9585_v34 = vpop.permute.xlu0 %4207 }
 0x3d3   : > { %3701 = vadd.xlane.f32.xlu1 %v9405_v43  ;;  %v9604_v8 = vpop.permute.xlu1 %4192 }
 0x3d5   : > { %v6350_v44 = vpop.f32.mrb[4].mxu1 }
 0x3d6   : > { %v4699_v54 = vadd.f32 %v6350_v44, %v4266_v0  ;;  %v4454_v28 = vpop.f32.mrb[5].mxu1  ;;  %3727 = vadd.xlane.f32.xlu0 %v9470_v39  ;;  %v3884_v39 = vld [vmem:[#allocation4 + $0x40] sm:$0xff]  ;;  %v3889_v44 = vld [vmem:[#allocation4 + $0x68] sm:$0xff] }
 0x3d7   : > { %v4697_v47 = vadd.f32 %v4454_v28, %v4264_v31  ;;  %v6351_v4 = vpop.f32.mrb[6].mxu1  ;;  %3713 = vadd.xlane.f32.xlu1 %v9435_v12  ;;  %v3886_v12 = vld [vmem:[#allocation4 + $0x50] sm:$0xff]  ;;  %v9613_v6 = vpop.permute.xlu1 %4202  ;;  %v3888_v0 = vld [vmem:[#allocation4 + $0x60] sm:$0xff] }
 0x3d8   : > { %4763 = vst.msk [vmem:[#allocation4 + $0x30] sm:$0xff] %vm1091_vm2, %v4699_v54  ;;  %v4700_v9 = vadd.f32 %v6351_v4, %v4267_v25  ;;  %v4457_v43 = vpop.f32.mrb[7].mxu1  ;;  %v4270_v26 = vmul.f32 %v9073_v53, %v3886_v12  ;;  %v10514_v25 = vld [vmem:[#allocation74_spill] sm:$0xff]  ;;  %v10515_v54 = vld [vmem:[#allocation17_spill] sm:$0xff] }
 0x3d9   : > { %4761 = vst.msk [vmem:[#allocation4 + $0x20] sm:$0xff] %vm1091_vm2, %v4697_v47  ;;  %v4698_v22 = vadd.f32 %v4457_v43, %v4265_v46  ;;  %v10517_v4 = vld [vmem:[#allocation77_spill] sm:$0xff] }
 0x3da   : > { %4764 = vst.msk [vmem:[#allocation4 + $0x38] sm:$0xff] %vm1091_vm2, %v4700_v9  ;;  %3723 = vadd.xlane.f32.xlu0 %v9473_v57  ;;  %v4268_v57 = vmul.f32 %v9103_v11, %v3884_v39  ;;  %v9597_v11 = vpop.permute.xlu0 %4217  ;;  %v4273_v9 = vmul.f32 %v10517_v4, %v3889_v44  ;;  %v10525_v4 = vld [vmem:[#allocation18_spill] sm:$0xff] }
 0x3db   : > { %4762 = vst.msk [vmem:[#allocation4 + $0x28] sm:$0xff] %vm1091_vm2, %v4698_v22  ;;  %3709 = vadd.xlane.f32.xlu1 %v9427_v27  ;;  %v9622_v43 = vpop.permute.xlu1 %4212 }
 0x3de   : > { %3735 = vadd.xlane.f32.xlu0 %v9488_v16 }
 0x3df   : > { %3721 = vadd.xlane.f32.xlu1 %v9456_v49 }
 0x3e1   : > { %v6354_v30 = vpop.f32.mrb[8].mxu1 }
 0x3e2   : > { %v4703_v27 = vadd.f32 %v6354_v30, %v4270_v26  ;;  %v4470_v23 = vpop.f32.mrb[9].mxu1  ;;  %3731 = vadd.xlane.f32.xlu0 %v9490_v19  ;;  %v10512_v19 = vld [vmem:[#allocation117_spill] sm:$0xff] }
 0x3e3   : > { %v4701_v16 = vadd.f32 %v4470_v23, %v4268_v57  ;;  %v6355_v17 = vpop.f32.mrb[10].mxu1  ;;  %3717 = vadd.xlane.f32.xlu1 %v9447_v5  ;;  %v9607_v5 = vpop.permute.xlu0 %4237  ;;  %v2850_v20 = vsub.f32 %v10513_v35, %v10512_v19  ;;  %v10518_v57 = vld [vmem:[#allocation116_spill] sm:$0xff]  ;;  %v10519_v30 = vld [vmem:[#allocation113_spill] sm:$0xff] }
 0x3e4   : > { %4767 = vst.msk [vmem:[#allocation4 + $0x50] sm:$0xff] %vm1091_vm2, %v4703_v27  ;;  %v4704_v53 = vadd.f32 %v6355_v17, %v4271_v15  ;;  %v4473_v49 = vpop.f32.mrb[11].mxu1  ;;  %v2849_v52 = vsub.f32 %v10519_v30, %v10518_v57  ;;  %v10520_v15 = vld [vmem:[#allocation65_spill] sm:$0xff]  ;;  %v3497_v35 = vld [vmem:[#allocation3 + $0x30] sm:$0xff]  ;;  %v10527_v57 = vld [vmem:[#allocation71_spill] sm:$0xff] }
 0x3e5   : > { %4765 = vst.msk [vmem:[#allocation4 + $0x40] sm:$0xff] %vm1091_vm2, %v4701_v16  ;;  %v4702_v18 = vadd.f32 %v4473_v49, %v4269_v33  ;;  %v3557_v27 = vmul.f32 %v10520_v15, %v3493_v21  ;;  %v3492_v33 = vld [vmem:[#allocation3 + $0x8] sm:$0xff]  ;;  %v9635_v16 = vpop.permute.xlu1 %4232 }
 0x3e6   : > { %4768 = vst.msk [vmem:[#allocation4 + $0x58] sm:$0xff] %vm1091_vm2, %v4704_v53  ;;  %3743 = vadd.xlane.f32.xlu0 %v9508_v1  ;;  %v2977_v1 = vmul.f32 1.442695, %v2850_v20  ;;  %v2975_v17 = vmul.f32 1.442695, %v2849_v52  ;;  %v10521_v53 = vld [vmem:[#allocation67_spill] sm:$0xff] }
 0x3e7   : > { %4766 = vst.msk [vmem:[#allocation4 + $0x48] sm:$0xff] %vm1091_vm2, %v4702_v18  ;;  %3729 = vadd.xlane.f32.xlu1 %v9476_v45  ;;  %v9615_v31 = vpop.permute.xlu0 %4227  ;;  %v3891_v45 = vld [vmem:[#allocation4 + $0x78] sm:$0xff]  ;;  %v3556_v49 = vmul.f32 %v10521_v53, %v3492_v33  ;;  %v3894_v20 = vld [vmem:[#allocation4 + $0x90] sm:$0xff]  ;;  %v3491_v53 = vld [vmem:[#allocation3] sm:$0xff] }
 0x3e8   : > { %6862 = vpow2.f32 %v2977_v1  ;;  %v4275_v46 = vmul.f32 %v10516_v37, %v3891_v45  ;;  %v3892_v1 = vld [vmem:[#allocation4 + $0x80] sm:$0xff]  ;;  %v10522_v45 = vld [vmem:[#allocation69_spill] sm:$0xff] }
 0x3e9   : > { %6864 = vpow2.f32 %v2975_v17  ;;  %v3561_v44 = vmul.f32 %v10522_v45, %v3497_v35  ;;  %v10524_v37 = vld [vmem:[#allocation97_spill] sm:$0xff] }
 0x3ea   : > { %3739 = vadd.xlane.f32.xlu0 %v9510_v7  ;;  %v4274_v7 = vmul.f32 %v10514_v25, %v3890_v3  ;;  %v3893_v25 = vld [vmem:[#allocation4 + $0x88] sm:$0xff] }
 0x3eb   : > { %3725 = vadd.xlane.f32.xlu1 %v9468_v13  ;;  %v4272_v13 = vmul.f32 %v10515_v54, %v3888_v0  ;;  %v9624_v39 = vpop.permute.xlu0 %4247  ;;  %v9642_v0 = vpop.permute.xlu1 %4222 }
 0x3ef   : > { %3737 = vadd.xlane.f32.xlu1 %v9497_v62  ;;  %v9653_v33 = vpop.permute.xlu1 %4242 }
 0x3f2   : > { %v9639_v18 = vpop.eup %6862 }
 0x3f3   : > { %3733 = vadd.xlane.f32.xlu1 %v9485_v42  ;;  %v9660_v35 = vpop.eup %6864 }
 0x3f5   : > { %v6358_v28 = vpop.f32.mrb[12].mxu1 }
 0x3f6   : > { %v4707_v62 = vadd.f32 %v6358_v28, %v4274_v7  ;;  %v4486_v47 = vpop.f32.mrb[13].mxu1  ;;  %v10523_v7 = vld [vmem:[#allocation98_spill] sm:$0xff] }
 0x3f7   : > { %v4705_v22 = vadd.f32 %v4486_v47, %v4272_v13  ;;  %v6359_v12 = vpop.f32.mrb[14].mxu1  ;;  %3745 = vadd.xlane.f32.xlu1 %v9515_v41  ;;  %v4278_v54 = vmul.f32 %v10523_v7, %v3894_v20  ;;  %v3495_v28 = vld [vmem:[#allocation3 + $0x20] sm:$0xff] }
 0x3f8   : > { %4771 = vst.msk [vmem:[#allocation4 + $0x70] sm:$0xff] %vm1091_vm2, %v4707_v62  ;;  %v4708_v32 = vadd.f32 %v6359_v12, %v4275_v46  ;;  %v4489_v42 = vpop.f32.mrb[15].mxu1  ;;  %v4276_v46 = vmul.f32 %v10524_v37, %v3892_v1  ;;  %v3559_v30 = vmul.f32 %v10527_v57, %v3495_v28  ;;  %v10531_v37 = vld [vmem:[#allocation64_spill] sm:$0xff]  ;;  %v3897_v57 = vld [vmem:[#allocation4 + $0xa8] sm:$0xff] }
 0x3f9   : > { %4769 = vst.msk [vmem:[#allocation4 + $0x60] sm:$0xff] %vm1091_vm2, %v4705_v22  ;;  %v4706_v26 = vadd.f32 %v4489_v42, %v4273_v9 }
 0x3fa   : > { %4772 = vst.msk [vmem:[#allocation4 + $0x78] sm:$0xff] %vm1091_vm2, %v4708_v32  ;;  %v10526_v32 = vld [vmem:[#allocation89_spill] sm:$0xff] }
 0x3fb   : > { %4770 = vst.msk [vmem:[#allocation4 + $0x68] sm:$0xff] %vm1091_vm2, %v4706_v26  ;;  %v3624_v23 = vpop.xlane.xlu0 %3623  ;;  %3741 = vadd.xlane.f32.xlu1 %v9503_v38  ;;  %v3895_v38 = vld [vmem:[#allocation4 + $0x98] sm:$0xff]  ;;  %v4277_v42 = vmul.f32 %v10526_v32, %v3893_v25 }
 0x3fc   : > { %v3749_v41 = vadd.f32 %v3624_v23, %v3557_v27  ;;  %v4279_v9 = vmul.f32 %v10525_v4, %v3895_v38  ;;  %v3501_v23 = vld [vmem:[#allocation3 + $0x50] sm:$0xff]  ;;  %v3499_v38 = vld [vmem:[#allocation3 + $0x40] sm:$0xff]  ;;  %v3494_v25 = vld [vmem:[#allocation3 + $0x18] sm:$0xff] }
 0x3fe   : > { %3814 = vst.msk [vmem:[#allocation3 + $0x10] sm:$0xff] %vm3811_vm7, %v3749_v41 }
 0x3ff   : > { %v3622_v19 = vpop.xlane.xlu0 %3621 }
 0x400   : > { %v3748_v3 = vadd.f32 %v3622_v19, %v3556_v49  ;;  %4257 = vperm.xlu0 %6561, %v9639_v18   ;;  %v10528_v49 = vld [vmem:[#allocation73_spill] sm:$0xff] }
 0x401   : > { %v3565_v19 = vmul.f32 %v10528_v49, %v3501_v23 }
 0x402   : > { %3813 = vst.msk [vmem:[#allocation3 + $0x8] sm:$0xff] %vm3811_vm7, %v3748_v3  ;;  %v10529_v3 = vld [vmem:[#allocation63_spill] sm:$0xff] }
 0x403   : > { %v3632_v13 = vpop.xlane.xlu0 %3631  ;;  %v3555_v1 = vmul.f32 %v10529_v3, %v3491_v53  ;;  %v3496_v3 = vld [vmem:[#allocation3 + $0x28] sm:$0xff] }
 0x404   : > { %v3753_v62 = vadd.f32 %v3632_v13, %v3561_v44 }
 0x405   : > { %v6362_v47 = vpop.f32.mrb[16].mxu1 }
 0x406   : > { %v4711_v22 = vadd.f32 %v6362_v47, %v4278_v54  ;;  %v4502_v12 = vpop.f32.mrb[17].mxu1  ;;  %3818 = vst.msk [vmem:[#allocation3 + $0x30] sm:$0xff] %vm3811_vm7, %v3753_v62  ;;  %v10530_v54 = vld [vmem:[#allocation76_spill] sm:$0xff] }
 0x407   : > { %v4709_v21 = vadd.f32 %v4502_v12, %v4276_v46  ;;  %v6363_v26 = vpop.f32.mrb[18].mxu1  ;;  %v3628_v15 = vpop.xlane.xlu0 %3627  ;;  %v3563_v13 = vmul.f32 %v10530_v54, %v3499_v38  ;;  %v3558_v46 = vmul.f32 %v10531_v37, %v3494_v25  ;;  %v3505_v62 = vld [vmem:[#allocation3 + $0x70] sm:$0xff]  ;;  %v3896_v12 = vld [vmem:[#allocation4 + $0xa0] sm:$0xff]  ;;  %v10538_v37 = vld [vmem:[#allocation87_spill] sm:$0xff] }
 0x408   : > { %4775 = vst.msk [vmem:[#allocation4 + $0x90] sm:$0xff] %vm1091_vm2, %v4711_v22  ;;  %v4712_v52 = vadd.f32 %v6363_v26, %v4279_v9  ;;  %v4505_v27 = vpop.f32.mrb[19].mxu1  ;;  %v3751_v41 = vadd.f32 %v3628_v15, %v3559_v30  ;;  %v3898_v47 = vld [vmem:[#allocation4 + $0xb0] sm:$0xff]  ;;  %v3498_v22 = vld [vmem:[#allocation3 + $0x38] sm:$0xff]  ;;  %v10533_v30 = vld [vmem:[#allocation107_spill] sm:$0xff] }
 0x409   : > { %4773 = vst.msk [vmem:[#allocation4 + $0x80] sm:$0xff] %vm1091_vm2, %v4709_v21  ;;  %v4710_v17 = vadd.f32 %v4505_v27, %v4277_v42  ;;  %v3899_v42 = vld [vmem:[#allocation4 + $0xb8] sm:$0xff]  ;;  %v10534_v27 = vld [vmem:[#allocation66_spill] sm:$0xff] }
 0x40a   : > { %4776 = vst.msk [vmem:[#allocation4 + $0x98] sm:$0xff] %vm1091_vm2, %v4712_v52  ;;  %v10532_v21 = vld [vmem:[#allocation81_spill] sm:$0xff]  ;;  %v4282_v52 = vmul.f32 %v10533_v30, %v3898_v47  ;;  %v3562_v23 = vmul.f32 %v10534_v27, %v3498_v22  ;;  %v10541_v27 = vld [vmem:[#allocation70_spill] sm:$0xff] }
 0x40b   : > { %3816 = vst.msk [vmem:[#allocation3 + $0x20] sm:$0xff] %vm3811_vm7, %v3751_v41  ;;  %v3640_v20 = vpop.xlane.xlu0 %3639  ;;  %v3569_v26 = vmul.f32 %v10532_v21, %v3505_v62  ;;  %v3503_v41 = vld [vmem:[#allocation3 + $0x60] sm:$0xff]  ;;  %v10540_v30 = vld [vmem:[#allocation93_spill] sm:$0xff] }
 0x40c   : > { %4774 = vst.msk [vmem:[#allocation4 + $0x88] sm:$0xff] %vm1091_vm2, %v4710_v17  ;;  %v3757_v45 = vadd.f32 %v3640_v20, %v3565_v19  ;;  %4252 = vperm.xlu1 %6560, %v9660_v35   ;;  %v3620_v44 = vpop.xlane.xlu1 %3619  ;;  %v10535_v17 = vld [vmem:[#allocation25_spill] sm:$0xff] }
 0x40d   : > { %v3747_v7 = vadd.f32 %v3620_v44, %v3555_v1  ;;  %v4280_v53 = vmul.f32 %v10535_v17, %v3896_v12  ;;  %v10536_v1 = vld [vmem:[#allocation95_spill] sm:$0xff]  ;;  %v3509_v12 = vld [vmem:[#allocation3 + $0x90] sm:$0xff] }
 0x40e   : > { %3822 = vst.msk [vmem:[#allocation3 + $0x50] sm:$0xff] %vm3811_vm7, %v3757_v45  ;;  %v4283_v38 = vmul.f32 %v10536_v1, %v3899_v42 }
 0x40f   : > { %3812 = vst.msk [vmem:[#allocation3] sm:$0xff] %vm3811_vm7, %v3747_v7  ;;  %v3636_v28 = vpop.xlane.xlu0 %3635  ;;  %v10537_v7 = vld [vmem:[#allocation21_spill] sm:$0xff] }
 0x410   : > { %v3755_v4 = vadd.f32 %v3636_v28, %v3563_v13  ;;  %v3626_v9 = vpop.xlane.xlu1 %3625  ;;  %v4281_v54 = vmul.f32 %v10537_v7, %v3897_v57 }
 0x411   : > { %v3750_v32 = vadd.f32 %v3626_v9, %v3558_v46  ;;  %v3567_v46 = vmul.f32 %v10538_v37, %v3503_v41  ;;  %v10539_v9 = vld [vmem:[#allocation68_spill] sm:$0xff]  ;;  %v3507_v41 = vld [vmem:[#allocation3 + $0x80] sm:$0xff] }
 0x412   : > { %3820 = vst.msk [vmem:[#allocation3 + $0x40] sm:$0xff] %vm3811_vm7, %v3755_v4  ;;  %v3560_v22 = vmul.f32 %v10539_v9, %v3496_v3  ;;  %v10545_v9 = vld [vmem:[#allocation118_spill] sm:$0xff] }
 0x413   : > { %3815 = vst.msk [vmem:[#allocation3 + $0x18] sm:$0xff] %vm3811_vm7, %v3750_v32  ;;  %v3648_v15 = vpop.xlane.xlu0 %3647 }
 0x414   : > { %v3761_v49 = vadd.f32 %v3648_v15, %v3569_v26  ;;  %v3634_v20 = vpop.xlane.xlu1 %3633  ;;  %v3502_v26 = vld [vmem:[#allocation3 + $0x58] sm:$0xff] }
 0x415   : > { %v6366_v19 = vpop.f32.mrb[20].mxu1  ;;  %v3754_v44 = vadd.f32 %v3634_v20, %v3562_v23  ;;  %v3566_v23 = vmul.f32 %v10541_v27, %v3502_v26  ;;  %v10542_v20 = vld [vmem:[#allocation99_spill] sm:$0xff]  ;;  %v10547_v26 = vld [vmem:[#allocation29_spill] sm:$0xff] }
 0x416   : > { %v4715_v45 = vadd.f32 %v6366_v19, %v4282_v52  ;;  %v4518_v25 = vpop.f32.mrb[21].mxu1  ;;  %3826 = vst.msk [vmem:[#allocation3 + $0x70] sm:$0xff] %vm3811_vm7, %v3761_v49  ;;  %v3573_v52 = vmul.f32 %v10540_v30, %v3509_v12  ;;  %v3500_v49 = vld [vmem:[#allocation3 + $0x48] sm:$0xff]  ;;  %v3571_v3 = vmul.f32 %v10542_v20, %v3507_v41 }
 0x417   : > { %v4713_v13 = vadd.f32 %v4518_v25, %v4280_v53  ;;  %v6367_v28 = vpop.f32.mrb[22].mxu1  ;;  %3819 = vst.msk [vmem:[#allocation3 + $0x38] sm:$0xff] %vm3811_vm7, %v3754_v44  ;;  %v3644_v47 = vpop.xlane.xlu0 %3643  ;;  %v3513_v44 = vld [vmem:[#allocation3 + $0xb0] sm:$0xff]  ;;  %v3504_v27 = vld [vmem:[#allocation3 + $0x68] sm:$0xff] }
 0x418   : > { %4779 = vst.msk [vmem:[#allocation4 + $0xb0] sm:$0xff] %vm1091_vm2, %v4715_v45  ;;  %v4716_v62 = vadd.f32 %v6367_v28, %v4283_v38  ;;  %v4521_v4 = vpop.f32.mrb[23].mxu1  ;;  %v3759_v32 = vadd.f32 %v3644_v47, %v3567_v46  ;;  %v3630_v21 = vpop.xlane.xlu1 %3629  ;;  %v10543_v38 = vld [vmem:[#allocation72_spill] sm:$0xff]  ;;  %v3900_v28 = vld [vmem:[#allocation4 + $0xc0] sm:$0xff]  ;;  %v3903_v46 = vld [vmem:[#allocation4 + $0xd8] sm:$0xff] }
 0x419   : > { %4777 = vst.msk [vmem:[#allocation4 + $0xa0] sm:$0xff] %vm1091_vm2, %v4713_v13  ;;  %v4714_v42 = vadd.f32 %v4521_v4, %v4281_v54  ;;  %v3752_v57 = vadd.f32 %v3630_v21, %v3560_v22  ;;  %v3564_v45 = vmul.f32 %v10543_v38, %v3500_v49  ;;  %v3902_v25 = vld [vmem:[#allocation4 + $0xd0] sm:$0xff]  ;;  %v3506_v13 = vld [vmem:[#allocation3 + $0x78] sm:$0xff]  ;;  %v3901_v4 = vld [vmem:[#allocation4 + $0xc8] sm:$0xff] }
 0x41a   : > { %4780 = vst.msk [vmem:[#allocation4 + $0xb8] sm:$0xff] %vm1091_vm2, %v4716_v62  ;;  %v10544_v62 = vld [vmem:[#allocation105_spill] sm:$0xff]  ;;  %v4286_v22 = vmul.f32 %v10545_v9, %v3902_v25  ;;  %v3511_v21 = vld [vmem:[#allocation3 + $0xa0] sm:$0xff]  ;;  %v10550_v38 = vld [vmem:[#allocation112_spill] sm:$0xff] }
 0x41b   : > { %3824 = vst.msk [vmem:[#allocation3 + $0x60] sm:$0xff] %vm3811_vm7, %v3759_v32  ;;  %3817 = vst.msk [vmem:[#allocation3 + $0x28] sm:$0xff] %vm3811_vm7, %v3752_v57  ;;  %v3656_v15 = vpop.xlane.xlu0 %3655  ;;  %v3577_v47 = vmul.f32 %v10544_v62, %v3513_v44  ;;  %v10546_v32 = vld [vmem:[#allocation75_spill] sm:$0xff]  ;;  %v4284_v57 = vmul.f32 %v10547_v26, %v3900_v28  ;;  %v3517_v28 = vld [vmem:[#allocation3 + $0xd0] sm:$0xff] }
 0x41c   : > { %4778 = vst.msk [vmem:[#allocation4 + $0xa8] sm:$0xff] %vm1091_vm2, %v4714_v42  ;;  %v3765_v17 = vadd.f32 %v3656_v15, %v3573_v52  ;;  %v3642_v53 = vpop.xlane.xlu1 %3641  ;;  %v3570_v42 = vmul.f32 %v10546_v32, %v3506_v13  ;;  %v10552_v9 = vld [vmem:[#allocation120_spill] sm:$0xff] }
 0x41d   : > { %v3758_v19 = vadd.f32 %v3642_v53, %v3566_v23  ;;  %v10548_v23 = vld [vmem:[#allocation111_spill] sm:$0xff]  ;;  %v10553_v32 = vld [vmem:[#allocation84_spill] sm:$0xff] }
 0x41e   : > { %3830 = vst.msk [vmem:[#allocation3 + $0x90] sm:$0xff] %vm3811_vm7, %v3765_v17  ;;  %v4287_v41 = vmul.f32 %v10548_v23, %v3903_v46 }
 0x41f   : > { %3823 = vst.msk [vmem:[#allocation3 + $0x58] sm:$0xff] %vm3811_vm7, %v3758_v19  ;;  %v3652_v1 = vpop.xlane.xlu0 %3651  ;;  %v10549_v19 = vld [vmem:[#allocation106_spill] sm:$0xff] }
 0x420   : > { %v3763_v7 = vadd.f32 %v3652_v1, %v3571_v3  ;;  %v3638_v54 = vpop.xlane.xlu1 %3637  ;;  %v4285_v20 = vmul.f32 %v10549_v19, %v3901_v4 }
 0x421   : > { %v3756_v37 = vadd.f32 %v3638_v54, %v3564_v45  ;;  %v3575_v45 = vmul.f32 %v10550_v38, %v3511_v21  ;;  %v10551_v54 = vld [vmem:[#allocation79_spill] sm:$0xff]  ;;  %v3515_v21 = vld [vmem:[#allocation3 + $0xc0] sm:$0xff] }
 0x422   : > { %3828 = vst.msk [vmem:[#allocation3 + $0x80] sm:$0xff] %vm3811_vm7, %v3763_v7  ;;  %v3568_v13 = vmul.f32 %v10551_v54, %v3504_v27  ;;  %v10557_v54 = vld [vmem:[#allocation31_spill] sm:$0xff] }
 0x423   : > { %3821 = vst.msk [vmem:[#allocation3 + $0x48] sm:$0xff] %vm3811_vm7, %v3756_v37  ;;  %v3664_v12 = vpop.xlane.xlu0 %3663 }
 0x424   : > { %v3769_v30 = vadd.f32 %v3664_v12, %v3577_v47  ;;  %v3650_v15 = vpop.xlane.xlu1 %3649  ;;  %v3510_v47 = vld [vmem:[#allocation3 + $0x98] sm:$0xff] }
 0x425   : > { %v6370_v52 = vpop.f32.mrb[24].mxu1  ;;  %v3762_v53 = vadd.f32 %v3650_v15, %v3570_v42  ;;  %v3574_v42 = vmul.f32 %v10553_v32, %v3510_v47  ;;  %v10554_v15 = vld [vmem:[#allocation123_spill] sm:$0xff]  ;;  %v10559_v47 = vld [vmem:[#allocation33_spill] sm:$0xff] }
 0x426   : > { %v4719_v17 = vadd.f32 %v6370_v52, %v4286_v22  ;;  %v4534_v49 = vpop.f32.mrb[25].mxu1  ;;  %3834 = vst.msk [vmem:[#allocation3 + $0xb0] sm:$0xff] %vm3811_vm7, %v3769_v30  ;;  %v3581_v22 = vmul.f32 %v10552_v9, %v3517_v28  ;;  %v3508_v30 = vld [vmem:[#allocation3 + $0x88] sm:$0xff]  ;;  %v3579_v27 = vmul.f32 %v10554_v15, %v3515_v21 }
 0x427   : > { %v4717_v3 = vadd.f32 %v4534_v49, %v4284_v57  ;;  %v6371_v1 = vpop.f32.mrb[26].mxu1  ;;  %3827 = vst.msk [vmem:[#allocation3 + $0x78] sm:$0xff] %vm3811_vm7, %v3762_v53  ;;  %v3660_v25 = vpop.xlane.xlu0 %3659  ;;  %v3521_v53 = vld [vmem:[#allocation3 + $0xf0] sm:$0xff]  ;;  %v3512_v32 = vld [vmem:[#allocation3 + $0xa8] sm:$0xff] }
 0x428   : > { %4783 = vst.msk [vmem:[#allocation4 + $0xd0] sm:$0xff] %vm1091_vm2, %v4719_v17  ;;  %v4720_v44 = vadd.f32 %v6371_v1, %v4287_v41  ;;  %v4537_v7 = vpop.f32.mrb[27].mxu1  ;;  %v3767_v37 = vadd.f32 %v3660_v25, %v3575_v45  ;;  %v3646_v62 = vpop.xlane.xlu1 %3645  ;;  %v10555_v41 = vld [vmem:[#allocation90_spill] sm:$0xff]  ;;  %v3906_v49 = vld [vmem:[#allocation4 + $0xf0] sm:$0xff]  ;;  %v3907_v45 = vld [vmem:[#allocation4 + $0xf8] sm:$0xff] }
 0x429   : > { %4781 = vst.msk [vmem:[#allocation4 + $0xc0] sm:$0xff] %vm1091_vm2, %v4717_v3  ;;  %v4718_v46 = vadd.f32 %v4537_v7, %v4285_v20  ;;  %v3760_v4 = vadd.f32 %v3646_v62, %v3568_v13  ;;  %v3572_v17 = vmul.f32 %v10555_v41, %v3508_v30  ;;  %v3514_v3 = vld [vmem:[#allocation3 + $0xb8] sm:$0xff]  ;;  %v3904_v1 = vld [vmem:[#allocation4 + $0xe0] sm:$0xff]  ;;  %v3905_v7 = vld [vmem:[#allocation4 + $0xe8] sm:$0xff]  ;;  %v4290_v13 = vmul.f32 %v10557_v54, %v3906_v49 }
 0x42a   : > { %4784 = vst.msk [vmem:[#allocation4 + $0xd8] sm:$0xff] %vm1091_vm2, %v4720_v44  ;;  %v10556_v44 = vld [vmem:[#allocation125_spill] sm:$0xff]  ;;  %v3519_v62 = vld [vmem:[#allocation3 + $0xe0] sm:$0xff] }
 0x42b   : > { %3832 = vst.msk [vmem:[#allocation3 + $0xa0] sm:$0xff] %vm3811_vm7, %v3767_v37  ;;  %3825 = vst.msk [vmem:[#allocation3 + $0x68] sm:$0xff] %vm3811_vm7, %v3760_v4  ;;  %v3672_v12 = vpop.xlane.xlu0 %3671  ;;  %v3585_v25 = vmul.f32 %v10556_v44, %v3521_v53  ;;  %v10558_v37 = vld [vmem:[#allocation96_spill] sm:$0xff]  ;;  %v4288_v4 = vmul.f32 %v10559_v47, %v3904_v1  ;;  %v10562_v41 = vld [vmem:[#allocation126_spill] sm:$0xff] }
 0x42c   : > { %4782 = vst.msk [vmem:[#allocation4 + $0xc8] sm:$0xff] %vm1091_vm2, %v4718_v46  ;;  %v3773_v26 = vadd.f32 %v3672_v12, %v3581_v22  ;;  %v3658_v57 = vpop.xlane.xlu1 %3657  ;;  %v3578_v46 = vmul.f32 %v10558_v37, %v3514_v3  ;;  %v3525_v1 = vld [vmem:[#allocation3 + $0x110] sm:$0xff]  ;;  %v10564_v54 = vld [vmem:[#allocation109_spill] sm:$0xff] }
 0x42d   : > { %v3766_v52 = vadd.f32 %v3658_v57, %v3574_v42  ;;  %v10560_v42 = vld [vmem:[#allocation27_spill] sm:$0xff]  ;;  %v10565_v37 = vld [vmem:[#allocation108_spill] sm:$0xff] }
 0x42e   : > { %3838 = vst.msk [vmem:[#allocation3 + $0xd0] sm:$0xff] %vm3811_vm7, %v3773_v26  ;;  %v4291_v21 = vmul.f32 %v10560_v42, %v3907_v45 }
 0x42f   : > { %3831 = vst.msk [vmem:[#allocation3 + $0x98] sm:$0xff] %vm3811_vm7, %v3766_v52  ;;  %v3668_v23 = vpop.xlane.xlu0 %3667  ;;  %v10561_v52 = vld [vmem:[#allocation34_spill] sm:$0xff] }
 0x430   : > { %v3771_v19 = vadd.f32 %v3668_v23, %v3579_v27  ;;  %v3654_v20 = vpop.xlane.xlu1 %3653  ;;  %v4289_v15 = vmul.f32 %v10561_v52, %v3905_v7 }
 0x431   : > { %v3764_v38 = vadd.f32 %v3654_v20, %v3572_v17  ;;  %v3583_v17 = vmul.f32 %v10562_v41, %v3519_v62  ;;  %v10563_v20 = vld [vmem:[#allocation102_spill] sm:$0xff] }
 0x432   : > { %3836 = vst.msk [vmem:[#allocation3 + $0xc0] sm:$0xff] %vm3811_vm7, %v3771_v19  ;;  %v3576_v3 = vmul.f32 %v10563_v20, %v3512_v32  ;;  %v3523_v62 = vld [vmem:[#allocation3 + $0x100] sm:$0xff] }
 0x433   : > { %3829 = vst.msk [vmem:[#allocation3 + $0x88] sm:$0xff] %vm3811_vm7, %v3764_v38  ;;  %v3680_v28 = vpop.xlane.xlu0 %3679 }
 0x434   : > { %v3777_v9 = vadd.f32 %v3680_v28, %v3585_v25  ;;  %v3666_v12 = vpop.xlane.xlu1 %3665  ;;  %v3518_v25 = vld [vmem:[#allocation3 + $0xd8] sm:$0xff] }
 0x435   : > { %v6374_v22 = vpop.f32.mrb[28].mxu1  ;;  %v3770_v57 = vadd.f32 %v3666_v12, %v3578_v46  ;;  %v3582_v46 = vmul.f32 %v10565_v37, %v3518_v25  ;;  %v10566_v12 = vld [vmem:[#allocation128_spill] sm:$0xff] }
 0x436   : > { %v4723_v26 = vadd.f32 %v6374_v22, %v4290_v13  ;;  %v4550_v30 = vpop.f32.mrb[29].mxu1  ;;  %3842 = vst.msk [vmem:[#allocation3 + $0xf0] sm:$0xff] %vm3811_vm7, %v3777_v9  ;;  %v3589_v13 = vmul.f32 %v10564_v54, %v3525_v1  ;;  %v3516_v9 = vld [vmem:[#allocation3 + $0xc8] sm:$0xff]  ;;  %v3587_v32 = vmul.f32 %v10566_v12, %v3523_v62  ;;  %v10569_v1 = vld [vmem:[#allocation122_spill] sm:$0xff] }
 0x437   : > { %v4721_v27 = vadd.f32 %v4550_v30, %v4288_v4  ;;  %v6375_v23 = vpop.f32.mrb[30].mxu1  ;;  %3835 = vst.msk [vmem:[#allocation3 + $0xb8] sm:$0xff] %vm3811_vm7, %v3770_v57  ;;  %v3676_v49 = vpop.xlane.xlu0 %3675  ;;  %v3529_v57 = vld [vmem:[#allocation3 + $0x130] sm:$0xff]  ;;  %v10572_v12 = vld [vmem:[#allocation83_spill] sm:$0xff] }
 0x438   : > { %4787 = vst.msk [vmem:[#allocation4 + $0xf0] sm:$0xff] %vm1091_vm2, %v4723_v26  ;;  %v4724_v53 = vadd.f32 %v6375_v23, %v4291_v21  ;;  %v4553_v19 = vpop.f32.mrb[31].mxu1  ;;  %v3775_v38 = vadd.f32 %v3676_v49, %v3583_v17  ;;  %v3662_v44 = vpop.xlane.xlu1 %3661  ;;  %v10567_v21 = vld [vmem:[#allocation115_spill] sm:$0xff]  ;;  %v3910_v30 = vld [vmem:[#allocation4 + $0x110] sm:$0xff]  ;;  %v3908_v23 = vld [vmem:[#allocation4 + $0x100] sm:$0xff] }
 0x439   : > { %4785 = vst.msk [vmem:[#allocation4 + $0xe0] sm:$0xff] %vm1091_vm2, %v4721_v27  ;;  %v4722_v45 = vadd.f32 %v4553_v19, %v4289_v15  ;;  %v3768_v7 = vadd.f32 %v3662_v44, %v3576_v3  ;;  %v3580_v26 = vmul.f32 %v10567_v21, %v3516_v9  ;;  %v3522_v27 = vld [vmem:[#allocation3 + $0xf8] sm:$0xff]  ;;  %v3909_v19 = vld [vmem:[#allocation4 + $0x108] sm:$0xff]  ;;  %v4294_v20 = vmul.f32 %v9524_v59, %v3910_v30  ;;  %v10570_v44 = vld [vmem:[#allocation38_spill] sm:$0xff] }
 0x43a   : > { %4788 = vst.msk [vmem:[#allocation4 + $0xf8] sm:$0xff] %vm1091_vm2, %v4724_v53  ;;  %v3911_v17 = vld [vmem:[#allocation4 + $0x118] sm:$0xff]  ;;  %v10568_v53 = vld [vmem:[#allocation15_spill] sm:$0xff]  ;;  %v4292_v25 = vmul.f32 %v10570_v44, %v3908_v23  ;;  %v3533_v30 = vld [vmem:[#allocation3 + $0x150] sm:$0xff] }
 0x43b   : > { %3840 = vst.msk [vmem:[#allocation3 + $0xe0] sm:$0xff] %vm3811_vm7, %v3775_v38  ;;  %3833 = vst.msk [vmem:[#allocation3 + $0xa8] sm:$0xff] %vm3811_vm7, %v3768_v7  ;;  %v3688_v28 = vpop.xlane.xlu0 %3687  ;;  %v3593_v49 = vmul.f32 %v10568_v53, %v3529_v57  ;;  %v3586_v38 = vmul.f32 %v10569_v1, %v3522_v27  ;;  %v4295_v37 = vmul.f32 %v9492_v10, %v3911_v17  ;;  %v10573_v57 = vld [vmem:[#allocation124_spill] sm:$0xff]  ;;  %v3526_v23 = vld [vmem:[#allocation3 + $0x118] sm:$0xff] }
 0x43c   : > { %4786 = vst.msk [vmem:[#allocation4 + $0xe8] sm:$0xff] %vm1091_vm2, %v4722_v45  ;;  %v3781_v47 = vadd.f32 %v3688_v28, %v3589_v13  ;;  %v3674_v4 = vpop.xlane.xlu1 %3673  ;;  %v3527_v45 = vld [vmem:[#allocation3 + $0x120] sm:$0xff]  ;;  %v3520_v28 = vld [vmem:[#allocation3 + $0xe8] sm:$0xff]  ;;  %v10574_v17 = vld [vmem:[#allocation88_spill] sm:$0xff] }
 0x43d   : > { %v3774_v22 = vadd.f32 %v3674_v4, %v3582_v46  ;;  %v10571_v4 = vld [vmem:[#allocation32_spill] sm:$0xff]  ;;  %v3584_v10 = vmul.f32 %v10573_v57, %v3520_v28  ;;  %v3597_v53 = vmul.f32 %v10574_v17, %v3533_v30  ;;  %v3535_v57 = vld [vmem:[#allocation3 + $0x160] sm:$0xff] }
 0x43e   : > { %3846 = vst.msk [vmem:[#allocation3 + $0x110] sm:$0xff] %vm3811_vm7, %v3781_v47  ;;  %v4293_v9 = vmul.f32 %v10571_v4, %v3909_v19  ;;  %v10575_v19 = vld [vmem:[#allocation78_spill] sm:$0xff]  ;;  %v3914_v4 = vld [vmem:[#allocation4 + $0x130] sm:$0xff] }
 0x43f   : > { %3839 = vst.msk [vmem:[#allocation3 + $0xd8] sm:$0xff] %vm3811_vm7, %v3774_v22  ;;  %v3684_v42 = vpop.xlane.xlu0 %3683  ;;  %v4298_v30 = vmul.f32 %v9542_v29, %v3914_v4  ;;  %v10583_v4 = vld [vmem:[#allocation16_spill] sm:$0xff] }
 0x440   : > { %v3779_v52 = vadd.f32 %v3684_v42, %v3587_v32  ;;  %v3670_v15 = vpop.xlane.xlu1 %3669  ;;  %v3591_v32 = vmul.f32 %v10572_v12, %v3527_v45  ;;  %v3524_v45 = vld [vmem:[#allocation3 + $0x108] sm:$0xff] }
 0x441   : > { %v3772_v41 = vadd.f32 %v3670_v15, %v3580_v26 }
 0x442   : > { %3844 = vst.msk [vmem:[#allocation3 + $0x100] sm:$0xff] %vm3811_vm7, %v3779_v52 }
 0x443   : > { %3837 = vst.msk [vmem:[#allocation3 + $0xc8] sm:$0xff] %vm3811_vm7, %v3772_v41  ;;  %v3696_v3 = vpop.xlane.xlu0 %3695 }
 0x444   : > { %v3785_v7 = vadd.f32 %v3696_v3, %v3593_v49  ;;  %v3682_v13 = vpop.xlane.xlu1 %3681  ;;  %v3531_v3 = vld [vmem:[#allocation3 + $0x140] sm:$0xff] }
 0x445   : > { %v6378_v54 = vpop.f32.mrb[32].mxu1  ;;  %v3778_v62 = vadd.f32 %v3682_v13, %v3586_v38  ;;  %v10577_v13 = vld [vmem:[#allocation127_spill] sm:$0xff] }
 0x446   : > { %v4727_v46 = vadd.f32 %v6378_v54, %v4294_v20  ;;  %v4566_v47 = vpop.f32.mrb[33].mxu1  ;;  %3850 = vst.msk [vmem:[#allocation3 + $0x130] sm:$0xff] %vm3811_vm7, %v3785_v7  ;;  %v3590_v20 = vmul.f32 %v10575_v19, %v3526_v23  ;;  %v3588_v28 = vmul.f32 %v10577_v13, %v3524_v45 }
 0x447   : > { %v4725_v59 = vadd.f32 %v4566_v47, %v4292_v25  ;;  %v6379_v22 = vpop.f32.mrb[34].mxu1  ;;  %3843 = vst.msk [vmem:[#allocation3 + $0xf8] sm:$0xff] %vm3811_vm7, %v3778_v62  ;;  %v3692_v26 = vpop.xlane.xlu0 %3691  ;;  %v10576_v25 = vld [vmem:[#allocation82_spill] sm:$0xff]  ;;  %v3530_v47 = vld [vmem:[#allocation3 + $0x138] sm:$0xff] }
 0x448   : > { %4791 = vst.msk [vmem:[#allocation4 + $0x110] sm:$0xff] %vm1091_vm2, %v4727_v46  ;;  %v4728_v42 = vadd.f32 %v6379_v22, %v4295_v37  ;;  %v4569_v21 = vpop.f32.mrb[35].mxu1  ;;  %v3783_v15 = vadd.f32 %v3692_v26, %v3591_v32  ;;  %v3678_v27 = vpop.xlane.xlu1 %3677  ;;  %v3595_v7 = vmul.f32 %v10576_v25, %v3531_v3  ;;  %v3537_v37 = vld [vmem:[#allocation3 + $0x170] sm:$0xff]  ;;  %v3915_v32 = vld [vmem:[#allocation4 + $0x138] sm:$0xff] }
 0x449   : > { %4789 = vst.msk [vmem:[#allocation4 + $0x100] sm:$0xff] %vm1091_vm2, %v4725_v59  ;;  %v4726_v52 = vadd.f32 %v4569_v21, %v4293_v9  ;;  %v3776_v41 = vadd.f32 %v3678_v27, %v3584_v10  ;;  %v3912_v59 = vld [vmem:[#allocation4 + $0x120] sm:$0xff]  ;;  %v10578_v22 = vld [vmem:[#allocation104_spill] sm:$0xff]  ;;  %v3913_v10 = vld [vmem:[#allocation4 + $0x128] sm:$0xff] }
 0x44a   : > { %4792 = vst.msk [vmem:[#allocation4 + $0x118] sm:$0xff] %vm1091_vm2, %v4728_v42  ;;  %v3601_v12 = vmul.f32 %v10578_v22, %v3537_v37  ;;  %v10579_v21 = vld [vmem:[#allocation80_spill] sm:$0xff]  ;;  %v3528_v27 = vld [vmem:[#allocation3 + $0x128] sm:$0xff]  ;;  %v4296_v23 = vmul.f32 %v9532_v2, %v3912_v59  ;;  %v3539_v59 = vld [vmem:[#allocation3 + $0x180] sm:$0xff] }
 0x44b   : > { %4790 = vst.msk [vmem:[#allocation4 + $0x108] sm:$0xff] %vm1091_vm2, %v4726_v52  ;;  %v3704_v49 = vpop.xlane.xlu0 %3703  ;;  %v3594_v26 = vmul.f32 %v10579_v21, %v3530_v47  ;;  %v3541_v2 = vld [vmem:[#allocation3 + $0x190] sm:$0xff] }
 0x44c   : > { %3848 = vst.msk [vmem:[#allocation3 + $0x120] sm:$0xff] %vm3811_vm7, %v3783_v15  ;;  %3841 = vst.msk [vmem:[#allocation3 + $0xe8] sm:$0xff] %vm3811_vm7, %v3776_v41  ;;  %v3789_v1 = vadd.f32 %v3704_v49, %v3597_v53  ;;  %v3690_v38 = vpop.xlane.xlu1 %3689  ;;  %v4299_v53 = vmul.f32 %v9520_v51, %v3915_v32  ;;  %v3532_v32 = vld [vmem:[#allocation3 + $0x148] sm:$0xff] }
 0x44d   : > { %v3782_v44 = vadd.f32 %v3690_v38, %v3590_v20  ;;  %v10580_v20 = vld [vmem:[#allocation22_spill] sm:$0xff] }
 0x44e   : > { %3854 = vst.msk [vmem:[#allocation3 + $0x150] sm:$0xff] %vm3811_vm7, %v3789_v1  ;;  %v3599_v3 = vmul.f32 %v10580_v20, %v3535_v57  ;;  %v4297_v1 = vmul.f32 %v9505_v55, %v3913_v10  ;;  %v10582_v55 = vld [vmem:[#allocation100_spill] sm:$0xff]  ;;  %v10584_v57 = vld [vmem:[#allocation101_spill] sm:$0xff] }
 0x44f   : > { %3847 = vst.msk [vmem:[#allocation3 + $0x118] sm:$0xff] %vm3811_vm7, %v3782_v44  ;;  %v3700_v54 = vpop.xlane.xlu0 %3699  ;;  %v10581_v44 = vld [vmem:[#allocation86_spill] sm:$0xff]  ;;  %v3603_v10 = vmul.f32 %v10584_v57, %v3539_v59 }
 0x450   : > { %v3787_v46 = vadd.f32 %v3700_v54, %v3595_v7  ;;  %v3686_v62 = vpop.xlane.xlu1 %3685  ;;  %v3592_v25 = vmul.f32 %v10581_v44, %v3528_v27  ;;  %v10586_v44 = vld [vmem:[#allocation119_spill] sm:$0xff] }
 0x451   : > { %v3780_v9 = vadd.f32 %v3686_v62, %v3588_v28  ;;  %v3534_v28 = vld [vmem:[#allocation3 + $0x158] sm:$0xff]  ;;  %v3605_v62 = vmul.f32 %v10582_v55, %v3541_v2  ;;  %v3536_v55 = vld [vmem:[#allocation3 + $0x168] sm:$0xff] }
 0x452   : > { %3852 = vst.msk [vmem:[#allocation3 + $0x140] sm:$0xff] %vm3811_vm7, %v3787_v46 }
 0x453   : > { %3845 = vst.msk [vmem:[#allocation3 + $0x108] sm:$0xff] %vm3811_vm7, %v3780_v9  ;;  %v3712_v42 = vpop.xlane.xlu0 %3711  ;;  %v3598_v9 = vmul.f32 %v10583_v4, %v3534_v28  ;;  %v3920_v4 = vld [vmem:[#allocation4 + $0x160] sm:$0xff] }
 0x454   : > { %v3793_v52 = vadd.f32 %v3712_v42, %v3601_v12  ;;  %v3698_v15 = vpop.xlane.xlu1 %3697  ;;  %v3918_v42 = vld [vmem:[#allocation4 + $0x150] sm:$0xff] }
 0x455   : > { %v6382_v41 = vpop.f32.mrb[36].mxu1  ;;  %v3786_v17 = vadd.f32 %v3698_v15, %v3594_v26  ;;  %v3916_v26 = vld [vmem:[#allocation4 + $0x140] sm:$0xff]  ;;  %v10585_v15 = vld [vmem:[#allocation92_spill] sm:$0xff] }
 0x456   : > { %3858 = vst.msk [vmem:[#allocation3 + $0x170] sm:$0xff] %vm3811_vm7, %v3793_v52  ;;  %v4731_v49 = vadd.f32 %v6382_v41, %v4298_v30  ;;  %v4582_v19 = vpop.f32.mrb[37].mxu1  ;;  %v3919_v30 = vld [vmem:[#allocation4 + $0x158] sm:$0xff]  ;;  %v3596_v27 = vmul.f32 %v10585_v15, %v3532_v32  ;;  %v3917_v41 = vld [vmem:[#allocation4 + $0x148] sm:$0xff]  ;;  %v4300_v20 = vmul.f32 %v9554_v56, %v3916_v26  ;;  %v3543_v56 = vld [vmem:[#allocation3 + $0x1a0] sm:$0xff]  ;;  %v4304_v15 = vmul.f32 %v9572_v36, %v3920_v4 }
 0x457   : > { %3851 = vst.msk [vmem:[#allocation3 + $0x138] sm:$0xff] %vm3811_vm7, %v3786_v17  ;;  %v4729_v29 = vadd.f32 %v4582_v19, %v4296_v23  ;;  %v6383_v38 = vpop.f32.mrb[38].mxu1  ;;  %v3708_v45 = vpop.xlane.xlu0 %3707  ;;  %v3545_v23 = vld [vmem:[#allocation3 + $0x1b0] sm:$0xff]  ;;  %v4302_v17 = vmul.f32 %v9560_v50, %v3918_v42  ;;  %v3538_v19 = vld [vmem:[#allocation3 + $0x178] sm:$0xff]  ;;  %v4301_v2 = vmul.f32 %v9527_v60, %v3917_v41  ;;  %v3921_v26 = vld [vmem:[#allocation4 + $0x168] sm:$0xff] }
 0x458   : > { %4795 = vst.msk [vmem:[#allocation4 + $0x130] sm:$0xff] %vm1091_vm2, %v4731_v49  ;;  %v4732_v7 = vadd.f32 %v6383_v38, %v4299_v53  ;;  %v4585_v51 = vpop.f32.mrb[39].mxu1  ;;  %v3791_v54 = vadd.f32 %v3708_v45, %v3599_v3  ;;  %v3694_v13 = vpop.xlane.xlu1 %3693  ;;  %v10589_v32 = vld [vmem:[#allocation85_spill] sm:$0xff]  ;;  %v3547_v36 = vld [vmem:[#allocation3 + $0x1c0] sm:$0xff] }
 0x459   : > { %4793 = vst.msk [vmem:[#allocation4 + $0x120] sm:$0xff] %vm1091_vm2, %v4729_v29  ;;  %v4730_v37 = vadd.f32 %v4585_v51, %v4297_v1  ;;  %v3784_v46 = vadd.f32 %v3694_v13, %v3592_v25  ;;  %v4303_v29 = vmul.f32 %v9534_v24, %v3919_v30  ;;  %v3609_v25 = vmul.f32 %v10586_v44, %v3545_v23  ;;  %v3546_v4 = vld [vmem:[#allocation3 + $0x1b8] sm:$0xff] }
 0x45a   : > { %4796 = vst.msk [vmem:[#allocation4 + $0x138] sm:$0xff] %vm1091_vm2, %v4732_v7  ;;  %v3600_v42 = vmul.f32 %v10589_v32, %v3536_v55  ;;  %v3925_v55 = vld [vmem:[#allocation4 + $0x188] sm:$0xff] }
 0x45b   : > { %3856 = vst.msk [vmem:[#allocation3 + $0x160] sm:$0xff] %vm3811_vm7, %v3791_v54  ;;  %3849 = vst.msk [vmem:[#allocation3 + $0x128] sm:$0xff] %vm3811_vm7, %v3784_v46  ;;  %v3720_v47 = vpop.xlane.xlu0 %3719  ;;  %v10587_v54 = vld [vmem:[#allocation121_spill] sm:$0xff] }
 0x45c   : > { %4794 = vst.msk [vmem:[#allocation4 + $0x128] sm:$0xff] %vm1091_vm2, %v4730_v37  ;;  %v3797_v22 = vadd.f32 %v3720_v47, %v3605_v62  ;;  %v3706_v12 = vpop.xlane.xlu1 %3705  ;;  %v3602_v13 = vmul.f32 %v10587_v54, %v3538_v19  ;;  %v3922_v62 = vld [vmem:[#allocation4 + $0x170] sm:$0xff]  ;;  %v10592_v54 = vld [vmem:[#allocation30_spill] sm:$0xff] }
 0x45d   : > { %v3790_v21 = vadd.f32 %v3706_v12, %v3598_v9  ;;  %v10588_v9 = vld [vmem:[#allocation26_spill] sm:$0xff]  ;;  %v4306_v57 = vmul.f32 %v9582_v58, %v3922_v62 }
 0x45e   : > { %3862 = vst.msk [vmem:[#allocation3 + $0x190] sm:$0xff] %vm3811_vm7, %v3797_v22  ;;  %v3607_v59 = vmul.f32 %v10588_v9, %v3543_v56  ;;  %v3923_v22 = vld [vmem:[#allocation4 + $0x178] sm:$0xff] }
 0x45f   : > { %3855 = vst.msk [vmem:[#allocation3 + $0x158] sm:$0xff] %vm3811_vm7, %v3790_v21  ;;  %v3716_v52 = vpop.xlane.xlu0 %3715  ;;  %v3549_v21 = vld [vmem:[#allocation3 + $0x1d0] sm:$0xff]  ;;  %v4307_v41 = vmul.f32 %v9556_v40, %v3923_v22  ;;  %v3927_v56 = vld [vmem:[#allocation4 + $0x198] sm:$0xff] }
 0x460   : > { %v3795_v53 = vadd.f32 %v3716_v52, %v3603_v10  ;;  %v3702_v49 = vpop.xlane.xlu1 %3701  ;;  %v3542_v52 = vld [vmem:[#allocation3 + $0x198] sm:$0xff] }
 0x461   : > { %v6386_v3 = vpop.f32.mrb[40].mxu1  ;;  %v3788_v1 = vadd.f32 %v3702_v49, %v3596_v27  ;;  %v10590_v49 = vld [vmem:[#allocation110_spill] sm:$0xff] }
 0x462   : > { %3860 = vst.msk [vmem:[#allocation3 + $0x180] sm:$0xff] %vm3811_vm7, %v3795_v53  ;;  %v4735_v38 = vadd.f32 %v6386_v3, %v4302_v17  ;;  %v4598_v45 = vpop.f32.mrb[41].mxu1  ;;  %v3613_v19 = vmul.f32 %v10590_v49, %v3549_v21  ;;  %v10595_v49 = vld [vmem:[#allocation28_spill] sm:$0xff] }
 0x463   : > { %3853 = vst.msk [vmem:[#allocation3 + $0x148] sm:$0xff] %vm3811_vm7, %v3788_v1  ;;  %v4733_v50 = vadd.f32 %v4598_v45, %v4300_v20  ;;  %v6387_v7 = vpop.f32.mrb[42].mxu1  ;;  %v3728_v51 = vpop.xlane.xlu0 %3727  ;;  %v4305_v20 = vmul.f32 %v9545_v61, %v3921_v26  ;;  %v4309_v26 = vmul.f32 %v9563_v63, %v3925_v55 }
 0x464   : > { %4799 = vst.msk [vmem:[#allocation4 + $0x150] sm:$0xff] %vm1091_vm2, %v4735_v38  ;;  %v4736_v28 = vadd.f32 %v6387_v7, %v4303_v29  ;;  %v4601_v24 = vpop.f32.mrb[43].mxu1  ;;  %v3801_v37 = vadd.f32 %v3728_v51, %v3609_v25  ;;  %v3714_v46 = vpop.xlane.xlu1 %3713  ;;  %v10591_v29 = vld [vmem:[#allocation19_spill] sm:$0xff]  ;;  %v3924_v51 = vld [vmem:[#allocation4 + $0x180] sm:$0xff] }
 0x465   : > { %4797 = vst.msk [vmem:[#allocation4 + $0x140] sm:$0xff] %vm1091_vm2, %v4733_v50  ;;  %v4734_v47 = vadd.f32 %v4601_v24, %v4301_v2  ;;  %v3794_v60 = vadd.f32 %v3714_v46, %v3602_v13  ;;  %v3606_v38 = vmul.f32 %v10591_v29, %v3542_v52  ;;  %v3540_v2 = vld [vmem:[#allocation3 + $0x188] sm:$0xff]  ;;  %v3926_v50 = vld [vmem:[#allocation4 + $0x190] sm:$0xff]  ;;  %v3611_v13 = vmul.f32 %v10592_v54, %v3547_v36 }
 0x466   : > { %4800 = vst.msk [vmem:[#allocation4 + $0x158] sm:$0xff] %vm1091_vm2, %v4736_v28  ;;  %v10593_v24 = vld [vmem:[#allocation91_spill] sm:$0xff]  ;;  %v3553_v46 = vld [vmem:[#allocation3 + $0x1f0] sm:$0xff]  ;;  %v4310_v62 = vmul.f32 %v9604_v8, %v3926_v50  ;;  %v4308_v9 = vmul.f32 %v9594_v14, %v3924_v51  ;;  %v3551_v14 = vld [vmem:[#allocation3 + $0x1e0] sm:$0xff] }
 0x467   : > { %3866 = vst.msk [vmem:[#allocation3 + $0x1b0] sm:$0xff] %vm3811_vm7, %v3801_v37  ;;  %3859 = vst.msk [vmem:[#allocation3 + $0x178] sm:$0xff] %vm3811_vm7, %v3794_v60  ;;  %v3724_v12 = vpop.xlane.xlu0 %3723  ;;  %v3604_v37 = vmul.f32 %v10593_v24, %v3540_v2  ;;  %v3617_v21 = vmul.f32 %v9660_v35, %v3553_v46  ;;  %v3929_v29 = vld [vmem:[#allocation4 + $0x1a8] sm:$0xff]  ;;  %v3934_v46 = vld [vmem:[#allocation4 + $0x1d0] sm:$0xff] }
 0x468   : > { %4798 = vst.msk [vmem:[#allocation4 + $0x148] sm:$0xff] %vm1091_vm2, %v4734_v47  ;;  %v3799_v10 = vadd.f32 %v3724_v12, %v3607_v59  ;;  %v3710_v30 = vpop.xlane.xlu1 %3709  ;;  %v4311_v12 = vmul.f32 %v9575_v48, %v3927_v56  ;;  %v4313_v51 = vmul.f32 %v9585_v34, %v3929_v29  ;;  %v3935_v34 = vld [vmem:[#allocation4 + $0x1d8] sm:$0xff] }
 0x469   : > { %v6390_v27 = vpop.f32.mrb[44].mxu1  ;;  %v3792_v23 = vadd.f32 %v3710_v30, %v3600_v42  ;;  %v10594_v30 = vld [vmem:[#allocation94_spill] sm:$0xff] }
 0x46a   : > { %3864 = vst.msk [vmem:[#allocation3 + $0x1a0] sm:$0xff] %vm3811_vm7, %v3799_v10  ;;  %v4739_v17 = vadd.f32 %v6390_v27, %v4306_v57  ;;  %v4614_v53 = vpop.f32.mrb[45].mxu1  ;;  %v3610_v52 = vmul.f32 %v10594_v30, %v3546_v4  ;;  %v3933_v4 = vld [vmem:[#allocation4 + $0x1c8] sm:$0xff] }
 0x46b   : > { %3857 = vst.msk [vmem:[#allocation3 + $0x168] sm:$0xff] %vm3811_vm7, %v3792_v23  ;;  %v4737_v58 = vadd.f32 %v4614_v53, %v4304_v15  ;;  %v6391_v3 = vpop.f32.mrb[46].mxu1  ;;  %v3736_v1 = vpop.xlane.xlu0 %3735  ;;  %v3928_v53 = vld [vmem:[#allocation4 + $0x1a0] sm:$0xff] }
 0x46c   : > { %4803 = vst.msk [vmem:[#allocation4 + $0x170] sm:$0xff] %vm1091_vm2, %v4739_v17  ;;  %v4740_v45 = vadd.f32 %v6391_v3, %v4307_v41  ;;  %v4617_v40 = vpop.f32.mrb[47].mxu1  ;;  %v3805_v44 = vadd.f32 %v3736_v1, %v3613_v19  ;;  %v3722_v25 = vpop.xlane.xlu1 %3721  ;;  %v3544_v41 = vld [vmem:[#allocation3 + $0x1a8] sm:$0xff]  ;;  %v3930_v17 = vld [vmem:[#allocation4 + $0x1b0] sm:$0xff]  ;;  %v3615_v19 = vmul.f32 %v10595_v49, %v3551_v14 }
 0x46d   : > { %4801 = vst.msk [vmem:[#allocation4 + $0x160] sm:$0xff] %vm1091_vm2, %v4737_v58  ;;  %v4738_v7 = vadd.f32 %v4617_v40, %v4305_v20  ;;  %v3798_v61 = vadd.f32 %v3722_v25, %v3606_v38  ;;  %v3931_v20 = vld [vmem:[#allocation4 + $0x1b8] sm:$0xff]  ;;  %v10596_v3 = vld [vmem:[#allocation20_spill] sm:$0xff]  ;;  %v4314_v38 = vmul.f32 %v9622_v43, %v3930_v17  ;;  %v10597_v43 = vld [vmem:[#allocation103_spill] sm:$0xff] }
 0x46e   : > { %4804 = vst.msk [vmem:[#allocation4 + $0x178] sm:$0xff] %vm1091_vm2, %v4740_v45  ;;  %v3608_v1 = vmul.f32 %v10596_v3, %v3544_v41  ;;  %v3550_v40 = vld [vmem:[#allocation3 + $0x1d8] sm:$0xff]  ;;  %v4315_v50 = vmul.f32 %v9597_v11, %v3931_v20  ;;  %v3937_v17 = vld [vmem:[#allocation4 + $0x1e8] sm:$0xff] }
 0x46f   : > { %3870 = vst.msk [vmem:[#allocation3 + $0x1d0] sm:$0xff] %vm3811_vm7, %v3805_v44  ;;  %3863 = vst.msk [vmem:[#allocation3 + $0x198] sm:$0xff] %vm3811_vm7, %v3798_v61  ;;  %v3732_v28 = vpop.xlane.xlu0 %3731  ;;  %v4312_v44 = vmul.f32 %v9613_v6, %v3928_v53  ;;  %v3614_v56 = vmul.f32 %v10597_v43, %v3550_v40  ;;  %v4321_v3 = vmul.f32 %v9624_v39, %v3937_v17 }
 0x470   : > { %4802 = vst.msk [vmem:[#allocation4 + $0x168] sm:$0xff] %vm1091_vm2, %v4738_v7  ;;  %v3803_v47 = vadd.f32 %v3732_v28, %v3611_v13  ;;  %v3718_v60 = vpop.xlane.xlu1 %3717 }
 0x471   : > { %v6394_v59 = vpop.f32.mrb[48].mxu1  ;;  %v3796_v22 = vadd.f32 %v3718_v60, %v3604_v37  ;;  %v3548_v37 = vld [vmem:[#allocation3 + $0x1c8] sm:$0xff] }
 0x472   : > { %3868 = vst.msk [vmem:[#allocation3 + $0x1c0] sm:$0xff] %vm3811_vm7, %v3803_v47  ;;  %v4743_v32 = vadd.f32 %v6394_v59, %v4310_v62  ;;  %v4630_v42 = vpop.f32.mrb[49].mxu1  ;;  %v3932_v62 = vld [vmem:[#allocation4 + $0x1c0] sm:$0xff]  ;;  %v10598_v47 = vld [vmem:[#allocation23_spill] sm:$0xff] }
 0x473   : > { %3861 = vst.msk [vmem:[#allocation3 + $0x188] sm:$0xff] %vm3811_vm7, %v3796_v22  ;;  %v4741_v8 = vadd.f32 %v4630_v42, %v4308_v9  ;;  %v6395_v57 = vpop.f32.mrb[50].mxu1  ;;  %v3744_v10 = vpop.xlane.xlu0 %3743  ;;  %v3612_v60 = vmul.f32 %v10598_v47, %v3548_v37  ;;  %v4318_v9 = vmul.f32 %v9635_v16, %v3934_v46  ;;  %v3554_v22 = vld [vmem:[#allocation3 + $0x1f8] sm:$0xff] }
 0x474   : > { %4807 = vst.msk [vmem:[#allocation4 + $0x190] sm:$0xff] %vm1091_vm2, %v4743_v32  ;;  %v4744_v15 = vadd.f32 %v6395_v57, %v4311_v12  ;;  %v4633_v48 = vpop.f32.mrb[51].mxu1  ;;  %v3809_v27 = vadd.f32 %v3744_v10, %v3617_v21  ;;  %v3730_v23 = vpop.xlane.xlu1 %3729  ;;  %v4316_v12 = vmul.f32 %v9642_v0, %v3932_v62  ;;  %v4319_v21 = vmul.f32 %v9607_v5, %v3935_v34  ;;  %v3552_v0 = vld [vmem:[#allocation3 + $0x1e8] sm:$0xff] }
 0x475   : > { %4805 = vst.msk [vmem:[#allocation4 + $0x180] sm:$0xff] %vm1091_vm2, %v4741_v8  ;;  %v4742_v35 = vadd.f32 %v4633_v48, %v4309_v26  ;;  %v3802_v63 = vadd.f32 %v3730_v23, %v3610_v52  ;;  %v4317_v57 = vmul.f32 %v9615_v31, %v3933_v4  ;;  %v3618_v52 = vmul.f32 %v9639_v18, %v3554_v22  ;;  %v3939_v31 = vld [vmem:[#allocation4 + $0x1f8] sm:$0xff]  ;;  %v10599_v18 = vld [vmem:[#allocation24_spill] sm:$0xff] }
 0x476   : > { %4808 = vst.msk [vmem:[#allocation4 + $0x198] sm:$0xff] %vm1091_vm2, %v4744_v15  ;;  %v3616_v41 = vmul.f32 %v10599_v18, %v3552_v0 }
 0x477   : > { %3874 = vst.msk [vmem:[#allocation3 + $0x1f0] sm:$0xff] %vm3811_vm7, %v3809_v27  ;;  %3867 = vst.msk [vmem:[#allocation3 + $0x1b8] sm:$0xff] %vm3811_vm7, %v3802_v63  ;;  %v3740_v58 = vpop.xlane.xlu0 %3739  ;;  %v3936_v27 = vld [vmem:[#allocation4 + $0x1e0] sm:$0xff] }
 0x478   : > { %4806 = vst.msk [vmem:[#allocation4 + $0x188] sm:$0xff] %vm1091_vm2, %v4742_v35  ;;  %v3807_v36 = vadd.f32 %v3740_v58, %v3615_v19  ;;  %v3726_v45 = vpop.xlane.xlu1 %3725  ;;  %v4320_v63 = vmul.f32 %v9653_v33, %v3936_v27  ;;  %v3938_v58 = vld [vmem:[#allocation4 + $0x1f0] sm:$0xff] }
 0x479   : > { %v6398_v25 = vpop.f32.mrb[52].mxu1  ;;  %v3800_v2 = vadd.f32 %v3726_v45, %v3608_v1 }
 0x47a   : > { %3872 = vst.msk [vmem:[#allocation3 + $0x1e0] sm:$0xff] %vm3811_vm7, %v3807_v36  ;;  %v4747_v7 = vadd.f32 %v6398_v25, %v4314_v38  ;;  %v4646_v61 = vpop.f32.mrb[53].mxu1 }
 0x47b   : > { %3865 = vst.msk [vmem:[#allocation3 + $0x1a8] sm:$0xff] %vm3811_vm7, %v3800_v2  ;;  %v4745_v54 = vadd.f32 %v4646_v61, %v4312_v44  ;;  %v6399_v13 = vpop.f32.mrb[54].mxu1 }
 0x47c   : > { %4811 = vst.msk [vmem:[#allocation4 + $0x1b0] sm:$0xff] %vm1091_vm2, %v4747_v7  ;;  %v4748_v28 = vadd.f32 %v6399_v13, %v4315_v50  ;;  %v4649_v6 = vpop.f32.mrb[55].mxu1  ;;  %v3738_v24 = vpop.xlane.xlu1 %3737 }
 0x47d   : > { %4809 = vst.msk [vmem:[#allocation4 + $0x1a0] sm:$0xff] %vm1091_vm2, %v4745_v54  ;;  %v4746_v11 = vadd.f32 %v4649_v6, %v4313_v51  ;;  %v3806_v55 = vadd.f32 %v3738_v24, %v3614_v56 }
 0x47e   : > { %4812 = vst.msk [vmem:[#allocation4 + $0x1b8] sm:$0xff] %vm1091_vm2, %v4748_v28 }
 0x47f   : > { %4810 = vst.msk [vmem:[#allocation4 + $0x1a8] sm:$0xff] %vm1091_vm2, %v4746_v11  ;;  %v4258_v23 = vpop.permute.xlu0 %4257 }
 0x480   : > { %3871 = vst.msk [vmem:[#allocation3 + $0x1d8] sm:$0xff] %vm3811_vm7, %v3806_v55  ;;  %v3734_v59 = vpop.xlane.xlu1 %3733  ;;  %v4323_v19 = vmul.f32 %v4258_v23, %v3939_v31 }
 0x481   : > { %v6402_v32 = vpop.f32.mrb[56].mxu1  ;;  %v3804_v42 = vadd.f32 %v3734_v59, %v3612_v60 }
 0x482   : > { %v4751_v26 = vadd.f32 %v6402_v32, %v4318_v9  ;;  %v4662_v8 = vpop.f32.mrb[57].mxu1 }
 0x483   : > { %3869 = vst.msk [vmem:[#allocation3 + $0x1c8] sm:$0xff] %vm3811_vm7, %v3804_v42  ;;  %v4749_v10 = vadd.f32 %v4662_v8, %v4316_v12  ;;  %v6403_v30 = vpop.f32.mrb[58].mxu1 }
 0x484   : > { %4815 = vst.msk [vmem:[#allocation4 + $0x1d0] sm:$0xff] %vm1091_vm2, %v4751_v26  ;;  %v4752_v16 = vadd.f32 %v6403_v30, %v4319_v21  ;;  %v4665_v14 = vpop.f32.mrb[59].mxu1  ;;  %v3746_v15 = vpop.xlane.xlu1 %3745 }
 0x485   : > { %4813 = vst.msk [vmem:[#allocation4 + $0x1c0] sm:$0xff] %vm1091_vm2, %v4749_v10  ;;  %v4750_v48 = vadd.f32 %v4665_v14, %v4317_v57  ;;  %v3810_v5 = vadd.f32 %v3746_v15, %v3618_v52 }
 0x486   : > { %4816 = vst.msk [vmem:[#allocation4 + $0x1d8] sm:$0xff] %vm1091_vm2, %v4752_v16 }
 0x487   : > { %4814 = vst.msk [vmem:[#allocation4 + $0x1c8] sm:$0xff] %vm1091_vm2, %v4750_v48 }
 0x488   : > { %3875 = vst.msk [vmem:[#allocation3 + $0x1f8] sm:$0xff] %vm3811_vm7, %v3810_v5  ;;  %v3742_v35 = vpop.xlane.xlu1 %3741 }
 0x489   : > { %v6406_v53 = vpop.f32.mrb[60].mxu1  ;;  %v3808_v49 = vadd.f32 %v3742_v35, %v3616_v41 }
 0x48a   : > { %v4678_v20 = vpop.f32.mrb[61].mxu1 }
 0x48b   : > { %3873 = vst.msk [vmem:[#allocation3 + $0x1e8] sm:$0xff] %vm3811_vm7, %v3808_v49  ;;  %v4753_v1 = vadd.f32 %v4678_v20, %v4320_v63  ;;  %v6407_v29 = vpop.f32.mrb[62].mxu1 }
 0x48c   : > { %v4756_v38 = vadd.f32 %v6407_v29, %v4323_v19  ;;  %v4681_v36 = vpop.f32.mrb[63].mxu1  ;;  %v4253_v45 = vpop.permute.xlu1 %4252 }
 0x48d   : > { %4817 = vst.msk [vmem:[#allocation4 + $0x1e0] sm:$0xff] %vm1091_vm2, %v4753_v1  ;;  %v4754_v40 = vadd.f32 %v4681_v36, %v4321_v3  ;;  %v4322_v44 = vmul.f32 %v4253_v45, %v3938_v58 }
 0x48e   : > { %4820 = vst.msk [vmem:[#allocation4 + $0x1f8] sm:$0xff] %vm1091_vm2, %v4756_v38 }
 0x48f   : > { %4818 = vst.msk [vmem:[#allocation4 + $0x1e8] sm:$0xff] %vm1091_vm2, %v4754_v40  ;;  %v4755_v33 = vadd.f32 %v6406_v53, %v4322_v44 }
 0x491   : > { %4819 = vst.msk [vmem:[#allocation4 + $0x1f0] sm:$0xff] %vm1091_vm2, %v4755_v33 }
 0x492 PF: > { %p6137_p6 = scmp.ne.s32.totalorder %s7210_s18, 1 }
 0x493   : > { %v4977_v39 = vld [vmem:[#allocation3 + $0xc0] sm:$0xff] (!%p6137_p6)  ;;  %v4978_v2 = vld [vmem:[#allocation3 + $0xc8] sm:$0xff] (!%p6137_p6)  ;;  %v7239_v50 = vmov (!%p6137_p6), 0   ;;  %v4972_v61 = vld [vmem:[#allocation3 + $0x98] sm:$0xff] (!%p6137_p6)  ;;  %s7240_s9 = smov (!%p6137_p6), 32   ;;  %s7241_s18 = smov (!%p6137_p6), 64  }
 0x494   : > { %4888 = sbr.rel (%p6137_p6) target bundleno = 1744 (0x6d0), region = 89  ;;  %v4969_v25 = vld [vmem:[#allocation3 + $0x80] sm:$0xff] (!%p6137_p6)  ;;  %6867 = vset.pattern.permute.xlu1 (!%p6137_p6), %v7239_v50  ;;  %6866 = vset.pattern.permute.xlu0 (!%p6137_p6), %v7239_v50  ;;  %6996 = vrcp.f32 (!%p6137_p6), %v4977_v39  ;;  %v4970_v7 = vld [vmem:[#allocation3 + $0x88] sm:$0xff] (!%p6137_p6)  ;;  %v4971_v51 = vld [vmem:[#allocation3 + $0x90] sm:$0xff] (!%p6137_p6)  ;;  %s7242_s12 = smov (!%p6137_p6), 96   ;;  %vm5657_vm2 = vcmask (!%p6137_p6), 261120  }
 0x495   : > { %6998 = vrcp.f32 (!%p6137_p6), %v4969_v25  ;;  %v4980_v54 = vld [vmem:[#allocation3 + $0xd8] sm:$0xff] (!%p6137_p6)  ;;  %v4979_v13 = vld [vmem:[#allocation3 + $0xd0] sm:$0xff] (!%p6137_p6)  ;;  %v4986_v28 = vld [vmem:[#allocation3 + $0x108] sm:$0xff] (!%p6137_p6)  ;;  %vm5674_vm8 = vcmask (!%p6137_p6), 523264   ;;  %vm5691_vm9 = vcmask (!%p6137_p6), 785408  }
 0x496   : > { %7000 = vrcp.f32 (!%p6137_p6), %v4978_v2  ;;  %v4985_v24 = vld [vmem:[#allocation3 + $0x100] sm:$0xff] (!%p6137_p6)  ;;  %v4994_v46 = vld [vmem:[#allocation3 + $0x148] sm:$0xff] (!%p6137_p6)  ;;  %v4988_v34 = vld [vmem:[#allocation3 + $0x118] sm:$0xff] (!%p6137_p6) }
 0x497   : > { %7002 = vrcp.f32 (!%p6137_p6), %v4970_v7  ;;  %v4993_v55 = vld [vmem:[#allocation3 + $0x140] sm:$0xff] (!%p6137_p6)  ;;  %v4987_v60 = vld [vmem:[#allocation3 + $0x110] sm:$0xff] (!%p6137_p6)  ;;  %v4996_v9 = vld [vmem:[#allocation3 + $0x158] sm:$0xff] (!%p6137_p6) }
 0x498   : > { %7004 = vrcp.f32 (!%p6137_p6), %v4972_v61  ;;  %v4995_v59 = vld [vmem:[#allocation3 + $0x150] sm:$0xff] (!%p6137_p6)  ;;  %v5002_v32 = vld [vmem:[#allocation3 + $0x188] sm:$0xff] (!%p6137_p6)  ;;  %v5001_v42 = vld [vmem:[#allocation3 + $0x180] sm:$0xff] (!%p6137_p6) }
 0x499   : > { %7006 = vrcp.f32 (!%p6137_p6), %v4971_v51  ;;  %v5010_v8 = vld [vmem:[#allocation3 + $0x1c8] sm:$0xff] (!%p6137_p6)  ;;  %v5009_v10 = vld [vmem:[#allocation3 + $0x1c0] sm:$0xff] (!%p6137_p6)  ;;  %v5004_v52 = vld [vmem:[#allocation3 + $0x198] sm:$0xff] (!%p6137_p6) }
 0x49a   : > { %7008 = vrcp.f32 (!%p6137_p6), %v4980_v54  ;;  %v5003_v14 = vld [vmem:[#allocation3 + $0x190] sm:$0xff] (!%p6137_p6)  ;;  %v5012_v0 = vld [vmem:[#allocation3 + $0x1d8] sm:$0xff] (!%p6137_p6)  ;;  %v4974_v31 = vld [vmem:[#allocation3 + $0xa8] sm:$0xff] (!%p6137_p6) }
 0x49b   : > { %7010 = vrcp.f32 %v4979_v13  ;;  %v5011_v5 = vld [vmem:[#allocation3 + $0x1d0] sm:$0xff]  ;;  %v4973_v18 = vld [vmem:[#allocation3 + $0xa0] sm:$0xff]  ;;  %v4982_v17 = vld [vmem:[#allocation3 + $0xe8] sm:$0xff] }
 0x49c   : > { %7012 = vrcp.f32 %v4986_v28  ;;  %v4981_v63 = vld [vmem:[#allocation3 + $0xe0] sm:$0xff]  ;;  %v4976_v49 = vld [vmem:[#allocation3 + $0xb8] sm:$0xff]  ;;  %v4975_v20 = vld [vmem:[#allocation3 + $0xb0] sm:$0xff] }
 0x49d   : > { %7014 = vrcp.f32 %v4985_v24  ;;  %v4984_v3 = vld [vmem:[#allocation3 + $0xf8] sm:$0xff]  ;;  %v4983_v29 = vld [vmem:[#allocation3 + $0xf0] sm:$0xff]  ;;  %v4990_v36 = vld [vmem:[#allocation3 + $0x128] sm:$0xff] }
 0x49e   : > { %v6997_v43 = vpop.eup %6996  ;;  %7016 = vrcp.f32 %v4994_v46  ;;  %v4989_v40 = vld [vmem:[#allocation3 + $0x120] sm:$0xff]  ;;  %v4998_v33 = vld [vmem:[#allocation3 + $0x168] sm:$0xff]  ;;  %v4992_v50 = vld [vmem:[#allocation3 + $0x138] sm:$0xff] }
 0x49f   : > { %v6999_v56 = vpop.eup %6998  ;;  %5203 = vperm.xlu1 %6867, %v6997_v43   ;;  %7018 = vrcp.f32 %v4993_v55  ;;  %v4997_v25 = vld [vmem:[#allocation3 + $0x160] sm:$0xff]  ;;  %v4991_v61 = vld [vmem:[#allocation3 + $0x130] sm:$0xff]  ;;  %v5000_v54 = vld [vmem:[#allocation3 + $0x178] sm:$0xff] }
 0x4a0   : > { %v7001_v6 = vpop.eup %7000  ;;  %5163 = vperm.xlu0 %6866, %v6999_v56   ;;  %7020 = vrcp.f32 %v4988_v34  ;;  %v4999_v43 = vld [vmem:[#allocation3 + $0x170] sm:$0xff]  ;;  %v5006_v28 = vld [vmem:[#allocation3 + $0x1a8] sm:$0xff]  ;;  %v5005_v24 = vld [vmem:[#allocation3 + $0x1a0] sm:$0xff] }
 0x4a1   : > { %v7003_v37 = vpop.eup %7002  ;;  %7022 = vrcp.f32 %v4987_v60  ;;  %v5014_v46 = vld [vmem:[#allocation3 + $0x1e8] sm:$0xff]  ;;  %v5013_v55 = vld [vmem:[#allocation3 + $0x1e0] sm:$0xff]  ;;  %v5008_v34 = vld [vmem:[#allocation3 + $0x1b8] sm:$0xff] }
 0x4a2   : > { %v7005_v11 = vpop.eup %7004  ;;  %7024 = vrcp.f32 %v4996_v9  ;;  %v5007_v60 = vld [vmem:[#allocation3 + $0x1b0] sm:$0xff]  ;;  %v5016_v9 = vld [vmem:[#allocation3 + $0x1f8] sm:$0xff] }
 0x4a3   : > { %5208 = vperm.xlu1 %6867, %v7001_v6   ;;  %v7007_v62 = vpop.eup %7006  ;;  %7026 = vrcp.f32 %v4995_v59 }
 0x4a4   : > { %5168 = vperm.xlu0 %6866, %v7003_v37   ;;  %v7009_v47 = vpop.eup %7008  ;;  %7028 = vrcp.f32 %v5002_v32  ;;  %v4954_v32 = vld [vmem:[#allocation3 + $0x8] sm:$0xff] }
 0x4a5   : > { %v7011_v4 = vpop.eup %7010  ;;  %7030 = vrcp.f32 %v5001_v42 }
 0x4a6   : > { %v7013_v22 = vpop.eup %7012  ;;  %7032 = vrcp.f32 %v5010_v8  ;;  %v4962_v8 = vld [vmem:[#allocation3 + $0x48] sm:$0xff] }
 0x4a7   : > { %5178 = vperm.xlu1 %6867, %v7005_v11   ;;  %v7015_v12 = vpop.eup %7014  ;;  %7034 = vrcp.f32 %v5009_v10  ;;  %v4961_v10 = vld [vmem:[#allocation3 + $0x40] sm:$0xff] }
 0x4a8   : > { %5173 = vperm.xlu0 %6866, %v7007_v62   ;;  %v7017_v21 = vpop.eup %7016  ;;  %7036 = vrcp.f32 %v5004_v52  ;;  %v4956_v52 = vld [vmem:[#allocation3 + $0x18] sm:$0xff] }
 0x4a9   : > { %v7019_v26 = vpop.eup %7018  ;;  %7038 = vrcp.f32 %v5003_v14  ;;  %v4955_v14 = vld [vmem:[#allocation3 + $0x10] sm:$0xff] }
 0x4aa   : > { %v7021_v57 = vpop.eup %7020  ;;  %7040 = vrcp.f32 %v5012_v0  ;;  %v4964_v0 = vld [vmem:[#allocation3 + $0x58] sm:$0xff] }
 0x4ab   : > { %5218 = vperm.xlu1 %6867, %v7009_v47   ;;  %v7023_v30 = vpop.eup %7022  ;;  %7042 = vrcp.f32 %v5011_v5  ;;  %v4963_v5 = vld [vmem:[#allocation3 + $0x50] sm:$0xff] }
 0x4ac   : > { %5213 = vperm.xlu0 %6866, %v7011_v4   ;;  %v7025_v16 = vpop.eup %7024  ;;  %7044 = vrcp.f32 %v4974_v31  ;;  %v4958_v31 = vld [vmem:[#allocation3 + $0x28] sm:$0xff] }
 0x4ad   : > { %v7027_v15 = vpop.eup %7026  ;;  %7046 = vrcp.f32 %v4973_v18  ;;  %v4957_v18 = vld [vmem:[#allocation3 + $0x20] sm:$0xff] }
 0x4ae   : > { %v7029_v48 = vpop.eup %7028  ;;  %7048 = vrcp.f32 %v4982_v17  ;;  %v6988_v17 = vld [vmem:[%s10096_s3] sm:$0xff]  }
 0x4af   : > { %5248 = vperm.xlu1 %6867, %v7013_v22   ;;  %v7031_v27 = vpop.eup %7030  ;;  %7050 = vrcp.f32 %v4981_v63  ;;  %v5015_v22 = vld [vmem:[#allocation3 + $0x1f0] sm:$0xff]  ;;  %6408 = vmatprep.subr.bf16.mxu0 %v6988_v17 }
 0x4b0   : > { %5243 = vperm.xlu0 %6866, %v7015_v12   ;;  %v7033_v23 = vpop.eup %7032  ;;  %7052 = vrcp.f32 %v4976_v49  ;;  %6409 = vmatpush3.bf16.xpose.msra.mxu0 %v6988_v17 }
 0x4b1   : > { %v7035_v41 = vpop.eup %7034  ;;  %7054 = vrcp.f32 %v4975_v20  ;;  %6440 = vmatprep.subr.bf16.mxu1 %v6988_v17 }
 0x4b2   : > { %v7037_v35 = vpop.eup %7036  ;;  %7056 = vrcp.f32 %v4984_v3  ;;  %6448 = vmatpush3.bf16.xpose.msra.mxu1 %v6988_v17 }
 0x4b3   : > { %5288 = vperm.xlu1 %6867, %v7017_v21   ;;  %v7039_v53 = vpop.eup %7038  ;;  %7058 = vrcp.f32 %v4983_v29  ;;  %v4953_v21 = vld [vmem:[#allocation3] sm:$0xff]  ;;  %v4968_v29 = vld [vmem:[#allocation3 + $0x78] sm:$0xff] }
 0x4b4   : > { %5283 = vperm.xlu0 %6866, %v7019_v26   ;;  %v7041_v19 = vpop.eup %7040  ;;  %7060 = vrcp.f32 %v4990_v36  ;;  %v4967_v36 = vld [vmem:[#allocation3 + $0x70] sm:$0xff] }
 0x4b5   : > { %v7043_v58 = vpop.eup %7042  ;;  %7062 = vrcp.f32 %v4989_v40 }
 0x4b6   : > { %v7045_v1 = vpop.eup %7044  ;;  %7064 = vrcp.f32 %v4998_v33  ;;  %v6990_v33 = vld [vmem:[%s10096_s3 + $0x10] sm:$0xff]  }
 0x4b7   : > { %5258 = vperm.xlu1 %6867, %v7021_v57   ;;  %v7047_v38 = vpop.eup %7046  ;;  %7066 = vrcp.f32 %v4997_v25 }
 0x4b8   : > { %5253 = vperm.xlu0 %6866, %v7023_v30   ;;  %v7049_v45 = vpop.eup %7048  ;;  %7068 = vrcp.f32 %v4992_v50 }
 0x4b9   : > { %v7051_v44 = vpop.eup %7050  ;;  %7070 = vrcp.f32 %v4991_v61 }
 0x4ba   : > { %v7053_v39 = vpop.eup %7052  ;;  %7072 = vrcp.f32 %v5000_v54  ;;  %v4913_v54 = vld [vmem:[#allocation4 + $0xc0] sm:$0xff] }
 0x4bb   : > { %5298 = vperm.xlu1 %6867, %v7025_v16   ;;  %v7055_v2 = vpop.eup %7054  ;;  %7074 = vrcp.f32 %v4999_v43  ;;  %v4905_v43 = vld [vmem:[#allocation4 + $0x80] sm:$0xff] }
 0x4bc   : > { %5293 = vperm.xlu0 %6866, %v7027_v15   ;;  %v7057_v7 = vpop.eup %7056  ;;  %7076 = vrcp.f32 %v5006_v28 }
 0x4bd   : > { %v7059_v51 = vpop.eup %7058  ;;  %7078 = vrcp.f32 %v5005_v24 }
 0x4be   : > { %v7061_v13 = vpop.eup %7060  ;;  %7080 = vrcp.f32 %v5014_v46 }
 0x4bf   : > { %5328 = vperm.xlu1 %6867, %v7029_v48   ;;  %v7063_v56 = vpop.eup %7062  ;;  %7082 = vrcp.f32 %v5013_v55 }
 0x4c0   : > { %5323 = vperm.xlu0 %6866, %v7031_v27   ;;  %v7065_v6 = vpop.eup %7064  ;;  %7084 = vrcp.f32 %v5008_v34 }
 0x4c1   : > { %v7067_v37 = vpop.eup %7066  ;;  %7086 = vrcp.f32 %v5007_v60 }
 0x4c2   : > { %v7069_v11 = vpop.eup %7068  ;;  %7088 = vrcp.f32 %v5016_v9 }
 0x4c3   : > { %5368 = vperm.xlu1 %6867, %v7033_v23   ;;  %v7071_v62 = vpop.eup %7070  ;;  %7090 = vrcp.f32 %v5015_v22 }
 0x4c4   : > { %5363 = vperm.xlu0 %6866, %v7035_v41   ;;  %v7073_v47 = vpop.eup %7072  ;;  %7092 = vrcp.f32 %v4954_v32  ;;  %v4915_v32 = vld [vmem:[#allocation4 + $0xd0] sm:$0xff] }
 0x4c5   : > { %v7075_v4 = vpop.eup %7074  ;;  %7094 = vrcp.f32 %v4953_v21 }
 0x4c6   : > { %v7077_v59 = vpop.eup %7076  ;;  %7096 = vrcp.f32 %v4962_v8 }
 0x4c7   : > { %5338 = vperm.xlu1 %6867, %v7037_v35   ;;  %v7079_v12 = vpop.eup %7078  ;;  %7098 = vrcp.f32 %v4961_v10  ;;  %v4966_v35 = vld [vmem:[#allocation3 + $0x68] sm:$0xff] }
 0x4c8   : > { %5333 = vperm.xlu0 %6866, %v7039_v53   ;;  %v7081_v42 = vpop.eup %7080  ;;  %7100 = vrcp.f32 %v4956_v52  ;;  %v4965_v53 = vld [vmem:[#allocation3 + $0x60] sm:$0xff] }
 0x4c9   : > { %v7083_v26 = vpop.eup %7082  ;;  %7102 = vrcp.f32 %v4955_v14  ;;  %v4921_v52 = vld [vmem:[#allocation4 + $0x100] sm:$0xff] }
 0x4ca   : > { %v7085_v57 = vpop.eup %7084  ;;  %7104 = vrcp.f32 %v4964_v0 }
 0x4cb   : > { %5378 = vperm.xlu1 %6867, %v7041_v19   ;;  %v7087_v30 = vpop.eup %7086  ;;  %7106 = vrcp.f32 %v4963_v5  ;;  %v4960_v19 = vld [vmem:[#allocation3 + $0x38] sm:$0xff]  ;;  %v4930_v5 = vld [vmem:[#allocation4 + $0x148] sm:$0xff] }
 0x4cc   : > { %5373 = vperm.xlu0 %6866, %v7043_v58   ;;  %v7089_v16 = vpop.eup %7088  ;;  %7108 = vrcp.f32 %v4958_v31  ;;  %v4959_v58 = vld [vmem:[#allocation3 + $0x30] sm:$0xff] }
 0x4cd   : > { %v7091_v15 = vpop.eup %7090  ;;  %7110 = vrcp.f32 %v4957_v18  ;;  %v6994_v18 = vld [vmem:[%s10096_s3 + $0x30] sm:$0xff]  }
 0x4ce   : > { %v7093_v48 = vpop.eup %7092  ;;  %7112 = vrcp.f32 %v4966_v35 }
 0x4cf   : > { %5188 = vperm.xlu1 %6867, %v7045_v1   ;;  %v7095_v27 = vpop.eup %7094  ;;  %7114 = vrcp.f32 %v4965_v53  ;;  %v6989_v1 = vld [vmem:[%s10096_s3 + $0x8] sm:$0xff]   ;;  %v4923_v53 = vld [vmem:[#allocation4 + $0x110] sm:$0xff] }
 0x4d0   : > { %5183 = vperm.xlu0 %6866, %v7047_v38   ;;  %v7097_v23 = vpop.eup %7096  ;;  %7116 = vrcp.f32 %v4960_v19  ;;  %6410 = vmatprep.subr.bf16.mxu0 %v6989_v1 }
 0x4d1   : > { %v7099_v41 = vpop.eup %7098  ;;  %7118 = vrcp.f32 %v4959_v58  ;;  %6411 = vmatpush3.bf16.xpose.msra.mxu0 %v6989_v1  ;;  %6441 = vmatprep.subr.bf16.mxu1 %v6989_v1 }
 0x4d2   : > { %v7101_v63 = vpop.eup %7100  ;;  %7120 = vrcp.f32 %v4968_v29  ;;  %6449 = vmatpush3.bf16.xpose.msra.mxu1 %v6989_v1  ;;  %6412 = vmatprep.subr.bf16.mxu0 %v6990_v33  ;;  %v4932_v1 = vld [vmem:[#allocation4 + $0x158] sm:$0xff]  ;;  %v4931_v29 = vld [vmem:[#allocation4 + $0x150] sm:$0xff] }
 0x4d3   : > { %5228 = vperm.xlu1 %6867, %v7049_v45   ;;  %v7103_v49 = vpop.eup %7102  ;;  %7122 = vrcp.f32 %v4967_v36  ;;  %6442 = vmatprep.subr.bf16.mxu1 %v6990_v33 }
 0x4d4   : > { %5223 = vperm.xlu0 %6866, %v7051_v44   ;;  %v7105_v20 = vpop.eup %7104 }
 0x4d5   : > { %v7107_v3 = vpop.eup %7106 }
 0x4d6   : > { %v7109_v38 = vpop.eup %7108 }
 0x4d7   : > { %5198 = vperm.xlu1 %6867, %v7053_v39   ;;  %v7111_v45 = vpop.eup %7110 }
 0x4d8   : > { %5193 = vperm.xlu0 %6866, %v7055_v2   ;;  %v7113_v40 = vpop.eup %7112 }
 0x4d9   : > { %v7115_v44 = vpop.eup %7114  ;;  %6413 = vmatpush3.bf16.xpose.msra.mxu0 %v6990_v33 }
 0x4da   : > { %v7117_v39 = vpop.eup %7116  ;;  %6450 = vmatpush3.bf16.xpose.msra.mxu1 %v6990_v33 }
 0x4db   : > { %5238 = vperm.xlu1 %6867, %v7057_v7   ;;  %v7119_v25 = vpop.eup %7118  ;;  %v6991_v7 = vld [vmem:[%s10096_s3 + $0x18] sm:$0xff]  }
 0x4dc   : > { %5233 = vperm.xlu0 %6866, %v7059_v51   ;;  %v7121_v2 = vpop.eup %7120  ;;  %6414 = vmatprep.subr.bf16.mxu0 %v6991_v7 }
 0x4dd   : > { %v7123_v50 = vpop.eup %7122  ;;  %6443 = vmatprep.subr.bf16.mxu1 %v6991_v7 }
 0x4df   : > { %5268 = vperm.xlu1 %6867, %v7061_v13   ;;  %v4914_v13 = vld [vmem:[#allocation4 + $0xc8] sm:$0xff] }
 0x4e0   : > { %5263 = vperm.xlu0 %6866, %v7063_v56   ;;  %v4906_v56 = vld [vmem:[#allocation4 + $0x88] sm:$0xff] }
 0x4e1   : > { %6415 = vmatpush3.bf16.xpose.msra.mxu0 %v6991_v7 }
 0x4e2   : > { %6451 = vmatpush3.bf16.xpose.msra.mxu1 %v6991_v7 }
 0x4e3   : > { %5308 = vperm.xlu1 %6867, %v7065_v6   ;;  %v6992_v6 = vld [vmem:[%s10096_s3 + $0x20] sm:$0xff]  }
 0x4e4   : > { %5303 = vperm.xlu0 %6866, %v7067_v37   ;;  %6416 = vmatprep.subr.bf16.mxu0 %v6992_v6 }
 0x4e5   : > { %6444 = vmatprep.subr.bf16.mxu1 %v6992_v6 }
 0x4e7   : > { %5278 = vperm.xlu1 %6867, %v7069_v11  }
 0x4e8   : > { %5273 = vperm.xlu0 %6866, %v7071_v62   ;;  %v4908_v62 = vld [vmem:[#allocation4 + $0x98] sm:$0xff] }
 0x4e9   : > { %6417 = vmatpush3.bf16.xpose.msra.mxu0 %v6992_v6 }
 0x4ea   : > { %6452 = vmatpush3.bf16.xpose.msra.mxu1 %v6992_v6 }
 0x4eb   : > { %5318 = vperm.xlu1 %6867, %v7073_v47   ;;  %v4907_v47 = vld [vmem:[#allocation4 + $0x90] sm:$0xff] }
 0x4ec   : > { %5313 = vperm.xlu0 %6866, %v7075_v4  }
 0x4ef   : > { %5348 = vperm.xlu1 %6867, %v7077_v59  }
 0x4f0   : > { %5343 = vperm.xlu0 %6866, %v7079_v12   ;;  %v4916_v12 = vld [vmem:[#allocation4 + $0xd8] sm:$0xff] }
 0x4f3   : > { %5388 = vperm.xlu1 %6867, %v7081_v42  }
 0x4f4   : > { %5383 = vperm.xlu0 %6866, %v7083_v26   ;;  %v6993_v26 = vld [vmem:[%s10096_s3 + $0x28] sm:$0xff]  }
 0x4f5   : > { %6418 = vmatprep.subr.bf16.mxu0 %v6993_v26  ;;  %6445 = vmatprep.subr.bf16.mxu1 %v6993_v26 }
 0x4f6   : > { %6419 = vmatpush3.bf16.xpose.msra.mxu0 %v6993_v26  ;;  %6453 = vmatpush3.bf16.xpose.msra.mxu1 %v6993_v26 }
 0x4f7   : > { %5358 = vperm.xlu1 %6867, %v7085_v57   ;;  %6420 = vmatprep.subr.bf16.mxu0 %v6994_v18 }
 0x4f8   : > { %5353 = vperm.xlu0 %6866, %v7087_v30   ;;  %v4922_v30 = vld [vmem:[#allocation4 + $0x108] sm:$0xff]  ;;  %6446 = vmatprep.subr.bf16.mxu1 %v6994_v18 }
 0x4fb   : > { %5398 = vperm.xlu1 %6867, %v7089_v16  }
 0x4fc   : > { %5393 = vperm.xlu0 %6866, %v7091_v15  }
 0x4fe   : > { %6421 = vmatpush3.bf16.xpose.msra.mxu0 %v6994_v18  ;;  %6454 = vmatpush3.bf16.xpose.msra.mxu1 %v6994_v18 }
 0x4ff   : > { %5088 = vperm.xlu1 %6867, %v7093_v48  }
 0x500   : > { %5083 = vperm.xlu0 %6866, %v7095_v27   ;;  %v4929_v27 = vld [vmem:[#allocation4 + $0x140] sm:$0xff] }
 0x503   : > { %5128 = vperm.xlu1 %6867, %v7097_v23  }
 0x504   : > { %5123 = vperm.xlu0 %6866, %v7099_v41  }
 0x507   : > { %5098 = vperm.xlu1 %6867, %v7101_v63   ;;  %v4924_v63 = vld [vmem:[#allocation4 + $0x118] sm:$0xff] }
 0x508   : > { %5093 = vperm.xlu0 %6866, %v7103_v49  }
 0x50b   : > { %5138 = vperm.xlu1 %6867, %v7105_v20  }
 0x50c   : > { %5133 = vperm.xlu0 %6866, %v7107_v3  }
 0x50f   : > { %5108 = vperm.xlu1 %6867, %v7109_v38  }
 0x510   : > { %5103 = vperm.xlu0 %6866, %v7111_v45   ;;  %v6995_v45 = vld [vmem:[%s10096_s3 + $0x38] sm:$0xff]  }
 0x511   : > { %6422 = vmatprep.subr.bf16.mxu0 %v6995_v45  ;;  %6447 = vmatprep.subr.bf16.mxu1 %v6995_v45 }
 0x512   : > { %6423 = vmatpush3.bf16.xpose.msra.mxu0 %v6995_v45  ;;  %6455 = vmatpush3.bf16.xpose.msra.mxu1 %v6995_v45 }
 0x513   : > { %5148 = vperm.xlu1 %6867, %v7113_v40  }
 0x514   : > { %5143 = vperm.xlu0 %6866, %v7115_v44  }
 0x517   : > { %5118 = vperm.xlu1 %6867, %v7117_v39   ;;  %v4938_v39 = vld [vmem:[#allocation4 + $0x188] sm:$0xff] }
 0x518   : > { %5113 = vperm.xlu0 %6866, %v7119_v25   ;;  %v4937_v25 = vld [vmem:[#allocation4 + $0x180] sm:$0xff] }
 0x51b   : > { %5158 = vperm.xlu1 %6867, %v7121_v2  }
 0x51c   : > { %5153 = vperm.xlu0 %6866, %v7123_v50  }
 0x51e   : > { %v5204_v61 = vpop.permute.xlu1 %5203 }
 0x51f   : > { %v5164_v51 = vpop.permute.xlu0 %5163  ;;  %v5425_v24 = vmul.f32 %v5204_v61, %v4913_v54  ;;  %v4946_v54 = vld [vmem:[#allocation4 + $0x1c8] sm:$0xff] }
 0x520   : > { %v5417_v11 = vmul.f32 %v5164_v51, %v4905_v43 }
 0x522   : > { %v5209_v28 = vpop.permute.xlu1 %5208 }
 0x523   : > { %v5426_v37 = vmul.f32 %v5209_v28, %v4914_v13  ;;  %v5169_v46 = vpop.permute.xlu0 %5168  ;;  %v4945_v13 = vld [vmem:[#allocation4 + $0x1c0] sm:$0xff] }
 0x524   : > { %v5418_v55 = vmul.f32 %v5169_v46, %v4906_v56  ;;  %v4939_v46 = vld [vmem:[#allocation4 + $0x190] sm:$0xff] }
 0x525   : > { %v6873_v34 = vpack.i.bf16 %v5426_v37, %v5425_v24  ;;  %v4940_v37 = vld [vmem:[#allocation4 + $0x198] sm:$0xff] }
 0x526   : > { %v6868_v60 = vpack.i.bf16 %v5418_v55, %v5417_v11  ;;  %v5179_v4 = vpop.permute.xlu1 %5178 }
 0x527   : > { %v5420_v9 = vmul.f32 %v5179_v4, %v4908_v62  ;;  %v5174_v59 = vpop.permute.xlu0 %5173  ;;  %6874 = vrot.lane.b32.xlu1 %v6873_v34, %s7240_s9  ;;  %v4947_v4 = vld [vmem:[#allocation4 + $0x1d0] sm:$0xff] }
 0x528   : > { %v5419_v22 = vmul.f32 %v5174_v59, %v4907_v47  ;;  %6869 = vrot.lane.b32.xlu0 %v6868_v60, %s7240_s9  ;;  %v4948_v60 = vld [vmem:[#allocation4 + $0x1d8] sm:$0xff] }
 0x52a   : > { %v6878_v42 = vpack.i.bf16 %v5420_v9, %v5419_v22  ;;  %v5219_v21 = vpop.permute.xlu1 %5218 }
 0x52b   : > { %v5428_v8 = vmul.f32 %v5219_v21, %v4916_v12  ;;  %v5214_v57 = vpop.permute.xlu0 %5213  ;;  %v4909_v21 = vld [vmem:[#allocation4 + $0xa0] sm:$0xff] }
 0x52c   : > { %v5427_v10 = vmul.f32 %v5214_v57, %v4915_v32  ;;  %6879 = vrot.lane.b32.xlu0 %v6878_v42, %s7240_s9  ;;  %v4910_v42 = vld [vmem:[#allocation4 + $0xa8] sm:$0xff] }
 0x52e   : > { %v6883_v16 = vpack.i.bf16 %v5428_v8, %v5427_v10  ;;  %v5249_v14 = vpop.permute.xlu1 %5248 }
 0x52f   : > { %v5434_v15 = vmul.f32 %v5249_v14, %v4922_v30  ;;  %v5244_v0 = vpop.permute.xlu0 %5243 }
 0x530   : > { %v5433_v48 = vmul.f32 %v5244_v0, %v4921_v52  ;;  %6884 = vrot.lane.b32.xlu1 %v6883_v16, %s7240_s9  ;;  %v4918_v52 = vld [vmem:[#allocation4 + $0xe8] sm:$0xff]  ;;  %v4917_v16 = vld [vmem:[#allocation4 + $0xe0] sm:$0xff] }
 0x532   : > { %v6888_v31 = vpack.i.bf16 %v5434_v15, %v5433_v48  ;;  %v5289_v23 = vpop.permute.xlu1 %5288 }
 0x533   : > { %v5442_v41 = vmul.f32 %v5289_v23, %v4930_v5  ;;  %v5284_v17 = vpop.permute.xlu0 %5283 }
 0x534   : > { %v5441_v35 = vmul.f32 %v5284_v17, %v4929_v27  ;;  %6889 = vrot.lane.b32.xlu0 %v6888_v31, %s7241_s18  ;;  %v4912_v27 = vld [vmem:[#allocation4 + $0xb8] sm:$0xff]  ;;  %v4911_v31 = vld [vmem:[#allocation4 + $0xb0] sm:$0xff] }
 0x536   : > { %v6893_v49 = vpack.i.bf16 %v5442_v41, %v5441_v35  ;;  %v5259_v19 = vpop.permute.xlu1 %5258 }
 0x537   : > { %v5436_v20 = vmul.f32 %v5259_v19, %v4924_v63  ;;  %v5254_v58 = vpop.permute.xlu0 %5253  ;;  %v4920_v63 = vld [vmem:[#allocation4 + $0xf8] sm:$0xff] }
 0x538   : > { %v5435_v3 = vmul.f32 %v5254_v58, %v4923_v53  ;;  %6894 = vrot.lane.b32.xlu1 %v6893_v49, %s7241_s18  ;;  %v4919_v53 = vld [vmem:[#allocation4 + $0xf0] sm:$0xff] }
 0x53a   : > { %v6898_v38 = vpack.i.bf16 %v5436_v20, %v5435_v3  ;;  %v5299_v36 = vpop.permute.xlu1 %5298 }
 0x53b   : > { %v5444_v40 = vmul.f32 %v5299_v36, %v4932_v1  ;;  %v5294_v44 = vpop.permute.xlu0 %5293  ;;  %v4926_v1 = vld [vmem:[#allocation4 + $0x128] sm:$0xff] }
 0x53c   : > { %v5443_v33 = vmul.f32 %v5294_v44, %v4931_v29  ;;  %6899 = vrot.lane.b32.xlu0 %v6898_v38, %s7241_s18  ;;  %v4925_v29 = vld [vmem:[#allocation4 + $0x120] sm:$0xff] }
 0x53e   : > { %v6903_v2 = vpack.i.bf16 %v5444_v40, %v5443_v33  ;;  %v5329_v50 = vpop.permute.xlu1 %5328  ;;  %v4934_v33 = vld [vmem:[#allocation4 + $0x168] sm:$0xff] }
 0x53f   : > { %v5450_v7 = vmul.f32 %v5329_v50, %v4938_v39  ;;  %v5324_v61 = vpop.permute.xlu0 %5323  ;;  %v4933_v39 = vld [vmem:[#allocation4 + $0x160] sm:$0xff] }
 0x540   : > { %v5449_v51 = vmul.f32 %v5324_v61, %v4937_v25  ;;  %6904 = vrot.lane.b32.xlu1 %v6903_v2, %s7241_s18 }
 0x542   : > { %v6908_v43 = vpack.i.bf16 %v5450_v7, %v5449_v51  ;;  %v5369_v56 = vpop.permute.xlu1 %5368  ;;  %v4928_v51 = vld [vmem:[#allocation4 + $0x138] sm:$0xff] }
 0x543   : > { %v5458_v28 = vmul.f32 %v5369_v56, %v4946_v54  ;;  %v5364_v6 = vpop.permute.xlu0 %5363  ;;  %v4927_v54 = vld [vmem:[#allocation4 + $0x130] sm:$0xff] }
 0x544   : > { %v5457_v24 = vmul.f32 %v5364_v6, %v4945_v13  ;;  %6909 = vrot.lane.b32.xlu0 %v6908_v43, %s7242_s12 }
 0x546   : > { %v6913_v11 = vpack.i.bf16 %v5458_v28, %v5457_v24  ;;  %v5339_v55 = vpop.permute.xlu1 %5338  ;;  %v4936_v24 = vld [vmem:[#allocation4 + $0x178] sm:$0xff] }
 0x547   : > { %v5452_v62 = vmul.f32 %v5339_v55, %v4940_v37  ;;  %v5334_v34 = vpop.permute.xlu0 %5333  ;;  %v4935_v37 = vld [vmem:[#allocation4 + $0x170] sm:$0xff] }
 0x548   : > { %v5451_v47 = vmul.f32 %v5334_v34, %v4939_v46  ;;  %6914 = vrot.lane.b32.xlu1 %v6913_v11, %s7242_s12 }
 0x54a   : > { %v6918_v9 = vpack.i.bf16 %v5452_v62, %v5451_v47  ;;  %v5379_v59 = vpop.permute.xlu1 %5378  ;;  %v4942_v47 = vld [vmem:[#allocation4 + $0x1a8] sm:$0xff] }
 0x54b   : > { %v5460_v22 = vmul.f32 %v5379_v59, %v4948_v60  ;;  %v5374_v12 = vpop.permute.xlu0 %5373  ;;  %v4941_v60 = vld [vmem:[#allocation4 + $0x1a0] sm:$0xff] }
 0x54c   : > { %v5459_v32 = vmul.f32 %v5374_v12, %v4947_v4  ;;  %6919 = vrot.lane.b32.xlu0 %v6918_v9, %s7242_s12 }
 0x54e   : > { %v6923_v26 = vpack.i.bf16 %v5460_v22, %v5459_v32  ;;  %v5189_v8 = vpop.permute.xlu1 %5188  ;;  %v4950_v32 = vld [vmem:[#allocation4 + $0x1e8] sm:$0xff] }
 0x54f   : > { %v5422_v57 = vmul.f32 %v5189_v8, %v4910_v42  ;;  %v5184_v10 = vpop.permute.xlu0 %5183  ;;  %v4949_v42 = vld [vmem:[#allocation4 + $0x1e0] sm:$0xff] }
 0x550   : > { %v5421_v30 = vmul.f32 %v5184_v10, %v4909_v21  ;;  %6924 = vrot.lane.b32.xlu1 %v6923_v26, %s7242_s12 }
 0x552   : > { %v6928_v14 = vpack.i.bf16 %v5422_v57, %v5421_v30  ;;  %v5229_v15 = vpop.permute.xlu1 %5228  ;;  %v4944_v30 = vld [vmem:[#allocation4 + $0x1b8] sm:$0xff] }
 0x553   : > { %v5430_v0 = vmul.f32 %v5229_v15, %v4918_v52  ;;  %v5224_v48 = vpop.permute.xlu0 %5223  ;;  %v4943_v52 = vld [vmem:[#allocation4 + $0x1b0] sm:$0xff] }
 0x554   : > { %v5429_v5 = vmul.f32 %v5224_v48, %v4917_v16  ;;  %6929 = vrot.lane.b32.xlu0 %v6928_v14, %s7240_s9 }
 0x556   : > { %v6933_v23 = vpack.i.bf16 %v5430_v0, %v5429_v5  ;;  %v5199_v18 = vpop.permute.xlu1 %5198  ;;  %v4952_v5 = vld [vmem:[#allocation4 + $0x1f8] sm:$0xff] }
 0x557   : > { %v5424_v41 = vmul.f32 %v5199_v18, %v4912_v27  ;;  %v5194_v17 = vpop.permute.xlu0 %5193  ;;  %v4951_v27 = vld [vmem:[#allocation4 + $0x1f0] sm:$0xff] }
 0x558   : > { %v5423_v35 = vmul.f32 %v5194_v17, %v4911_v31  ;;  %6934 = vrot.lane.b32.xlu1 %v6933_v23, %s7240_s9 }
 0x55a   : > { %v6938_v49 = vpack.i.bf16 %v5424_v41, %v5423_v35  ;;  %v5239_v19 = vpop.permute.xlu1 %5238 }
 0x55b   : > { %v5432_v20 = vmul.f32 %v5239_v19, %v4920_v63  ;;  %v5234_v58 = vpop.permute.xlu0 %5233 }
 0x55c   : > { %v5431_v3 = vmul.f32 %v5234_v58, %v4919_v53  ;;  %6939 = vrot.lane.b32.xlu0 %v6938_v49, %s7240_s9 }
 0x55e   : > { %v6943_v38 = vpack.i.bf16 %v5432_v20, %v5431_v3  ;;  %v5269_v36 = vpop.permute.xlu1 %5268 }
 0x55f   : > { %v5438_v45 = vmul.f32 %v5269_v36, %v4926_v1  ;;  %v5264_v40 = vpop.permute.xlu0 %5263 }
 0x560   : > { %v5437_v44 = vmul.f32 %v5264_v40, %v4925_v29  ;;  %6944 = vrot.lane.b32.xlu1 %v6943_v38, %s7240_s9 }
 0x562   : > { %v6948_v25 = vpack.i.bf16 %v5438_v45, %v5437_v44  ;;  %v5309_v2 = vpop.permute.xlu1 %5308 }
 0x563   : > { %v5446_v50 = vmul.f32 %v5309_v2, %v4934_v33  ;;  %v5304_v7 = vpop.permute.xlu0 %5303 }
 0x564   : > { %v5445_v61 = vmul.f32 %v5304_v7, %v4933_v39  ;;  %6949 = vrot.lane.b32.xlu0 %v6948_v25, %s7241_s18 }
 0x566   : > { %v6953_v13 = vpack.i.bf16 %v5446_v50, %v5445_v61  ;;  %v5279_v43 = vpop.permute.xlu1 %5278 }
 0x567   : > { %v5440_v56 = vmul.f32 %v5279_v43, %v4928_v51  ;;  %v5274_v28 = vpop.permute.xlu0 %5273  ;;  %v4890_v51 = vld [vmem:[#allocation4 + $0x8] sm:$0xff] }
 0x568   : > { %v5439_v6 = vmul.f32 %v5274_v28, %v4927_v54  ;;  %6954 = vrot.lane.b32.xlu1 %v6953_v13, %s7241_s18  ;;  %v4889_v54 = vld [vmem:[#allocation4] sm:$0xff] }
 0x569   : > { %v4897_v28 = vld [vmem:[#allocation4 + $0x40] sm:$0xff] }
 0x56a   : > { %v6958_v46 = vpack.i.bf16 %v5440_v56, %v5439_v6  ;;  %v5319_v11 = vpop.permute.xlu1 %5318  ;;  %v4898_v56 = vld [vmem:[#allocation4 + $0x48] sm:$0xff] }
 0x56b   : > { %v5448_v55 = vmul.f32 %v5319_v11, %v4936_v24  ;;  %v5314_v62 = vpop.permute.xlu0 %5313 }
 0x56c   : > { %v5447_v34 = vmul.f32 %v5314_v62, %v4935_v37  ;;  %6959 = vrot.lane.b32.xlu0 %v6958_v46, %s7241_s18 }
 0x56e   : > { %v6963_v4 = vpack.i.bf16 %v5448_v55, %v5447_v34  ;;  %v5349_v9 = vpop.permute.xlu1 %5348 }
 0x56f   : > { %v5454_v59 = vmul.f32 %v5349_v9, %v4942_v47  ;;  %v5344_v22 = vpop.permute.xlu0 %5343 }
 0x570   : > { %v5453_v12 = vmul.f32 %v5344_v22, %v4941_v60  ;;  %6964 = vrot.lane.b32.xlu1 %v6963_v4, %s7241_s18 }
 0x572   : > { %v6968_v21 = vpack.i.bf16 %v5454_v59, %v5453_v12  ;;  %v5389_v26 = vpop.permute.xlu1 %5388 }
 0x573   : > { %v5462_v8 = vmul.f32 %v5389_v26, %v4950_v32  ;;  %v5384_v57 = vpop.permute.xlu0 %5383 }
 0x574   : > { %v5461_v10 = vmul.f32 %v5384_v57, %v4949_v42  ;;  %6969 = vrot.lane.b32.xlu0 %v6968_v21, %s7242_s12 }
 0x576   : > { %v6973_v16 = vpack.i.bf16 %v5462_v8, %v5461_v10  ;;  %v5359_v14 = vpop.permute.xlu1 %5358 }
 0x577   : > { %v5456_v15 = vmul.f32 %v5359_v14, %v4944_v30  ;;  %v5354_v0 = vpop.permute.xlu0 %5353  ;;  %v4892_v30 = vld [vmem:[#allocation4 + $0x18] sm:$0xff] }
 0x578   : > { %v5455_v48 = vmul.f32 %v5354_v0, %v4943_v52  ;;  %6974 = vrot.lane.b32.xlu1 %v6973_v16, %s7242_s12  ;;  %v4891_v52 = vld [vmem:[#allocation4 + $0x10] sm:$0xff] }
 0x57a   : > { %v6978_v31 = vpack.i.bf16 %v5456_v15, %v5455_v48  ;;  %v5399_v23 = vpop.permute.xlu1 %5398 }
 0x57b   : > { %v5464_v18 = vmul.f32 %v5399_v23, %v4952_v5  ;;  %v5394_v41 = vpop.permute.xlu0 %5393 }
 0x57c   : > { %v5463_v17 = vmul.f32 %v5394_v41, %v4951_v27  ;;  %6979 = vrot.lane.b32.xlu0 %v6978_v31, %s7242_s12 }
 0x57e   : > { %v6983_v35 = vpack.i.bf16 %v5464_v18, %v5463_v17  ;;  %v5089_v63 = vpop.permute.xlu1 %5088 }
 0x57f   : > { %v5084_v53 = vpop.permute.xlu0 %5083  ;;  %v5402_v11 = vmul.f32 %v5089_v63, %v4890_v51 }
 0x580   : > { %6984 = vrot.lane.b32.xlu1 %v6983_v35, %s7242_s12  ;;  %v5401_v55 = vmul.f32 %v5084_v53, %v4889_v54 }
 0x582   : > { %v5129_v49 = vpop.permute.xlu1 %5128 }
 0x583   : > { %v5124_v19 = vpop.permute.xlu0 %5123  ;;  %v5410_v62 = vmul.f32 %v5129_v49, %v4898_v56 }
 0x584   : > { %v5409_v34 = vmul.f32 %v5124_v19, %v4897_v28  ;;  %v4900_v19 = vld [vmem:[#allocation4 + $0x58] sm:$0xff] }
 0x586   : > { %v9917_v20 = vpop.permute.xlu1 %5098 }
 0x587   : > { %v9919_v58 = vpop.permute.xlu0 %5093  ;;  %v5404_v35 = vmul.f32 %v9917_v20, %v4892_v30 }
 0x588   : > { %v5403_v63 = vmul.f32 %v9919_v58, %v4891_v52 }
 0x58a   : > { %v9921_v3 = vpop.permute.xlu1 %5138 }
 0x58b   : > { %v9923_v1 = vpop.permute.xlu0 %5133 }
 0x58e   : > { %v9927_v38 = vpop.permute.xlu1 %5108 }
 0x58f   : > { %v9925_v29 = vpop.permute.xlu0 %5103 }
 0x592   : > { %v9931_v45 = vpop.permute.xlu1 %5148 }
 0x593   : > { %v9929_v36 = vpop.permute.xlu0 %5143 }
 0x596   : > { %v9935_v44 = vpop.permute.xlu1 %5118 }
 0x597   : > { %v9933_v40 = vpop.permute.xlu0 %5113 }
 0x59a   : > { %v9939_v39 = vpop.permute.xlu1 %5158 }
 0x59b   : > { %v9937_v33 = vpop.permute.xlu0 %5153 }
 0x59e   : > { %v6875_v2 = vpop.permute.xlu1 %6874 }
 0x59f   : > { %v6870_v25 = vpop.permute.xlu0 %6869  ;;  %v6877_v47 = vunpack.i.h.bf16 %v6875_v2  ;;  %v6876_v60 = vunpack.i.l.bf16 %v6875_v2 }
 0x5a0   : > { %v6872_v6 = vunpack.i.h.bf16 %v6870_v25  ;;  %v6871_v24 = vunpack.i.l.bf16 %v6870_v25  ;;  %v4899_v25 = vld [vmem:[#allocation4 + $0x50] sm:$0xff] }
 0x5a1   : > { %v5666_v15 = vsel %vm5657_vm2, %v5409_v34, %v6876_v60  ;;  %v5667_v0 = vsel %vm5657_vm2, %v5410_v62, %v6877_v47 }
 0x5a2   : > { %v9941_v7 = vpop.permute.xlu1 %6884  ;;  %v5658_v12 = vsel %vm5657_vm2, %v5401_v55, %v6871_v24  ;;  %v5659_v32 = vsel %vm5657_vm2, %v5402_v11, %v6872_v6  ;;  %v5412_v24 = vmul.f32 %v9921_v3, %v4900_v19 }
 0x5a3   : > { %v6880_v50 = vpop.permute.xlu0 %6879  ;;  %v6887_v2 = vunpack.i.h.bf16 %v9941_v7 }
 0x5a4   : > { %v6882_v48 = vunpack.i.h.bf16 %v6880_v50  ;;  %v6881_v5 = vunpack.i.l.bf16 %v6880_v50  ;;  %v6886_v50 = vunpack.i.l.bf16 %v9941_v7 }
 0x5a5   : > { %v5669_v34 = vsel %vm5657_vm2, %v5412_v24, %v6887_v2 }
 0x5a6   : > { %v5660_v54 = vsel %vm5657_vm2, %v5403_v63, %v6881_v5 }
 0x5a7   : > { %v6890_v61 = vpop.permute.xlu0 %6889 }
 0x5a8   : > { %v6892_v37 = vunpack.i.h.bf16 %v6890_v61  ;;  %v6891_v46 = vunpack.i.l.bf16 %v6890_v61 }
 0x5aa   : > { %v6895_v13 = vpop.permute.xlu1 %6894  ;;  %v5675_v26 = vsel %vm5674_vm8, %v5658_v12, %v6891_v46  ;;  %v5676_v8 = vsel %vm5674_vm8, %v5659_v32, %v6892_v37  ;;  %v5411_v37 = vmul.f32 %v9923_v1, %v4899_v25 }
 0x5ab   : > { %v6897_v42 = vunpack.i.h.bf16 %v6895_v13  ;;  %v6896_v21 = vunpack.i.l.bf16 %v6895_v13  ;;  %v5661_v13 = vsel %vm5657_vm2, %v5404_v35, %v6882_v48  ;;  %v4895_v35 = vld [vmem:[#allocation4 + $0x30] sm:$0xff] }
 0x5ac   : > { %v5668_v62 = vsel %vm5657_vm2, %v5411_v37, %v6886_v50 }
 0x5ad   : > { %v5683_v41 = vsel %vm5674_vm8, %v5666_v15, %v6896_v21  ;;  %v5684_v17 = vsel %vm5674_vm8, %v5667_v0, %v6897_v42 }
 0x5ae   : > { %v6900_v43 = vpop.permute.xlu0 %6899 }
 0x5af   : > { %v6902_v23 = vunpack.i.h.bf16 %v6900_v43  ;;  %v6901_v18 = vunpack.i.l.bf16 %v6900_v43 }
 0x5b1   : > { %v5677_v58 = vsel %vm5674_vm8, %v5660_v54, %v6901_v18  ;;  %v5678_v56 = vsel %vm5674_vm8, %v5661_v13, %v6902_v23  ;;  %v5407_v54 = vmul.f32 %v9933_v40, %v4895_v35 }
 0x5b2   : > { %v6905_v4 = vpop.permute.xlu1 %6904 }
 0x5b3   : > { %v6907_v28 = vunpack.i.h.bf16 %v6905_v4  ;;  %v6906_v6 = vunpack.i.l.bf16 %v6905_v4 }
 0x5b5   : > { %v5686_v4 = vsel %vm5674_vm8, %v5669_v34, %v6907_v28 }
 0x5b6   : > { %v6910_v9 = vpop.permute.xlu0 %6909 }
 0x5b7   : > { %v6912_v59 = vunpack.i.h.bf16 %v6910_v9  ;;  %v6911_v22 = vunpack.i.l.bf16 %v6910_v9  ;;  %v5685_v9 = vsel %vm5674_vm8, %v5668_v62, %v6906_v6 }
 0x5b9   : > { %v5692_v57 = vsel %vm5691_vm9, %v5675_v26, %v6911_v22  ;;  %v5693_v10 = vsel %vm5691_vm9, %v5676_v8, %v6912_v59  ;;  %v4894_v26 = vld [vmem:[#allocation4 + $0x28] sm:$0xff]  ;;  %v4893_v8 = vld [vmem:[#allocation4 + $0x20] sm:$0xff] }
 0x5ba   : > { %v6915_v16 = vpop.permute.xlu1 %6914  ;;  %v5708_v14 = vpack.c.bf16 %v5693_v10, %v5692_v57  ;;  %v5405_v15 = vmul.f32 %v9925_v29, %v4893_v8 }
 0x5bb   : > { %v6917_v27 = vunpack.i.h.bf16 %v6915_v16  ;;  %v6916_v31 = vunpack.i.l.bf16 %v6915_v16  ;;  %v4902_v16 = vld [vmem:[#allocation4 + $0x68] sm:$0xff] }
 0x5bc   : > { %6424 = vmatprep.mubr.bf16.mxu0 %v5708_v14  ;;  %v5406_v14 = vmul.f32 %v9927_v38, %v4894_v26  ;;  %v5414_v5 = vmul.f32 %v9931_v45, %v4902_v16 }
 0x5bd   : > { %v5700_v53 = vsel %vm5691_vm9, %v5683_v41, %v6916_v31  ;;  %v5701_v49 = vsel %vm5691_vm9, %v5684_v17, %v6917_v27  ;;  %v4901_v27 = vld [vmem:[#allocation4 + $0x60] sm:$0xff]  ;;  %v4896_v31 = vld [vmem:[#allocation4 + $0x38] sm:$0xff] }
 0x5be   : > { %v6920_v61 = vpop.permute.xlu0 %6919  ;;  %v5712_v51 = vpack.c.bf16 %v5701_v49, %v5700_v53  ;;  %v5413_v45 = vmul.f32 %v9929_v36, %v4901_v27  ;;  %v5408_v50 = vmul.f32 %v9935_v44, %v4896_v31 }
 0x5bf   : > { %v6922_v43 = vunpack.i.h.bf16 %v6920_v61  ;;  %v6921_v20 = vunpack.i.l.bf16 %v6920_v61 }
 0x5c0   : > { %6432 = vmatprep.mubr.bf16.mxu1 %v5712_v51 }
 0x5c1   : > { %v5694_v7 = vsel %vm5691_vm9, %v5677_v58, %v6921_v20  ;;  %v5695_v46 = vsel %vm5691_vm9, %v5678_v56, %v6922_v43 }
 0x5c2   : > { %v6925_v11 = vpop.permute.xlu1 %6924  ;;  %v5709_v55 = vpack.c.bf16 %v5695_v46, %v5694_v7 }
 0x5c3   : > { %v6927_v47 = vunpack.i.h.bf16 %v6925_v11  ;;  %v6926_v60 = vunpack.i.l.bf16 %v6925_v11  ;;  %v4904_v11 = vld [vmem:[#allocation4 + $0x78] sm:$0xff] }
 0x5c4   : > { %6425 = vmatmul.mubr.bf16.vlgmr.msra.gmra.mrb[0].mxu0 %v5709_v55  ;;  %v4903_v55 = vld [vmem:[#allocation4 + $0x70] sm:$0xff] }
 0x5c5   : > { %v5702_v3 = vsel %vm5691_vm9, %v5685_v9, %v6926_v60  ;;  %v5703_v1 = vsel %vm5691_vm9, %v5686_v4, %v6927_v47  ;;  %v5415_v26 = vmul.f32 %v9937_v33, %v4903_v55 }
 0x5c6   : > { %v5713_v59 = vpack.c.bf16 %v5703_v1, %v5702_v3  ;;  %v6930_v22 = vpop.permute.xlu0 %6929 }
 0x5c7   : > { %v6932_v57 = vunpack.i.h.bf16 %v6930_v22  ;;  %v6931_v10 = vunpack.i.l.bf16 %v6930_v22 }
 0x5c8   : > { %6433 = vmatmul.mubr.bf16.vlgmr.msra.gmra.mrb[0].mxu1 %v5713_v59 }
 0x5c9   : > { %v5662_v23 = vsel %vm5657_vm2, %v5405_v15, %v6931_v10  ;;  %v5663_v18 = vsel %vm5657_vm2, %v5406_v14, %v6932_v57 }
 0x5ca   : > { %v6935_v12 = vpop.permute.xlu1 %6934 }
 0x5cb   : > { %v6937_v63 = vunpack.i.h.bf16 %v6935_v12  ;;  %v6936_v53 = vunpack.i.l.bf16 %v6935_v12 }
 0x5cd   : > { %v5670_v56 = vsel %vm5657_vm2, %v5413_v45, %v6936_v53  ;;  %v5671_v28 = vsel %vm5657_vm2, %v5414_v5, %v6937_v63 }
 0x5ce   : > { %v6940_v32 = vpop.permute.xlu0 %6939 }
 0x5cf   : > { %v6942_v13 = vunpack.i.h.bf16 %v6940_v32  ;;  %v6941_v43 = vunpack.i.l.bf16 %v6940_v32 }
 0x5d1   : > { %v5664_v62 = vsel %vm5657_vm2, %v5407_v54, %v6941_v43  ;;  %v5665_v34 = vsel %vm5657_vm2, %v5408_v50, %v6942_v13 }
 0x5d2   : > { %v9973_v42 = vpop.permute.xlu1 %6944 }
 0x5d3   : > { %v6947_v9 = vunpack.i.h.bf16 %v9973_v42  ;;  %v6946_v4 = vunpack.i.l.bf16 %v9973_v42 }
 0x5d6   : > { %v6950_v21 = vpop.permute.xlu0 %6949 }
 0x5d7   : > { %v6952_v0 = vunpack.i.h.bf16 %v6950_v21  ;;  %v6951_v48 = vunpack.i.l.bf16 %v6950_v21  ;;  %v5416_v21 = vmul.f32 %v9939_v39, %v4904_v11 }
 0x5d9   : > { %v5679_v38 = vsel %vm5674_vm8, %v5662_v23, %v6951_v48  ;;  %v5680_v29 = vsel %vm5674_vm8, %v5663_v18, %v6952_v0 }
 0x5da   : > { %v6955_v30 = vpop.permute.xlu1 %6954 }
 0x5db   : > { %v6957_v25 = vunpack.i.h.bf16 %v6955_v30  ;;  %v6956_v2 = vunpack.i.l.bf16 %v6955_v30  ;;  %v5672_v30 = vsel %vm5657_vm2, %v5415_v26, %v6946_v4 }
 0x5dd   : > { %v5687_v36 = vsel %vm5674_vm8, %v5670_v56, %v6956_v2  ;;  %v5688_v44 = vsel %vm5674_vm8, %v5671_v28, %v6957_v25 }
 0x5de   : > { %v6960_v52 = vpop.permute.xlu0 %6959 }
 0x5df   : > { %v6962_v37 = vunpack.i.h.bf16 %v6960_v52  ;;  %v6961_v7 = vunpack.i.l.bf16 %v6960_v52  ;;  %v5673_v52 = vsel %vm5657_vm2, %v5416_v21, %v6947_v9 }
 0x5e1   : > { %v5681_v59 = vsel %vm5674_vm8, %v5664_v62, %v6961_v7  ;;  %v5682_v22 = vsel %vm5674_vm8, %v5665_v34, %v6962_v37 }
 0x5e2   : > { %v6965_v41 = vpop.permute.xlu1 %6964 }
 0x5e3   : > { %v6967_v12 = vunpack.i.h.bf16 %v6965_v41  ;;  %v6966_v32 = vunpack.i.l.bf16 %v6965_v41 }
 0x5e5   : > { %v5689_v39 = vsel %vm5674_vm8, %v5672_v30, %v6966_v32  ;;  %v5690_v33 = vsel %vm5674_vm8, %v5673_v52, %v6967_v12 }
 0x5e6   : > { %v6970_v17 = vpop.permute.xlu0 %6969 }
 0x5e7   : > { %v6972_v49 = vunpack.i.h.bf16 %v6970_v17  ;;  %v6971_v19 = vunpack.i.l.bf16 %v6970_v17 }
 0x5e9   : > { %v5696_v61 = vsel %vm5691_vm9, %v5679_v38, %v6971_v19  ;;  %v5697_v51 = vsel %vm5691_vm9, %v5680_v29, %v6972_v49 }
 0x5ea   : > { %v6975_v20 = vpop.permute.xlu1 %6974  ;;  %v5710_v58 = vpack.c.bf16 %v5697_v51, %v5696_v61 }
 0x5eb   : > { %v6977_v6 = vunpack.i.h.bf16 %v6975_v20  ;;  %v6976_v24 = vunpack.i.l.bf16 %v6975_v20 }
 0x5ec   : > { %6428 = vmatprep.mubr.bf16.mxu0 %v5710_v58 }
 0x5ed   : > { %v5704_v46 = vsel %vm5691_vm9, %v5687_v36, %v6976_v24  ;;  %v5705_v40 = vsel %vm5691_vm9, %v5688_v44, %v6977_v6 }
 0x5ee   : > { %v6980_v47 = vpop.permute.xlu0 %6979  ;;  %v5714_v60 = vpack.c.bf16 %v5705_v40, %v5704_v46 }
 0x5ef   : > { %v6982_v3 = vunpack.i.h.bf16 %v6980_v47  ;;  %v6981_v1 = vunpack.i.l.bf16 %v6980_v47 }
 0x5f0   : > { %6436 = vmatprep.mubr.bf16.mxu1 %v5714_v60 }
 0x5f1   : > { %v5698_v8 = vsel %vm5691_vm9, %v5681_v59, %v6981_v1  ;;  %v5699_v57 = vsel %vm5691_vm9, %v5682_v22, %v6982_v3 }
 0x5f2   : > { %v6985_v10 = vpop.permute.xlu1 %6984  ;;  %v5711_v42 = vpack.c.bf16 %v5699_v57, %v5698_v8 }
 0x5f3   : > { %v6987_v16 = vunpack.i.h.bf16 %v6985_v10  ;;  %v6986_v14 = vunpack.i.l.bf16 %v6985_v10 }
 0x5f4   : > { %6429 = vmatmul.mubr.bf16.gmra.mrb[4].mxu0 %v5711_v42 }
 0x5f5   : > { %v5706_v15 = vsel %vm5691_vm9, %v5689_v39, %v6986_v14  ;;  %v5707_v0 = vsel %vm5691_vm9, %v5690_v33, %v6987_v16 }
 0x5f6   : > { %v5715_v48 = vpack.c.bf16 %v5707_v0, %v5706_v15 }
 0x5f8   : > { %6437 = vmatmul.mubr.bf16.gmra.mrb[4].mxu1 %v5715_v48 }
 0x697   : > { %v6426_v5 = vpop.f32.mrb[0].mxu0 }
 0x698   : > { %5879 = vst [vmem:[%s7458_s22 + $0x10] sm:$0xff] %v6426_v5  ;;  %v5814_v27 = vpop.f32.mrb[1].mxu0 }
 0x699   : > { %5877 = vst [vmem:[%s7458_s22] sm:$0xff] %v5814_v27  ;;  %v6427_v31 = vpop.f32.mrb[2].mxu0 }
 0x69a   : > { %5880 = vst [vmem:[%s7458_s22 + $0x18] sm:$0xff] %v6427_v31  ;;  %v5817_v23 = vpop.f32.mrb[3].mxu0 }
 0x69b   : > { %5878 = vst [vmem:[%s7458_s22 + $0x8] sm:$0xff] %v5817_v23  ;;  %v6434_v18 = vpop.f32.mrb[0].mxu1 }
 0x69c   : > { %5887 = vst [vmem:[%s7458_s22 + $0x50] sm:$0xff] %v6434_v18  ;;  %v5846_v41 = vpop.f32.mrb[1].mxu1 }
 0x69d   : > { %5885 = vst [vmem:[%s7458_s22 + $0x40] sm:$0xff] %v5846_v41  ;;  %v6435_v17 = vpop.f32.mrb[2].mxu1 }
 0x69e   : > { %5888 = vst [vmem:[%s7458_s22 + $0x58] sm:$0xff] %v6435_v17  ;;  %v5849_v35 = vpop.f32.mrb[3].mxu1 }
 0x69f   : > { %5886 = vst [vmem:[%s7458_s22 + $0x48] sm:$0xff] %v5849_v35 }
 0x6c7   : > { %v6430_v63 = vpop.f32.mrb[4].mxu0 }
 0x6c8   : > { %5883 = vst [vmem:[%s7458_s22 + $0x30] sm:$0xff] %v6430_v63  ;;  %v5830_v53 = vpop.f32.mrb[5].mxu0 }
 0x6c9   : > { %5881 = vst [vmem:[%s7458_s22 + $0x20] sm:$0xff] %v5830_v53  ;;  %v6431_v49 = vpop.f32.mrb[6].mxu0 }
 0x6ca   : > { %5884 = vst [vmem:[%s7458_s22 + $0x38] sm:$0xff] %v6431_v49  ;;  %v5833_v19 = vpop.f32.mrb[7].mxu0 }
 0x6cb   : > { %5882 = vst [vmem:[%s7458_s22 + $0x28] sm:$0xff] %v5833_v19  ;;  %v6438_v38 = vpop.f32.mrb[4].mxu1 }
 0x6cc   : > { %5891 = vst [vmem:[%s7458_s22 + $0x70] sm:$0xff] %v6438_v38  ;;  %v5862_v29 = vpop.f32.mrb[5].mxu1 }
 0x6cd   : > { %5889 = vst [vmem:[%s7458_s22 + $0x60] sm:$0xff] %v5862_v29  ;;  %v6439_v25 = vpop.f32.mrb[6].mxu1 }
 0x6ce   : > { %5892 = vst [vmem:[%s7458_s22 + $0x78] sm:$0xff] %v6439_v25  ;;  %v5865_v2 = vpop.f32.mrb[7].mxu1 }
 0x6cf   : > { %5890 = vst [vmem:[%s7458_s22 + $0x68] sm:$0xff] %v5865_v2 }
 0x6d0 PF: > { %s6147_s13 = sshll.u32 %s7214_s19, 4  ;;  %s6148_s14 = sshll.u32 %s7218_s20, 5 }
 0x6d1   : > { %s5909_s25 = sshll.u32 %s7458_s22, 4  ;;  %s5906_s26 = sadd.s32 %s6148_s14, %s6147_s13  ;;  %s10028_s25 = int_to_ptr.vmem [resolvable:$true] %s5909_s25 }
 0x6d2   : > { %s6149_s6 = sshll.u32 %s5906_s26, 7  ;;  %s5894_s0 = scalar_lea.sflag [#allocation7], %s7439_s29 }
 0x6d3   : > { %s10033_s30 = scalar_lea.hbm %s10097_s4, %s6149_s6  ;;  %s7124_s28 = scalar_lea.vmem %s10028_s25, 2048 }
 0x6d4   : > { %p7125_p8 = scmp.ne.s32.totalorder %s10028_s25, %s7124_s28  ;;  %s7243_s19 = smov [#allocation6]  }
 0x6d5   : > { %s7128_s20 = sshll.u32 %s7243_s19, 4  ;;  %s7129_s20 = int_to_ptr.vmem [resolvable:$false] %s7128_s20 }
 0x6d6   : > { %p7126_p9 = pnand %p7125_p8, %p7338_p7  ;;  %s7130_s22 = scalar_lea.vmem %s7129_s20, 4096 }
 0x6d7   : > { %p7131_p12 = scmp.lt.s32.totalorder %s10028_s25, %s7129_s20  ;;  %p7132_p13 = scmp.lt.s32.totalorder %s7130_s22, %s7124_s28 }
 0x6d8   : > { %p7127_p11 = pneg %p7126_p9 }
 0x6d9   : > { %p7133_p0 = por %p7132_p13, %p7131_p12 }
 0x6db   : > { %p7134_p1 = pnand %p7133_p0, %p7127_p11 }
 0x6dd   : > { %7137 = shalt.err (!%p7134_p1)
}
 0x6de   : > { %s7138_s10 = scalar_lea.hbm %s10033_s30, 2048  ;;  %s7142_s27 = scalar_lea.hbm %s10097_s4, 8192 }
 0x6df   : > { %p7139_p2 = scmp.ne.s32.totalorder %s10033_s30, %s7138_s10  ;;  %p7143_p5 = scmp.lt.u32.totalorder %s10033_s30, %s10097_s4 }
 0x6e0   : > { %p7144_p6 = scmp.lt.u32.totalorder %s7142_s27, %s7138_s10  ;;  %p7146_p9 = scmp.lt.u32.totalorder %s7138_s10, %s10033_s30 }
 0x6e1   : > { %p7140_p3 = pnand %p7139_p2, %p7338_p7 }
 0x6e2   : > { %p7145_p8 = por %p7144_p6, %p7143_p5 }
 0x6e3   : > { %p7141_p4 = pneg %p7140_p3 }
 0x6e4   : > { %p7147_p11 = por %p7146_p9, %p7145_p8 }
 0x6e6   : > { %p7148_p12 = pnand %p7147_p11, %p7141_p4 }
 0x6e8   : > { %7151 = shalt.err (!%p7148_p12)
}
 0x6e9   : > { %s7244_s14 = smov 128   ;;  %s7245_s26 = smov 8  }
 0x6ea   : > { %6464 = dma.vmem_to_hbm [thread:$0]  (%p7338_p7), %s10028_s25, 2048, %s10033_s30, %s5894_s0, %s7244_s14, %s7244_s14, %s7245_s26  }
 0x6eb PF: > { %p6470_p13 = scmp.ge.s32.totalorder %s7234_s24, 2  ;;  %s5924_s6 = sand.u32 1, %s7198_s15  }
 0x6ec   : > { %s5925_s8 = scalar_lea.sflag [#allocation7], %s5924_s6 }
 0x6ed   : > { %p6467_p0 = pnand %p6470_p13, %p7347_p10 }
 0x6ef   : > { %7193 = dma.done.wait (!%p6467_p0), %s5925_s8, 2048  }
 0x6f0   : > { %7195 = vsyncadd (!%p6467_p0), %s5925_s8, 4294965248  ;;  %s17_s24 = sadd.s32 1, %s7234_s24   ;;  %s10600_s19 = sld [smem:[#allocation9_spill]] }
 0x6f1   : > { %p14_p1 = scmp.ge.s32.totalorder %s17_s24, 10   ;;  %s10601_s20 = sld [smem:[#allocation10_spill]] }
 0x6f2   : > { %s10602_s5 = sld [smem:[#allocation11_spill]]  ;;  %s10603_s22 = sld [smem:[#allocation12_spill]] }
 0x6f3   : > { %s10604_s23 = sld [smem:[#allocation13_spill]]  ;;  %s10605_s15 = smov %s7202_s16 }
 0x6f4   : > { %s10606_s16 = smov %s7206_s17  ;;  %s10607_s17 = smov %s7357_s11 }
 0x6f5   : > { %s10608_s18 = smov %s7222_s21  ;;  %16 = sbr.rel (!%p14_p1) target bundleno = 8 (0x8), region = 135 }
 0x6f8   : > { %s10609_s21 = smov %s10602_s5 }
 0x6fc   :  { %5930 = vsyncpa [#allocation7], 1 }
 0x6fd   :  { %5932 = vsyncpa [#allocation7 + $0x1], 1 }

</bundles_post_ra>
